<compile_context>
chip_gen: v7x
topology: tpu7x:2x2x1
jax: 0.10.0
libtpu: 0.0.40
codegen_flags: <defaults>
</compile_context>

<pallas_src>
import functools

import jax
import jax.numpy as jnp
from jax.experimental import pallas as pl
from jax.experimental.pallas import tpu as pltpu

BN_EPS = 1e-5
VMEM_LIMIT = 48 * 1024 * 1024  # fits comfortably under v7x's 64 MiB physical


def _round_up(x, m):
    return (x + m - 1) // m * m


def _choose_m_tile(mp):
    tm = min(512, mp)
    while mp % tm:
        tm //= 2
    return tm


# ----------------------------- Pallas kernels ------------------------------

def _matmul_affine_kernel(*refs, apply_relu, has_residual):
    """K-tiled matmul; epilogue = BN affine (+residual) (+ReLU), bf16 out."""
    if has_residual:
        a_ref, b_ref, scale_ref, bias_ref, res_ref, o_ref, acc_ref = refs
    else:
        a_ref, b_ref, scale_ref, bias_ref, o_ref, acc_ref = refs
        res_ref = None

    k = pl.program_id(1)

    @pl.when(k == 0)
    def _():
        acc_ref[...] = jnp.zeros_like(acc_ref)

    acc_ref[...] += jnp.dot(a_ref[...], b_ref[...],
                            preferred_element_type=jnp.float32)

    @pl.when(k == pl.num_programs(1) - 1)
    def _():
        out = acc_ref[...] * scale_ref[...] + bias_ref[...]
        if has_residual:
            out = out + res_ref[...].astype(jnp.float32)
        if apply_relu:
            out = jnp.maximum(out, 0.0)
        o_ref[...] = out.astype(o_ref.dtype)


def matmul_affine(a, b, scale, bias, *, relu=False, residual=None,
                  out_dtype=jnp.bfloat16):
    """(M,K)@(K,N) * scale[N] + bias[N] (+ residual[M,N]) (+ ReLU).

    bf16 MXU inputs, f32 accumulation.  Grid = (M tiles, K tiles); output is
    padded to a lane-dense (multiple-of-128) column count and sliced back.
    """
    M, K = a.shape
    K2, N = b.shape
    assert K == K2

    kt = 512 if K >= 2048 else (256 if K > 128 else 128)
    Kp = _round_up(K, kt)
    Np = _round_up(N, 128)
    Mp = _round_up(M, 128) if M > 128 else _round_up(M, 8)
    tm = _choose_m_tile(Mp)

    a = a.astype(jnp.bfloat16)
    b = b.astype(jnp.bfloat16)
    if (Mp, Kp) != (M, K):
        a = jnp.pad(a, ((0, Mp - M), (0, Kp - K)))
    if (Kp, Np) != (K, N):
        b = jnp.pad(b, ((0, Kp - K), (0, Np - N)))
    scale = jnp.pad(scale.astype(jnp.float32), (0, Np - N)).reshape(1, Np)
    bias = jnp.pad(bias.astype(jnp.float32), (0, Np - N)).reshape(1, Np)

    inputs = [a, b, scale, bias]
    in_specs = [
        pl.BlockSpec((tm, kt), lambda m, k: (m, k)),
        pl.BlockSpec((kt, Np), lambda m, k: (k, 0)),
        pl.BlockSpec((1, Np), lambda m, k: (0, 0)),
        pl.BlockSpec((1, Np), lambda m, k: (0, 0)),
    ]

    has_res = residual is not None
    if has_res:
        r = residual.astype(jnp.bfloat16)
        if r.shape != (Mp, Np):
            r = jnp.pad(r, ((0, Mp - r.shape[0]), (0, Np - r.shape[1])))
        inputs.append(r)
        in_specs.append(pl.BlockSpec((tm, Np), lambda m, k: (m, 0)))

    kernel = functools.partial(_matmul_affine_kernel,
                               apply_relu=relu, has_residual=has_res)
    out = pl.pallas_call(
        kernel,
        out_shape=jax.ShapeDtypeStruct((Mp, Np), out_dtype),
        grid_spec=pltpu.PrefetchScalarGridSpec(
            num_scalar_prefetch=0,
            grid=(Mp // tm, Kp // kt),
            in_specs=in_specs,
            out_specs=pl.BlockSpec((tm, Np), lambda m, k: (m, 0)),
            scratch_shapes=[pltpu.VMEM((tm, Np), jnp.float32)],
        ),
        compiler_params=pltpu.CompilerParams(
            dimension_semantics=("parallel", "arbitrary"),
            vmem_limit_bytes=VMEM_LIMIT),
    )(*inputs)
    return out[:M, :N]


def _max_taps_kernel(*refs):
    """Elementwise max over kh*kw shifted views (row-tiled)."""
    o_ref = refs[-1]
    result = refs[0][...]
    for r in refs[1:-1]:
        result = jnp.maximum(result, r[...])
    o_ref[...] = result


def maxpool_3x3_s2_p1(x):
    """MaxPool2d(kernel=3, stride=2, padding=1) on NHWC input (bf16)."""
    N, H, W, C = x.shape
    k, s, pad = 3, 2, 1
    OH = (H + 2 * pad - k) // s + 1
    OW = (W + 2 * pad - k) // s + 1
    xp = jnp.pad(x, ((0, 0), (pad, pad), (pad, pad), (0, 0)),
                 constant_values=-jnp.inf)
    M = N * OH * OW
    views = []
    for i in range(k):
        for j in range(k):
            views.append(
                xp[:, i:i + s * OH:s, j:j + s * OW:s, :].reshape(M, C))
    Mp = _round_up(M, 8)
    if Mp != M:
        views = [jnp.pad(v, ((0, Mp - M), (0, 0))) for v in views]
    tm = _choose_m_tile(Mp)
    out = pl.pallas_call(
        _max_taps_kernel,
        out_shape=jax.ShapeDtypeStruct((Mp, C), x.dtype),
        grid=(Mp // tm,),
        in_specs=[pl.BlockSpec((tm, C), lambda m: (m, 0)) for _ in views],
        out_specs=pl.BlockSpec((tm, C), lambda m: (m, 0)),
        compiler_params=pltpu.CompilerParams(
            dimension_semantics=("parallel",),
            vmem_limit_bytes=VMEM_LIMIT),
    )(*views)
    return out[:M].reshape(N, OH, OW, C)


def _head_kernel(x_ref, w1_ref, b1_ref, w2_ref, b2_ref, o_ref):
    """Fused: global avg pool -> fc1 -> ReLU -> (Dropout=id) -> fc2."""
    pooled = jnp.mean(x_ref[...].astype(jnp.float32), axis=1)      # (Nb, C)
    h = jnp.dot(pooled.astype(jnp.bfloat16), w1_ref[...],
                preferred_element_type=jnp.float32) + b1_ref[...]
    h = jnp.maximum(h, 0.0)
    # TODO(synk): Dropout(p=0.4) is identity in eval mode; training RNG
    #             masking not implemented.
    y = jnp.dot(h.astype(jnp.bfloat16), w2_ref[...],
                preferred_element_type=jnp.float32) + b2_ref[...]
    o_ref[...] = y


def fc_head(x, fc1_w, fc1_b, fc2_w, fc2_b):
    """AdaptiveAvgPool2d((1,1)) + flatten + fc head, one Pallas kernel."""
    N, H, W, C = x.shape
    n_out = fc2_w.shape[0]
    Nb = max(8, _round_up(N, 8))
    H1, H2 = 128, 128   # lane-dense padded fc widths (64 -> 128, 2 -> 128)

    x2 = jnp.pad(x.reshape(N, H * W, C).astype(jnp.bfloat16),
                 ((0, Nb - N), (0, 0), (0, 0)))
    w1 = jnp.pad(fc1_w.T.astype(jnp.bfloat16),
                 ((0, 0), (0, H1 - fc1_w.shape[0])))                # (C, 128)
    b1 = jnp.pad(fc1_b.astype(jnp.float32),
                 (0, H1 - fc1_b.shape[0])).reshape(1, H1)
    w2 = jnp.pad(fc2_w.T.astype(jnp.bfloat16),
                 ((0, H1 - fc2_w.shape[1]), (0, H2 - fc2_w.shape[0])))
    b2 = jnp.pad(fc2_b.astype(jnp.float32),
                 (0, H2 - fc2_b.shape[0])).reshape(1, H2)

    out = pl.pallas_call(
        _head_kernel,
        out_shape=jax.ShapeDtypeStruct((Nb, H2), jnp.float32),
        grid=(1,),
        in_specs=[
            pl.BlockSpec((Nb, H * W, C), lambda i: (0, 0, 0)),
            pl.BlockSpec((C, H1), lambda i: (0, 0)),
            pl.BlockSpec((1, H1), lambda i: (0, 0)),
            pl.BlockSpec((H1, H2), lambda i: (0, 0)),
            pl.BlockSpec((1, H2), lambda i: (0, 0)),
        ],
        out_specs=pl.BlockSpec((Nb, H2), lambda i: (0, 0)),
        compiler_params=pltpu.CompilerParams(vmem_limit_bytes=VMEM_LIMIT),
    )(x2, w1, b1, w2, b2)
    return out[:N, :n_out]


# ------------------------------- glue layers -------------------------------

def im2col(x, kh, kw, stride, pad):
    """NHWC (bf16) -> (N*OH*OW, kh*kw*Cin) patch matrix (data movement only).
    TODO(synk): replace with implicit-GEMM shifted-window conv to avoid the
                kh*kw HBM expansion."""
    N, H, W, C = x.shape
    OH = (H + 2 * pad - kh) // stride + 1
    OW = (W + 2 * pad - kw) // stride + 1
    xp = jnp.pad(x, ((0, 0), (pad, pad), (pad, pad), (0, 0)))
    cols = []
    for i in range(kh):
        for j in range(kw):
            cols.append(xp[:, i:i + stride * OH:stride,
                           j:j + stride * OW:stride, :])
    patches = jnp.stack(cols, axis=3)  # (N, OH, OW, kh*kw, C)
    return patches.reshape(N * OH * OW, kh * kw * C), OH, OW


def conv_bn(x, w, bn, stride, pad, relu, residual=None):
    """Conv2d(bias=False) + BatchNorm (eval) [+ residual] [+ ReLU]."""
    Cout, Cin, kh, kw = w.shape          # PyTorch OIHW weight layout
    N = x.shape[0]
    if kh == 1 and kw == 1 and pad == 0:
        xs = x[:, ::stride, ::stride, :] if stride > 1 else x
        OH, OW = xs.shape[1], xs.shape[2]
        patches = xs.reshape(N * OH * OW, Cin)
    else:
        patches, OH, OW = im2col(x, kh, kw, stride, pad)
    wm = jnp.transpose(w, (2, 3, 1, 0)).reshape(kh * kw * Cin, Cout)
    scale = bn["gamma"] / jnp.sqrt(bn["var"] + BN_EPS)
    bias = bn["beta"] - bn["mean"] * scale
    out = matmul_affine(patches, wm, scale, bias, relu=relu,
                        residual=residual)
    return out.reshape(N, OH, OW, Cout)


def basic_block(x, p, stride):
    if "down_w" in p:
        identity = conv_bn(x, p["down_w"], p["down_bn"], stride, 0,
                           relu=False)
    else:
        identity = x
    out = conv_bn(x, p["conv1_w"], p["bn1"], stride, 1, relu=True)
    res2d = identity.reshape(-1, out.shape[-1])
    # conv2 + bn2 + residual add + ReLU fused in one matmul epilogue.
    out = conv_bn(out, p["conv2_w"], p["bn2"], 1, 1, relu=True,
                  residual=res2d)
    return out


def resnet18_binary_forward(params, x_nchw):
    x = jnp.transpose(x_nchw, (0, 2, 3, 1)).astype(jnp.bfloat16)  # NCHW->NHWC
    # stem: conv7x7 s2 + BN + ReLU, then maxpool 3x3 s2
    x = conv_bn(x, params["conv1_w"], params["bn1"], stride=2, pad=3,
                relu=True)
    x = maxpool_3x3_s2_p1(x)
    # residual stages
    for name, stride in (("layer1", 1), ("layer2", 2),
                         ("layer3", 2), ("layer4", 2)):
        blocks = params[name]
        x = basic_block(x, blocks[0], stride)
        x = basic_block(x, blocks[1], 1)
    # fused avgpool + fc head
    return fc_head(x, params["fc1_w"], params["fc1_b"],
                   params["fc2_w"], params["fc2_b"])


# ------------------------------ initialization ------------------------------

def _bn_params(c):
    return {"gamma": jnp.ones((c,), jnp.float32),
            "beta": jnp.zeros((c,), jnp.float32),
            "mean": jnp.zeros((c,), jnp.float32),
            "var": jnp.ones((c,), jnp.float32)}


def init_params(key):
    keys = iter(jax.random.split(key, 64))

    def conv_w(cout, cin, kh, kw):
        fan_in = cin * kh * kw
        std = (2.0 / fan_in) ** 0.5  # kaiming-normal, as in torchvision
        return std * jax.random.normal(next(keys), (cout, cin, kh, kw),
                                       jnp.float32)

    def linear(cout, cin):
        bound = 1.0 / (cin ** 0.5)
        w = jax.random.uniform(next(keys), (cout, cin), jnp.float32,
                               -bound, bound)
        b = jax.random.uniform(next(keys), (cout,), jnp.float32, -bound,
                               bound)
        return w, b

    params = {"conv1_w": conv_w(64, 3, 7, 7), "bn1": _bn_params(64)}

    def block(cin, cout, downsample):
        p = {"conv1_w": conv_w(cout, cin, 3, 3), "bn1": _bn_params(cout),
             "conv2_w": conv_w(cout, cout, 3, 3), "bn2": _bn_params(cout)}
        if downsample:
            p["down_w"] = conv_w(cout, cin, 1, 1)
            p["down_bn"] = _bn_params(cout)
        return p

    stages = [(64, 64, False), (64, 128, True), (128, 256, True),
              (256, 512, True)]
    for idx, (cin, cout, down) in enumerate(stages, start=1):
        params[f"layer{idx}"] = [block(cin, cout, down),
                                 block(cout, cout, False)]

    params["fc1_w"], params["fc1_b"] = linear(64, 512)
    params["fc2_w"], params["fc2_b"] = linear(2, 64)
    return params


if __name__ == "__main__":
    key = jax.random.PRNGKey(0)
    pkey, xkey = jax.random.split(key)
    params = init_params(pkey)
    # PyTorch-convention NCHW input: batch=2, 3 channels, 32x32 spatial
    x = jax.random.normal(xkey, (2, 3, 32, 32), jnp.float32)

    fwd = jax.jit(functools.partial(resnet18_binary_forward, params))
    out = fwd(x)
    jax.block_until_ready(out)
    assert out.shape == (2, 2) and out.dtype == jnp.float32
    print("KERNEL_OK")
</pallas_src>

<mosaic_0001>
module attributes {stable_mosaic.version = 11 : i64} {
  func.func @_matmul_affine_kernel(%arg0: i32, %arg1: i32, %arg2: memref<512x256xbf16, #tpu.memory_space<vmem>>, %arg3: memref<256x128xbf16, #tpu.memory_space<vmem>>, %arg4: memref<1x128xf32, #tpu.memory_space<vmem>>, %arg5: memref<1x128xf32, #tpu.memory_space<vmem>>, %arg6: memref<512x128xbf16, #tpu.memory_space<vmem>>, %arg7: memref<512x128xf32, #tpu.memory_space<vmem>>) attributes {dimension_semantics = [#tpu.dimension_semantics<parallel>, #tpu.dimension_semantics<arbitrary>], iteration_bounds = array<i64: 1, 1>, scalar_prefetch = 0 : i64, scratch_operands = 1 : i64, tpu.core_type = #tpu.core_type<tc>, window_params = [{transform_indices = @transform_0, window_bounds = array<i64: 512, 256>}, {transform_indices = @transform_1, window_bounds = array<i64: 256, 128>}, {pipeline_mode = #tpu.pipeline_mode<synchronous>, transform_indices = @transform_2, window_bounds = array<i64: 1, 128>}, {pipeline_mode = #tpu.pipeline_mode<synchronous>, transform_indices = @transform_3, window_bounds = array<i64: 1, 128>}, {transform_indices = @transform_4, window_bounds = array<i64: 512, 128>}]} {
    %c0_i32 = arith.constant 0 : i32
    %0 = arith.cmpi eq, %arg1, %c0_i32 : i32
    %1 = arith.extui %0 : i1 to i32
    %c0_i32_0 = arith.constant 0 : i32
    %2 = arith.cmpi ne, %1, %c0_i32_0 : i32
    scf.if %2 {
      %cst_10 = arith.constant 0.000000e+00 : f32
      %12 = vector.broadcast %cst_10 : f32 to vector<512x128xf32>
      %c0_11 = arith.constant 0 : index
      %c0_12 = arith.constant 0 : index
      %13 = vector.load %arg7[%c0_11, %c0_12] : memref<512x128xf32, #tpu.memory_space<vmem>>, vector<512x128xf32>
      tpu.vector_store %arg7[%c0_11, %c0_12], %12 {strides = array<i32>} : memref<512x128xf32, #tpu.memory_space<vmem>>, vector<512x128xf32>,
    } else {
    }
    %c0 = arith.constant 0 : index
    %c0_1 = arith.constant 0 : index
    %3 = vector.load %arg7[%c0, %c0_1] : memref<512x128xf32, #tpu.memory_space<vmem>>, vector<512x128xf32>
    %c0_2 = arith.constant 0 : index
    %c0_3 = arith.constant 0 : index
    %4 = vector.load %arg2[%c0_2, %c0_3] : memref<512x256xbf16, #tpu.memory_space<vmem>>, vector<512x256xbf16>
    %c0_4 = arith.constant 0 : index
    %c0_5 = arith.constant 0 : index
    %5 = vector.load %arg3[%c0_4, %c0_5] : memref<256x128xbf16, #tpu.memory_space<vmem>>, vector<256x128xbf16>
    %cst = arith.constant dense<0.000000e+00> : vector<512x128xf32>
    %6 = tpu.matmul %4, %5, %cst {dimension_numbers = #tpu.dot_dimension_numbers<[1], [0], [0], [1], [0, 0, 1, 1], [], []>} : vector<512x256xbf16>, vector<256x128xbf16>, vector<512x128xf32> -> vector<512x128xf32>
    %7 = arith.addf %3, %6 : vector<512x128xf32>
    %c0_6 = arith.constant 0 : index
    %c0_7 = arith.constant 0 : index
    %8 = vector.load %arg7[%c0_6, %c0_7] : memref<512x128xf32, #tpu.memory_space<vmem>>, vector<512x128xf32>
    tpu.vector_store %arg7[%c0_6, %c0_7], %7 {strides = array<i32>} : memref<512x128xf32, #tpu.memory_space<vmem>>, vector<512x128xf32>,
    %c0_i32_8 = arith.constant 0 : i32
    %9 = arith.cmpi eq, %arg1, %c0_i32_8 : i32
    %10 = arith.extui %9 : i1 to i32
    %c0_i32_9 = arith.constant 0 : i32
    %11 = arith.cmpi ne, %10, %c0_i32_9 : i32
    scf.if %11 {
      %c0_10 = arith.constant 0 : index
      %c0_11 = arith.constant 0 : index
      %12 = vector.load %arg7[%c0_10, %c0_11] : memref<512x128xf32, #tpu.memory_space<vmem>>, vector<512x128xf32>
      %c0_12 = arith.constant 0 : index
      %c0_13 = arith.constant 0 : index
      %13 = vector.load %arg4[%c0_12, %c0_13] : memref<1x128xf32, #tpu.memory_space<vmem>>, vector<1x128xf32>
      %14 = vector.broadcast %13 : vector<1x128xf32> to vector<512x128xf32>
      %15 = arith.mulf %12, %14 : vector<512x128xf32>
      %c0_14 = arith.constant 0 : index
      %c0_15 = arith.constant 0 : index
      %16 = vector.load %arg5[%c0_14, %c0_15] : memref<1x128xf32, #tpu.memory_space<vmem>>, vector<1x128xf32>
      %17 = vector.broadcast %16 : vector<1x128xf32> to vector<512x128xf32>
      %18 = arith.addf %15, %17 : vector<512x128xf32>
      %cst_16 = arith.constant 0.000000e+00 : f32
      %19 = vector.broadcast %cst_16 : f32 to vector<512x128xf32>
      %20 = arith.maximumf %18, %19 : vector<512x128xf32>
      %21 = arith.truncf %20 : vector<512x128xf32> to vector<512x128xbf16>
      %c0_17 = arith.constant 0 : index
      %c0_18 = arith.constant 0 : index
      %22 = vector.load %arg6[%c0_17, %c0_18] : memref<512x128xbf16, #tpu.memory_space<vmem>>, vector<512x128xbf16>
      tpu.vector_store %arg6[%c0_17, %c0_18], %21 {strides = array<i32>} : memref<512x128xbf16, #tpu.memory_space<vmem>>, vector<512x128xbf16>,
    } else {
    }
    return
  }
  func.func @transform_0(%arg0: i32, %arg1: i32) -> (i32, i32) {
    %c0_i32 = arith.constant 0 : i32
    return %arg0, %arg1 : i32, i32
  }
  func.func @transform_1(%arg0: i32, %arg1: i32) -> (i32, i32) {
    %c0_i32 = arith.constant 0 : i32
    %c0_i32_0 = arith.constant 0 : i32
    return %arg1, %c0_i32 : i32, i32
  }
  func.func @transform_2(%arg0: i32, %arg1: i32) -> (i32, i32) {
    %c0_i32 = arith.constant 0 : i32
    %c0_i32_0 = arith.constant 0 : i32
    %c0_i32_1 = arith.constant 0 : i32
    return %c0_i32, %c0_i32_0 : i32, i32
  }
  func.func @transform_3(%arg0: i32, %arg1: i32) -> (i32, i32) {
    %c0_i32 = arith.constant 0 : i32
    %c0_i32_0 = arith.constant 0 : i32
    %c0_i32_1 = arith.constant 0 : i32
    return %c0_i32, %c0_i32_0 : i32, i32
  }
  func.func @transform_4(%arg0: i32, %arg1: i32) -> (i32, i32) {
    %c0_i32 = arith.constant 0 : i32
    %c0_i32_0 = arith.constant 0 : i32
    return %arg0, %c0_i32 : i32, i32
  }
}

module attributes {stable_mosaic.version = 11 : i64} {
  func.func @_max_taps_kernel(%arg0: i32, %arg1: memref<128x64xbf16, #tpu.memory_space<vmem>>, %arg2: memref<128x64xbf16, #tpu.memory_space<vmem>>, %arg3: memref<128x64xbf16, #tpu.memory_space<vmem>>, %arg4: memref<128x64xbf16, #tpu.memory_space<vmem>>, %arg5: memref<128x64xbf16, #tpu.memory_space<vmem>>, %arg6: memref<128x64xbf16, #tpu.memory_space<vmem>>, %arg7: memref<128x64xbf16, #tpu.memory_space<vmem>>, %arg8: memref<128x64xbf16, #tpu.memory_space<vmem>>, %arg9: memref<128x64xbf16, #tpu.memory_space<vmem>>, %arg10: memref<128x64xbf16, #tpu.memory_space<vmem>>) attributes {dimension_semantics = [#tpu.dimension_semantics<parallel>], iteration_bounds = array<i64: 1>, scalar_prefetch = 0 : i64, scratch_operands = 0 : i64, tpu.core_type = #tpu.core_type<tc>, window_params = [{transform_indices = @transform_0, window_bounds = array<i64: 128, 64>}, {transform_indices = @transform_1, window_bounds = array<i64: 128, 64>}, {transform_indices = @transform_2, window_bounds = array<i64: 128, 64>}, {transform_indices = @transform_3, window_bounds = array<i64: 128, 64>}, {transform_indices = @transform_4, window_bounds = array<i64: 128, 64>}, {transform_indices = @transform_5, window_bounds = array<i64: 128, 64>}, {transform_indices = @transform_6, window_bounds = array<i64: 128, 64>}, {transform_indices = @transform_7, window_bounds = array<i64: 128, 64>}, {transform_indices = @transform_8, window_bounds = array<i64: 128, 64>}, {transform_indices = @transform_9, window_bounds = array<i64: 128, 64>}]} {
    %c0 = arith.constant 0 : index
    %c0_0 = arith.constant 0 : index
    %0 = vector.load %arg1[%c0, %c0_0] : memref<128x64xbf16, #tpu.memory_space<vmem>>, vector<128x64xbf16>
    %c0_1 = arith.constant 0 : index
    %c0_2 = arith.constant 0 : index
    %1 = vector.load %arg2[%c0_1, %c0_2] : memref<128x64xbf16, #tpu.memory_space<vmem>>, vector<128x64xbf16>
    %2 = arith.maximumf %0, %1 : vector<128x64xbf16>
    %c0_3 = arith.constant 0 : index
    %c0_4 = arith.constant 0 : index
    %3 = vector.load %arg3[%c0_3, %c0_4] : memref<128x64xbf16, #tpu.memory_space<vmem>>, vector<128x64xbf16>
    %4 = arith.maximumf %2, %3 : vector<128x64xbf16>
    %c0_5 = arith.constant 0 : index
    %c0_6 = arith.constant 0 : index
    %5 = vector.load %arg4[%c0_5, %c0_6] : memref<128x64xbf16, #tpu.memory_space<vmem>>, vector<128x64xbf16>
    %6 = arith.maximumf %4, %5 : vector<128x64xbf16>
    %c0_7 = arith.constant 0 : index
    %c0_8 = arith.constant 0 : index
    %7 = vector.load %arg5[%c0_7, %c0_8] : memref<128x64xbf16, #tpu.memory_space<vmem>>, vector<128x64xbf16>
    %8 = arith.maximumf %6, %7 : vector<128x64xbf16>
    %c0_9 = arith.constant 0 : index
    %c0_10 = arith.constant 0 : index
    %9 = vector.load %arg6[%c0_9, %c0_10] : memref<128x64xbf16, #tpu.memory_space<vmem>>, vector<128x64xbf16>
    %10 = arith.maximumf %8, %9 : vector<128x64xbf16>
    %c0_11 = arith.constant 0 : index
    %c0_12 = arith.constant 0 : index
    %11 = vector.load %arg7[%c0_11, %c0_12] : memref<128x64xbf16, #tpu.memory_space<vmem>>, vector<128x64xbf16>
    %12 = arith.maximumf %10, %11 : vector<128x64xbf16>
    %c0_13 = arith.constant 0 : index
    %c0_14 = arith.constant 0 : index
    %13 = vector.load %arg8[%c0_13, %c0_14] : memref<128x64xbf16, #tpu.memory_space<vmem>>, vector<128x64xbf16>
    %14 = arith.maximumf %12, %13 : vector<128x64xbf16>
    %c0_15 = arith.constant 0 : index
    %c0_16 = arith.constant 0 : index
    %15 = vector.load %arg9[%c0_15, %c0_16] : memref<128x64xbf16, #tpu.memory_space<vmem>>, vector<128x64xbf16>
    %16 = arith.maximumf %14, %15 : vector<128x64xbf16>
    %c0_17 = arith.constant 0 : index
    %c0_18 = arith.constant 0 : index
    %17 = vector.load %arg10[%c0_17, %c0_18] : memref<128x64xbf16, #tpu.memory_space<vmem>>, vector<128x64xbf16>
    tpu.vector_store %arg10[%c0_17, %c0_18], %16 {strides = array<i32>} : memref<128x64xbf16, #tpu.memory_space<vmem>>, vector<128x64xbf16>,
    return
  }
  func.func @transform_0(%arg0: i32) -> (i32, i32) {
    %c0_i32 = arith.constant 0 : i32
    %c0_i32_0 = arith.constant 0 : i32
    return %arg0, %c0_i32 : i32, i32
  }
  func.func @transform_1(%arg0: i32) -> (i32, i32) {
    %c0_i32 = arith.constant 0 : i32
    %c0_i32_0 = arith.constant 0 : i32
    return %arg0, %c0_i32 : i32, i32
  }
  func.func @transform_2(%arg0: i32) -> (i32, i32) {
    %c0_i32 = arith.constant 0 : i32
    %c0_i32_0 = arith.constant 0 : i32
    return %arg0, %c0_i32 : i32, i32
  }
  func.func @transform_3(%arg0: i32) -> (i32, i32) {
    %c0_i32 = arith.constant 0 : i32
    %c0_i32_0 = arith.constant 0 : i32
    return %arg0, %c0_i32 : i32, i32
  }
  func.func @transform_4(%arg0: i32) -> (i32, i32) {
    %c0_i32 = arith.constant 0 : i32
    %c0_i32_0 = arith.constant 0 : i32
    return %arg0, %c0_i32 : i32, i32
  }
  func.func @transform_5(%arg0: i32) -> (i32, i32) {
    %c0_i32 = arith.constant 0 : i32
    %c0_i32_0 = arith.constant 0 : i32
    return %arg0, %c0_i32 : i32, i32
  }
  func.func @transform_6(%arg0: i32) -> (i32, i32) {
    %c0_i32 = arith.constant 0 : i32
    %c0_i32_0 = arith.constant 0 : i32
    return %arg0, %c0_i32 : i32, i32
  }
  func.func @transform_7(%arg0: i32) -> (i32, i32) {
    %c0_i32 = arith.constant 0 : i32
    %c0_i32_0 = arith.constant 0 : i32
    return %arg0, %c0_i32 : i32, i32
  }
  func.func @transform_8(%arg0: i32) -> (i32, i32) {
    %c0_i32 = arith.constant 0 : i32
    %c0_i32_0 = arith.constant 0 : i32
    return %arg0, %c0_i32 : i32, i32
  }
  func.func @transform_9(%arg0: i32) -> (i32, i32) {
    %c0_i32 = arith.constant 0 : i32
    %c0_i32_0 = arith.constant 0 : i32
    return %arg0, %c0_i32 : i32, i32
  }
}

module attributes {stable_mosaic.version = 11 : i64} {
  func.func @_matmul_affine_kernel(%arg0: i32, %arg1: i32, %arg2: memref<128x256xbf16, #tpu.memory_space<vmem>>, %arg3: memref<256x128xbf16, #tpu.memory_space<vmem>>, %arg4: memref<1x128xf32, #tpu.memory_space<vmem>>, %arg5: memref<1x128xf32, #tpu.memory_space<vmem>>, %arg6: memref<128x128xbf16, #tpu.memory_space<vmem>>, %arg7: memref<128x128xf32, #tpu.memory_space<vmem>>) attributes {dimension_semantics = [#tpu.dimension_semantics<parallel>, #tpu.dimension_semantics<arbitrary>], iteration_bounds = array<i64: 1, 3>, scalar_prefetch = 0 : i64, scratch_operands = 1 : i64, tpu.core_type = #tpu.core_type<tc>, window_params = [{transform_indices = @transform_0, window_bounds = array<i64: 128, 256>}, {transform_indices = @transform_1, window_bounds = array<i64: 256, 128>}, {pipeline_mode = #tpu.pipeline_mode<synchronous>, transform_indices = @transform_2, window_bounds = array<i64: 1, 128>}, {pipeline_mode = #tpu.pipeline_mode<synchronous>, transform_indices = @transform_3, window_bounds = array<i64: 1, 128>}, {transform_indices = @transform_4, window_bounds = array<i64: 128, 128>}]} {
    %c0_i32 = arith.constant 0 : i32
    %0 = arith.cmpi eq, %arg1, %c0_i32 : i32
    %1 = arith.extui %0 : i1 to i32
    %c0_i32_0 = arith.constant 0 : i32
    %2 = arith.cmpi ne, %1, %c0_i32_0 : i32
    scf.if %2 {
      %cst_9 = arith.constant 0.000000e+00 : f32
      %12 = vector.broadcast %cst_9 : f32 to vector<128x128xf32>
      %c0_10 = arith.constant 0 : index
      %c0_11 = arith.constant 0 : index
      %13 = vector.load %arg7[%c0_10, %c0_11] : memref<128x128xf32, #tpu.memory_space<vmem>>, vector<128x128xf32>
      tpu.vector_store %arg7[%c0_10, %c0_11], %12 {strides = array<i32>} : memref<128x128xf32, #tpu.memory_space<vmem>>, vector<128x128xf32>,
    } else {
    }
    %c0 = arith.constant 0 : index
    %c0_1 = arith.constant 0 : index
    %3 = vector.load %arg7[%c0, %c0_1] : memref<128x128xf32, #tpu.memory_space<vmem>>, vector<128x128xf32>
    %c0_2 = arith.constant 0 : index
    %c0_3 = arith.constant 0 : index
    %4 = vector.load %arg2[%c0_2, %c0_3] : memref<128x256xbf16, #tpu.memory_space<vmem>>, vector<128x256xbf16>
    %c0_4 = arith.constant 0 : index
    %c0_5 = arith.constant 0 : index
    %5 = vector.load %arg3[%c0_4, %c0_5] : memref<256x128xbf16, #tpu.memory_space<vmem>>, vector<256x128xbf16>
    %cst = arith.constant dense<0.000000e+00> : vector<128x128xf32>
    %6 = tpu.matmul %4, %5, %cst {dimension_numbers = #tpu.dot_dimension_numbers<[1], [0], [0], [1], [0, 0, 1, 1], [], []>} : vector<128x256xbf16>, vector<256x128xbf16>, vector<128x128xf32> -> vector<128x128xf32>
    %7 = arith.addf %3, %6 : vector<128x128xf32>
    %c0_6 = arith.constant 0 : index
    %c0_7 = arith.constant 0 : index
    %8 = vector.load %arg7[%c0_6, %c0_7] : memref<128x128xf32, #tpu.memory_space<vmem>>, vector<128x128xf32>
    tpu.vector_store %arg7[%c0_6, %c0_7], %7 {strides = array<i32>} : memref<128x128xf32, #tpu.memory_space<vmem>>, vector<128x128xf32>,
    %c2_i32 = arith.constant 2 : i32
    %9 = arith.cmpi eq, %arg1, %c2_i32 : i32
    %10 = arith.extui %9 : i1 to i32
    %c0_i32_8 = arith.constant 0 : i32
    %11 = arith.cmpi ne, %10, %c0_i32_8 : i32
    scf.if %11 {
      %c0_9 = arith.constant 0 : index
      %c0_10 = arith.constant 0 : index
      %12 = vector.load %arg7[%c0_9, %c0_10] : memref<128x128xf32, #tpu.memory_space<vmem>>, vector<128x128xf32>
      %c0_11 = arith.constant 0 : index
      %c0_12 = arith.constant 0 : index
      %13 = vector.load %arg4[%c0_11, %c0_12] : memref<1x128xf32, #tpu.memory_space<vmem>>, vector<1x128xf32>
      %14 = vector.broadcast %13 : vector<1x128xf32> to vector<128x128xf32>
      %15 = arith.mulf %12, %14 : vector<128x128xf32>
      %c0_13 = arith.constant 0 : index
      %c0_14 = arith.constant 0 : index
      %16 = vector.load %arg5[%c0_13, %c0_14] : memref<1x128xf32, #tpu.memory_space<vmem>>, vector<1x128xf32>
      %17 = vector.broadcast %16 : vector<1x128xf32> to vector<128x128xf32>
      %18 = arith.addf %15, %17 : vector<128x128xf32>
      %cst_15 = arith.constant 0.000000e+00 : f32
      %19 = vector.broadcast %cst_15 : f32 to vector<128x128xf32>
      %20 = arith.maximumf %18, %19 : vector<128x128xf32>
      %21 = arith.truncf %20 : vector<128x128xf32> to vector<128x128xbf16>
      %c0_16 = arith.constant 0 : index
      %c0_17 = arith.constant 0 : index
      %22 = vector.load %arg6[%c0_16, %c0_17] : memref<128x128xbf16, #tpu.memory_space<vmem>>, vector<128x128xbf16>
      tpu.vector_store %arg6[%c0_16, %c0_17], %21 {strides = array<i32>} : memref<128x128xbf16, #tpu.memory_space<vmem>>, vector<128x128xbf16>,
    } else {
    }
    return
  }
  func.func @transform_0(%arg0: i32, %arg1: i32) -> (i32, i32) {
    %c0_i32 = arith.constant 0 : i32
    return %arg0, %arg1 : i32, i32
  }
  func.func @transform_1(%arg0: i32, %arg1: i32) -> (i32, i32) {
    %c0_i32 = arith.constant 0 : i32
    %c0_i32_0 = arith.constant 0 : i32
    return %arg1, %c0_i32 : i32, i32
  }
  func.func @transform_2(%arg0: i32, %arg1: i32) -> (i32, i32) {
    %c0_i32 = arith.constant 0 : i32
    %c0_i32_0 = arith.constant 0 : i32
    %c0_i32_1 = arith.constant 0 : i32
    return %c0_i32, %c0_i32_0 : i32, i32
  }
  func.func @transform_3(%arg0: i32, %arg1: i32) -> (i32, i32) {
    %c0_i32 = arith.constant 0 : i32
    %c0_i32_0 = arith.constant 0 : i32
    %c0_i32_1 = arith.constant 0 : i32
    return %c0_i32, %c0_i32_0 : i32, i32
  }
  func.func @transform_4(%arg0: i32, %arg1: i32) -> (i32, i32) {
    %c0_i32 = arith.constant 0 : i32
    %c0_i32_0 = arith.constant 0 : i32
    return %arg0, %c0_i32 : i32, i32
  }
}

module attributes {stable_mosaic.version = 11 : i64} {
  func.func @_matmul_affine_kernel(%arg0: i32, %arg1: i32, %arg2: memref<128x256xbf16, #tpu.memory_space<vmem>>, %arg3: memref<256x128xbf16, #tpu.memory_space<vmem>>, %arg4: memref<1x128xf32, #tpu.memory_space<vmem>>, %arg5: memref<1x128xf32, #tpu.memory_space<vmem>>, %arg6: memref<128x128xbf16, #tpu.memory_space<vmem>>, %arg7: memref<128x128xbf16, #tpu.memory_space<vmem>>, %arg8: memref<128x128xf32, #tpu.memory_space<vmem>>) attributes {dimension_semantics = [#tpu.dimension_semantics<parallel>, #tpu.dimension_semantics<arbitrary>], iteration_bounds = array<i64: 1, 3>, scalar_prefetch = 0 : i64, scratch_operands = 1 : i64, tpu.core_type = #tpu.core_type<tc>, window_params = [{transform_indices = @transform_0, window_bounds = array<i64: 128, 256>}, {transform_indices = @transform_1, window_bounds = array<i64: 256, 128>}, {pipeline_mode = #tpu.pipeline_mode<synchronous>, transform_indices = @transform_2, window_bounds = array<i64: 1, 128>}, {pipeline_mode = #tpu.pipeline_mode<synchronous>, transform_indices = @transform_3, window_bounds = array<i64: 1, 128>}, {transform_indices = @transform_4, window_bounds = array<i64: 128, 128>}, {transform_indices = @transform_5, window_bounds = array<i64: 128, 128>}]} {
    %c0_i32 = arith.constant 0 : i32
    %0 = arith.cmpi eq, %arg1, %c0_i32 : i32
    %1 = arith.extui %0 : i1 to i32
    %c0_i32_0 = arith.constant 0 : i32
    %2 = arith.cmpi ne, %1, %c0_i32_0 : i32
    scf.if %2 {
      %cst_9 = arith.constant 0.000000e+00 : f32
      %12 = vector.broadcast %cst_9 : f32 to vector<128x128xf32>
      %c0_10 = arith.constant 0 : index
      %c0_11 = arith.constant 0 : index
      %13 = vector.load %arg8[%c0_10, %c0_11] : memref<128x128xf32, #tpu.memory_space<vmem>>, vector<128x128xf32>
      tpu.vector_store %arg8[%c0_10, %c0_11], %12 {strides = array<i32>} : memref<128x128xf32, #tpu.memory_space<vmem>>, vector<128x128xf32>,
    } else {
    }
    %c0 = arith.constant 0 : index
    %c0_1 = arith.constant 0 : index
    %3 = vector.load %arg8[%c0, %c0_1] : memref<128x128xf32, #tpu.memory_space<vmem>>, vector<128x128xf32>
    %c0_2 = arith.constant 0 : index
    %c0_3 = arith.constant 0 : index
    %4 = vector.load %arg2[%c0_2, %c0_3] : memref<128x256xbf16, #tpu.memory_space<vmem>>, vector<128x256xbf16>
    %c0_4 = arith.constant 0 : index
    %c0_5 = arith.constant 0 : index
    %5 = vector.load %arg3[%c0_4, %c0_5] : memref<256x128xbf16, #tpu.memory_space<vmem>>, vector<256x128xbf16>
    %cst = arith.constant dense<0.000000e+00> : vector<128x128xf32>
    %6 = tpu.matmul %4, %5, %cst {dimension_numbers = #tpu.dot_dimension_numbers<[1], [0], [0], [1], [0, 0, 1, 1], [], []>} : vector<128x256xbf16>, vector<256x128xbf16>, vector<128x128xf32> -> vector<128x128xf32>
    %7 = arith.addf %3, %6 : vector<128x128xf32>
    %c0_6 = arith.constant 0 : index
    %c0_7 = arith.constant 0 : index
    %8 = vector.load %arg8[%c0_6, %c0_7] : memref<128x128xf32, #tpu.memory_space<vmem>>, vector<128x128xf32>
    tpu.vector_store %arg8[%c0_6, %c0_7], %7 {strides = array<i32>} : memref<128x128xf32, #tpu.memory_space<vmem>>, vector<128x128xf32>,
    %c2_i32 = arith.constant 2 : i32
    %9 = arith.cmpi eq, %arg1, %c2_i32 : i32
    %10 = arith.extui %9 : i1 to i32
    %c0_i32_8 = arith.constant 0 : i32
    %11 = arith.cmpi ne, %10, %c0_i32_8 : i32
    scf.if %11 {
      %c0_9 = arith.constant 0 : index
      %c0_10 = arith.constant 0 : index
      %12 = vector.load %arg8[%c0_9, %c0_10] : memref<128x128xf32, #tpu.memory_space<vmem>>, vector<128x128xf32>
      %c0_11 = arith.constant 0 : index
      %c0_12 = arith.constant 0 : index
      %13 = vector.load %arg4[%c0_11, %c0_12] : memref<1x128xf32, #tpu.memory_space<vmem>>, vector<1x128xf32>
      %14 = vector.broadcast %13 : vector<1x128xf32> to vector<128x128xf32>
      %15 = arith.mulf %12, %14 : vector<128x128xf32>
      %c0_13 = arith.constant 0 : index
      %c0_14 = arith.constant 0 : index
      %16 = vector.load %arg5[%c0_13, %c0_14] : memref<1x128xf32, #tpu.memory_space<vmem>>, vector<1x128xf32>
      %17 = vector.broadcast %16 : vector<1x128xf32> to vector<128x128xf32>
      %18 = arith.addf %15, %17 : vector<128x128xf32>
      %c0_15 = arith.constant 0 : index
      %c0_16 = arith.constant 0 : index
      %19 = vector.load %arg6[%c0_15, %c0_16] : memref<128x128xbf16, #tpu.memory_space<vmem>>, vector<128x128xbf16>
      %20 = arith.extf %19 : vector<128x128xbf16> to vector<128x128xf32>
      %21 = arith.addf %18, %20 : vector<128x128xf32>
      %cst_17 = arith.constant 0.000000e+00 : f32
      %22 = vector.broadcast %cst_17 : f32 to vector<128x128xf32>
      %23 = arith.maximumf %21, %22 : vector<128x128xf32>
      %24 = arith.truncf %23 : vector<128x128xf32> to vector<128x128xbf16>
      %c0_18 = arith.constant 0 : index
      %c0_19 = arith.constant 0 : index
      %25 = vector.load %arg7[%c0_18, %c0_19] : memref<128x128xbf16, #tpu.memory_space<vmem>>, vector<128x128xbf16>
      tpu.vector_store %arg7[%c0_18, %c0_19], %24 {strides = array<i32>} : memref<128x128xbf16, #tpu.memory_space<vmem>>, vector<128x128xbf16>,
    } else {
    }
    return
  }
  func.func @transform_0(%arg0: i32, %arg1: i32) -> (i32, i32) {
    %c0_i32 = arith.constant 0 : i32
    return %arg0, %arg1 : i32, i32
  }
  func.func @transform_1(%arg0: i32, %arg1: i32) -> (i32, i32) {
    %c0_i32 = arith.constant 0 : i32
    %c0_i32_0 = arith.constant 0 : i32
    return %arg1, %c0_i32 : i32, i32
  }
  func.func @transform_2(%arg0: i32, %arg1: i32) -> (i32, i32) {
    %c0_i32 = arith.constant 0 : i32
    %c0_i32_0 = arith.constant 0 : i32
    %c0_i32_1 = arith.constant 0 : i32
    return %c0_i32, %c0_i32_0 : i32, i32
  }
  func.func @transform_3(%arg0: i32, %arg1: i32) -> (i32, i32) {
    %c0_i32 = arith.constant 0 : i32
    %c0_i32_0 = arith.constant 0 : i32
    %c0_i32_1 = arith.constant 0 : i32
    return %c0_i32, %c0_i32_0 : i32, i32
  }
  func.func @transform_4(%arg0: i32, %arg1: i32) -> (i32, i32) {
    %c0_i32 = arith.constant 0 : i32
    %c0_i32_0 = arith.constant 0 : i32
    return %arg0, %c0_i32 : i32, i32
  }
  func.func @transform_5(%arg0: i32, %arg1: i32) -> (i32, i32) {
    %c0_i32 = arith.constant 0 : i32
    %c0_i32_0 = arith.constant 0 : i32
    return %arg0, %c0_i32 : i32, i32
  }
}

module attributes {stable_mosaic.version = 11 : i64} {
  func.func @_matmul_affine_kernel(%arg0: i32, %arg1: i32, %arg2: memref<32x256xbf16, #tpu.memory_space<vmem>>, %arg3: memref<256x128xbf16, #tpu.memory_space<vmem>>, %arg4: memref<1x128xf32, #tpu.memory_space<vmem>>, %arg5: memref<1x128xf32, #tpu.memory_space<vmem>>, %arg6: memref<32x128xbf16, #tpu.memory_space<vmem>>, %arg7: memref<32x128xf32, #tpu.memory_space<vmem>>) attributes {dimension_semantics = [#tpu.dimension_semantics<parallel>, #tpu.dimension_semantics<arbitrary>], iteration_bounds = array<i64: 1, 3>, scalar_prefetch = 0 : i64, scratch_operands = 1 : i64, tpu.core_type = #tpu.core_type<tc>, window_params = [{transform_indices = @transform_0, window_bounds = array<i64: 32, 256>}, {transform_indices = @transform_1, window_bounds = array<i64: 256, 128>}, {pipeline_mode = #tpu.pipeline_mode<synchronous>, transform_indices = @transform_2, window_bounds = array<i64: 1, 128>}, {pipeline_mode = #tpu.pipeline_mode<synchronous>, transform_indices = @transform_3, window_bounds = array<i64: 1, 128>}, {transform_indices = @transform_4, window_bounds = array<i64: 32, 128>}]} {
    %c0_i32 = arith.constant 0 : i32
    %0 = arith.cmpi eq, %arg1, %c0_i32 : i32
    %1 = arith.extui %0 : i1 to i32
    %c0_i32_0 = arith.constant 0 : i32
    %2 = arith.cmpi ne, %1, %c0_i32_0 : i32
    scf.if %2 {
      %cst_9 = arith.constant 0.000000e+00 : f32
      %12 = vector.broadcast %cst_9 : f32 to vector<32x128xf32>
      %c0_10 = arith.constant 0 : index
      %c0_11 = arith.constant 0 : index
      %13 = vector.load %arg7[%c0_10, %c0_11] : memref<32x128xf32, #tpu.memory_space<vmem>>, vector<32x128xf32>
      tpu.vector_store %arg7[%c0_10, %c0_11], %12 {strides = array<i32>} : memref<32x128xf32, #tpu.memory_space<vmem>>, vector<32x128xf32>,
    } else {
    }
    %c0 = arith.constant 0 : index
    %c0_1 = arith.constant 0 : index
    %3 = vector.load %arg7[%c0, %c0_1] : memref<32x128xf32, #tpu.memory_space<vmem>>, vector<32x128xf32>
    %c0_2 = arith.constant 0 : index
    %c0_3 = arith.constant 0 : index
    %4 = vector.load %arg2[%c0_2, %c0_3] : memref<32x256xbf16, #tpu.memory_space<vmem>>, vector<32x256xbf16>
    %c0_4 = arith.constant 0 : index
    %c0_5 = arith.constant 0 : index
    %5 = vector.load %arg3[%c0_4, %c0_5] : memref<256x128xbf16, #tpu.memory_space<vmem>>, vector<256x128xbf16>
    %cst = arith.constant dense<0.000000e+00> : vector<32x128xf32>
    %6 = tpu.matmul %4, %5, %cst {dimension_numbers = #tpu.dot_dimension_numbers<[1], [0], [0], [1], [0, 0, 1, 1], [], []>} : vector<32x256xbf16>, vector<256x128xbf16>, vector<32x128xf32> -> vector<32x128xf32>
    %7 = arith.addf %3, %6 : vector<32x128xf32>
    %c0_6 = arith.constant 0 : index
    %c0_7 = arith.constant 0 : index
    %8 = vector.load %arg7[%c0_6, %c0_7] : memref<32x128xf32, #tpu.memory_space<vmem>>, vector<32x128xf32>
    tpu.vector_store %arg7[%c0_6, %c0_7], %7 {strides = array<i32>} : memref<32x128xf32, #tpu.memory_space<vmem>>, vector<32x128xf32>,
    %c2_i32 = arith.constant 2 : i32
    %9 = arith.cmpi eq, %arg1, %c2_i32 : i32
    %10 = arith.extui %9 : i1 to i32
    %c0_i32_8 = arith.constant 0 : i32
    %11 = arith.cmpi ne, %10, %c0_i32_8 : i32
    scf.if %11 {
      %c0_9 = arith.constant 0 : index
      %c0_10 = arith.constant 0 : index
      %12 = vector.load %arg7[%c0_9, %c0_10] : memref<32x128xf32, #tpu.memory_space<vmem>>, vector<32x128xf32>
      %c0_11 = arith.constant 0 : index
      %c0_12 = arith.constant 0 : index
      %13 = vector.load %arg4[%c0_11, %c0_12] : memref<1x128xf32, #tpu.memory_space<vmem>>, vector<1x128xf32>
      %14 = vector.broadcast %13 : vector<1x128xf32> to vector<32x128xf32>
      %15 = arith.mulf %12, %14 : vector<32x128xf32>
      %c0_13 = arith.constant 0 : index
      %c0_14 = arith.constant 0 : index
      %16 = vector.load %arg5[%c0_13, %c0_14] : memref<1x128xf32, #tpu.memory_space<vmem>>, vector<1x128xf32>
      %17 = vector.broadcast %16 : vector<1x128xf32> to vector<32x128xf32>
      %18 = arith.addf %15, %17 : vector<32x128xf32>
      %cst_15 = arith.constant 0.000000e+00 : f32
      %19 = vector.broadcast %cst_15 : f32 to vector<32x128xf32>
      %20 = arith.maximumf %18, %19 : vector<32x128xf32>
      %21 = arith.truncf %20 : vector<32x128xf32> to vector<32x128xbf16>
      %c0_16 = arith.constant 0 : index
      %c0_17 = arith.constant 0 : index
      %22 = vector.load %arg6[%c0_16, %c0_17] : memref<32x128xbf16, #tpu.memory_space<vmem>>, vector<32x128xbf16>
      tpu.vector_store %arg6[%c0_16, %c0_17], %21 {strides = array<i32>} : memref<32x128xbf16, #tpu.memory_space<vmem>>, vector<32x128xbf16>,
    } else {
    }
    return
  }
  func.func @transform_0(%arg0: i32, %arg1: i32) -> (i32, i32) {
    %c0_i32 = arith.constant 0 : i32
    return %arg0, %arg1 : i32, i32
  }
  func.func @transform_1(%arg0: i32, %arg1: i32) -> (i32, i32) {
    %c0_i32 = arith.constant 0 : i32
    %c0_i32_0 = arith.constant 0 : i32
    return %arg1, %c0_i32 : i32, i32
  }
  func.func @transform_2(%arg0: i32, %arg1: i32) -> (i32, i32) {
    %c0_i32 = arith.constant 0 : i32
    %c0_i32_0 = arith.constant 0 : i32
    %c0_i32_1 = arith.constant 0 : i32
    return %c0_i32, %c0_i32_0 : i32, i32
  }
  func.func @transform_3(%arg0: i32, %arg1: i32) -> (i32, i32) {
    %c0_i32 = arith.constant 0 : i32
    %c0_i32_0 = arith.constant 0 : i32
    %c0_i32_1 = arith.constant 0 : i32
    return %c0_i32, %c0_i32_0 : i32, i32
  }
  func.func @transform_4(%arg0: i32, %arg1: i32) -> (i32, i32) {
    %c0_i32 = arith.constant 0 : i32
    %c0_i32_0 = arith.constant 0 : i32
    return %arg0, %c0_i32 : i32, i32
  }
}

module attributes {stable_mosaic.version = 11 : i64} {
  func.func @_matmul_affine_kernel(%arg0: i32, %arg1: i32, %arg2: memref<32x128xbf16, #tpu.memory_space<vmem>>, %arg3: memref<128x128xbf16, #tpu.memory_space<vmem>>, %arg4: memref<1x128xf32, #tpu.memory_space<vmem>>, %arg5: memref<1x128xf32, #tpu.memory_space<vmem>>, %arg6: memref<32x128xbf16, #tpu.memory_space<vmem>>, %arg7: memref<32x128xf32, #tpu.memory_space<vmem>>) attributes {dimension_semantics = [#tpu.dimension_semantics<parallel>, #tpu.dimension_semantics<arbitrary>], iteration_bounds = array<i64: 1, 1>, scalar_prefetch = 0 : i64, scratch_operands = 1 : i64, tpu.core_type = #tpu.core_type<tc>, window_params = [{transform_indices = @transform_0, window_bounds = array<i64: 32, 128>}, {transform_indices = @transform_1, window_bounds = array<i64: 128, 128>}, {pipeline_mode = #tpu.pipeline_mode<synchronous>, transform_indices = @transform_2, window_bounds = array<i64: 1, 128>}, {pipeline_mode = #tpu.pipeline_mode<synchronous>, transform_indices = @transform_3, window_bounds = array<i64: 1, 128>}, {transform_indices = @transform_4, window_bounds = array<i64: 32, 128>}]} {
    %c0_i32 = arith.constant 0 : i32
    %0 = arith.cmpi eq, %arg1, %c0_i32 : i32
    %1 = arith.extui %0 : i1 to i32
    %c0_i32_0 = arith.constant 0 : i32
    %2 = arith.cmpi ne, %1, %c0_i32_0 : i32
    scf.if %2 {
      %cst_10 = arith.constant 0.000000e+00 : f32
      %12 = vector.broadcast %cst_10 : f32 to vector<32x128xf32>
      %c0_11 = arith.constant 0 : index
      %c0_12 = arith.constant 0 : index
      %13 = vector.load %arg7[%c0_11, %c0_12] : memref<32x128xf32, #tpu.memory_space<vmem>>, vector<32x128xf32>
      tpu.vector_store %arg7[%c0_11, %c0_12], %12 {strides = array<i32>} : memref<32x128xf32, #tpu.memory_space<vmem>>, vector<32x128xf32>,
    } else {
    }
    %c0 = arith.constant 0 : index
    %c0_1 = arith.constant 0 : index
    %3 = vector.load %arg7[%c0, %c0_1] : memref<32x128xf32, #tpu.memory_space<vmem>>, vector<32x128xf32>
    %c0_2 = arith.constant 0 : index
    %c0_3 = arith.constant 0 : index
    %4 = vector.load %arg2[%c0_2, %c0_3] : memref<32x128xbf16, #tpu.memory_space<vmem>>, vector<32x128xbf16>
    %c0_4 = arith.constant 0 : index
    %c0_5 = arith.constant 0 : index
    %5 = vector.load %arg3[%c0_4, %c0_5] : memref<128x128xbf16, #tpu.memory_space<vmem>>, vector<128x128xbf16>
    %cst = arith.constant dense<0.000000e+00> : vector<32x128xf32>
    %6 = tpu.matmul %4, %5, %cst {dimension_numbers = #tpu.dot_dimension_numbers<[1], [0], [0], [1], [0, 0, 1, 1], [], []>} : vector<32x128xbf16>, vector<128x128xbf16>, vector<32x128xf32> -> vector<32x128xf32>
    %7 = arith.addf %3, %6 : vector<32x128xf32>
    %c0_6 = arith.constant 0 : index
    %c0_7 = arith.constant 0 : index
    %8 = vector.load %arg7[%c0_6, %c0_7] : memref<32x128xf32, #tpu.memory_space<vmem>>, vector<32x128xf32>
    tpu.vector_store %arg7[%c0_6, %c0_7], %7 {strides = array<i32>} : memref<32x128xf32, #tpu.memory_space<vmem>>, vector<32x128xf32>,
    %c0_i32_8 = arith.constant 0 : i32
    %9 = arith.cmpi eq, %arg1, %c0_i32_8 : i32
    %10 = arith.extui %9 : i1 to i32
    %c0_i32_9 = arith.constant 0 : i32
    %11 = arith.cmpi ne, %10, %c0_i32_9 : i32
    scf.if %11 {
      %c0_10 = arith.constant 0 : index
      %c0_11 = arith.constant 0 : index
      %12 = vector.load %arg7[%c0_10, %c0_11] : memref<32x128xf32, #tpu.memory_space<vmem>>, vector<32x128xf32>
      %c0_12 = arith.constant 0 : index
      %c0_13 = arith.constant 0 : index
      %13 = vector.load %arg4[%c0_12, %c0_13] : memref<1x128xf32, #tpu.memory_space<vmem>>, vector<1x128xf32>
      %14 = vector.broadcast %13 : vector<1x128xf32> to vector<32x128xf32>
      %15 = arith.mulf %12, %14 : vector<32x128xf32>
      %c0_14 = arith.constant 0 : index
      %c0_15 = arith.constant 0 : index
      %16 = vector.load %arg5[%c0_14, %c0_15] : memref<1x128xf32, #tpu.memory_space<vmem>>, vector<1x128xf32>
      %17 = vector.broadcast %16 : vector<1x128xf32> to vector<32x128xf32>
      %18 = arith.addf %15, %17 : vector<32x128xf32>
      %19 = arith.truncf %18 : vector<32x128xf32> to vector<32x128xbf16>
      %c0_16 = arith.constant 0 : index
      %c0_17 = arith.constant 0 : index
      %20 = vector.load %arg6[%c0_16, %c0_17] : memref<32x128xbf16, #tpu.memory_space<vmem>>, vector<32x128xbf16>
      tpu.vector_store %arg6[%c0_16, %c0_17], %19 {strides = array<i32>} : memref<32x128xbf16, #tpu.memory_space<vmem>>, vector<32x128xbf16>,
    } else {
    }
    return
  }
  func.func @transform_0(%arg0: i32, %arg1: i32) -> (i32, i32) {
    %c0_i32 = arith.constant 0 : i32
    return %arg0, %arg1 : i32, i32
  }
  func.func @transform_1(%arg0: i32, %arg1: i32) -> (i32, i32) {
    %c0_i32 = arith.constant 0 : i32
    %c0_i32_0 = arith.constant 0 : i32
    return %arg1, %c0_i32 : i32, i32
  }
  func.func @transform_2(%arg0: i32, %arg1: i32) -> (i32, i32) {
    %c0_i32 = arith.constant 0 : i32
    %c0_i32_0 = arith.constant 0 : i32
    %c0_i32_1 = arith.constant 0 : i32
    return %c0_i32, %c0_i32_0 : i32, i32
  }
  func.func @transform_3(%arg0: i32, %arg1: i32) -> (i32, i32) {
    %c0_i32 = arith.constant 0 : i32
    %c0_i32_0 = arith.constant 0 : i32
    %c0_i32_1 = arith.constant 0 : i32
    return %c0_i32, %c0_i32_0 : i32, i32
  }
  func.func @transform_4(%arg0: i32, %arg1: i32) -> (i32, i32) {
    %c0_i32 = arith.constant 0 : i32
    %c0_i32_0 = arith.constant 0 : i32
    return %arg0, %c0_i32 : i32, i32
  }
}

module attributes {stable_mosaic.version = 11 : i64} {
  func.func @_matmul_affine_kernel(%arg0: i32, %arg1: i32, %arg2: memref<32x256xbf16, #tpu.memory_space<vmem>>, %arg3: memref<256x128xbf16, #tpu.memory_space<vmem>>, %arg4: memref<1x128xf32, #tpu.memory_space<vmem>>, %arg5: memref<1x128xf32, #tpu.memory_space<vmem>>, %arg6: memref<32x128xbf16, #tpu.memory_space<vmem>>, %arg7: memref<32x128xf32, #tpu.memory_space<vmem>>) attributes {dimension_semantics = [#tpu.dimension_semantics<parallel>, #tpu.dimension_semantics<arbitrary>], iteration_bounds = array<i64: 1, 5>, scalar_prefetch = 0 : i64, scratch_operands = 1 : i64, tpu.core_type = #tpu.core_type<tc>, window_params = [{transform_indices = @transform_0, window_bounds = array<i64: 32, 256>}, {transform_indices = @transform_1, window_bounds = array<i64: 256, 128>}, {pipeline_mode = #tpu.pipeline_mode<synchronous>, transform_indices = @transform_2, window_bounds = array<i64: 1, 128>}, {pipeline_mode = #tpu.pipeline_mode<synchronous>, transform_indices = @transform_3, window_bounds = array<i64: 1, 128>}, {transform_indices = @transform_4, window_bounds = array<i64: 32, 128>}]} {
    %c0_i32 = arith.constant 0 : i32
    %0 = arith.cmpi eq, %arg1, %c0_i32 : i32
    %1 = arith.extui %0 : i1 to i32
    %c0_i32_0 = arith.constant 0 : i32
    %2 = arith.cmpi ne, %1, %c0_i32_0 : i32
    scf.if %2 {
      %cst_9 = arith.constant 0.000000e+00 : f32
      %12 = vector.broadcast %cst_9 : f32 to vector<32x128xf32>
      %c0_10 = arith.constant 0 : index
      %c0_11 = arith.constant 0 : index
      %13 = vector.load %arg7[%c0_10, %c0_11] : memref<32x128xf32, #tpu.memory_space<vmem>>, vector<32x128xf32>
      tpu.vector_store %arg7[%c0_10, %c0_11], %12 {strides = array<i32>} : memref<32x128xf32, #tpu.memory_space<vmem>>, vector<32x128xf32>,
    } else {
    }
    %c0 = arith.constant 0 : index
    %c0_1 = arith.constant 0 : index
    %3 = vector.load %arg7[%c0, %c0_1] : memref<32x128xf32, #tpu.memory_space<vmem>>, vector<32x128xf32>
    %c0_2 = arith.constant 0 : index
    %c0_3 = arith.constant 0 : index
    %4 = vector.load %arg2[%c0_2, %c0_3] : memref<32x256xbf16, #tpu.memory_space<vmem>>, vector<32x256xbf16>
    %c0_4 = arith.constant 0 : index
    %c0_5 = arith.constant 0 : index
    %5 = vector.load %arg3[%c0_4, %c0_5] : memref<256x128xbf16, #tpu.memory_space<vmem>>, vector<256x128xbf16>
    %cst = arith.constant dense<0.000000e+00> : vector<32x128xf32>
    %6 = tpu.matmul %4, %5, %cst {dimension_numbers = #tpu.dot_dimension_numbers<[1], [0], [0], [1], [0, 0, 1, 1], [], []>} : vector<32x256xbf16>, vector<256x128xbf16>, vector<32x128xf32> -> vector<32x128xf32>
    %7 = arith.addf %3, %6 : vector<32x128xf32>
    %c0_6 = arith.constant 0 : index
    %c0_7 = arith.constant 0 : index
    %8 = vector.load %arg7[%c0_6, %c0_7] : memref<32x128xf32, #tpu.memory_space<vmem>>, vector<32x128xf32>
    tpu.vector_store %arg7[%c0_6, %c0_7], %7 {strides = array<i32>} : memref<32x128xf32, #tpu.memory_space<vmem>>, vector<32x128xf32>,
    %c4_i32 = arith.constant 4 : i32
    %9 = arith.cmpi eq, %arg1, %c4_i32 : i32
    %10 = arith.extui %9 : i1 to i32
    %c0_i32_8 = arith.constant 0 : i32
    %11 = arith.cmpi ne, %10, %c0_i32_8 : i32
    scf.if %11 {
      %c0_9 = arith.constant 0 : index
      %c0_10 = arith.constant 0 : index
      %12 = vector.load %arg7[%c0_9, %c0_10] : memref<32x128xf32, #tpu.memory_space<vmem>>, vector<32x128xf32>
      %c0_11 = arith.constant 0 : index
      %c0_12 = arith.constant 0 : index
      %13 = vector.load %arg4[%c0_11, %c0_12] : memref<1x128xf32, #tpu.memory_space<vmem>>, vector<1x128xf32>
      %14 = vector.broadcast %13 : vector<1x128xf32> to vector<32x128xf32>
      %15 = arith.mulf %12, %14 : vector<32x128xf32>
      %c0_13 = arith.constant 0 : index
      %c0_14 = arith.constant 0 : index
      %16 = vector.load %arg5[%c0_13, %c0_14] : memref<1x128xf32, #tpu.memory_space<vmem>>, vector<1x128xf32>
      %17 = vector.broadcast %16 : vector<1x128xf32> to vector<32x128xf32>
      %18 = arith.addf %15, %17 : vector<32x128xf32>
      %cst_15 = arith.constant 0.000000e+00 : f32
      %19 = vector.broadcast %cst_15 : f32 to vector<32x128xf32>
      %20 = arith.maximumf %18, %19 : vector<32x128xf32>
      %21 = arith.truncf %20 : vector<32x128xf32> to vector<32x128xbf16>
      %c0_16 = arith.constant 0 : index
      %c0_17 = arith.constant 0 : index
      %22 = vector.load %arg6[%c0_16, %c0_17] : memref<32x128xbf16, #tpu.memory_space<vmem>>, vector<32x128xbf16>
      tpu.vector_store %arg6[%c0_16, %c0_17], %21 {strides = array<i32>} : memref<32x128xbf16, #tpu.memory_space<vmem>>, vector<32x128xbf16>,
    } else {
    }
    return
  }
  func.func @transform_0(%arg0: i32, %arg1: i32) -> (i32, i32) {
    %c0_i32 = arith.constant 0 : i32
    return %arg0, %arg1 : i32, i32
  }
  func.func @transform_1(%arg0: i32, %arg1: i32) -> (i32, i32) {
    %c0_i32 = arith.constant 0 : i32
    %c0_i32_0 = arith.constant 0 : i32
    return %arg1, %c0_i32 : i32, i32
  }
  func.func @transform_2(%arg0: i32, %arg1: i32) -> (i32, i32) {
    %c0_i32 = arith.constant 0 : i32
    %c0_i32_0 = arith.constant 0 : i32
    %c0_i32_1 = arith.constant 0 : i32
    return %c0_i32, %c0_i32_0 : i32, i32
  }
  func.func @transform_3(%arg0: i32, %arg1: i32) -> (i32, i32) {
    %c0_i32 = arith.constant 0 : i32
    %c0_i32_0 = arith.constant 0 : i32
    %c0_i32_1 = arith.constant 0 : i32
    return %c0_i32, %c0_i32_0 : i32, i32
  }
  func.func @transform_4(%arg0: i32, %arg1: i32) -> (i32, i32) {
    %c0_i32 = arith.constant 0 : i32
    %c0_i32_0 = arith.constant 0 : i32
    return %arg0, %c0_i32 : i32, i32
  }
}

module attributes {stable_mosaic.version = 11 : i64} {
  func.func @_matmul_affine_kernel(%arg0: i32, %arg1: i32, %arg2: memref<32x256xbf16, #tpu.memory_space<vmem>>, %arg3: memref<256x128xbf16, #tpu.memory_space<vmem>>, %arg4: memref<1x128xf32, #tpu.memory_space<vmem>>, %arg5: memref<1x128xf32, #tpu.memory_space<vmem>>, %arg6: memref<32x128xbf16, #tpu.memory_space<vmem>>, %arg7: memref<32x128xbf16, #tpu.memory_space<vmem>>, %arg8: memref<32x128xf32, #tpu.memory_space<vmem>>) attributes {dimension_semantics = [#tpu.dimension_semantics<parallel>, #tpu.dimension_semantics<arbitrary>], iteration_bounds = array<i64: 1, 5>, scalar_prefetch = 0 : i64, scratch_operands = 1 : i64, tpu.core_type = #tpu.core_type<tc>, window_params = [{transform_indices = @transform_0, window_bounds = array<i64: 32, 256>}, {transform_indices = @transform_1, window_bounds = array<i64: 256, 128>}, {pipeline_mode = #tpu.pipeline_mode<synchronous>, transform_indices = @transform_2, window_bounds = array<i64: 1, 128>}, {pipeline_mode = #tpu.pipeline_mode<synchronous>, transform_indices = @transform_3, window_bounds = array<i64: 1, 128>}, {transform_indices = @transform_4, window_bounds = array<i64: 32, 128>}, {transform_indices = @transform_5, window_bounds = array<i64: 32, 128>}]} {
    %c0_i32 = arith.constant 0 : i32
    %0 = arith.cmpi eq, %arg1, %c0_i32 : i32
    %1 = arith.extui %0 : i1 to i32
    %c0_i32_0 = arith.constant 0 : i32
    %2 = arith.cmpi ne, %1, %c0_i32_0 : i32
    scf.if %2 {
      %cst_9 = arith.constant 0.000000e+00 : f32
      %12 = vector.broadcast %cst_9 : f32 to vector<32x128xf32>
      %c0_10 = arith.constant 0 : index
      %c0_11 = arith.constant 0 : index
      %13 = vector.load %arg8[%c0_10, %c0_11] : memref<32x128xf32, #tpu.memory_space<vmem>>, vector<32x128xf32>
      tpu.vector_store %arg8[%c0_10, %c0_11], %12 {strides = array<i32>} : memref<32x128xf32, #tpu.memory_space<vmem>>, vector<32x128xf32>,
    } else {
    }
    %c0 = arith.constant 0 : index
    %c0_1 = arith.constant 0 : index
    %3 = vector.load %arg8[%c0, %c0_1] : memref<32x128xf32, #tpu.memory_space<vmem>>, vector<32x128xf32>
    %c0_2 = arith.constant 0 : index
    %c0_3 = arith.constant 0 : index
    %4 = vector.load %arg2[%c0_2, %c0_3] : memref<32x256xbf16, #tpu.memory_space<vmem>>, vector<32x256xbf16>
    %c0_4 = arith.constant 0 : index
    %c0_5 = arith.constant 0 : index
    %5 = vector.load %arg3[%c0_4, %c0_5] : memref<256x128xbf16, #tpu.memory_space<vmem>>, vector<256x128xbf16>
    %cst = arith.constant dense<0.000000e+00> : vector<32x128xf32>
    %6 = tpu.matmul %4, %5, %cst {dimension_numbers = #tpu.dot_dimension_numbers<[1], [0], [0], [1], [0, 0, 1, 1], [], []>} : vector<32x256xbf16>, vector<256x128xbf16>, vector<32x128xf32> -> vector<32x128xf32>
    %7 = arith.addf %3, %6 : vector<32x128xf32>
    %c0_6 = arith.constant 0 : index
    %c0_7 = arith.constant 0 : index
    %8 = vector.load %arg8[%c0_6, %c0_7] : memref<32x128xf32, #tpu.memory_space<vmem>>, vector<32x128xf32>
    tpu.vector_store %arg8[%c0_6, %c0_7], %7 {strides = array<i32>} : memref<32x128xf32, #tpu.memory_space<vmem>>, vector<32x128xf32>,
    %c4_i32 = arith.constant 4 : i32
    %9 = arith.cmpi eq, %arg1, %c4_i32 : i32
    %10 = arith.extui %9 : i1 to i32
    %c0_i32_8 = arith.constant 0 : i32
    %11 = arith.cmpi ne, %10, %c0_i32_8 : i32
    scf.if %11 {
      %c0_9 = arith.constant 0 : index
      %c0_10 = arith.constant 0 : index
      %12 = vector.load %arg8[%c0_9, %c0_10] : memref<32x128xf32, #tpu.memory_space<vmem>>, vector<32x128xf32>
      %c0_11 = arith.constant 0 : index
      %c0_12 = arith.constant 0 : index
      %13 = vector.load %arg4[%c0_11, %c0_12] : memref<1x128xf32, #tpu.memory_space<vmem>>, vector<1x128xf32>
      %14 = vector.broadcast %13 : vector<1x128xf32> to vector<32x128xf32>
      %15 = arith.mulf %12, %14 : vector<32x128xf32>
      %c0_13 = arith.constant 0 : index
      %c0_14 = arith.constant 0 : index
      %16 = vector.load %arg5[%c0_13, %c0_14] : memref<1x128xf32, #tpu.memory_space<vmem>>, vector<1x128xf32>
      %17 = vector.broadcast %16 : vector<1x128xf32> to vector<32x128xf32>
      %18 = arith.addf %15, %17 : vector<32x128xf32>
      %c0_15 = arith.constant 0 : index
      %c0_16 = arith.constant 0 : index
      %19 = vector.load %arg6[%c0_15, %c0_16] : memref<32x128xbf16, #tpu.memory_space<vmem>>, vector<32x128xbf16>
      %20 = arith.extf %19 : vector<32x128xbf16> to vector<32x128xf32>
      %21 = arith.addf %18, %20 : vector<32x128xf32>
      %cst_17 = arith.constant 0.000000e+00 : f32
      %22 = vector.broadcast %cst_17 : f32 to vector<32x128xf32>
      %23 = arith.maximumf %21, %22 : vector<32x128xf32>
      %24 = arith.truncf %23 : vector<32x128xf32> to vector<32x128xbf16>
      %c0_18 = arith.constant 0 : index
      %c0_19 = arith.constant 0 : index
      %25 = vector.load %arg7[%c0_18, %c0_19] : memref<32x128xbf16, #tpu.memory_space<vmem>>, vector<32x128xbf16>
      tpu.vector_store %arg7[%c0_18, %c0_19], %24 {strides = array<i32>} : memref<32x128xbf16, #tpu.memory_space<vmem>>, vector<32x128xbf16>,
    } else {
    }
    return
  }
  func.func @transform_0(%arg0: i32, %arg1: i32) -> (i32, i32) {
    %c0_i32 = arith.constant 0 : i32
    return %arg0, %arg1 : i32, i32
  }
  func.func @transform_1(%arg0: i32, %arg1: i32) -> (i32, i32) {
    %c0_i32 = arith.constant 0 : i32
    %c0_i32_0 = arith.constant 0 : i32
    return %arg1, %c0_i32 : i32, i32
  }
  func.func @transform_2(%arg0: i32, %arg1: i32) -> (i32, i32) {
    %c0_i32 = arith.constant 0 : i32
    %c0_i32_0 = arith.constant 0 : i32
    %c0_i32_1 = arith.constant 0 : i32
    return %c0_i32, %c0_i32_0 : i32, i32
  }
  func.func @transform_3(%arg0: i32, %arg1: i32) -> (i32, i32) {
    %c0_i32 = arith.constant 0 : i32
    %c0_i32_0 = arith.constant 0 : i32
    %c0_i32_1 = arith.constant 0 : i32
    return %c0_i32, %c0_i32_0 : i32, i32
  }
  func.func @transform_4(%arg0: i32, %arg1: i32) -> (i32, i32) {
    %c0_i32 = arith.constant 0 : i32
    %c0_i32_0 = arith.constant 0 : i32
    return %arg0, %c0_i32 : i32, i32
  }
  func.func @transform_5(%arg0: i32, %arg1: i32) -> (i32, i32) {
    %c0_i32 = arith.constant 0 : i32
    %c0_i32_0 = arith.constant 0 : i32
    return %arg0, %c0_i32 : i32, i32
  }
}

module attributes {stable_mosaic.version = 11 : i64} {
  func.func @_matmul_affine_kernel(%arg0: i32, %arg1: i32, %arg2: memref<8x256xbf16, #tpu.memory_space<vmem>>, %arg3: memref<256x256xbf16, #tpu.memory_space<vmem>>, %arg4: memref<1x256xf32, #tpu.memory_space<vmem>>, %arg5: memref<1x256xf32, #tpu.memory_space<vmem>>, %arg6: memref<8x256xbf16, #tpu.memory_space<vmem>>, %arg7: memref<8x256xf32, #tpu.memory_space<vmem>>) attributes {dimension_semantics = [#tpu.dimension_semantics<parallel>, #tpu.dimension_semantics<arbitrary>], iteration_bounds = array<i64: 1, 5>, scalar_prefetch = 0 : i64, scratch_operands = 1 : i64, tpu.core_type = #tpu.core_type<tc>, window_params = [{transform_indices = @transform_0, window_bounds = array<i64: 8, 256>}, {transform_indices = @transform_1, window_bounds = array<i64: 256, 256>}, {pipeline_mode = #tpu.pipeline_mode<synchronous>, transform_indices = @transform_2, window_bounds = array<i64: 1, 256>}, {pipeline_mode = #tpu.pipeline_mode<synchronous>, transform_indices = @transform_3, window_bounds = array<i64: 1, 256>}, {transform_indices = @transform_4, window_bounds = array<i64: 8, 256>}]} {
    %c0_i32 = arith.constant 0 : i32
    %0 = arith.cmpi eq, %arg1, %c0_i32 : i32
    %1 = arith.extui %0 : i1 to i32
    %c0_i32_0 = arith.constant 0 : i32
    %2 = arith.cmpi ne, %1, %c0_i32_0 : i32
    scf.if %2 {
      %cst_9 = arith.constant 0.000000e+00 : f32
      %12 = vector.broadcast %cst_9 : f32 to vector<8x256xf32>
      %c0_10 = arith.constant 0 : index
      %c0_11 = arith.constant 0 : index
      %13 = vector.load %arg7[%c0_10, %c0_11] : memref<8x256xf32, #tpu.memory_space<vmem>>, vector<8x256xf32>
      tpu.vector_store %arg7[%c0_10, %c0_11], %12 {strides = array<i32>} : memref<8x256xf32, #tpu.memory_space<vmem>>, vector<8x256xf32>,
    } else {
    }
    %c0 = arith.constant 0 : index
    %c0_1 = arith.constant 0 : index
    %3 = vector.load %arg7[%c0, %c0_1] : memref<8x256xf32, #tpu.memory_space<vmem>>, vector<8x256xf32>
    %c0_2 = arith.constant 0 : index
    %c0_3 = arith.constant 0 : index
    %4 = vector.load %arg2[%c0_2, %c0_3] : memref<8x256xbf16, #tpu.memory_space<vmem>>, vector<8x256xbf16>
    %c0_4 = arith.constant 0 : index
    %c0_5 = arith.constant 0 : index
    %5 = vector.load %arg3[%c0_4, %c0_5] : memref<256x256xbf16, #tpu.memory_space<vmem>>, vector<256x256xbf16>
    %cst = arith.constant dense<0.000000e+00> : vector<8x256xf32>
    %6 = tpu.matmul %4, %5, %cst {dimension_numbers = #tpu.dot_dimension_numbers<[1], [0], [0], [1], [0, 0, 1, 1], [], []>} : vector<8x256xbf16>, vector<256x256xbf16>, vector<8x256xf32> -> vector<8x256xf32>
    %7 = arith.addf %3, %6 : vector<8x256xf32>
    %c0_6 = arith.constant 0 : index
    %c0_7 = arith.constant 0 : index
    %8 = vector.load %arg7[%c0_6, %c0_7] : memref<8x256xf32, #tpu.memory_space<vmem>>, vector<8x256xf32>
    tpu.vector_store %arg7[%c0_6, %c0_7], %7 {strides = array<i32>} : memref<8x256xf32, #tpu.memory_space<vmem>>, vector<8x256xf32>,
    %c4_i32 = arith.constant 4 : i32
    %9 = arith.cmpi eq, %arg1, %c4_i32 : i32
    %10 = arith.extui %9 : i1 to i32
    %c0_i32_8 = arith.constant 0 : i32
    %11 = arith.cmpi ne, %10, %c0_i32_8 : i32
    scf.if %11 {
      %c0_9 = arith.constant 0 : index
      %c0_10 = arith.constant 0 : index
      %12 = vector.load %arg7[%c0_9, %c0_10] : memref<8x256xf32, #tpu.memory_space<vmem>>, vector<8x256xf32>
      %c0_11 = arith.constant 0 : index
      %c0_12 = arith.constant 0 : index
      %13 = vector.load %arg4[%c0_11, %c0_12] : memref<1x256xf32, #tpu.memory_space<vmem>>, vector<1x256xf32>
      %14 = vector.broadcast %13 : vector<1x256xf32> to vector<8x256xf32>
      %15 = arith.mulf %12, %14 : vector<8x256xf32>
      %c0_13 = arith.constant 0 : index
      %c0_14 = arith.constant 0 : index
      %16 = vector.load %arg5[%c0_13, %c0_14] : memref<1x256xf32, #tpu.memory_space<vmem>>, vector<1x256xf32>
      %17 = vector.broadcast %16 : vector<1x256xf32> to vector<8x256xf32>
      %18 = arith.addf %15, %17 : vector<8x256xf32>
      %cst_15 = arith.constant 0.000000e+00 : f32
      %19 = vector.broadcast %cst_15 : f32 to vector<8x256xf32>
      %20 = arith.maximumf %18, %19 : vector<8x256xf32>
      %21 = arith.truncf %20 : vector<8x256xf32> to vector<8x256xbf16>
      %c0_16 = arith.constant 0 : index
      %c0_17 = arith.constant 0 : index
      %22 = vector.load %arg6[%c0_16, %c0_17] : memref<8x256xbf16, #tpu.memory_space<vmem>>, vector<8x256xbf16>
      tpu.vector_store %arg6[%c0_16, %c0_17], %21 {strides = array<i32>} : memref<8x256xbf16, #tpu.memory_space<vmem>>, vector<8x256xbf16>,
    } else {
    }
    return
  }
  func.func @transform_0(%arg0: i32, %arg1: i32) -> (i32, i32) {
    %c0_i32 = arith.constant 0 : i32
    return %arg0, %arg1 : i32, i32
  }
  func.func @transform_1(%arg0: i32, %arg1: i32) -> (i32, i32) {
    %c0_i32 = arith.constant 0 : i32
    %c0_i32_0 = arith.constant 0 : i32
    return %arg1, %c0_i32 : i32, i32
  }
  func.func @transform_2(%arg0: i32, %arg1: i32) -> (i32, i32) {
    %c0_i32 = arith.constant 0 : i32
    %c0_i32_0 = arith.constant 0 : i32
    %c0_i32_1 = arith.constant 0 : i32
    return %c0_i32, %c0_i32_0 : i32, i32
  }
  func.func @transform_3(%arg0: i32, %arg1: i32) -> (i32, i32) {
    %c0_i32 = arith.constant 0 : i32
    %c0_i32_0 = arith.constant 0 : i32
    %c0_i32_1 = arith.constant 0 : i32
    return %c0_i32, %c0_i32_0 : i32, i32
  }
  func.func @transform_4(%arg0: i32, %arg1: i32) -> (i32, i32) {
    %c0_i32 = arith.constant 0 : i32
    %c0_i32_0 = arith.constant 0 : i32
    return %arg0, %c0_i32 : i32, i32
  }
}

module attributes {stable_mosaic.version = 11 : i64} {
  func.func @_matmul_affine_kernel(%arg0: i32, %arg1: i32, %arg2: memref<8x128xbf16, #tpu.memory_space<vmem>>, %arg3: memref<128x256xbf16, #tpu.memory_space<vmem>>, %arg4: memref<1x256xf32, #tpu.memory_space<vmem>>, %arg5: memref<1x256xf32, #tpu.memory_space<vmem>>, %arg6: memref<8x256xbf16, #tpu.memory_space<vmem>>, %arg7: memref<8x256xf32, #tpu.memory_space<vmem>>) attributes {dimension_semantics = [#tpu.dimension_semantics<parallel>, #tpu.dimension_semantics<arbitrary>], iteration_bounds = array<i64: 1, 1>, scalar_prefetch = 0 : i64, scratch_operands = 1 : i64, tpu.core_type = #tpu.core_type<tc>, window_params = [{transform_indices = @transform_0, window_bounds = array<i64: 8, 128>}, {transform_indices = @transform_1, window_bounds = array<i64: 128, 256>}, {pipeline_mode = #tpu.pipeline_mode<synchronous>, transform_indices = @transform_2, window_bounds = array<i64: 1, 256>}, {pipeline_mode = #tpu.pipeline_mode<synchronous>, transform_indices = @transform_3, window_bounds = array<i64: 1, 256>}, {transform_indices = @transform_4, window_bounds = array<i64: 8, 256>}]} {
    %c0_i32 = arith.constant 0 : i32
    %0 = arith.cmpi eq, %arg1, %c0_i32 : i32
    %1 = arith.extui %0 : i1 to i32
    %c0_i32_0 = arith.constant 0 : i32
    %2 = arith.cmpi ne, %1, %c0_i32_0 : i32
    scf.if %2 {
      %cst_10 = arith.constant 0.000000e+00 : f32
      %12 = vector.broadcast %cst_10 : f32 to vector<8x256xf32>
      %c0_11 = arith.constant 0 : index
      %c0_12 = arith.constant 0 : index
      %13 = vector.load %arg7[%c0_11, %c0_12] : memref<8x256xf32, #tpu.memory_space<vmem>>, vector<8x256xf32>
      tpu.vector_store %arg7[%c0_11, %c0_12], %12 {strides = array<i32>} : memref<8x256xf32, #tpu.memory_space<vmem>>, vector<8x256xf32>,
    } else {
    }
    %c0 = arith.constant 0 : index
    %c0_1 = arith.constant 0 : index
    %3 = vector.load %arg7[%c0, %c0_1] : memref<8x256xf32, #tpu.memory_space<vmem>>, vector<8x256xf32>
    %c0_2 = arith.constant 0 : index
    %c0_3 = arith.constant 0 : index
    %4 = vector.load %arg2[%c0_2, %c0_3] : memref<8x128xbf16, #tpu.memory_space<vmem>>, vector<8x128xbf16>
    %c0_4 = arith.constant 0 : index
    %c0_5 = arith.constant 0 : index
    %5 = vector.load %arg3[%c0_4, %c0_5] : memref<128x256xbf16, #tpu.memory_space<vmem>>, vector<128x256xbf16>
    %cst = arith.constant dense<0.000000e+00> : vector<8x256xf32>
    %6 = tpu.matmul %4, %5, %cst {dimension_numbers = #tpu.dot_dimension_numbers<[1], [0], [0], [1], [0, 0, 1, 1], [], []>} : vector<8x128xbf16>, vector<128x256xbf16>, vector<8x256xf32> -> vector<8x256xf32>
    %7 = arith.addf %3, %6 : vector<8x256xf32>
    %c0_6 = arith.constant 0 : index
    %c0_7 = arith.constant 0 : index
    %8 = vector.load %arg7[%c0_6, %c0_7] : memref<8x256xf32, #tpu.memory_space<vmem>>, vector<8x256xf32>
    tpu.vector_store %arg7[%c0_6, %c0_7], %7 {strides = array<i32>} : memref<8x256xf32, #tpu.memory_space<vmem>>, vector<8x256xf32>,
    %c0_i32_8 = arith.constant 0 : i32
    %9 = arith.cmpi eq, %arg1, %c0_i32_8 : i32
    %10 = arith.extui %9 : i1 to i32
    %c0_i32_9 = arith.constant 0 : i32
    %11 = arith.cmpi ne, %10, %c0_i32_9 : i32
    scf.if %11 {
      %c0_10 = arith.constant 0 : index
      %c0_11 = arith.constant 0 : index
      %12 = vector.load %arg7[%c0_10, %c0_11] : memref<8x256xf32, #tpu.memory_space<vmem>>, vector<8x256xf32>
      %c0_12 = arith.constant 0 : index
      %c0_13 = arith.constant 0 : index
      %13 = vector.load %arg4[%c0_12, %c0_13] : memref<1x256xf32, #tpu.memory_space<vmem>>, vector<1x256xf32>
      %14 = vector.broadcast %13 : vector<1x256xf32> to vector<8x256xf32>
      %15 = arith.mulf %12, %14 : vector<8x256xf32>
      %c0_14 = arith.constant 0 : index
      %c0_15 = arith.constant 0 : index
      %16 = vector.load %arg5[%c0_14, %c0_15] : memref<1x256xf32, #tpu.memory_space<vmem>>, vector<1x256xf32>
      %17 = vector.broadcast %16 : vector<1x256xf32> to vector<8x256xf32>
      %18 = arith.addf %15, %17 : vector<8x256xf32>
      %19 = arith.truncf %18 : vector<8x256xf32> to vector<8x256xbf16>
      %c0_16 = arith.constant 0 : index
      %c0_17 = arith.constant 0 : index
      %20 = vector.load %arg6[%c0_16, %c0_17] : memref<8x256xbf16, #tpu.memory_space<vmem>>, vector<8x256xbf16>
      tpu.vector_store %arg6[%c0_16, %c0_17], %19 {strides = array<i32>} : memref<8x256xbf16, #tpu.memory_space<vmem>>, vector<8x256xbf16>,
    } else {
    }
    return
  }
  func.func @transform_0(%arg0: i32, %arg1: i32) -> (i32, i32) {
    %c0_i32 = arith.constant 0 : i32
    return %arg0, %arg1 : i32, i32
  }
  func.func @transform_1(%arg0: i32, %arg1: i32) -> (i32, i32) {
    %c0_i32 = arith.constant 0 : i32
    %c0_i32_0 = arith.constant 0 : i32
    return %arg1, %c0_i32 : i32, i32
  }
  func.func @transform_2(%arg0: i32, %arg1: i32) -> (i32, i32) {
    %c0_i32 = arith.constant 0 : i32
    %c0_i32_0 = arith.constant 0 : i32
    %c0_i32_1 = arith.constant 0 : i32
    return %c0_i32, %c0_i32_0 : i32, i32
  }
  func.func @transform_3(%arg0: i32, %arg1: i32) -> (i32, i32) {
    %c0_i32 = arith.constant 0 : i32
    %c0_i32_0 = arith.constant 0 : i32
    %c0_i32_1 = arith.constant 0 : i32
    return %c0_i32, %c0_i32_0 : i32, i32
  }
  func.func @transform_4(%arg0: i32, %arg1: i32) -> (i32, i32) {
    %c0_i32 = arith.constant 0 : i32
    %c0_i32_0 = arith.constant 0 : i32
    return %arg0, %c0_i32 : i32, i32
  }
}

module attributes {stable_mosaic.version = 11 : i64} {
  func.func @_matmul_affine_kernel(%arg0: i32, %arg1: i32, %arg2: memref<8x512xbf16, #tpu.memory_space<vmem>>, %arg3: memref<512x256xbf16, #tpu.memory_space<vmem>>, %arg4: memref<1x256xf32, #tpu.memory_space<vmem>>, %arg5: memref<1x256xf32, #tpu.memory_space<vmem>>, %arg6: memref<8x256xbf16, #tpu.memory_space<vmem>>, %arg7: memref<8x256xbf16, #tpu.memory_space<vmem>>, %arg8: memref<8x256xf32, #tpu.memory_space<vmem>>) attributes {dimension_semantics = [#tpu.dimension_semantics<parallel>, #tpu.dimension_semantics<arbitrary>], iteration_bounds = array<i64: 1, 5>, scalar_prefetch = 0 : i64, scratch_operands = 1 : i64, tpu.core_type = #tpu.core_type<tc>, window_params = [{transform_indices = @transform_0, window_bounds = array<i64: 8, 512>}, {transform_indices = @transform_1, window_bounds = array<i64: 512, 256>}, {pipeline_mode = #tpu.pipeline_mode<synchronous>, transform_indices = @transform_2, window_bounds = array<i64: 1, 256>}, {pipeline_mode = #tpu.pipeline_mode<synchronous>, transform_indices = @transform_3, window_bounds = array<i64: 1, 256>}, {transform_indices = @transform_4, window_bounds = array<i64: 8, 256>}, {transform_indices = @transform_5, window_bounds = array<i64: 8, 256>}]} {
    %c0_i32 = arith.constant 0 : i32
    %0 = arith.cmpi eq, %arg1, %c0_i32 : i32
    %1 = arith.extui %0 : i1 to i32
    %c0_i32_0 = arith.constant 0 : i32
    %2 = arith.cmpi ne, %1, %c0_i32_0 : i32
    scf.if %2 {
      %cst_9 = arith.constant 0.000000e+00 : f32
      %12 = vector.broadcast %cst_9 : f32 to vector<8x256xf32>
      %c0_10 = arith.constant 0 : index
      %c0_11 = arith.constant 0 : index
      %13 = vector.load %arg8[%c0_10, %c0_11] : memref<8x256xf32, #tpu.memory_space<vmem>>, vector<8x256xf32>
      tpu.vector_store %arg8[%c0_10, %c0_11], %12 {strides = array<i32>} : memref<8x256xf32, #tpu.memory_space<vmem>>, vector<8x256xf32>,
    } else {
    }
    %c0 = arith.constant 0 : index
    %c0_1 = arith.constant 0 : index
    %3 = vector.load %arg8[%c0, %c0_1] : memref<8x256xf32, #tpu.memory_space<vmem>>, vector<8x256xf32>
    %c0_2 = arith.constant 0 : index
    %c0_3 = arith.constant 0 : index
    %4 = vector.load %arg2[%c0_2, %c0_3] : memref<8x512xbf16, #tpu.memory_space<vmem>>, vector<8x512xbf16>
    %c0_4 = arith.constant 0 : index
    %c0_5 = arith.constant 0 : index
    %5 = vector.load %arg3[%c0_4, %c0_5] : memref<512x256xbf16, #tpu.memory_space<vmem>>, vector<512x256xbf16>
    %cst = arith.constant dense<0.000000e+00> : vector<8x256xf32>
    %6 = tpu.matmul %4, %5, %cst {dimension_numbers = #tpu.dot_dimension_numbers<[1], [0], [0], [1], [0, 0, 1, 1], [], []>} : vector<8x512xbf16>, vector<512x256xbf16>, vector<8x256xf32> -> vector<8x256xf32>
    %7 = arith.addf %3, %6 : vector<8x256xf32>
    %c0_6 = arith.constant 0 : index
    %c0_7 = arith.constant 0 : index
    %8 = vector.load %arg8[%c0_6, %c0_7] : memref<8x256xf32, #tpu.memory_space<vmem>>, vector<8x256xf32>
    tpu.vector_store %arg8[%c0_6, %c0_7], %7 {strides = array<i32>} : memref<8x256xf32, #tpu.memory_space<vmem>>, vector<8x256xf32>,
    %c4_i32 = arith.constant 4 : i32
    %9 = arith.cmpi eq, %arg1, %c4_i32 : i32
    %10 = arith.extui %9 : i1 to i32
    %c0_i32_8 = arith.constant 0 : i32
    %11 = arith.cmpi ne, %10, %c0_i32_8 : i32
    scf.if %11 {
      %c0_9 = arith.constant 0 : index
      %c0_10 = arith.constant 0 : index
      %12 = vector.load %arg8[%c0_9, %c0_10] : memref<8x256xf32, #tpu.memory_space<vmem>>, vector<8x256xf32>
      %c0_11 = arith.constant 0 : index
      %c0_12 = arith.constant 0 : index
      %13 = vector.load %arg4[%c0_11, %c0_12] : memref<1x256xf32, #tpu.memory_space<vmem>>, vector<1x256xf32>
      %14 = vector.broadcast %13 : vector<1x256xf32> to vector<8x256xf32>
      %15 = arith.mulf %12, %14 : vector<8x256xf32>
      %c0_13 = arith.constant 0 : index
      %c0_14 = arith.constant 0 : index
      %16 = vector.load %arg5[%c0_13, %c0_14] : memref<1x256xf32, #tpu.memory_space<vmem>>, vector<1x256xf32>
      %17 = vector.broadcast %16 : vector<1x256xf32> to vector<8x256xf32>
      %18 = arith.addf %15, %17 : vector<8x256xf32>
      %c0_15 = arith.constant 0 : index
      %c0_16 = arith.constant 0 : index
      %19 = vector.load %arg6[%c0_15, %c0_16] : memref<8x256xbf16, #tpu.memory_space<vmem>>, vector<8x256xbf16>
      %20 = arith.extf %19 : vector<8x256xbf16> to vector<8x256xf32>
      %21 = arith.addf %18, %20 : vector<8x256xf32>
      %cst_17 = arith.constant 0.000000e+00 : f32
      %22 = vector.broadcast %cst_17 : f32 to vector<8x256xf32>
      %23 = arith.maximumf %21, %22 : vector<8x256xf32>
      %24 = arith.truncf %23 : vector<8x256xf32> to vector<8x256xbf16>
      %c0_18 = arith.constant 0 : index
      %c0_19 = arith.constant 0 : index
      %25 = vector.load %arg7[%c0_18, %c0_19] : memref<8x256xbf16, #tpu.memory_space<vmem>>, vector<8x256xbf16>
      tpu.vector_store %arg7[%c0_18, %c0_19], %24 {strides = array<i32>} : memref<8x256xbf16, #tpu.memory_space<vmem>>, vector<8x256xbf16>,
    } else {
    }
    return
  }
  func.func @transform_0(%arg0: i32, %arg1: i32) -> (i32, i32) {
    %c0_i32 = arith.constant 0 : i32
    return %arg0, %arg1 : i32, i32
  }
  func.func @transform_1(%arg0: i32, %arg1: i32) -> (i32, i32) {
    %c0_i32 = arith.constant 0 : i32
    %c0_i32_0 = arith.constant 0 : i32
    return %arg1, %c0_i32 : i32, i32
  }
  func.func @transform_2(%arg0: i32, %arg1: i32) -> (i32, i32) {
    %c0_i32 = arith.constant 0 : i32
    %c0_i32_0 = arith.constant 0 : i32
    %c0_i32_1 = arith.constant 0 : i32
    return %c0_i32, %c0_i32_0 : i32, i32
  }
  func.func @transform_3(%arg0: i32, %arg1: i32) -> (i32, i32) {
    %c0_i32 = arith.constant 0 : i32
    %c0_i32_0 = arith.constant 0 : i32
    %c0_i32_1 = arith.constant 0 : i32
    return %c0_i32, %c0_i32_0 : i32, i32
  }
  func.func @transform_4(%arg0: i32, %arg1: i32) -> (i32, i32) {
    %c0_i32 = arith.constant 0 : i32
    %c0_i32_0 = arith.constant 0 : i32
    return %arg0, %c0_i32 : i32, i32
  }
  func.func @transform_5(%arg0: i32, %arg1: i32) -> (i32, i32) {
    %c0_i32 = arith.constant 0 : i32
    %c0_i32_0 = arith.constant 0 : i32
    return %arg0, %c0_i32 : i32, i32
  }
}

module attributes {stable_mosaic.version = 11 : i64} {
  func.func @_matmul_affine_kernel(%arg0: i32, %arg1: i32, %arg2: memref<8x512xbf16, #tpu.memory_space<vmem>>, %arg3: memref<512x256xbf16, #tpu.memory_space<vmem>>, %arg4: memref<1x256xf32, #tpu.memory_space<vmem>>, %arg5: memref<1x256xf32, #tpu.memory_space<vmem>>, %arg6: memref<8x256xbf16, #tpu.memory_space<vmem>>, %arg7: memref<8x256xf32, #tpu.memory_space<vmem>>) attributes {dimension_semantics = [#tpu.dimension_semantics<parallel>, #tpu.dimension_semantics<arbitrary>], iteration_bounds = array<i64: 1, 5>, scalar_prefetch = 0 : i64, scratch_operands = 1 : i64, tpu.core_type = #tpu.core_type<tc>, window_params = [{transform_indices = @transform_0, window_bounds = array<i64: 8, 512>}, {transform_indices = @transform_1, window_bounds = array<i64: 512, 256>}, {pipeline_mode = #tpu.pipeline_mode<synchronous>, transform_indices = @transform_2, window_bounds = array<i64: 1, 256>}, {pipeline_mode = #tpu.pipeline_mode<synchronous>, transform_indices = @transform_3, window_bounds = array<i64: 1, 256>}, {transform_indices = @transform_4, window_bounds = array<i64: 8, 256>}]} {
    %c0_i32 = arith.constant 0 : i32
    %0 = arith.cmpi eq, %arg1, %c0_i32 : i32
    %1 = arith.extui %0 : i1 to i32
    %c0_i32_0 = arith.constant 0 : i32
    %2 = arith.cmpi ne, %1, %c0_i32_0 : i32
    scf.if %2 {
      %cst_9 = arith.constant 0.000000e+00 : f32
      %12 = vector.broadcast %cst_9 : f32 to vector<8x256xf32>
      %c0_10 = arith.constant 0 : index
      %c0_11 = arith.constant 0 : index
      %13 = vector.load %arg7[%c0_10, %c0_11] : memref<8x256xf32, #tpu.memory_space<vmem>>, vector<8x256xf32>
      tpu.vector_store %arg7[%c0_10, %c0_11], %12 {strides = array<i32>} : memref<8x256xf32, #tpu.memory_space<vmem>>, vector<8x256xf32>,
    } else {
    }
    %c0 = arith.constant 0 : index
    %c0_1 = arith.constant 0 : index
    %3 = vector.load %arg7[%c0, %c0_1] : memref<8x256xf32, #tpu.memory_space<vmem>>, vector<8x256xf32>
    %c0_2 = arith.constant 0 : index
    %c0_3 = arith.constant 0 : index
    %4 = vector.load %arg2[%c0_2, %c0_3] : memref<8x512xbf16, #tpu.memory_space<vmem>>, vector<8x512xbf16>
    %c0_4 = arith.constant 0 : index
    %c0_5 = arith.constant 0 : index
    %5 = vector.load %arg3[%c0_4, %c0_5] : memref<512x256xbf16, #tpu.memory_space<vmem>>, vector<512x256xbf16>
    %cst = arith.constant dense<0.000000e+00> : vector<8x256xf32>
    %6 = tpu.matmul %4, %5, %cst {dimension_numbers = #tpu.dot_dimension_numbers<[1], [0], [0], [1], [0, 0, 1, 1], [], []>} : vector<8x512xbf16>, vector<512x256xbf16>, vector<8x256xf32> -> vector<8x256xf32>
    %7 = arith.addf %3, %6 : vector<8x256xf32>
    %c0_6 = arith.constant 0 : index
    %c0_7 = arith.constant 0 : index
    %8 = vector.load %arg7[%c0_6, %c0_7] : memref<8x256xf32, #tpu.memory_space<vmem>>, vector<8x256xf32>
    tpu.vector_store %arg7[%c0_6, %c0_7], %7 {strides = array<i32>} : memref<8x256xf32, #tpu.memory_space<vmem>>, vector<8x256xf32>,
    %c4_i32 = arith.constant 4 : i32
    %9 = arith.cmpi eq, %arg1, %c4_i32 : i32
    %10 = arith.extui %9 : i1 to i32
    %c0_i32_8 = arith.constant 0 : i32
    %11 = arith.cmpi ne, %10, %c0_i32_8 : i32
    scf.if %11 {
      %c0_9 = arith.constant 0 : index
      %c0_10 = arith.constant 0 : index
      %12 = vector.load %arg7[%c0_9, %c0_10] : memref<8x256xf32, #tpu.memory_space<vmem>>, vector<8x256xf32>
      %c0_11 = arith.constant 0 : index
      %c0_12 = arith.constant 0 : index
      %13 = vector.load %arg4[%c0_11, %c0_12] : memref<1x256xf32, #tpu.memory_space<vmem>>, vector<1x256xf32>
      %14 = vector.broadcast %13 : vector<1x256xf32> to vector<8x256xf32>
      %15 = arith.mulf %12, %14 : vector<8x256xf32>
      %c0_13 = arith.constant 0 : index
      %c0_14 = arith.constant 0 : index
      %16 = vector.load %arg5[%c0_13, %c0_14] : memref<1x256xf32, #tpu.memory_space<vmem>>, vector<1x256xf32>
      %17 = vector.broadcast %16 : vector<1x256xf32> to vector<8x256xf32>
      %18 = arith.addf %15, %17 : vector<8x256xf32>
      %cst_15 = arith.constant 0.000000e+00 : f32
      %19 = vector.broadcast %cst_15 : f32 to vector<8x256xf32>
      %20 = arith.maximumf %18, %19 : vector<8x256xf32>
      %21 = arith.truncf %20 : vector<8x256xf32> to vector<8x256xbf16>
      %c0_16 = arith.constant 0 : index
      %c0_17 = arith.constant 0 : index
      %22 = vector.load %arg6[%c0_16, %c0_17] : memref<8x256xbf16, #tpu.memory_space<vmem>>, vector<8x256xbf16>
      tpu.vector_store %arg6[%c0_16, %c0_17], %21 {strides = array<i32>} : memref<8x256xbf16, #tpu.memory_space<vmem>>, vector<8x256xbf16>,
    } else {
    }
    return
  }
  func.func @transform_0(%arg0: i32, %arg1: i32) -> (i32, i32) {
    %c0_i32 = arith.constant 0 : i32
    return %arg0, %arg1 : i32, i32
  }
  func.func @transform_1(%arg0: i32, %arg1: i32) -> (i32, i32) {
    %c0_i32 = arith.constant 0 : i32
    %c0_i32_0 = arith.constant 0 : i32
    return %arg1, %c0_i32 : i32, i32
  }
  func.func @transform_2(%arg0: i32, %arg1: i32) -> (i32, i32) {
    %c0_i32 = arith.constant 0 : i32
    %c0_i32_0 = arith.constant 0 : i32
    %c0_i32_1 = arith.constant 0 : i32
    return %c0_i32, %c0_i32_0 : i32, i32
  }
  func.func @transform_3(%arg0: i32, %arg1: i32) -> (i32, i32) {
    %c0_i32 = arith.constant 0 : i32
    %c0_i32_0 = arith.constant 0 : i32
    %c0_i32_1 = arith.constant 0 : i32
    return %c0_i32, %c0_i32_0 : i32, i32
  }
  func.func @transform_4(%arg0: i32, %arg1: i32) -> (i32, i32) {
    %c0_i32 = arith.constant 0 : i32
    %c0_i32_0 = arith.constant 0 : i32
    return %arg0, %c0_i32 : i32, i32
  }
}

module attributes {stable_mosaic.version = 11 : i64} {
  func.func @_matmul_affine_kernel(%arg0: i32, %arg1: i32, %arg2: memref<8x512xbf16, #tpu.memory_space<vmem>>, %arg3: memref<512x512xbf16, #tpu.memory_space<vmem>>, %arg4: memref<1x512xf32, #tpu.memory_space<vmem>>, %arg5: memref<1x512xf32, #tpu.memory_space<vmem>>, %arg6: memref<8x512xbf16, #tpu.memory_space<vmem>>, %arg7: memref<8x512xf32, #tpu.memory_space<vmem>>) attributes {dimension_semantics = [#tpu.dimension_semantics<parallel>, #tpu.dimension_semantics<arbitrary>], iteration_bounds = array<i64: 1, 5>, scalar_prefetch = 0 : i64, scratch_operands = 1 : i64, tpu.core_type = #tpu.core_type<tc>, window_params = [{transform_indices = @transform_0, window_bounds = array<i64: 8, 512>}, {transform_indices = @transform_1, window_bounds = array<i64: 512, 512>}, {pipeline_mode = #tpu.pipeline_mode<synchronous>, transform_indices = @transform_2, window_bounds = array<i64: 1, 512>}, {pipeline_mode = #tpu.pipeline_mode<synchronous>, transform_indices = @transform_3, window_bounds = array<i64: 1, 512>}, {transform_indices = @transform_4, window_bounds = array<i64: 8, 512>}]} {
    %c0_i32 = arith.constant 0 : i32
    %0 = arith.cmpi eq, %arg1, %c0_i32 : i32
    %1 = arith.extui %0 : i1 to i32
    %c0_i32_0 = arith.constant 0 : i32
    %2 = arith.cmpi ne, %1, %c0_i32_0 : i32
    scf.if %2 {
      %cst_9 = arith.constant 0.000000e+00 : f32
      %12 = vector.broadcast %cst_9 : f32 to vector<8x512xf32>
      %c0_10 = arith.constant 0 : index
      %c0_11 = arith.constant 0 : index
      %13 = vector.load %arg7[%c0_10, %c0_11] : memref<8x512xf32, #tpu.memory_space<vmem>>, vector<8x512xf32>
      tpu.vector_store %arg7[%c0_10, %c0_11], %12 {strides = array<i32>} : memref<8x512xf32, #tpu.memory_space<vmem>>, vector<8x512xf32>,
    } else {
    }
    %c0 = arith.constant 0 : index
    %c0_1 = arith.constant 0 : index
    %3 = vector.load %arg7[%c0, %c0_1] : memref<8x512xf32, #tpu.memory_space<vmem>>, vector<8x512xf32>
    %c0_2 = arith.constant 0 : index
    %c0_3 = arith.constant 0 : index
    %4 = vector.load %arg2[%c0_2, %c0_3] : memref<8x512xbf16, #tpu.memory_space<vmem>>, vector<8x512xbf16>
    %c0_4 = arith.constant 0 : index
    %c0_5 = arith.constant 0 : index
    %5 = vector.load %arg3[%c0_4, %c0_5] : memref<512x512xbf16, #tpu.memory_space<vmem>>, vector<512x512xbf16>
    %cst = arith.constant dense<0.000000e+00> : vector<8x512xf32>
    %6 = tpu.matmul %4, %5, %cst {dimension_numbers = #tpu.dot_dimension_numbers<[1], [0], [0], [1], [0, 0, 1, 1], [], []>} : vector<8x512xbf16>, vector<512x512xbf16>, vector<8x512xf32> -> vector<8x512xf32>
    %7 = arith.addf %3, %6 : vector<8x512xf32>
    %c0_6 = arith.constant 0 : index
    %c0_7 = arith.constant 0 : index
    %8 = vector.load %arg7[%c0_6, %c0_7] : memref<8x512xf32, #tpu.memory_space<vmem>>, vector<8x512xf32>
    tpu.vector_store %arg7[%c0_6, %c0_7], %7 {strides = array<i32>} : memref<8x512xf32, #tpu.memory_space<vmem>>, vector<8x512xf32>,
    %c4_i32 = arith.constant 4 : i32
    %9 = arith.cmpi eq, %arg1, %c4_i32 : i32
    %10 = arith.extui %9 : i1 to i32
    %c0_i32_8 = arith.constant 0 : i32
    %11 = arith.cmpi ne, %10, %c0_i32_8 : i32
    scf.if %11 {
      %c0_9 = arith.constant 0 : index
      %c0_10 = arith.constant 0 : index
      %12 = vector.load %arg7[%c0_9, %c0_10] : memref<8x512xf32, #tpu.memory_space<vmem>>, vector<8x512xf32>
      %c0_11 = arith.constant 0 : index
      %c0_12 = arith.constant 0 : index
      %13 = vector.load %arg4[%c0_11, %c0_12] : memref<1x512xf32, #tpu.memory_space<vmem>>, vector<1x512xf32>
      %14 = vector.broadcast %13 : vector<1x512xf32> to vector<8x512xf32>
      %15 = arith.mulf %12, %14 : vector<8x512xf32>
      %c0_13 = arith.constant 0 : index
      %c0_14 = arith.constant 0 : index
      %16 = vector.load %arg5[%c0_13, %c0_14] : memref<1x512xf32, #tpu.memory_space<vmem>>, vector<1x512xf32>
      %17 = vector.broadcast %16 : vector<1x512xf32> to vector<8x512xf32>
      %18 = arith.addf %15, %17 : vector<8x512xf32>
      %cst_15 = arith.constant 0.000000e+00 : f32
      %19 = vector.broadcast %cst_15 : f32 to vector<8x512xf32>
      %20 = arith.maximumf %18, %19 : vector<8x512xf32>
      %21 = arith.truncf %20 : vector<8x512xf32> to vector<8x512xbf16>
      %c0_16 = arith.constant 0 : index
      %c0_17 = arith.constant 0 : index
      %22 = vector.load %arg6[%c0_16, %c0_17] : memref<8x512xbf16, #tpu.memory_space<vmem>>, vector<8x512xbf16>
      tpu.vector_store %arg6[%c0_16, %c0_17], %21 {strides = array<i32>} : memref<8x512xbf16, #tpu.memory_space<vmem>>, vector<8x512xbf16>,
    } else {
    }
    return
  }
  func.func @transform_0(%arg0: i32, %arg1: i32) -> (i32, i32) {
    %c0_i32 = arith.constant 0 : i32
    return %arg0, %arg1 : i32, i32
  }
  func.func @transform_1(%arg0: i32, %arg1: i32) -> (i32, i32) {
    %c0_i32 = arith.constant 0 : i32
    %c0_i32_0 = arith.constant 0 : i32
    return %arg1, %c0_i32 : i32, i32
  }
  func.func @transform_2(%arg0: i32, %arg1: i32) -> (i32, i32) {
    %c0_i32 = arith.constant 0 : i32
    %c0_i32_0 = arith.constant 0 : i32
    %c0_i32_1 = arith.constant 0 : i32
    return %c0_i32, %c0_i32_0 : i32, i32
  }
  func.func @transform_3(%arg0: i32, %arg1: i32) -> (i32, i32) {
    %c0_i32 = arith.constant 0 : i32
    %c0_i32_0 = arith.constant 0 : i32
    %c0_i32_1 = arith.constant 0 : i32
    return %c0_i32, %c0_i32_0 : i32, i32
  }
  func.func @transform_4(%arg0: i32, %arg1: i32) -> (i32, i32) {
    %c0_i32 = arith.constant 0 : i32
    %c0_i32_0 = arith.constant 0 : i32
    return %arg0, %c0_i32 : i32, i32
  }
}

module attributes {stable_mosaic.version = 11 : i64} {
  func.func @_matmul_affine_kernel(%arg0: i32, %arg1: i32, %arg2: memref<8x256xbf16, #tpu.memory_space<vmem>>, %arg3: memref<256x512xbf16, #tpu.memory_space<vmem>>, %arg4: memref<1x512xf32, #tpu.memory_space<vmem>>, %arg5: memref<1x512xf32, #tpu.memory_space<vmem>>, %arg6: memref<8x512xbf16, #tpu.memory_space<vmem>>, %arg7: memref<8x512xf32, #tpu.memory_space<vmem>>) attributes {dimension_semantics = [#tpu.dimension_semantics<parallel>, #tpu.dimension_semantics<arbitrary>], iteration_bounds = array<i64: 1, 1>, scalar_prefetch = 0 : i64, scratch_operands = 1 : i64, tpu.core_type = #tpu.core_type<tc>, window_params = [{transform_indices = @transform_0, window_bounds = array<i64: 8, 256>}, {transform_indices = @transform_1, window_bounds = array<i64: 256, 512>}, {pipeline_mode = #tpu.pipeline_mode<synchronous>, transform_indices = @transform_2, window_bounds = array<i64: 1, 512>}, {pipeline_mode = #tpu.pipeline_mode<synchronous>, transform_indices = @transform_3, window_bounds = array<i64: 1, 512>}, {transform_indices = @transform_4, window_bounds = array<i64: 8, 512>}]} {
    %c0_i32 = arith.constant 0 : i32
    %0 = arith.cmpi eq, %arg1, %c0_i32 : i32
    %1 = arith.extui %0 : i1 to i32
    %c0_i32_0 = arith.constant 0 : i32
    %2 = arith.cmpi ne, %1, %c0_i32_0 : i32
    scf.if %2 {
      %cst_10 = arith.constant 0.000000e+00 : f32
      %12 = vector.broadcast %cst_10 : f32 to vector<8x512xf32>
      %c0_11 = arith.constant 0 : index
      %c0_12 = arith.constant 0 : index
      %13 = vector.load %arg7[%c0_11, %c0_12] : memref<8x512xf32, #tpu.memory_space<vmem>>, vector<8x512xf32>
      tpu.vector_store %arg7[%c0_11, %c0_12], %12 {strides = array<i32>} : memref<8x512xf32, #tpu.memory_space<vmem>>, vector<8x512xf32>,
    } else {
    }
    %c0 = arith.constant 0 : index
    %c0_1 = arith.constant 0 : index
    %3 = vector.load %arg7[%c0, %c0_1] : memref<8x512xf32, #tpu.memory_space<vmem>>, vector<8x512xf32>
    %c0_2 = arith.constant 0 : index
    %c0_3 = arith.constant 0 : index
    %4 = vector.load %arg2[%c0_2, %c0_3] : memref<8x256xbf16, #tpu.memory_space<vmem>>, vector<8x256xbf16>
    %c0_4 = arith.constant 0 : index
    %c0_5 = arith.constant 0 : index
    %5 = vector.load %arg3[%c0_4, %c0_5] : memref<256x512xbf16, #tpu.memory_space<vmem>>, vector<256x512xbf16>
    %cst = arith.constant dense<0.000000e+00> : vector<8x512xf32>
    %6 = tpu.matmul %4, %5, %cst {dimension_numbers = #tpu.dot_dimension_numbers<[1], [0], [0], [1], [0, 0, 1, 1], [], []>} : vector<8x256xbf16>, vector<256x512xbf16>, vector<8x512xf32> -> vector<8x512xf32>
    %7 = arith.addf %3, %6 : vector<8x512xf32>
    %c0_6 = arith.constant 0 : index
    %c0_7 = arith.constant 0 : index
    %8 = vector.load %arg7[%c0_6, %c0_7] : memref<8x512xf32, #tpu.memory_space<vmem>>, vector<8x512xf32>
    tpu.vector_store %arg7[%c0_6, %c0_7], %7 {strides = array<i32>} : memref<8x512xf32, #tpu.memory_space<vmem>>, vector<8x512xf32>,
    %c0_i32_8 = arith.constant 0 : i32
    %9 = arith.cmpi eq, %arg1, %c0_i32_8 : i32
    %10 = arith.extui %9 : i1 to i32
    %c0_i32_9 = arith.constant 0 : i32
    %11 = arith.cmpi ne, %10, %c0_i32_9 : i32
    scf.if %11 {
      %c0_10 = arith.constant 0 : index
      %c0_11 = arith.constant 0 : index
      %12 = vector.load %arg7[%c0_10, %c0_11] : memref<8x512xf32, #tpu.memory_space<vmem>>, vector<8x512xf32>
      %c0_12 = arith.constant 0 : index
      %c0_13 = arith.constant 0 : index
      %13 = vector.load %arg4[%c0_12, %c0_13] : memref<1x512xf32, #tpu.memory_space<vmem>>, vector<1x512xf32>
      %14 = vector.broadcast %13 : vector<1x512xf32> to vector<8x512xf32>
      %15 = arith.mulf %12, %14 : vector<8x512xf32>
      %c0_14 = arith.constant 0 : index
      %c0_15 = arith.constant 0 : index
      %16 = vector.load %arg5[%c0_14, %c0_15] : memref<1x512xf32, #tpu.memory_space<vmem>>, vector<1x512xf32>
      %17 = vector.broadcast %16 : vector<1x512xf32> to vector<8x512xf32>
      %18 = arith.addf %15, %17 : vector<8x512xf32>
      %19 = arith.truncf %18 : vector<8x512xf32> to vector<8x512xbf16>
      %c0_16 = arith.constant 0 : index
      %c0_17 = arith.constant 0 : index
      %20 = vector.load %arg6[%c0_16, %c0_17] : memref<8x512xbf16, #tpu.memory_space<vmem>>, vector<8x512xbf16>
      tpu.vector_store %arg6[%c0_16, %c0_17], %19 {strides = array<i32>} : memref<8x512xbf16, #tpu.memory_space<vmem>>, vector<8x512xbf16>,
    } else {
    }
    return
  }
  func.func @transform_0(%arg0: i32, %arg1: i32) -> (i32, i32) {
    %c0_i32 = arith.constant 0 : i32
    return %arg0, %arg1 : i32, i32
  }
  func.func @transform_1(%arg0: i32, %arg1: i32) -> (i32, i32) {
    %c0_i32 = arith.constant 0 : i32
    %c0_i32_0 = arith.constant 0 : i32
    return %arg1, %c0_i32 : i32, i32
  }
  func.func @transform_2(%arg0: i32, %arg1: i32) -> (i32, i32) {
    %c0_i32 = arith.constant 0 : i32
    %c0_i32_0 = arith.constant 0 : i32
    %c0_i32_1 = arith.constant 0 : i32
    return %c0_i32, %c0_i32_0 : i32, i32
  }
  func.func @transform_3(%arg0: i32, %arg1: i32) -> (i32, i32) {
    %c0_i32 = arith.constant 0 : i32
    %c0_i32_0 = arith.constant 0 : i32
    %c0_i32_1 = arith.constant 0 : i32
    return %c0_i32, %c0_i32_0 : i32, i32
  }
  func.func @transform_4(%arg0: i32, %arg1: i32) -> (i32, i32) {
    %c0_i32 = arith.constant 0 : i32
    %c0_i32_0 = arith.constant 0 : i32
    return %arg0, %c0_i32 : i32, i32
  }
}

module attributes {stable_mosaic.version = 11 : i64} {
  func.func @_matmul_affine_kernel(%arg0: i32, %arg1: i32, %arg2: memref<8x512xbf16, #tpu.memory_space<vmem>>, %arg3: memref<512x512xbf16, #tpu.memory_space<vmem>>, %arg4: memref<1x512xf32, #tpu.memory_space<vmem>>, %arg5: memref<1x512xf32, #tpu.memory_space<vmem>>, %arg6: memref<8x512xbf16, #tpu.memory_space<vmem>>, %arg7: memref<8x512xbf16, #tpu.memory_space<vmem>>, %arg8: memref<8x512xf32, #tpu.memory_space<vmem>>) attributes {dimension_semantics = [#tpu.dimension_semantics<parallel>, #tpu.dimension_semantics<arbitrary>], iteration_bounds = array<i64: 1, 9>, scalar_prefetch = 0 : i64, scratch_operands = 1 : i64, tpu.core_type = #tpu.core_type<tc>, window_params = [{transform_indices = @transform_0, window_bounds = array<i64: 8, 512>}, {transform_indices = @transform_1, window_bounds = array<i64: 512, 512>}, {pipeline_mode = #tpu.pipeline_mode<synchronous>, transform_indices = @transform_2, window_bounds = array<i64: 1, 512>}, {pipeline_mode = #tpu.pipeline_mode<synchronous>, transform_indices = @transform_3, window_bounds = array<i64: 1, 512>}, {transform_indices = @transform_4, window_bounds = array<i64: 8, 512>}, {transform_indices = @transform_5, window_bounds = array<i64: 8, 512>}]} {
    %c0_i32 = arith.constant 0 : i32
    %0 = arith.cmpi eq, %arg1, %c0_i32 : i32
    %1 = arith.extui %0 : i1 to i32
    %c0_i32_0 = arith.constant 0 : i32
    %2 = arith.cmpi ne, %1, %c0_i32_0 : i32
    scf.if %2 {
      %cst_9 = arith.constant 0.000000e+00 : f32
      %12 = vector.broadcast %cst_9 : f32 to vector<8x512xf32>
      %c0_10 = arith.constant 0 : index
      %c0_11 = arith.constant 0 : index
      %13 = vector.load %arg8[%c0_10, %c0_11] : memref<8x512xf32, #tpu.memory_space<vmem>>, vector<8x512xf32>
      tpu.vector_store %arg8[%c0_10, %c0_11], %12 {strides = array<i32>} : memref<8x512xf32, #tpu.memory_space<vmem>>, vector<8x512xf32>,
    } else {
    }
    %c0 = arith.constant 0 : index
    %c0_1 = arith.constant 0 : index
    %3 = vector.load %arg8[%c0, %c0_1] : memref<8x512xf32, #tpu.memory_space<vmem>>, vector<8x512xf32>
    %c0_2 = arith.constant 0 : index
    %c0_3 = arith.constant 0 : index
    %4 = vector.load %arg2[%c0_2, %c0_3] : memref<8x512xbf16, #tpu.memory_space<vmem>>, vector<8x512xbf16>
    %c0_4 = arith.constant 0 : index
    %c0_5 = arith.constant 0 : index
    %5 = vector.load %arg3[%c0_4, %c0_5] : memref<512x512xbf16, #tpu.memory_space<vmem>>, vector<512x512xbf16>
    %cst = arith.constant dense<0.000000e+00> : vector<8x512xf32>
    %6 = tpu.matmul %4, %5, %cst {dimension_numbers = #tpu.dot_dimension_numbers<[1], [0], [0], [1], [0, 0, 1, 1], [], []>} : vector<8x512xbf16>, vector<512x512xbf16>, vector<8x512xf32> -> vector<8x512xf32>
    %7 = arith.addf %3, %6 : vector<8x512xf32>
    %c0_6 = arith.constant 0 : index
    %c0_7 = arith.constant 0 : index
    %8 = vector.load %arg8[%c0_6, %c0_7] : memref<8x512xf32, #tpu.memory_space<vmem>>, vector<8x512xf32>
    tpu.vector_store %arg8[%c0_6, %c0_7], %7 {strides = array<i32>} : memref<8x512xf32, #tpu.memory_space<vmem>>, vector<8x512xf32>,
    %c8_i32 = arith.constant 8 : i32
    %9 = arith.cmpi eq, %arg1, %c8_i32 : i32
    %10 = arith.extui %9 : i1 to i32
    %c0_i32_8 = arith.constant 0 : i32
    %11 = arith.cmpi ne, %10, %c0_i32_8 : i32
    scf.if %11 {
      %c0_9 = arith.constant 0 : index
      %c0_10 = arith.constant 0 : index
      %12 = vector.load %arg8[%c0_9, %c0_10] : memref<8x512xf32, #tpu.memory_space<vmem>>, vector<8x512xf32>
      %c0_11 = arith.constant 0 : index
      %c0_12 = arith.constant 0 : index
      %13 = vector.load %arg4[%c0_11, %c0_12] : memref<1x512xf32, #tpu.memory_space<vmem>>, vector<1x512xf32>
      %14 = vector.broadcast %13 : vector<1x512xf32> to vector<8x512xf32>
      %15 = arith.mulf %12, %14 : vector<8x512xf32>
      %c0_13 = arith.constant 0 : index
      %c0_14 = arith.constant 0 : index
      %16 = vector.load %arg5[%c0_13, %c0_14] : memref<1x512xf32, #tpu.memory_space<vmem>>, vector<1x512xf32>
      %17 = vector.broadcast %16 : vector<1x512xf32> to vector<8x512xf32>
      %18 = arith.addf %15, %17 : vector<8x512xf32>
      %c0_15 = arith.constant 0 : index
      %c0_16 = arith.constant 0 : index
      %19 = vector.load %arg6[%c0_15, %c0_16] : memref<8x512xbf16, #tpu.memory_space<vmem>>, vector<8x512xbf16>
      %20 = arith.extf %19 : vector<8x512xbf16> to vector<8x512xf32>
      %21 = arith.addf %18, %20 : vector<8x512xf32>
      %cst_17 = arith.constant 0.000000e+00 : f32
      %22 = vector.broadcast %cst_17 : f32 to vector<8x512xf32>
      %23 = arith.maximumf %21, %22 : vector<8x512xf32>
      %24 = arith.truncf %23 : vector<8x512xf32> to vector<8x512xbf16>
      %c0_18 = arith.constant 0 : index
      %c0_19 = arith.constant 0 : index
      %25 = vector.load %arg7[%c0_18, %c0_19] : memref<8x512xbf16, #tpu.memory_space<vmem>>, vector<8x512xbf16>
      tpu.vector_store %arg7[%c0_18, %c0_19], %24 {strides = array<i32>} : memref<8x512xbf16, #tpu.memory_space<vmem>>, vector<8x512xbf16>,
    } else {
    }
    return
  }
  func.func @transform_0(%arg0: i32, %arg1: i32) -> (i32, i32) {
    %c0_i32 = arith.constant 0 : i32
    return %arg0, %arg1 : i32, i32
  }
  func.func @transform_1(%arg0: i32, %arg1: i32) -> (i32, i32) {
    %c0_i32 = arith.constant 0 : i32
    %c0_i32_0 = arith.constant 0 : i32
    return %arg1, %c0_i32 : i32, i32
  }
  func.func @transform_2(%arg0: i32, %arg1: i32) -> (i32, i32) {
    %c0_i32 = arith.constant 0 : i32
    %c0_i32_0 = arith.constant 0 : i32
    %c0_i32_1 = arith.constant 0 : i32
    return %c0_i32, %c0_i32_0 : i32, i32
  }
  func.func @transform_3(%arg0: i32, %arg1: i32) -> (i32, i32) {
    %c0_i32 = arith.constant 0 : i32
    %c0_i32_0 = arith.constant 0 : i32
    %c0_i32_1 = arith.constant 0 : i32
    return %c0_i32, %c0_i32_0 : i32, i32
  }
  func.func @transform_4(%arg0: i32, %arg1: i32) -> (i32, i32) {
    %c0_i32 = arith.constant 0 : i32
    %c0_i32_0 = arith.constant 0 : i32
    return %arg0, %c0_i32 : i32, i32
  }
  func.func @transform_5(%arg0: i32, %arg1: i32) -> (i32, i32) {
    %c0_i32 = arith.constant 0 : i32
    %c0_i32_0 = arith.constant 0 : i32
    return %arg0, %c0_i32 : i32, i32
  }
}

module attributes {stable_mosaic.version = 11 : i64} {
  func.func @_matmul_affine_kernel(%arg0: i32, %arg1: i32, %arg2: memref<8x512xbf16, #tpu.memory_space<vmem>>, %arg3: memref<512x512xbf16, #tpu.memory_space<vmem>>, %arg4: memref<1x512xf32, #tpu.memory_space<vmem>>, %arg5: memref<1x512xf32, #tpu.memory_space<vmem>>, %arg6: memref<8x512xbf16, #tpu.memory_space<vmem>>, %arg7: memref<8x512xf32, #tpu.memory_space<vmem>>) attributes {dimension_semantics = [#tpu.dimension_semantics<parallel>, #tpu.dimension_semantics<arbitrary>], iteration_bounds = array<i64: 1, 9>, scalar_prefetch = 0 : i64, scratch_operands = 1 : i64, tpu.core_type = #tpu.core_type<tc>, window_params = [{transform_indices = @transform_0, window_bounds = array<i64: 8, 512>}, {transform_indices = @transform_1, window_bounds = array<i64: 512, 512>}, {pipeline_mode = #tpu.pipeline_mode<synchronous>, transform_indices = @transform_2, window_bounds = array<i64: 1, 512>}, {pipeline_mode = #tpu.pipeline_mode<synchronous>, transform_indices = @transform_3, window_bounds = array<i64: 1, 512>}, {transform_indices = @transform_4, window_bounds = array<i64: 8, 512>}]} {
    %c0_i32 = arith.constant 0 : i32
    %0 = arith.cmpi eq, %arg1, %c0_i32 : i32
    %1 = arith.extui %0 : i1 to i32
    %c0_i32_0 = arith.constant 0 : i32
    %2 = arith.cmpi ne, %1, %c0_i32_0 : i32
    scf.if %2 {
      %cst_9 = arith.constant 0.000000e+00 : f32
      %12 = vector.broadcast %cst_9 : f32 to vector<8x512xf32>
      %c0_10 = arith.constant 0 : index
      %c0_11 = arith.constant 0 : index
      %13 = vector.load %arg7[%c0_10, %c0_11] : memref<8x512xf32, #tpu.memory_space<vmem>>, vector<8x512xf32>
      tpu.vector_store %arg7[%c0_10, %c0_11], %12 {strides = array<i32>} : memref<8x512xf32, #tpu.memory_space<vmem>>, vector<8x512xf32>,
    } else {
    }
    %c0 = arith.constant 0 : index
    %c0_1 = arith.constant 0 : index
    %3 = vector.load %arg7[%c0, %c0_1] : memref<8x512xf32, #tpu.memory_space<vmem>>, vector<8x512xf32>
    %c0_2 = arith.constant 0 : index
    %c0_3 = arith.constant 0 : index
    %4 = vector.load %arg2[%c0_2, %c0_3] : memref<8x512xbf16, #tpu.memory_space<vmem>>, vector<8x512xbf16>
    %c0_4 = arith.constant 0 : index
    %c0_5 = arith.constant 0 : index
    %5 = vector.load %arg3[%c0_4, %c0_5] : memref<512x512xbf16, #tpu.memory_space<vmem>>, vector<512x512xbf16>
    %cst = arith.constant dense<0.000000e+00> : vector<8x512xf32>
    %6 = tpu.matmul %4, %5, %cst {dimension_numbers = #tpu.dot_dimension_numbers<[1], [0], [0], [1], [0, 0, 1, 1], [], []>} : vector<8x512xbf16>, vector<512x512xbf16>, vector<8x512xf32> -> vector<8x512xf32>
    %7 = arith.addf %3, %6 : vector<8x512xf32>
    %c0_6 = arith.constant 0 : index
    %c0_7 = arith.constant 0 : index
    %8 = vector.load %arg7[%c0_6, %c0_7] : memref<8x512xf32, #tpu.memory_space<vmem>>, vector<8x512xf32>
    tpu.vector_store %arg7[%c0_6, %c0_7], %7 {strides = array<i32>} : memref<8x512xf32, #tpu.memory_space<vmem>>, vector<8x512xf32>,
    %c8_i32 = arith.constant 8 : i32
    %9 = arith.cmpi eq, %arg1, %c8_i32 : i32
    %10 = arith.extui %9 : i1 to i32
    %c0_i32_8 = arith.constant 0 : i32
    %11 = arith.cmpi ne, %10, %c0_i32_8 : i32
    scf.if %11 {
      %c0_9 = arith.constant 0 : index
      %c0_10 = arith.constant 0 : index
      %12 = vector.load %arg7[%c0_9, %c0_10] : memref<8x512xf32, #tpu.memory_space<vmem>>, vector<8x512xf32>
      %c0_11 = arith.constant 0 : index
      %c0_12 = arith.constant 0 : index
      %13 = vector.load %arg4[%c0_11, %c0_12] : memref<1x512xf32, #tpu.memory_space<vmem>>, vector<1x512xf32>
      %14 = vector.broadcast %13 : vector<1x512xf32> to vector<8x512xf32>
      %15 = arith.mulf %12, %14 : vector<8x512xf32>
      %c0_13 = arith.constant 0 : index
      %c0_14 = arith.constant 0 : index
      %16 = vector.load %arg5[%c0_13, %c0_14] : memref<1x512xf32, #tpu.memory_space<vmem>>, vector<1x512xf32>
      %17 = vector.broadcast %16 : vector<1x512xf32> to vector<8x512xf32>
      %18 = arith.addf %15, %17 : vector<8x512xf32>
      %cst_15 = arith.constant 0.000000e+00 : f32
      %19 = vector.broadcast %cst_15 : f32 to vector<8x512xf32>
      %20 = arith.maximumf %18, %19 : vector<8x512xf32>
      %21 = arith.truncf %20 : vector<8x512xf32> to vector<8x512xbf16>
      %c0_16 = arith.constant 0 : index
      %c0_17 = arith.constant 0 : index
      %22 = vector.load %arg6[%c0_16, %c0_17] : memref<8x512xbf16, #tpu.memory_space<vmem>>, vector<8x512xbf16>
      tpu.vector_store %arg6[%c0_16, %c0_17], %21 {strides = array<i32>} : memref<8x512xbf16, #tpu.memory_space<vmem>>, vector<8x512xbf16>,
    } else {
    }
    return
  }
  func.func @transform_0(%arg0: i32, %arg1: i32) -> (i32, i32) {
    %c0_i32 = arith.constant 0 : i32
    return %arg0, %arg1 : i32, i32
  }
  func.func @transform_1(%arg0: i32, %arg1: i32) -> (i32, i32) {
    %c0_i32 = arith.constant 0 : i32
    %c0_i32_0 = arith.constant 0 : i32
    return %arg1, %c0_i32 : i32, i32
  }
  func.func @transform_2(%arg0: i32, %arg1: i32) -> (i32, i32) {
    %c0_i32 = arith.constant 0 : i32
    %c0_i32_0 = arith.constant 0 : i32
    %c0_i32_1 = arith.constant 0 : i32
    return %c0_i32, %c0_i32_0 : i32, i32
  }
  func.func @transform_3(%arg0: i32, %arg1: i32) -> (i32, i32) {
    %c0_i32 = arith.constant 0 : i32
    %c0_i32_0 = arith.constant 0 : i32
    %c0_i32_1 = arith.constant 0 : i32
    return %c0_i32, %c0_i32_0 : i32, i32
  }
  func.func @transform_4(%arg0: i32, %arg1: i32) -> (i32, i32) {
    %c0_i32 = arith.constant 0 : i32
    %c0_i32_0 = arith.constant 0 : i32
    return %arg0, %c0_i32 : i32, i32
  }
}

module attributes {stable_mosaic.version = 11 : i64} {
  func.func @_head_kernel(%arg0: i32, %arg1: memref<8x1x512xbf16, #tpu.memory_space<vmem>>, %arg2: memref<512x128xbf16, #tpu.memory_space<vmem>>, %arg3: memref<1x128xf32, #tpu.memory_space<vmem>>, %arg4: memref<128x128xbf16, #tpu.memory_space<vmem>>, %arg5: memref<1x128xf32, #tpu.memory_space<vmem>>, %arg6: memref<8x128xf32, #tpu.memory_space<vmem>>) attributes {dimension_semantics = [#tpu.dimension_semantics<arbitrary>], iteration_bounds = array<i64: 1>, scalar_prefetch = 0 : i64, scratch_operands = 0 : i64, tpu.core_type = #tpu.core_type<tc>, window_params = [{pipeline_mode = #tpu.pipeline_mode<synchronous>, transform_indices = @transform_0, window_bounds = array<i64: 8, 1, 512>}, {pipeline_mode = #tpu.pipeline_mode<synchronous>, transform_indices = @transform_1, window_bounds = array<i64: 512, 128>}, {pipeline_mode = #tpu.pipeline_mode<synchronous>, transform_indices = @transform_2, window_bounds = array<i64: 1, 128>}, {pipeline_mode = #tpu.pipeline_mode<synchronous>, transform_indices = @transform_3, window_bounds = array<i64: 128, 128>}, {pipeline_mode = #tpu.pipeline_mode<synchronous>, transform_indices = @transform_4, window_bounds = array<i64: 1, 128>}, {pipeline_mode = #tpu.pipeline_mode<synchronous>, transform_indices = @transform_5, window_bounds = array<i64: 8, 128>}]} {
    %c0 = arith.constant 0 : index
    %c0_0 = arith.constant 0 : index
    %c0_1 = arith.constant 0 : index
    %0 = vector.load %arg1[%c0, %c0_0, %c0_1] : memref<8x1x512xbf16, #tpu.memory_space<vmem>>, vector<8x1x512xbf16>
    %1 = arith.extf %0 : vector<8x1x512xbf16> to vector<8x1x512xf32>
    %cst = arith.constant dense<0.000000e+00> : vector<8x512xf32>
    %2 = vector.multi_reduction <add>, %1, %cst [1] : vector<8x1x512xf32> to vector<8x512xf32>
    %cst_2 = arith.constant 1.000000e+00 : f32
    %3 = vector.broadcast %cst_2 : f32 to vector<8x512xf32>
    %4 = arith.divf %2, %3 : vector<8x512xf32>
    %5 = arith.truncf %4 : vector<8x512xf32> to vector<8x512xbf16>
    %c0_3 = arith.constant 0 : index
    %c0_4 = arith.constant 0 : index
    %6 = vector.load %arg2[%c0_3, %c0_4] : memref<512x128xbf16, #tpu.memory_space<vmem>>, vector<512x128xbf16>
    %cst_5 = arith.constant dense<0.000000e+00> : vector<8x128xf32>
    %7 = tpu.matmul %5, %6, %cst_5 {dimension_numbers = #tpu.dot_dimension_numbers<[1], [0], [0], [1], [0, 0, 1, 1], [], []>} : vector<8x512xbf16>, vector<512x128xbf16>, vector<8x128xf32> -> vector<8x128xf32>
    %c0_6 = arith.constant 0 : index
    %c0_7 = arith.constant 0 : index
    %8 = vector.load %arg3[%c0_6, %c0_7] : memref<1x128xf32, #tpu.memory_space<vmem>>, vector<1x128xf32>
    %9 = vector.broadcast %8 : vector<1x128xf32> to vector<8x128xf32>
    %10 = arith.addf %7, %9 : vector<8x128xf32>
    %cst_8 = arith.constant 0.000000e+00 : f32
    %11 = vector.broadcast %cst_8 : f32 to vector<8x128xf32>
    %12 = arith.maximumf %10, %11 : vector<8x128xf32>
    %13 = arith.truncf %12 : vector<8x128xf32> to vector<8x128xbf16>
    %c0_9 = arith.constant 0 : index
    %c0_10 = arith.constant 0 : index
    %14 = vector.load %arg4[%c0_9, %c0_10] : memref<128x128xbf16, #tpu.memory_space<vmem>>, vector<128x128xbf16>
    %cst_11 = arith.constant dense<0.000000e+00> : vector<8x128xf32>
    %15 = tpu.matmul %13, %14, %cst_11 {dimension_numbers = #tpu.dot_dimension_numbers<[1], [0], [0], [1], [0, 0, 1, 1], [], []>} : vector<8x128xbf16>, vector<128x128xbf16>, vector<8x128xf32> -> vector<8x128xf32>
    %c0_12 = arith.constant 0 : index
    %c0_13 = arith.constant 0 : index
    %16 = vector.load %arg5[%c0_12, %c0_13] : memref<1x128xf32, #tpu.memory_space<vmem>>, vector<1x128xf32>
    %17 = vector.broadcast %16 : vector<1x128xf32> to vector<8x128xf32>
    %18 = arith.addf %15, %17 : vector<8x128xf32>
    %c0_14 = arith.constant 0 : index
    %c0_15 = arith.constant 0 : index
    %19 = vector.load %arg6[%c0_14, %c0_15] : memref<8x128xf32, #tpu.memory_space<vmem>>, vector<8x128xf32>
    tpu.vector_store %arg6[%c0_14, %c0_15], %18 {strides = array<i32>} : memref<8x128xf32, #tpu.memory_space<vmem>>, vector<8x128xf32>,
    return
  }
  func.func @transform_0(%arg0: i32) -> (i32, i32, i32) {
    %c0_i32 = arith.constant 0 : i32
    %c0_i32_0 = arith.constant 0 : i32
    %c0_i32_1 = arith.constant 0 : i32
    %c0_i32_2 = arith.constant 0 : i32
    return %c0_i32, %c0_i32_0, %c0_i32_1 : i32, i32, i32
  }
  func.func @transform_1(%arg0: i32) -> (i32, i32) {
    %c0_i32 = arith.constant 0 : i32
    %c0_i32_0 = arith.constant 0 : i32
    %c0_i32_1 = arith.constant 0 : i32
    return %c0_i32, %c0_i32_0 : i32, i32
  }
  func.func @transform_2(%arg0: i32) -> (i32, i32) {
    %c0_i32 = arith.constant 0 : i32
    %c0_i32_0 = arith.constant 0 : i32
    %c0_i32_1 = arith.constant 0 : i32
    return %c0_i32, %c0_i32_0 : i32, i32
  }
  func.func @transform_3(%arg0: i32) -> (i32, i32) {
    %c0_i32 = arith.constant 0 : i32
    %c0_i32_0 = arith.constant 0 : i32
    %c0_i32_1 = arith.constant 0 : i32
    return %c0_i32, %c0_i32_0 : i32, i32
  }
  func.func @transform_4(%arg0: i32) -> (i32, i32) {
    %c0_i32 = arith.constant 0 : i32
    %c0_i32_0 = arith.constant 0 : i32
    %c0_i32_1 = arith.constant 0 : i32
    return %c0_i32, %c0_i32_0 : i32, i32
  }
  func.func @transform_5(%arg0: i32) -> (i32, i32) {
    %c0_i32 = arith.constant 0 : i32
    %c0_i32_0 = arith.constant 0 : i32
    %c0_i32_1 = arith.constant 0 : i32
    return %c0_i32, %c0_i32_0 : i32, i32
  }
}

</mosaic_0001>

<bundles_post_ra>
// kernel: resnet18_binary_forward.22
= control target key start
LH: loop header
LB: loop body
LE: loop exit
PB: predicated region body
PF: predicated region fallthrough
CT: control target
= control target key end

     0   :  { %v2222_v0 = vmov 0   ;;  %s2754_s1 = inlined_call_operand.vmem [shape: bf16[256,128], index: 1, kind: input, shape index: {}]   ;;  %s2755_s0 = inlined_call_operand.vmem [shape: bf16[512,256], index: 0, kind: input, shape index: {}]   ;;  %s2756_s2 = inlined_call_operand.vmem [shape: f32[1,128], index: 2, kind: input, shape index: {}]   ;;  %s2757_s3 = inlined_call_operand.vmem [shape: f32[1,128], index: 3, kind: input, shape index: {}]   ;;  %s2758_s4 = inlined_call_operand.vmem [shape: bf16[512,128], index: 4, kind: output, shape index: {}]  }
   0x1   :  { %662 = vmatprep.subr.bf16.mxu0 %v2222_v0  ;;  %2077 = vmatprep.subr.bf16.mxu1 %v2222_v0  ;;  %v2110_v1 = vld [vmem:[%s2754_s1] sm:$0xff]   ;;  %v2111_v2 = vld [vmem:[%s2754_s1 + $0x8] sm:$0xff]   ;;  %v2112_v3 = vld [vmem:[%s2754_s1 + $0x10] sm:$0xff]  }
   0x2   :  { %663 = vmatpush1.bf16.msra.mxu0 %v2110_v1  ;;  %2093 = vmatpush1.bf16.msra.mxu1 %v2110_v1  ;;  %v2113_v4 = vld [vmem:[%s2754_s1 + $0x18] sm:$0xff]   ;;  %v2114_v5 = vld [vmem:[%s2754_s1 + $0x20] sm:$0xff]   ;;  %v2115_v7 = vld [vmem:[%s2754_s1 + $0x28] sm:$0xff]  }
   0x3   :  { %664 = vmatprep.subr.bf16.mxu0 %v2222_v0  ;;  %2078 = vmatprep.subr.bf16.mxu1 %v2222_v0  ;;  %v2128_v6 = vld [vmem:[%s2755_s0 + $0x4] ss:$8 sps:$4 sm:$0xff]   ;;  %v2116_v9 = vld [vmem:[%s2754_s1 + $0x30] sm:$0xff]   ;;  %v2117_v10 = vld [vmem:[%s2754_s1 + $0x38] sm:$0xff]  }
   0x4   :  { %v2131_v8 = vld [vmem:[%s2755_s0 + $0x104] ss:$8 sps:$4 sm:$0xff]   ;;  %694 = vmatprep.mubr.bf16.mxu0 %v2128_v6  ;;  %v2120_v13 = vld [vmem:[%s2754_s1 + $0x50] sm:$0xff]   ;;  %v2121_v14 = vld [vmem:[%s2754_s1 + $0x58] sm:$0xff]  }
   0x5   :  { %822 = vmatprep.mubr.bf16.mxu1 %v2131_v8  ;;  %v2118_v11 = vld [vmem:[%s2754_s1 + $0x40] sm:$0xff]   ;;  %v2119_v12 = vld [vmem:[%s2754_s1 + $0x48] sm:$0xff]   ;;  %v2124_v17 = vld [vmem:[%s2754_s1 + $0x70] sm:$0xff]  }
   0x6   :  { %665 = vmatpush1.bf16.msra.mxu0 %v2111_v2  ;;  %2094 = vmatpush1.bf16.msra.mxu1 %v2111_v2  ;;  %v2122_v15 = vld [vmem:[%s2754_s1 + $0x60] sm:$0xff]   ;;  %v2123_v16 = vld [vmem:[%s2754_s1 + $0x68] sm:$0xff]   ;;  %v2125_v18 = vld [vmem:[%s2754_s1 + $0x78] sm:$0xff]  }
   0x7   :  { %666 = vmatprep.subr.bf16.mxu0 %v2222_v0  ;;  %2079 = vmatprep.subr.bf16.mxu1 %v2222_v0  ;;  %v2126_v19 = vld [vmem:[%s2755_s0] ss:$8 sps:$4 sm:$0xff]   ;;  %v2132_v21 = vld [vmem:[%s2755_s0 + $0x14] ss:$8 sps:$4 sm:$0xff]   ;;  %v2136_v23 = vld [vmem:[%s2755_s0 + $0x10] ss:$8 sps:$4 sm:$0xff]  }
   0x8   :  { %v2129_v20 = vld [vmem:[%s2755_s0 + $0x100] ss:$8 sps:$4 sm:$0xff]   ;;  %v2134_v22 = vld [vmem:[%s2755_s0 + $0x114] ss:$8 sps:$4 sm:$0xff]   ;;  %v2137_v24 = vld [vmem:[%s2755_s0 + $0x110] ss:$8 sps:$4 sm:$0xff]  }
   0x9   :  { %v2138_v25 = vld [vmem:[%s2755_s0 + $0x24] ss:$8 sps:$4 sm:$0xff]   ;;  %v2142_v27 = vld [vmem:[%s2755_s0 + $0x20] ss:$8 sps:$4 sm:$0xff]   ;;  %v2144_v29 = vld [vmem:[%s2755_s0 + $0x34] ss:$8 sps:$4 sm:$0xff]  }
   0xa   :  { %667 = vmatpush1.bf16.msra.mxu0 %v2112_v3  ;;  %2095 = vmatpush1.bf16.msra.mxu1 %v2112_v3  ;;  %v2140_v26 = vld [vmem:[%s2755_s0 + $0x124] ss:$8 sps:$4 sm:$0xff]   ;;  %v2143_v28 = vld [vmem:[%s2755_s0 + $0x120] ss:$8 sps:$4 sm:$0xff]   ;;  %v2146_v30 = vld [vmem:[%s2755_s0 + $0x134] ss:$8 sps:$4 sm:$0xff]  }
   0xb   :  { %668 = vmatprep.subr.bf16.mxu0 %v2222_v0  ;;  %2080 = vmatprep.subr.bf16.mxu1 %v2222_v0  ;;  %v2148_v31 = vld [vmem:[%s2755_s0 + $0x30] ss:$8 sps:$4 sm:$0xff]   ;;  %v2150_v33 = vld [vmem:[%s2755_s0 + $0x44] ss:$8 sps:$4 sm:$0xff]   ;;  %v2154_v35 = vld [vmem:[%s2755_s0 + $0x40] ss:$8 sps:$4 sm:$0xff]  }
   0xc   :  { %v2149_v32 = vld [vmem:[%s2755_s0 + $0x130] ss:$8 sps:$4 sm:$0xff]   ;;  %v2152_v34 = vld [vmem:[%s2755_s0 + $0x144] ss:$8 sps:$4 sm:$0xff]   ;;  %v2155_v36 = vld [vmem:[%s2755_s0 + $0x140] ss:$8 sps:$4 sm:$0xff]  }
   0xd   :  { %v2156_v37 = vld [vmem:[%s2755_s0 + $0x54] ss:$8 sps:$4 sm:$0xff]   ;;  %v2160_v39 = vld [vmem:[%s2755_s0 + $0x50] ss:$8 sps:$4 sm:$0xff]   ;;  %v2162_v41 = vld [vmem:[%s2755_s0 + $0x64] ss:$8 sps:$4 sm:$0xff]  }
   0xe   :  { %669 = vmatpush1.bf16.msra.mxu0 %v2113_v4  ;;  %2096 = vmatpush1.bf16.msra.mxu1 %v2113_v4  ;;  %v2158_v38 = vld [vmem:[%s2755_s0 + $0x154] ss:$8 sps:$4 sm:$0xff]   ;;  %v2161_v40 = vld [vmem:[%s2755_s0 + $0x150] ss:$8 sps:$4 sm:$0xff]   ;;  %v2164_v42 = vld [vmem:[%s2755_s0 + $0x164] ss:$8 sps:$4 sm:$0xff]  }
   0xf   :  { %670 = vmatprep.subr.bf16.mxu0 %v2222_v0  ;;  %2081 = vmatprep.subr.bf16.mxu1 %v2222_v0  ;;  %v2166_v43 = vld [vmem:[%s2755_s0 + $0x60] ss:$8 sps:$4 sm:$0xff]   ;;  %v2168_v45 = vld [vmem:[%s2755_s0 + $0x74] ss:$8 sps:$4 sm:$0xff]   ;;  %v2172_v47 = vld [vmem:[%s2755_s0 + $0x70] ss:$8 sps:$4 sm:$0xff]  }
  0x10   :  { %v2167_v44 = vld [vmem:[%s2755_s0 + $0x160] ss:$8 sps:$4 sm:$0xff]   ;;  %v2170_v46 = vld [vmem:[%s2755_s0 + $0x174] ss:$8 sps:$4 sm:$0xff]   ;;  %v2173_v48 = vld [vmem:[%s2755_s0 + $0x170] ss:$8 sps:$4 sm:$0xff]  }
  0x11   :  { %v2174_v49 = vld [vmem:[%s2755_s0 + $0x84] ss:$8 sps:$4 sm:$0xff]   ;;  %v2178_v51 = vld [vmem:[%s2755_s0 + $0x80] ss:$8 sps:$4 sm:$0xff]   ;;  %v2180_v53 = vld [vmem:[%s2755_s0 + $0x94] ss:$8 sps:$4 sm:$0xff]  }
  0x12   :  { %671 = vmatpush1.bf16.msra.mxu0 %v2114_v5  ;;  %2097 = vmatpush1.bf16.msra.mxu1 %v2114_v5  ;;  %v2176_v50 = vld [vmem:[%s2755_s0 + $0x184] ss:$8 sps:$4 sm:$0xff]   ;;  %v2179_v52 = vld [vmem:[%s2755_s0 + $0x180] ss:$8 sps:$4 sm:$0xff]   ;;  %v2182_v54 = vld [vmem:[%s2755_s0 + $0x194] ss:$8 sps:$4 sm:$0xff]  }
  0x13   :  { %672 = vmatprep.subr.bf16.mxu0 %v2222_v0  ;;  %2082 = vmatprep.subr.bf16.mxu1 %v2222_v0  ;;  %v2184_v55 = vld [vmem:[%s2755_s0 + $0x90] ss:$8 sps:$4 sm:$0xff]   ;;  %v2186_v57 = vld [vmem:[%s2755_s0 + $0xa4] ss:$8 sps:$4 sm:$0xff]   ;;  %v2190_v59 = vld [vmem:[%s2755_s0 + $0xa0] ss:$8 sps:$4 sm:$0xff]  }
  0x14   :  { %v2185_v56 = vld [vmem:[%s2755_s0 + $0x190] ss:$8 sps:$4 sm:$0xff]   ;;  %v2188_v58 = vld [vmem:[%s2755_s0 + $0x1a4] ss:$8 sps:$4 sm:$0xff]   ;;  %v2191_v60 = vld [vmem:[%s2755_s0 + $0x1a0] ss:$8 sps:$4 sm:$0xff]  }
  0x15   :  { %v2192_v61 = vld [vmem:[%s2755_s0 + $0xb4] ss:$8 sps:$4 sm:$0xff]   ;;  %v2196_v63 = vld [vmem:[%s2755_s0 + $0xb0] ss:$8 sps:$4 sm:$0xff]   ;;  %v2198_v1 = vld [vmem:[%s2755_s0 + $0xc4] ss:$8 sps:$4 sm:$0xff]  }
  0x16   :  { %673 = vmatpush1.bf16.msra.mxu0 %v2115_v7  ;;  %2098 = vmatpush1.bf16.msra.mxu1 %v2115_v7  ;;  %v2194_v62 = vld [vmem:[%s2755_s0 + $0x1b4] ss:$8 sps:$4 sm:$0xff]   ;;  %v2200_v2 = vld [vmem:[%s2755_s0 + $0x1c4] ss:$8 sps:$4 sm:$0xff]   ;;  %v2202_v3 = vld [vmem:[%s2755_s0 + $0xc0] ss:$8 sps:$4 sm:$0xff]  }
  0x17   :  { %674 = vmatprep.subr.bf16.mxu0 %v2222_v0  ;;  %2083 = vmatprep.subr.bf16.mxu1 %v2222_v0  ;;  %v2203_v4 = vld [vmem:[%s2755_s0 + $0x1c0] ss:$8 sps:$4 sm:$0xff]   ;;  %v2204_v5 = vld [vmem:[%s2755_s0 + $0xd4] ss:$8 sps:$4 sm:$0xff]   ;;  %v2208_v7 = vld [vmem:[%s2755_s0 + $0xd0] ss:$8 sps:$4 sm:$0xff]  }
  0x18   :  { %v2206_v6 = vld [vmem:[%s2755_s0 + $0x1d4] ss:$8 sps:$4 sm:$0xff]   ;;  %v2209_v8 = vld [vmem:[%s2755_s0 + $0x1d0] ss:$8 sps:$4 sm:$0xff]  }
  0x1a   :  { %675 = vmatpush1.bf16.msra.mxu0 %v2116_v9  ;;  %2099 = vmatpush1.bf16.msra.mxu1 %v2116_v9  ;;  %v2210_v9 = vld [vmem:[%s2755_s0 + $0xe4] ss:$8 sps:$4 sm:$0xff]  }
  0x1b   :  { %676 = vmatprep.subr.bf16.mxu0 %v2222_v0  ;;  %2084 = vmatprep.subr.bf16.mxu1 %v2222_v0 }
  0x1e   :  { %677 = vmatpush1.bf16.msra.mxu0 %v2117_v10  ;;  %2100 = vmatpush1.bf16.msra.mxu1 %v2117_v10  ;;  %v2212_v10 = vld [vmem:[%s2755_s0 + $0x1e4] ss:$8 sps:$4 sm:$0xff]  }
  0x1f   :  { %678 = vmatprep.subr.bf16.mxu0 %v2222_v0  ;;  %2085 = vmatprep.subr.bf16.mxu1 %v2222_v0 }
  0x22   :  { %679 = vmatpush1.bf16.msra.mxu0 %v2118_v11  ;;  %2101 = vmatpush1.bf16.msra.mxu1 %v2118_v11  ;;  %v2214_v11 = vld [vmem:[%s2755_s0 + $0xe0] ss:$8 sps:$4 sm:$0xff]  }
  0x23   :  { %680 = vmatprep.subr.bf16.mxu0 %v2222_v0  ;;  %2086 = vmatprep.subr.bf16.mxu1 %v2222_v0 }
  0x26   :  { %681 = vmatpush1.bf16.msra.mxu0 %v2119_v12  ;;  %2102 = vmatpush1.bf16.msra.mxu1 %v2119_v12  ;;  %v2215_v12 = vld [vmem:[%s2755_s0 + $0x1e0] ss:$8 sps:$4 sm:$0xff]  }
  0x27   :  { %682 = vmatprep.subr.bf16.mxu0 %v2222_v0  ;;  %2087 = vmatprep.subr.bf16.mxu1 %v2222_v0 }
  0x2a   :  { %683 = vmatpush1.bf16.msra.mxu0 %v2120_v13  ;;  %2103 = vmatpush1.bf16.msra.mxu1 %v2120_v13  ;;  %v2216_v13 = vld [vmem:[%s2755_s0 + $0xf4] ss:$8 sps:$4 sm:$0xff]  }
  0x2b   :  { %684 = vmatprep.subr.bf16.mxu0 %v2222_v0  ;;  %2088 = vmatprep.subr.bf16.mxu1 %v2222_v0 }
  0x2e   :  { %685 = vmatpush1.bf16.msra.mxu0 %v2121_v14  ;;  %2104 = vmatpush1.bf16.msra.mxu1 %v2121_v14  ;;  %v2218_v14 = vld [vmem:[%s2755_s0 + $0x1f4] ss:$8 sps:$4 sm:$0xff]  }
  0x2f   :  { %686 = vmatprep.subr.bf16.mxu0 %v2222_v0  ;;  %2089 = vmatprep.subr.bf16.mxu1 %v2222_v0 }
  0x32   :  { %687 = vmatpush1.bf16.msra.mxu0 %v2122_v15  ;;  %2105 = vmatpush1.bf16.msra.mxu1 %v2122_v15  ;;  %v2220_v15 = vld [vmem:[%s2755_s0 + $0xf0] ss:$8 sps:$4 sm:$0xff]  }
  0x33   :  { %688 = vmatprep.subr.bf16.mxu0 %v2222_v0  ;;  %2090 = vmatprep.subr.bf16.mxu1 %v2222_v0 }
  0x36   :  { %689 = vmatpush1.bf16.msra.mxu0 %v2123_v16  ;;  %2106 = vmatpush1.bf16.msra.mxu1 %v2123_v16  ;;  %v2221_v16 = vld [vmem:[%s2755_s0 + $0x1f0] ss:$8 sps:$4 sm:$0xff]  }
  0x37   :  { %690 = vmatprep.subr.bf16.mxu0 %v2222_v0  ;;  %2091 = vmatprep.subr.bf16.mxu1 %v2222_v0 }
  0x3a   :  { %691 = vmatpush1.bf16.msra.mxu0 %v2124_v17  ;;  %2107 = vmatpush1.bf16.msra.mxu1 %v2124_v17  ;;  %v2523_v17 = vld [vmem:[%s2756_s2] ss:$0 sm:$0xff] }
  0x3b   :  { %692 = vmatprep.subr.bf16.mxu0 %v2222_v0  ;;  %2092 = vmatprep.subr.bf16.mxu1 %v2222_v0  ;;  %v2197_v0 = vld [vmem:[%s2755_s0 + $0x1b0] ss:$8 sps:$4 sm:$0xff]  }
  0x3e   :  { %693 = vmatpush1.bf16.msra.mxu0 %v2125_v18  ;;  %2108 = vmatpush1.bf16.msra.mxu1 %v2125_v18 }
  0x41   :  { %695 = vmatmul.mubr.bf16.vlgmr.msra.gmra.mrb[0].mxu0 %v2126_v19  ;;  %823 = vmatmul.mubr.bf16.vlgmr.msra.gmra.mrb[0].mxu1 %v2129_v20  ;;  %v2528_v19 = vld [vmem:[%s2757_s3] ss:$0 sm:$0xff] }
  0x42   :  { %702 = vmatprep.mubr.bf16.mxu0 %v2132_v21  ;;  %830 = vmatprep.mubr.bf16.mxu1 %v2134_v22 }
  0x49   :  { %703 = vmatmul.mubr.bf16.gmra.mrb[4].mxu0 %v2136_v23  ;;  %831 = vmatmul.mubr.bf16.gmra.mrb[4].mxu1 %v2137_v24 }
  0x4a   :  { %710 = vmatprep.mubr.bf16.mxu0 %v2138_v25  ;;  %838 = vmatprep.mubr.bf16.mxu1 %v2140_v26 }
  0x51   :  { %711 = vmatmul.mubr.bf16.gmra.mrb[8].mxu0 %v2142_v27  ;;  %839 = vmatmul.mubr.bf16.gmra.mrb[8].mxu1 %v2143_v28 }
  0x52   :  { %718 = vmatprep.mubr.bf16.mxu0 %v2144_v29  ;;  %846 = vmatprep.mubr.bf16.mxu1 %v2146_v30 }
  0x59   :  { %719 = vmatmul.mubr.bf16.gmra.mrb[12].mxu0 %v2148_v31  ;;  %847 = vmatmul.mubr.bf16.gmra.mrb[12].mxu1 %v2149_v32 }
  0x5a   :  { %726 = vmatprep.mubr.bf16.mxu0 %v2150_v33  ;;  %854 = vmatprep.mubr.bf16.mxu1 %v2152_v34 }
  0x61   :  { %727 = vmatmul.mubr.bf16.gmra.mrb[16].mxu0 %v2154_v35  ;;  %855 = vmatmul.mubr.bf16.gmra.mrb[16].mxu1 %v2155_v36 }
  0x62   :  { %734 = vmatprep.mubr.bf16.mxu0 %v2156_v37  ;;  %862 = vmatprep.mubr.bf16.mxu1 %v2158_v38 }
  0x69   :  { %735 = vmatmul.mubr.bf16.gmra.mrb[20].mxu0 %v2160_v39  ;;  %863 = vmatmul.mubr.bf16.gmra.mrb[20].mxu1 %v2161_v40 }
  0x6a   :  { %742 = vmatprep.mubr.bf16.mxu0 %v2162_v41  ;;  %870 = vmatprep.mubr.bf16.mxu1 %v2164_v42 }
  0x71   :  { %743 = vmatmul.mubr.bf16.gmra.mrb[24].mxu0 %v2166_v43  ;;  %871 = vmatmul.mubr.bf16.gmra.mrb[24].mxu1 %v2167_v44 }
  0x72   :  { %750 = vmatprep.mubr.bf16.mxu0 %v2168_v45  ;;  %878 = vmatprep.mubr.bf16.mxu1 %v2170_v46 }
  0x79   :  { %751 = vmatmul.mubr.bf16.gmra.mrb[28].mxu0 %v2172_v47  ;;  %879 = vmatmul.mubr.bf16.gmra.mrb[28].mxu1 %v2173_v48 }
  0x7a   :  { %758 = vmatprep.mubr.bf16.mxu0 %v2174_v49  ;;  %886 = vmatprep.mubr.bf16.mxu1 %v2176_v50 }
  0x81   :  { %759 = vmatmul.mubr.bf16.gmra.mrb[32].mxu0 %v2178_v51  ;;  %887 = vmatmul.mubr.bf16.gmra.mrb[32].mxu1 %v2179_v52 }
  0x82   :  { %766 = vmatprep.mubr.bf16.mxu0 %v2180_v53  ;;  %894 = vmatprep.mubr.bf16.mxu1 %v2182_v54 }
  0x89   :  { %767 = vmatmul.mubr.bf16.gmra.mrb[36].mxu0 %v2184_v55  ;;  %895 = vmatmul.mubr.bf16.gmra.mrb[36].mxu1 %v2185_v56 }
  0x8a   :  { %774 = vmatprep.mubr.bf16.mxu0 %v2186_v57  ;;  %902 = vmatprep.mubr.bf16.mxu1 %v2188_v58 }
  0x91   :  { %775 = vmatmul.mubr.bf16.gmra.mrb[40].mxu0 %v2190_v59  ;;  %903 = vmatmul.mubr.bf16.gmra.mrb[40].mxu1 %v2191_v60 }
  0x92   :  { %782 = vmatprep.mubr.bf16.mxu0 %v2192_v61  ;;  %910 = vmatprep.mubr.bf16.mxu1 %v2194_v62 }
  0x99   :  { %783 = vmatmul.mubr.bf16.gmra.mrb[44].mxu0 %v2196_v63  ;;  %911 = vmatmul.mubr.bf16.gmra.mrb[44].mxu1 %v2197_v0 }
  0x9a   :  { %790 = vmatprep.mubr.bf16.mxu0 %v2198_v1  ;;  %918 = vmatprep.mubr.bf16.mxu1 %v2200_v2 }
  0xa1   :  { %791 = vmatmul.mubr.bf16.gmra.mrb[48].mxu0 %v2202_v3  ;;  %919 = vmatmul.mubr.bf16.gmra.mrb[48].mxu1 %v2203_v4 }
  0xa2   :  { %798 = vmatprep.mubr.bf16.mxu0 %v2204_v5  ;;  %926 = vmatprep.mubr.bf16.mxu1 %v2206_v6 }
  0xa9   :  { %799 = vmatmul.mubr.bf16.gmra.mrb[52].mxu0 %v2208_v7  ;;  %927 = vmatmul.mubr.bf16.gmra.mrb[52].mxu1 %v2209_v8 }
  0xaa   :  { %806 = vmatprep.mubr.bf16.mxu0 %v2210_v9  ;;  %934 = vmatprep.mubr.bf16.mxu1 %v2212_v10 }
  0xb1   :  { %807 = vmatmul.mubr.bf16.gmra.mrb[56].mxu0 %v2214_v11  ;;  %935 = vmatmul.mubr.bf16.gmra.mrb[56].mxu1 %v2215_v12 }
  0xb2   :  { %814 = vmatprep.mubr.bf16.mxu0 %v2216_v13  ;;  %942 = vmatprep.mubr.bf16.mxu1 %v2218_v14 }
  0xb9   :  { %815 = vmatmul.mubr.bf16.gmra.mrb[60].mxu0 %v2220_v15  ;;  %943 = vmatmul.mubr.bf16.gmra.mrb[60].mxu1 %v2221_v16 }
 0x114   :  { %v696_v18 = vpop.f32.mrb[0].mxu0  ;;  %v824_v20 = vpop.f32.mrb[0].mxu1 }
 0x115   :  { %v1153_v21 = vmul.f32 %v2523_v17, %v696_v18  ;;  %v1185_v22 = vmul.f32 %v2523_v17, %v824_v20  ;;  %v698_v23 = vpop.f32.mrb[1].mxu0  ;;  %v826_v24 = vpop.f32.mrb[1].mxu1 }
 0x116   :  { %v699_v25 = vpop.f32.mrb[2].mxu0  ;;  %v827_v26 = vpop.f32.mrb[2].mxu1 }
 0x117   :  { %v1224_v27 = vadd.f32 %v2528_v19, %v1153_v21  ;;  %v1256_v28 = vadd.f32 %v2528_v19, %v1185_v22  ;;  %v1154_v29 = vmul.f32 %v2523_v17, %v699_v25  ;;  %v1186_v30 = vmul.f32 %v2523_v17, %v827_v26  ;;  %v701_v31 = vpop.f32.mrb[3].mxu0  ;;  %v829_v32 = vpop.f32.mrb[3].mxu1 }
 0x119   :  { %v1225_v33 = vadd.f32 %v2528_v19, %v1154_v29  ;;  %v1257_v34 = vadd.f32 %v2528_v19, %v1186_v30  ;;  %v1288_v35 = vmax.f32 %v1224_v27, 0.0  ;;  %v1320_v36 = vmax.f32 %v1256_v28, 0.0 }
 0x11b   :  { %v1289_v37 = vmax.f32 %v1225_v33, 0.0  ;;  %v1321_v38 = vmax.f32 %v1257_v34, 0.0 }
 0x11c   :  { %v704_v39 = vpop.f32.mrb[4].mxu0  ;;  %v832_v40 = vpop.f32.mrb[4].mxu1 }
 0x11d   :  { %v1889_v41 = vpack.c.bf16 %v1289_v37, %v1288_v35  ;;  %v1969_v42 = vpack.c.bf16 %v1321_v38, %v1320_v36  ;;  %v1155_v43 = vmul.f32 %v2523_v17, %v704_v39  ;;  %v1187_v44 = vmul.f32 %v2523_v17, %v832_v40  ;;  %v706_v45 = vpop.f32.mrb[5].mxu0  ;;  %v834_v46 = vpop.f32.mrb[5].mxu1 }
 0x11e   :  { %v707_v47 = vpop.f32.mrb[6].mxu0  ;;  %v835_v48 = vpop.f32.mrb[6].mxu1 }
 0x11f   :  { %1890 = vst [vmem:[%s2758_s4] sm:$0xff] %v1889_v41   ;;  %2061 = vst [vmem:[%s2758_s4 + $0x80] sm:$0xff] %v1969_v42   ;;  %v1226_v49 = vadd.f32 %v2528_v19, %v1155_v43  ;;  %v1258_v50 = vadd.f32 %v2528_v19, %v1187_v44  ;;  %v1156_v51 = vmul.f32 %v2523_v17, %v707_v47  ;;  %v709_v53 = vpop.f32.mrb[7].mxu0  ;;  %v837_v54 = vpop.f32.mrb[7].mxu1 }
 0x120   :  { %v1188_v52 = vmul.f32 %v2523_v17, %v835_v48 }
 0x121   :  { %v1227_v55 = vadd.f32 %v2528_v19, %v1156_v51  ;;  %v1290_v57 = vmax.f32 %v1226_v49, 0.0  ;;  %v1322_v58 = vmax.f32 %v1258_v50, 0.0 }
 0x122   :  { %v1259_v56 = vadd.f32 %v2528_v19, %v1188_v52 }
 0x123   :  { %v1291_v59 = vmax.f32 %v1227_v55, 0.0 }
 0x124   :  { %v1323_v60 = vmax.f32 %v1259_v56, 0.0  ;;  %v712_v61 = vpop.f32.mrb[8].mxu0  ;;  %v840_v62 = vpop.f32.mrb[8].mxu1 }
 0x125   :  { %v1894_v63 = vpack.c.bf16 %v1291_v59, %v1290_v57  ;;  %v1157_v1 = vmul.f32 %v2523_v17, %v712_v61  ;;  %v1189_v2 = vmul.f32 %v2523_v17, %v840_v62  ;;  %v714_v3 = vpop.f32.mrb[9].mxu0  ;;  %v842_v4 = vpop.f32.mrb[9].mxu1 }
 0x126   :  { %v1974_v0 = vpack.c.bf16 %v1323_v60, %v1322_v58  ;;  %v715_v5 = vpop.f32.mrb[10].mxu0  ;;  %v843_v6 = vpop.f32.mrb[10].mxu1 }
 0x127   :  { %2046 = vst [vmem:[%s2758_s4 + $0x8] sm:$0xff] %v1894_v63   ;;  %v1228_v7 = vadd.f32 %v2528_v19, %v1157_v1  ;;  %v1260_v8 = vadd.f32 %v2528_v19, %v1189_v2  ;;  %v1158_v9 = vmul.f32 %v2523_v17, %v715_v5  ;;  %v1190_v10 = vmul.f32 %v2523_v17, %v843_v6  ;;  %v717_v11 = vpop.f32.mrb[11].mxu0  ;;  %v845_v12 = vpop.f32.mrb[11].mxu1 }
 0x128   :  { %2062 = vst [vmem:[%s2758_s4 + $0x88] sm:$0xff] %v1974_v0  }
 0x129   :  { %v1229_v13 = vadd.f32 %v2528_v19, %v1158_v9  ;;  %v1261_v14 = vadd.f32 %v2528_v19, %v1190_v10  ;;  %v1292_v15 = vmax.f32 %v1228_v7, 0.0  ;;  %v1324_v16 = vmax.f32 %v1260_v8, 0.0 }
 0x12b   :  { %v1293_v18 = vmax.f32 %v1229_v13, 0.0  ;;  %v1325_v20 = vmax.f32 %v1261_v14, 0.0 }
 0x12c   :  { %v720_v21 = vpop.f32.mrb[12].mxu0  ;;  %v848_v22 = vpop.f32.mrb[12].mxu1 }
 0x12d   :  { %v1899_v23 = vpack.c.bf16 %v1293_v18, %v1292_v15  ;;  %v1979_v24 = vpack.c.bf16 %v1325_v20, %v1324_v16  ;;  %v1159_v25 = vmul.f32 %v2523_v17, %v720_v21  ;;  %v1191_v26 = vmul.f32 %v2523_v17, %v848_v22  ;;  %v722_v27 = vpop.f32.mrb[13].mxu0  ;;  %v850_v28 = vpop.f32.mrb[13].mxu1 }
 0x12e   :  { %v723_v29 = vpop.f32.mrb[14].mxu0  ;;  %v851_v30 = vpop.f32.mrb[14].mxu1 }
 0x12f   :  { %2047 = vst [vmem:[%s2758_s4 + $0x10] sm:$0xff] %v1899_v23   ;;  %2063 = vst [vmem:[%s2758_s4 + $0x90] sm:$0xff] %v1979_v24   ;;  %v1230_v31 = vadd.f32 %v2528_v19, %v1159_v25  ;;  %v1262_v32 = vadd.f32 %v2528_v19, %v1191_v26  ;;  %v1160_v33 = vmul.f32 %v2523_v17, %v723_v29  ;;  %v725_v35 = vpop.f32.mrb[15].mxu0  ;;  %v853_v36 = vpop.f32.mrb[15].mxu1 }
 0x130   :  { %v1192_v34 = vmul.f32 %v2523_v17, %v851_v30 }
 0x131   :  { %v1231_v37 = vadd.f32 %v2528_v19, %v1160_v33  ;;  %v1294_v39 = vmax.f32 %v1230_v31, 0.0  ;;  %v1326_v40 = vmax.f32 %v1262_v32, 0.0 }
 0x132   :  { %v1263_v38 = vadd.f32 %v2528_v19, %v1192_v34 }
 0x133   :  { %v1295_v41 = vmax.f32 %v1231_v37, 0.0 }
 0x134   :  { %v1327_v42 = vmax.f32 %v1263_v38, 0.0  ;;  %v728_v43 = vpop.f32.mrb[16].mxu0  ;;  %v856_v44 = vpop.f32.mrb[16].mxu1 }
 0x135   :  { %v1904_v45 = vpack.c.bf16 %v1295_v41, %v1294_v39  ;;  %v1161_v47 = vmul.f32 %v2523_v17, %v728_v43  ;;  %v1193_v48 = vmul.f32 %v2523_v17, %v856_v44  ;;  %v730_v49 = vpop.f32.mrb[17].mxu0  ;;  %v858_v50 = vpop.f32.mrb[17].mxu1 }
 0x136   :  { %v1984_v46 = vpack.c.bf16 %v1327_v42, %v1326_v40  ;;  %v731_v51 = vpop.f32.mrb[18].mxu0  ;;  %v859_v52 = vpop.f32.mrb[18].mxu1 }
 0x137   :  { %2048 = vst [vmem:[%s2758_s4 + $0x18] sm:$0xff] %v1904_v45   ;;  %v1232_v53 = vadd.f32 %v2528_v19, %v1161_v47  ;;  %v1264_v54 = vadd.f32 %v2528_v19, %v1193_v48  ;;  %v1162_v55 = vmul.f32 %v2523_v17, %v731_v51  ;;  %v1194_v56 = vmul.f32 %v2523_v17, %v859_v52  ;;  %v733_v57 = vpop.f32.mrb[19].mxu0  ;;  %v861_v58 = vpop.f32.mrb[19].mxu1 }
 0x138   :  { %2064 = vst [vmem:[%s2758_s4 + $0x98] sm:$0xff] %v1984_v46  }
 0x139   :  { %v1233_v59 = vadd.f32 %v2528_v19, %v1162_v55  ;;  %v1265_v60 = vadd.f32 %v2528_v19, %v1194_v56  ;;  %v1296_v61 = vmax.f32 %v1232_v53, 0.0  ;;  %v1328_v62 = vmax.f32 %v1264_v54, 0.0 }
 0x13b   :  { %v1297_v63 = vmax.f32 %v1233_v59, 0.0  ;;  %v1329_v0 = vmax.f32 %v1265_v60, 0.0 }
 0x13c   :  { %v736_v1 = vpop.f32.mrb[20].mxu0  ;;  %v864_v2 = vpop.f32.mrb[20].mxu1 }
 0x13d   :  { %v1909_v3 = vpack.c.bf16 %v1297_v63, %v1296_v61  ;;  %v1989_v4 = vpack.c.bf16 %v1329_v0, %v1328_v62  ;;  %v1163_v5 = vmul.f32 %v2523_v17, %v736_v1  ;;  %v1195_v6 = vmul.f32 %v2523_v17, %v864_v2  ;;  %v738_v7 = vpop.f32.mrb[21].mxu0  ;;  %v866_v8 = vpop.f32.mrb[21].mxu1 }
 0x13e   :  { %v739_v9 = vpop.f32.mrb[22].mxu0  ;;  %v867_v10 = vpop.f32.mrb[22].mxu1 }
 0x13f   :  { %2049 = vst [vmem:[%s2758_s4 + $0x20] sm:$0xff] %v1909_v3   ;;  %2065 = vst [vmem:[%s2758_s4 + $0xa0] sm:$0xff] %v1989_v4   ;;  %v1234_v11 = vadd.f32 %v2528_v19, %v1163_v5  ;;  %v1266_v12 = vadd.f32 %v2528_v19, %v1195_v6  ;;  %v1164_v13 = vmul.f32 %v2523_v17, %v739_v9  ;;  %v741_v15 = vpop.f32.mrb[23].mxu0  ;;  %v869_v16 = vpop.f32.mrb[23].mxu1 }
 0x140   :  { %v1196_v14 = vmul.f32 %v2523_v17, %v867_v10 }
 0x141   :  { %v1235_v18 = vadd.f32 %v2528_v19, %v1164_v13  ;;  %v1298_v21 = vmax.f32 %v1234_v11, 0.0  ;;  %v1330_v22 = vmax.f32 %v1266_v12, 0.0 }
 0x142   :  { %v1267_v20 = vadd.f32 %v2528_v19, %v1196_v14 }
 0x143   :  { %v1299_v23 = vmax.f32 %v1235_v18, 0.0 }
 0x144   :  { %v1331_v24 = vmax.f32 %v1267_v20, 0.0  ;;  %v744_v25 = vpop.f32.mrb[24].mxu0  ;;  %v872_v26 = vpop.f32.mrb[24].mxu1 }
 0x145   :  { %v1914_v27 = vpack.c.bf16 %v1299_v23, %v1298_v21  ;;  %v1165_v29 = vmul.f32 %v2523_v17, %v744_v25  ;;  %v1197_v30 = vmul.f32 %v2523_v17, %v872_v26  ;;  %v746_v31 = vpop.f32.mrb[25].mxu0  ;;  %v874_v32 = vpop.f32.mrb[25].mxu1 }
 0x146   :  { %v1994_v28 = vpack.c.bf16 %v1331_v24, %v1330_v22  ;;  %v747_v33 = vpop.f32.mrb[26].mxu0  ;;  %v875_v34 = vpop.f32.mrb[26].mxu1 }
 0x147   :  { %2050 = vst [vmem:[%s2758_s4 + $0x28] sm:$0xff] %v1914_v27   ;;  %v1236_v35 = vadd.f32 %v2528_v19, %v1165_v29  ;;  %v1268_v36 = vadd.f32 %v2528_v19, %v1197_v30  ;;  %v1166_v37 = vmul.f32 %v2523_v17, %v747_v33  ;;  %v1198_v38 = vmul.f32 %v2523_v17, %v875_v34  ;;  %v749_v39 = vpop.f32.mrb[27].mxu0  ;;  %v877_v40 = vpop.f32.mrb[27].mxu1 }
 0x148   :  { %2066 = vst [vmem:[%s2758_s4 + $0xa8] sm:$0xff] %v1994_v28  }
 0x149   :  { %v1237_v41 = vadd.f32 %v2528_v19, %v1166_v37  ;;  %v1269_v42 = vadd.f32 %v2528_v19, %v1198_v38  ;;  %v1300_v43 = vmax.f32 %v1236_v35, 0.0  ;;  %v1332_v44 = vmax.f32 %v1268_v36, 0.0 }
 0x14b   :  { %v1301_v45 = vmax.f32 %v1237_v41, 0.0  ;;  %v1333_v46 = vmax.f32 %v1269_v42, 0.0 }
 0x14c   :  { %v752_v47 = vpop.f32.mrb[28].mxu0  ;;  %v880_v48 = vpop.f32.mrb[28].mxu1 }
 0x14d   :  { %v1919_v49 = vpack.c.bf16 %v1301_v45, %v1300_v43  ;;  %v1999_v50 = vpack.c.bf16 %v1333_v46, %v1332_v44  ;;  %v1167_v51 = vmul.f32 %v2523_v17, %v752_v47  ;;  %v1199_v52 = vmul.f32 %v2523_v17, %v880_v48  ;;  %v754_v53 = vpop.f32.mrb[29].mxu0  ;;  %v882_v54 = vpop.f32.mrb[29].mxu1 }
 0x14e   :  { %v755_v55 = vpop.f32.mrb[30].mxu0  ;;  %v883_v56 = vpop.f32.mrb[30].mxu1 }
 0x14f   :  { %2051 = vst [vmem:[%s2758_s4 + $0x30] sm:$0xff] %v1919_v49   ;;  %2067 = vst [vmem:[%s2758_s4 + $0xb0] sm:$0xff] %v1999_v50   ;;  %v1238_v57 = vadd.f32 %v2528_v19, %v1167_v51  ;;  %v1270_v58 = vadd.f32 %v2528_v19, %v1199_v52  ;;  %v1168_v59 = vmul.f32 %v2523_v17, %v755_v55  ;;  %v757_v61 = vpop.f32.mrb[31].mxu0  ;;  %v885_v62 = vpop.f32.mrb[31].mxu1 }
 0x150   :  { %v1200_v60 = vmul.f32 %v2523_v17, %v883_v56 }
 0x151   :  { %v1239_v63 = vadd.f32 %v2528_v19, %v1168_v59  ;;  %v1302_v1 = vmax.f32 %v1238_v57, 0.0  ;;  %v1334_v2 = vmax.f32 %v1270_v58, 0.0 }
 0x152   :  { %v1271_v0 = vadd.f32 %v2528_v19, %v1200_v60 }
 0x153   :  { %v1303_v3 = vmax.f32 %v1239_v63, 0.0 }
 0x154   :  { %v1335_v4 = vmax.f32 %v1271_v0, 0.0  ;;  %v760_v5 = vpop.f32.mrb[32].mxu0  ;;  %v888_v6 = vpop.f32.mrb[32].mxu1 }
 0x155   :  { %v1924_v7 = vpack.c.bf16 %v1303_v3, %v1302_v1  ;;  %v1169_v9 = vmul.f32 %v2523_v17, %v760_v5  ;;  %v1201_v10 = vmul.f32 %v2523_v17, %v888_v6  ;;  %v762_v11 = vpop.f32.mrb[33].mxu0  ;;  %v890_v12 = vpop.f32.mrb[33].mxu1 }
 0x156   :  { %v2004_v8 = vpack.c.bf16 %v1335_v4, %v1334_v2  ;;  %v763_v13 = vpop.f32.mrb[34].mxu0  ;;  %v891_v14 = vpop.f32.mrb[34].mxu1 }
 0x157   :  { %2052 = vst [vmem:[%s2758_s4 + $0x38] sm:$0xff] %v1924_v7   ;;  %v1240_v15 = vadd.f32 %v2528_v19, %v1169_v9  ;;  %v1272_v16 = vadd.f32 %v2528_v19, %v1201_v10  ;;  %v1170_v18 = vmul.f32 %v2523_v17, %v763_v13  ;;  %v1202_v20 = vmul.f32 %v2523_v17, %v891_v14  ;;  %v765_v21 = vpop.f32.mrb[35].mxu0  ;;  %v893_v22 = vpop.f32.mrb[35].mxu1 }
 0x158   :  { %2068 = vst [vmem:[%s2758_s4 + $0xb8] sm:$0xff] %v2004_v8  }
 0x159   :  { %v1241_v23 = vadd.f32 %v2528_v19, %v1170_v18  ;;  %v1273_v24 = vadd.f32 %v2528_v19, %v1202_v20  ;;  %v1304_v25 = vmax.f32 %v1240_v15, 0.0  ;;  %v1336_v26 = vmax.f32 %v1272_v16, 0.0 }
 0x15b   :  { %v1305_v27 = vmax.f32 %v1241_v23, 0.0  ;;  %v1337_v28 = vmax.f32 %v1273_v24, 0.0 }
 0x15c   :  { %v768_v29 = vpop.f32.mrb[36].mxu0  ;;  %v896_v30 = vpop.f32.mrb[36].mxu1 }
 0x15d   :  { %v1929_v31 = vpack.c.bf16 %v1305_v27, %v1304_v25  ;;  %v2009_v32 = vpack.c.bf16 %v1337_v28, %v1336_v26  ;;  %v1171_v33 = vmul.f32 %v2523_v17, %v768_v29  ;;  %v1203_v34 = vmul.f32 %v2523_v17, %v896_v30  ;;  %v770_v35 = vpop.f32.mrb[37].mxu0  ;;  %v898_v36 = vpop.f32.mrb[37].mxu1 }
 0x15e   :  { %v771_v37 = vpop.f32.mrb[38].mxu0  ;;  %v899_v38 = vpop.f32.mrb[38].mxu1 }
 0x15f   :  { %2053 = vst [vmem:[%s2758_s4 + $0x40] sm:$0xff] %v1929_v31   ;;  %2069 = vst [vmem:[%s2758_s4 + $0xc0] sm:$0xff] %v2009_v32   ;;  %v1242_v39 = vadd.f32 %v2528_v19, %v1171_v33  ;;  %v1274_v40 = vadd.f32 %v2528_v19, %v1203_v34  ;;  %v1172_v41 = vmul.f32 %v2523_v17, %v771_v37  ;;  %v773_v43 = vpop.f32.mrb[39].mxu0  ;;  %v901_v44 = vpop.f32.mrb[39].mxu1 }
 0x160   :  { %v1204_v42 = vmul.f32 %v2523_v17, %v899_v38 }
 0x161   :  { %v1243_v45 = vadd.f32 %v2528_v19, %v1172_v41  ;;  %v1306_v47 = vmax.f32 %v1242_v39, 0.0  ;;  %v1338_v48 = vmax.f32 %v1274_v40, 0.0 }
 0x162   :  { %v1275_v46 = vadd.f32 %v2528_v19, %v1204_v42 }
 0x163   :  { %v1307_v49 = vmax.f32 %v1243_v45, 0.0 }
 0x164   :  { %v1339_v50 = vmax.f32 %v1275_v46, 0.0  ;;  %v776_v51 = vpop.f32.mrb[40].mxu0  ;;  %v904_v52 = vpop.f32.mrb[40].mxu1 }
 0x165   :  { %v1934_v53 = vpack.c.bf16 %v1307_v49, %v1306_v47  ;;  %v1173_v55 = vmul.f32 %v2523_v17, %v776_v51  ;;  %v1205_v56 = vmul.f32 %v2523_v17, %v904_v52  ;;  %v778_v57 = vpop.f32.mrb[41].mxu0  ;;  %v906_v58 = vpop.f32.mrb[41].mxu1 }
 0x166   :  { %v2014_v54 = vpack.c.bf16 %v1339_v50, %v1338_v48  ;;  %v779_v59 = vpop.f32.mrb[42].mxu0  ;;  %v907_v60 = vpop.f32.mrb[42].mxu1 }
 0x167   :  { %2054 = vst [vmem:[%s2758_s4 + $0x48] sm:$0xff] %v1934_v53   ;;  %v1244_v61 = vadd.f32 %v2528_v19, %v1173_v55  ;;  %v1276_v62 = vadd.f32 %v2528_v19, %v1205_v56  ;;  %v1174_v63 = vmul.f32 %v2523_v17, %v779_v59  ;;  %v1206_v0 = vmul.f32 %v2523_v17, %v907_v60  ;;  %v781_v1 = vpop.f32.mrb[43].mxu0  ;;  %v909_v2 = vpop.f32.mrb[43].mxu1 }
 0x168   :  { %2070 = vst [vmem:[%s2758_s4 + $0xc8] sm:$0xff] %v2014_v54  }
 0x169   :  { %v1245_v3 = vadd.f32 %v2528_v19, %v1174_v63  ;;  %v1277_v4 = vadd.f32 %v2528_v19, %v1206_v0  ;;  %v1308_v5 = vmax.f32 %v1244_v61, 0.0  ;;  %v1340_v6 = vmax.f32 %v1276_v62, 0.0 }
 0x16b   :  { %v1309_v7 = vmax.f32 %v1245_v3, 0.0  ;;  %v1341_v8 = vmax.f32 %v1277_v4, 0.0 }
 0x16c   :  { %v784_v9 = vpop.f32.mrb[44].mxu0  ;;  %v912_v10 = vpop.f32.mrb[44].mxu1 }
 0x16d   :  { %v1939_v11 = vpack.c.bf16 %v1309_v7, %v1308_v5  ;;  %v2019_v12 = vpack.c.bf16 %v1341_v8, %v1340_v6  ;;  %v1175_v13 = vmul.f32 %v2523_v17, %v784_v9  ;;  %v1207_v14 = vmul.f32 %v2523_v17, %v912_v10  ;;  %v786_v15 = vpop.f32.mrb[45].mxu0  ;;  %v914_v16 = vpop.f32.mrb[45].mxu1 }
 0x16e   :  { %v787_v18 = vpop.f32.mrb[46].mxu0  ;;  %v915_v20 = vpop.f32.mrb[46].mxu1 }
 0x16f   :  { %2055 = vst [vmem:[%s2758_s4 + $0x50] sm:$0xff] %v1939_v11   ;;  %2071 = vst [vmem:[%s2758_s4 + $0xd0] sm:$0xff] %v2019_v12   ;;  %v1246_v21 = vadd.f32 %v2528_v19, %v1175_v13  ;;  %v1278_v22 = vadd.f32 %v2528_v19, %v1207_v14  ;;  %v1176_v23 = vmul.f32 %v2523_v17, %v787_v18  ;;  %v789_v25 = vpop.f32.mrb[47].mxu0  ;;  %v917_v26 = vpop.f32.mrb[47].mxu1 }
 0x170   :  { %v1208_v24 = vmul.f32 %v2523_v17, %v915_v20 }
 0x171   :  { %v1247_v27 = vadd.f32 %v2528_v19, %v1176_v23  ;;  %v1310_v29 = vmax.f32 %v1246_v21, 0.0  ;;  %v1342_v30 = vmax.f32 %v1278_v22, 0.0 }
 0x172   :  { %v1279_v28 = vadd.f32 %v2528_v19, %v1208_v24 }
 0x173   :  { %v1311_v31 = vmax.f32 %v1247_v27, 0.0 }
 0x174   :  { %v1343_v32 = vmax.f32 %v1279_v28, 0.0  ;;  %v792_v33 = vpop.f32.mrb[48].mxu0  ;;  %v920_v34 = vpop.f32.mrb[48].mxu1 }
 0x175   :  { %v1944_v35 = vpack.c.bf16 %v1311_v31, %v1310_v29  ;;  %v1177_v37 = vmul.f32 %v2523_v17, %v792_v33  ;;  %v1209_v38 = vmul.f32 %v2523_v17, %v920_v34  ;;  %v794_v39 = vpop.f32.mrb[49].mxu0  ;;  %v922_v40 = vpop.f32.mrb[49].mxu1 }
 0x176   :  { %v2024_v36 = vpack.c.bf16 %v1343_v32, %v1342_v30  ;;  %v795_v41 = vpop.f32.mrb[50].mxu0  ;;  %v923_v42 = vpop.f32.mrb[50].mxu1 }
 0x177   :  { %2056 = vst [vmem:[%s2758_s4 + $0x58] sm:$0xff] %v1944_v35   ;;  %v1248_v43 = vadd.f32 %v2528_v19, %v1177_v37  ;;  %v1280_v44 = vadd.f32 %v2528_v19, %v1209_v38  ;;  %v1178_v45 = vmul.f32 %v2523_v17, %v795_v41  ;;  %v1210_v46 = vmul.f32 %v2523_v17, %v923_v42  ;;  %v797_v47 = vpop.f32.mrb[51].mxu0  ;;  %v925_v48 = vpop.f32.mrb[51].mxu1 }
 0x178   :  { %2072 = vst [vmem:[%s2758_s4 + $0xd8] sm:$0xff] %v2024_v36  }
 0x179   :  { %v1249_v49 = vadd.f32 %v2528_v19, %v1178_v45  ;;  %v1281_v50 = vadd.f32 %v2528_v19, %v1210_v46  ;;  %v1312_v51 = vmax.f32 %v1248_v43, 0.0  ;;  %v1344_v52 = vmax.f32 %v1280_v44, 0.0 }
 0x17b   :  { %v1313_v53 = vmax.f32 %v1249_v49, 0.0  ;;  %v1345_v54 = vmax.f32 %v1281_v50, 0.0 }
 0x17c   :  { %v800_v55 = vpop.f32.mrb[52].mxu0  ;;  %v928_v56 = vpop.f32.mrb[52].mxu1 }
 0x17d   :  { %v1949_v57 = vpack.c.bf16 %v1313_v53, %v1312_v51  ;;  %v2029_v58 = vpack.c.bf16 %v1345_v54, %v1344_v52  ;;  %v1179_v59 = vmul.f32 %v2523_v17, %v800_v55  ;;  %v1211_v60 = vmul.f32 %v2523_v17, %v928_v56  ;;  %v802_v61 = vpop.f32.mrb[53].mxu0  ;;  %v930_v62 = vpop.f32.mrb[53].mxu1 }
 0x17e   :  { %v803_v63 = vpop.f32.mrb[54].mxu0  ;;  %v931_v0 = vpop.f32.mrb[54].mxu1 }
 0x17f   :  { %2057 = vst [vmem:[%s2758_s4 + $0x60] sm:$0xff] %v1949_v57   ;;  %2073 = vst [vmem:[%s2758_s4 + $0xe0] sm:$0xff] %v2029_v58   ;;  %v1250_v1 = vadd.f32 %v2528_v19, %v1179_v59  ;;  %v1282_v2 = vadd.f32 %v2528_v19, %v1211_v60  ;;  %v1180_v3 = vmul.f32 %v2523_v17, %v803_v63  ;;  %v805_v5 = vpop.f32.mrb[55].mxu0  ;;  %v933_v6 = vpop.f32.mrb[55].mxu1 }
 0x180   :  { %v1212_v4 = vmul.f32 %v2523_v17, %v931_v0 }
 0x181   :  { %v1251_v7 = vadd.f32 %v2528_v19, %v1180_v3  ;;  %v1314_v9 = vmax.f32 %v1250_v1, 0.0  ;;  %v1346_v10 = vmax.f32 %v1282_v2, 0.0 }
 0x182   :  { %v1283_v8 = vadd.f32 %v2528_v19, %v1212_v4 }
 0x183   :  { %v1315_v11 = vmax.f32 %v1251_v7, 0.0 }
 0x184   :  { %v1347_v12 = vmax.f32 %v1283_v8, 0.0  ;;  %v808_v13 = vpop.f32.mrb[56].mxu0  ;;  %v936_v14 = vpop.f32.mrb[56].mxu1 }
 0x185   :  { %v1954_v15 = vpack.c.bf16 %v1315_v11, %v1314_v9  ;;  %v1181_v18 = vmul.f32 %v2523_v17, %v808_v13  ;;  %v1213_v20 = vmul.f32 %v2523_v17, %v936_v14  ;;  %v810_v21 = vpop.f32.mrb[57].mxu0  ;;  %v938_v22 = vpop.f32.mrb[57].mxu1 }
 0x186   :  { %v2034_v16 = vpack.c.bf16 %v1347_v12, %v1346_v10  ;;  %v811_v23 = vpop.f32.mrb[58].mxu0  ;;  %v939_v24 = vpop.f32.mrb[58].mxu1 }
 0x187   :  { %2058 = vst [vmem:[%s2758_s4 + $0x68] sm:$0xff] %v1954_v15   ;;  %v1252_v25 = vadd.f32 %v2528_v19, %v1181_v18  ;;  %v1284_v26 = vadd.f32 %v2528_v19, %v1213_v20  ;;  %v1182_v27 = vmul.f32 %v2523_v17, %v811_v23  ;;  %v1214_v28 = vmul.f32 %v2523_v17, %v939_v24  ;;  %v813_v29 = vpop.f32.mrb[59].mxu0  ;;  %v941_v30 = vpop.f32.mrb[59].mxu1 }
 0x188   :  { %2074 = vst [vmem:[%s2758_s4 + $0xe8] sm:$0xff] %v2034_v16  }
 0x189   :  { %v1253_v31 = vadd.f32 %v2528_v19, %v1182_v27  ;;  %v1285_v32 = vadd.f32 %v2528_v19, %v1214_v28  ;;  %v1316_v33 = vmax.f32 %v1252_v25, 0.0  ;;  %v1348_v34 = vmax.f32 %v1284_v26, 0.0 }
 0x18b   :  { %v1317_v35 = vmax.f32 %v1253_v31, 0.0  ;;  %v1349_v36 = vmax.f32 %v1285_v32, 0.0 }
 0x18c   :  { %v816_v37 = vpop.f32.mrb[60].mxu0  ;;  %v944_v38 = vpop.f32.mrb[60].mxu1 }
 0x18d   :  { %v1959_v39 = vpack.c.bf16 %v1317_v35, %v1316_v33  ;;  %v2039_v40 = vpack.c.bf16 %v1349_v36, %v1348_v34  ;;  %v1183_v41 = vmul.f32 %v2523_v17, %v816_v37  ;;  %v1215_v42 = vmul.f32 %v2523_v17, %v944_v38  ;;  %v818_v43 = vpop.f32.mrb[61].mxu0  ;;  %v946_v44 = vpop.f32.mrb[61].mxu1 }
 0x18e   :  { %v819_v45 = vpop.f32.mrb[62].mxu0  ;;  %v947_v46 = vpop.f32.mrb[62].mxu1 }
 0x18f   :  { %2059 = vst [vmem:[%s2758_s4 + $0x70] sm:$0xff] %v1959_v39   ;;  %2075 = vst [vmem:[%s2758_s4 + $0xf0] sm:$0xff] %v2039_v40   ;;  %v1254_v47 = vadd.f32 %v2528_v19, %v1183_v41  ;;  %v1286_v48 = vadd.f32 %v2528_v19, %v1215_v42  ;;  %v1184_v49 = vmul.f32 %v2523_v17, %v819_v45  ;;  %v821_v51 = vpop.f32.mrb[63].mxu0  ;;  %v949_v52 = vpop.f32.mrb[63].mxu1 }
 0x190   :  { %v1216_v50 = vmul.f32 %v2523_v17, %v947_v46 }
 0x191   :  { %v1255_v53 = vadd.f32 %v2528_v19, %v1184_v49  ;;  %v1318_v55 = vmax.f32 %v1254_v47, 0.0  ;;  %v1350_v56 = vmax.f32 %v1286_v48, 0.0 }
 0x192   :  { %v1287_v54 = vadd.f32 %v2528_v19, %v1216_v50 }
 0x193   :  { %v1319_v57 = vmax.f32 %v1255_v53, 0.0 }
 0x194   :  { %v1351_v58 = vmax.f32 %v1287_v54, 0.0 }
 0x195   :  { %v1964_v59 = vpack.c.bf16 %v1319_v57, %v1318_v55 }
 0x196   :  { %v2044_v60 = vpack.c.bf16 %v1351_v58, %v1350_v56 }
 0x197   :  { %2060 = vst [vmem:[%s2758_s4 + $0x78] sm:$0xff] %v1964_v59  }
 0x198   :  { %2076 = vst [vmem:[%s2758_s4 + $0xf8] sm:$0xff] %v2044_v60  }

// kernel: resnet18_binary_forward.23
= control target key start
LH: loop header
LB: loop body
LE: loop exit
PB: predicated region body
PF: predicated region fallthrough
CT: control target
= control target key end

     0   :  { %vm304_vm0 = vcmask 519168   ;;  %s871_s0 = inlined_call_operand.vmem [shape: bf16[128,64], index: 0, kind: input, shape index: {}]   ;;  %s872_s1 = inlined_call_operand.vmem [shape: bf16[128,64], index: 1, kind: input, shape index: {}]   ;;  %s873_s2 = inlined_call_operand.vmem [shape: bf16[128,64], index: 2, kind: input, shape index: {}]   ;;  %s874_s3 = inlined_call_operand.vmem [shape: bf16[128,64], index: 3, kind: input, shape index: {}]   ;;  %s875_s4 = inlined_call_operand.vmem [shape: bf16[128,64], index: 4, kind: input, shape index: {}]   ;;  %s876_s5 = inlined_call_operand.vmem [shape: bf16[128,64], index: 5, kind: input, shape index: {}]   ;;  %s877_s6 = inlined_call_operand.vmem [shape: bf16[128,64], index: 6, kind: input, shape index: {}]   ;;  %s878_s7 = inlined_call_operand.vmem [shape: bf16[128,64], index: 7, kind: input, shape index: {}]   ;;  %s879_s8 = inlined_call_operand.vmem [shape: bf16[128,64], index: 8, kind: input, shape index: {}]   ;;  %s880_s9 = inlined_call_operand.vmem [shape: bf16[128,64], index: 9, kind: output, shape index: {}]  }
   0x1   :  { %v32_v0 = vld [vmem:[%s871_s0] sm:$0xf]  ;;  %v33_v6 = vld [vmem:[%s871_s0 + $0x4] sm:$0xf]  ;;  %v34_v15 = vld [vmem:[%s871_s0 + $0x8] sm:$0xf] }
   0x2   :  { %v48_v1 = vld [vmem:[%s872_s1] sm:$0xf]  ;;  %v49_v7 = vld [vmem:[%s872_s1 + $0x4] sm:$0xf]  ;;  %v50_v16 = vld [vmem:[%s872_s1 + $0x8] sm:$0xf] }
   0x3   :  { %v80_v2 = vld [vmem:[%s873_s2] sm:$0xf]  ;;  %v64_v3 = vmax.bf16 %v48_v1, %v32_v0  ;;  %v81_v8 = vld [vmem:[%s873_s2 + $0x4] sm:$0xf]  ;;  %v65_v10 = vmax.bf16 %v49_v7, %v33_v6  ;;  %v82_v17 = vld [vmem:[%s873_s2 + $0x8] sm:$0xf]  ;;  %v66_v20 = vmax.bf16 %v50_v16, %v34_v15 }
   0x4   :  { %v112_v4 = vld [vmem:[%s874_s3] sm:$0xf]  ;;  %v113_v13 = vld [vmem:[%s874_s3 + $0x4] sm:$0xf]  ;;  %v114_v24 = vld [vmem:[%s874_s3 + $0x8] sm:$0xf] }
   0x5   :  { %v96_v5 = vmax.bf16 %v80_v2, %v64_v3  ;;  %v144_v9 = vld [vmem:[%s875_s4] sm:$0xf]  ;;  %v97_v14 = vmax.bf16 %v81_v8, %v65_v10  ;;  %v145_v19 = vld [vmem:[%s875_s4 + $0x4] sm:$0xf]  ;;  %v98_v26 = vmax.bf16 %v82_v17, %v66_v20  ;;  %v35_v27 = vld [vmem:[%s871_s0 + $0xc] sm:$0xf] }
   0x6   :  { %v176_v12 = vld [vmem:[%s876_s5] sm:$0xf]  ;;  %v177_v23 = vld [vmem:[%s876_s5 + $0x4] sm:$0xf]  ;;  %v51_v28 = vld [vmem:[%s872_s1 + $0xc] sm:$0xf] }
   0x7   :  { %v128_v11 = vmax.bf16 %v112_v4, %v96_v5  ;;  %v208_v21 = vld [vmem:[%s877_s6] sm:$0xf]  ;;  %v129_v22 = vmax.bf16 %v113_v13, %v97_v14  ;;  %v83_v29 = vld [vmem:[%s873_s2 + $0xc] sm:$0xf]  ;;  %v146_v33 = vld [vmem:[%s875_s4 + $0x8] sm:$0xf]  ;;  %v67_v34 = vmax.bf16 %v51_v28, %v35_v27  ;;  %v130_v37 = vmax.bf16 %v114_v24, %v98_v26 }
   0x8   :  { %v240_v30 = vld [vmem:[%s878_s7] sm:$0xf]  ;;  %v209_v36 = vld [vmem:[%s877_s6 + $0x4] sm:$0xf]  ;;  %v178_v38 = vld [vmem:[%s876_s5 + $0x8] sm:$0xf] }
   0x9   :  { %v160_v18 = vmax.bf16 %v144_v9, %v128_v11  ;;  %v272_v31 = vld [vmem:[%s879_s8] sm:$0xf]  ;;  %v161_v32 = vmax.bf16 %v145_v19, %v129_v22  ;;  %v115_v39 = vld [vmem:[%s874_s3 + $0xc] sm:$0xf]  ;;  %v99_v41 = vmax.bf16 %v83_v29, %v67_v34  ;;  %v36_v42 = vld [vmem:[%s871_s0 + $0x10] sm:$0xf]  ;;  %v162_v48 = vmax.bf16 %v146_v33, %v130_v37 }
   0xa   :  { %v52_v43 = vld [vmem:[%s872_s1 + $0x10] sm:$0xf]  ;;  %v241_v46 = vld [vmem:[%s878_s7 + $0x4] sm:$0xf]  ;;  %v147_v49 = vld [vmem:[%s875_s4 + $0xc] sm:$0xf] }
   0xb   :  { %v192_v25 = vmax.bf16 %v176_v12, %v160_v18  ;;  %v193_v40 = vmax.bf16 %v177_v23, %v161_v32  ;;  %v84_v44 = vld [vmem:[%s873_s2 + $0x10] sm:$0xf]  ;;  %v273_v47 = vld [vmem:[%s879_s8 + $0x4] sm:$0xf]  ;;  %v68_v50 = vmax.bf16 %v52_v43, %v36_v42  ;;  %v210_v52 = vld [vmem:[%s877_s6 + $0x8] sm:$0xf]  ;;  %v131_v53 = vmax.bf16 %v115_v39, %v99_v41 }
   0xc   :  { %v179_v54 = vld [vmem:[%s876_s5 + $0xc] sm:$0xf]  ;;  %v116_v55 = vld [vmem:[%s874_s3 + $0x10] sm:$0xf]  ;;  %v194_v57 = vmax.bf16 %v178_v38, %v162_v48  ;;  %v37_v59 = vld [vmem:[%s871_s0 + $0x14] sm:$0xf] }
   0xd   :  { %v224_v35 = vmax.bf16 %v208_v21, %v192_v25  ;;  %v225_v51 = vmax.bf16 %v209_v36, %v193_v40  ;;  %v100_v58 = vmax.bf16 %v84_v44, %v68_v50  ;;  %v53_v60 = vld [vmem:[%s872_s1 + $0x14] sm:$0xf]  ;;  %v242_v63 = vld [vmem:[%s878_s7 + $0x8] sm:$0xf]  ;;  %v163_v1 = vmax.bf16 %v147_v49, %v131_v53  ;;  %v148_v2 = vld [vmem:[%s875_s4 + $0x10] sm:$0xf] }
   0xe   :  { %v85_v61 = vld [vmem:[%s873_s2 + $0x14] sm:$0xf]  ;;  %v274_v0 = vld [vmem:[%s879_s8 + $0x8] sm:$0xf]  ;;  %v69_v3 = vmax.bf16 %v53_v60, %v37_v59  ;;  %v226_v4 = vmax.bf16 %v210_v52, %v194_v57  ;;  %v211_v5 = vld [vmem:[%s877_s6 + $0xc] sm:$0xf] }
   0xf   :  { %v256_v45 = vmax.bf16 %v240_v30, %v224_v35  ;;  %v257_v62 = vmax.bf16 %v241_v46, %v225_v51  ;;  %v132_v6 = vmax.bf16 %v116_v55, %v100_v58  ;;  %v180_v7 = vld [vmem:[%s876_s5 + $0x10] sm:$0xf]  ;;  %v117_v8 = vld [vmem:[%s874_s3 + $0x14] sm:$0xf]  ;;  %v195_v10 = vmax.bf16 %v179_v54, %v163_v1  ;;  %v38_v12 = vld [vmem:[%s871_s0 + $0x18] sm:$0xf] }
  0x10   :  { %v101_v11 = vmax.bf16 %v85_v61, %v69_v3  ;;  %v54_v13 = vld [vmem:[%s872_s1 + $0x18] sm:$0xf]  ;;  %v258_v15 = vmax.bf16 %v242_v63, %v226_v4  ;;  %v243_v16 = vld [vmem:[%s878_s7 + $0xc] sm:$0xf]  ;;  %v149_v19 = vld [vmem:[%s875_s4 + $0x14] sm:$0xf] }
  0x11   :  { %v288_v56 = vmax.bf16 %v272_v31, %v256_v45  ;;  %v289_v9 = vmax.bf16 %v273_v47, %v257_v62  ;;  %v86_v14 = vld [vmem:[%s873_s2 + $0x18] sm:$0xf]  ;;  %v275_v17 = vld [vmem:[%s879_s8 + $0xc] sm:$0xf]  ;;  %v164_v18 = vmax.bf16 %v148_v2, %v132_v6  ;;  %v70_v20 = vmax.bf16 %v54_v13, %v38_v12  ;;  %v212_v22 = vld [vmem:[%s877_s6 + $0x10] sm:$0xf] }
  0x12   :  { %v227_v21 = vmax.bf16 %v211_v5, %v195_v10  ;;  %v133_v23 = vmax.bf16 %v117_v8, %v101_v11  ;;  %v181_v24 = vld [vmem:[%s876_s5 + $0x14] sm:$0xf]  ;;  %v118_v25 = vld [vmem:[%s874_s3 + $0x18] sm:$0xf]  ;;  %v290_v26 = vmax.bf16 %v274_v0, %v258_v15  ;;  %v39_v29 = vld [vmem:[%s871_s0 + $0x1c] sm:$0xf] }
  0x13   :  { %305 = vst.msk [vmem:[%s880_s9] sm:$0xf] %vm304_vm0, %v288_v56  ;;  %306 = vst.msk [vmem:[%s880_s9 + $0x4] sm:$0xf] %vm304_vm0, %v289_v9  ;;  %v196_v27 = vmax.bf16 %v180_v7, %v164_v18  ;;  %v102_v28 = vmax.bf16 %v86_v14, %v70_v20  ;;  %v55_v30 = vld [vmem:[%s872_s1 + $0x1c] sm:$0xf] }
  0x14   :  { %v87_v31 = vld [vmem:[%s873_s2 + $0x1c] sm:$0xf]  ;;  %v259_v32 = vmax.bf16 %v243_v16, %v227_v21  ;;  %v244_v33 = vld [vmem:[%s878_s7 + $0x10] sm:$0xf]  ;;  %v165_v35 = vmax.bf16 %v149_v19, %v133_v23  ;;  %v150_v36 = vld [vmem:[%s875_s4 + $0x18] sm:$0xf]  ;;  %v71_v37 = vmax.bf16 %v55_v30, %v39_v29 }
  0x15   :  { %v276_v34 = vld [vmem:[%s879_s8 + $0x10] sm:$0xf]  ;;  %307 = vst.msk [vmem:[%s880_s9 + $0x8] sm:$0xf] %vm304_vm0, %v290_v26  ;;  %v228_v38 = vmax.bf16 %v212_v22, %v196_v27  ;;  %v213_v39 = vld [vmem:[%s877_s6 + $0x14] sm:$0xf]  ;;  %v134_v40 = vmax.bf16 %v118_v25, %v102_v28 }
  0x16   :  { %v182_v41 = vld [vmem:[%s876_s5 + $0x18] sm:$0xf]  ;;  %v119_v42 = vld [vmem:[%s874_s3 + $0x1c] sm:$0xf]  ;;  %v291_v43 = vmax.bf16 %v275_v17, %v259_v32  ;;  %v197_v44 = vmax.bf16 %v181_v24, %v165_v35  ;;  %v103_v45 = vmax.bf16 %v87_v31, %v71_v37  ;;  %v40_v46 = vld [vmem:[%s871_s0 + $0x20] sm:$0xf] }
  0x17   :  { %v56_v47 = vld [vmem:[%s872_s1 + $0x20] sm:$0xf]  ;;  %v260_v49 = vmax.bf16 %v244_v33, %v228_v38  ;;  %v245_v50 = vld [vmem:[%s878_s7 + $0x14] sm:$0xf]  ;;  %v166_v52 = vmax.bf16 %v150_v36, %v134_v40  ;;  %v151_v53 = vld [vmem:[%s875_s4 + $0x1c] sm:$0xf] }
  0x18   :  { %v88_v48 = vld [vmem:[%s873_s2 + $0x20] sm:$0xf]  ;;  %v277_v51 = vld [vmem:[%s879_s8 + $0x14] sm:$0xf]  ;;  %v72_v54 = vmax.bf16 %v56_v47, %v40_v46  ;;  %308 = vst.msk [vmem:[%s880_s9 + $0xc] sm:$0xf] %vm304_vm0, %v291_v43  ;;  %v229_v55 = vmax.bf16 %v213_v39, %v197_v44  ;;  %v135_v57 = vmax.bf16 %v119_v42, %v103_v45 }
  0x19   :  { %v214_v56 = vld [vmem:[%s877_s6 + $0x18] sm:$0xf]  ;;  %v183_v58 = vld [vmem:[%s876_s5 + $0x1c] sm:$0xf]  ;;  %v120_v59 = vld [vmem:[%s874_s3 + $0x20] sm:$0xf]  ;;  %v292_v60 = vmax.bf16 %v276_v34, %v260_v49  ;;  %v198_v61 = vmax.bf16 %v182_v41, %v166_v52 }
  0x1a   :  { %v104_v62 = vmax.bf16 %v88_v48, %v72_v54  ;;  %v41_v63 = vld [vmem:[%s871_s0 + $0x24] sm:$0xf]  ;;  %v261_v2 = vmax.bf16 %v245_v50, %v229_v55  ;;  %v246_v3 = vld [vmem:[%s878_s7 + $0x18] sm:$0xf]  ;;  %v167_v5 = vmax.bf16 %v151_v53, %v135_v57  ;;  %v152_v6 = vld [vmem:[%s875_s4 + $0x20] sm:$0xf] }
  0x1b   :  { %v57_v0 = vld [vmem:[%s872_s1 + $0x24] sm:$0xf]  ;;  %v278_v4 = vld [vmem:[%s879_s8 + $0x18] sm:$0xf]  ;;  %309 = vst.msk [vmem:[%s880_s9 + $0x10] sm:$0xf] %vm304_vm0, %v292_v60  ;;  %v230_v8 = vmax.bf16 %v214_v56, %v198_v61 }
  0x1c   :  { %v89_v1 = vld [vmem:[%s873_s2 + $0x24] sm:$0xf]  ;;  %v73_v7 = vmax.bf16 %v57_v0, %v41_v63  ;;  %v215_v9 = vld [vmem:[%s877_s6 + $0x1c] sm:$0xf]  ;;  %v136_v10 = vmax.bf16 %v120_v59, %v104_v62  ;;  %v184_v11 = vld [vmem:[%s876_s5 + $0x20] sm:$0xf]  ;;  %v293_v13 = vmax.bf16 %v277_v51, %v261_v2  ;;  %v199_v14 = vmax.bf16 %v183_v58, %v167_v5 }
  0x1d   :  { %v121_v12 = vld [vmem:[%s874_s3 + $0x24] sm:$0xf]  ;;  %v42_v16 = vld [vmem:[%s871_s0 + $0x28] sm:$0xf]  ;;  %v262_v19 = vmax.bf16 %v246_v3, %v230_v8  ;;  %v247_v20 = vld [vmem:[%s878_s7 + $0x1c] sm:$0xf] }
  0x1e   :  { %v105_v15 = vmax.bf16 %v89_v1, %v73_v7  ;;  %v58_v17 = vld [vmem:[%s872_s1 + $0x28] sm:$0xf]  ;;  %v279_v21 = vld [vmem:[%s879_s8 + $0x1c] sm:$0xf]  ;;  %v168_v22 = vmax.bf16 %v152_v6, %v136_v10  ;;  %v153_v23 = vld [vmem:[%s875_s4 + $0x24] sm:$0xf]  ;;  %v231_v25 = vmax.bf16 %v215_v9, %v199_v14 }
  0x1f   :  { %v90_v18 = vld [vmem:[%s873_s2 + $0x28] sm:$0xf]  ;;  %v74_v24 = vmax.bf16 %v58_v17, %v42_v16  ;;  %310 = vst.msk [vmem:[%s880_s9 + $0x14] sm:$0xf] %vm304_vm0, %v293_v13  ;;  %v216_v26 = vld [vmem:[%s877_s6 + $0x20] sm:$0xf]  ;;  %v294_v30 = vmax.bf16 %v278_v4, %v262_v19 }
  0x20   :  { %v137_v27 = vmax.bf16 %v121_v12, %v105_v15  ;;  %v185_v28 = vld [vmem:[%s876_s5 + $0x24] sm:$0xf]  ;;  %v122_v29 = vld [vmem:[%s874_s3 + $0x28] sm:$0xf]  ;;  %v200_v31 = vmax.bf16 %v184_v11, %v168_v22  ;;  %v43_v33 = vld [vmem:[%s871_s0 + $0x2c] sm:$0xf]  ;;  %v263_v36 = vmax.bf16 %v247_v20, %v231_v25 }
  0x21   :  { %v106_v32 = vmax.bf16 %v90_v18, %v74_v24  ;;  %v59_v34 = vld [vmem:[%s872_s1 + $0x2c] sm:$0xf]  ;;  %v248_v37 = vld [vmem:[%s878_s7 + $0x20] sm:$0xf]  ;;  %v154_v40 = vld [vmem:[%s875_s4 + $0x28] sm:$0xf] }
  0x22   :  { %v91_v35 = vld [vmem:[%s873_s2 + $0x2c] sm:$0xf]  ;;  %v280_v38 = vld [vmem:[%s879_s8 + $0x20] sm:$0xf]  ;;  %v169_v39 = vmax.bf16 %v153_v23, %v137_v27  ;;  %v75_v41 = vmax.bf16 %v59_v34, %v43_v33  ;;  %311 = vst.msk [vmem:[%s880_s9 + $0x18] sm:$0xf] %vm304_vm0, %v294_v30  ;;  %v232_v42 = vmax.bf16 %v216_v26, %v200_v31  ;;  %v295_v47 = vmax.bf16 %v279_v21, %v263_v36 }
  0x23   :  { %v217_v43 = vld [vmem:[%s877_s6 + $0x24] sm:$0xf]  ;;  %v138_v44 = vmax.bf16 %v122_v29, %v106_v32  ;;  %v186_v45 = vld [vmem:[%s876_s5 + $0x28] sm:$0xf]  ;;  %v123_v46 = vld [vmem:[%s874_s3 + $0x2c] sm:$0xf] }
  0x24   :  { %v201_v48 = vmax.bf16 %v185_v28, %v169_v39  ;;  %v107_v49 = vmax.bf16 %v91_v35, %v75_v41  ;;  %v44_v50 = vld [vmem:[%s871_s0 + $0x30] sm:$0xf]  ;;  %v264_v53 = vmax.bf16 %v248_v37, %v232_v42  ;;  %v249_v54 = vld [vmem:[%s878_s7 + $0x24] sm:$0xf]  ;;  %v155_v57 = vld [vmem:[%s875_s4 + $0x2c] sm:$0xf] }
  0x25   :  { %v60_v51 = vld [vmem:[%s872_s1 + $0x30] sm:$0xf]  ;;  %v281_v55 = vld [vmem:[%s879_s8 + $0x24] sm:$0xf]  ;;  %v170_v56 = vmax.bf16 %v154_v40, %v138_v44  ;;  %312 = vst.msk [vmem:[%s880_s9 + $0x1c] sm:$0xf] %vm304_vm0, %v295_v47 }
  0x26   :  { %v92_v52 = vld [vmem:[%s873_s2 + $0x30] sm:$0xf]  ;;  %v76_v58 = vmax.bf16 %v60_v51, %v44_v50  ;;  %v233_v59 = vmax.bf16 %v217_v43, %v201_v48  ;;  %v218_v60 = vld [vmem:[%s877_s6 + $0x28] sm:$0xf]  ;;  %v139_v61 = vmax.bf16 %v123_v46, %v107_v49  ;;  %v187_v62 = vld [vmem:[%s876_s5 + $0x2c] sm:$0xf]  ;;  %v296_v0 = vmax.bf16 %v280_v38, %v264_v53 }
  0x27   :  { %v124_v63 = vld [vmem:[%s874_s3 + $0x30] sm:$0xf]  ;;  %v202_v1 = vmax.bf16 %v186_v45, %v170_v56  ;;  %v45_v3 = vld [vmem:[%s871_s0 + $0x34] sm:$0xf]  ;;  %v250_v7 = vld [vmem:[%s878_s7 + $0x28] sm:$0xf] }
  0x28   :  { %v108_v2 = vmax.bf16 %v92_v52, %v76_v58  ;;  %v61_v4 = vld [vmem:[%s872_s1 + $0x34] sm:$0xf]  ;;  %v265_v6 = vmax.bf16 %v249_v54, %v233_v59  ;;  %v282_v8 = vld [vmem:[%s879_s8 + $0x28] sm:$0xf]  ;;  %v171_v9 = vmax.bf16 %v155_v57, %v139_v61  ;;  %v156_v10 = vld [vmem:[%s875_s4 + $0x30] sm:$0xf] }
  0x29   :  { %v93_v5 = vld [vmem:[%s873_s2 + $0x34] sm:$0xf]  ;;  %v77_v11 = vmax.bf16 %v61_v4, %v45_v3  ;;  %313 = vst.msk [vmem:[%s880_s9 + $0x20] sm:$0xf] %vm304_vm0, %v296_v0  ;;  %v234_v12 = vmax.bf16 %v218_v60, %v202_v1  ;;  %v219_v13 = vld [vmem:[%s877_s6 + $0x2c] sm:$0xf] }
  0x2a   :  { %v140_v14 = vmax.bf16 %v124_v63, %v108_v2  ;;  %v188_v15 = vld [vmem:[%s876_s5 + $0x30] sm:$0xf]  ;;  %v125_v16 = vld [vmem:[%s874_s3 + $0x34] sm:$0xf]  ;;  %v297_v17 = vmax.bf16 %v281_v55, %v265_v6  ;;  %v203_v18 = vmax.bf16 %v187_v62, %v171_v9  ;;  %v46_v20 = vld [vmem:[%s871_s0 + $0x38] sm:$0xf] }
  0x2b   :  { %v109_v19 = vmax.bf16 %v93_v5, %v77_v11  ;;  %v62_v21 = vld [vmem:[%s872_s1 + $0x38] sm:$0xf]  ;;  %v266_v23 = vmax.bf16 %v250_v7, %v234_v12  ;;  %v251_v24 = vld [vmem:[%s878_s7 + $0x2c] sm:$0xf]  ;;  %v157_v27 = vld [vmem:[%s875_s4 + $0x34] sm:$0xf] }
  0x2c   :  { %v94_v22 = vld [vmem:[%s873_s2 + $0x38] sm:$0xf]  ;;  %v283_v25 = vld [vmem:[%s879_s8 + $0x2c] sm:$0xf]  ;;  %v172_v26 = vmax.bf16 %v156_v10, %v140_v14  ;;  %v78_v28 = vmax.bf16 %v62_v21, %v46_v20  ;;  %314 = vst.msk [vmem:[%s880_s9 + $0x24] sm:$0xf] %vm304_vm0, %v297_v17  ;;  %v235_v29 = vmax.bf16 %v219_v13, %v203_v18 }
  0x2d   :  { %v220_v30 = vld [vmem:[%s877_s6 + $0x30] sm:$0xf]  ;;  %v141_v31 = vmax.bf16 %v125_v16, %v109_v19  ;;  %v189_v32 = vld [vmem:[%s876_s5 + $0x34] sm:$0xf]  ;;  %v126_v33 = vld [vmem:[%s874_s3 + $0x38] sm:$0xf]  ;;  %v298_v34 = vmax.bf16 %v282_v8, %v266_v23 }
  0x2e   :  { %v204_v35 = vmax.bf16 %v188_v15, %v172_v26  ;;  %v110_v36 = vmax.bf16 %v94_v22, %v78_v28  ;;  %v47_v37 = vld [vmem:[%s871_s0 + $0x3c] sm:$0xf]  ;;  %v267_v40 = vmax.bf16 %v251_v24, %v235_v29  ;;  %v252_v41 = vld [vmem:[%s878_s7 + $0x30] sm:$0xf]  ;;  %v158_v43 = vld [vmem:[%s875_s4 + $0x38] sm:$0xf] }
  0x2f   :  { %v63_v38 = vld [vmem:[%s872_s1 + $0x3c] sm:$0xf]  ;;  %v173_v42 = vmax.bf16 %v157_v27, %v141_v31  ;;  %315 = vst.msk [vmem:[%s880_s9 + $0x28] sm:$0xf] %vm304_vm0, %v298_v34  ;;  %v221_v46 = vld [vmem:[%s877_s6 + $0x34] sm:$0xf] }
  0x30   :  { %v95_v39 = vld [vmem:[%s873_s2 + $0x3c] sm:$0xf]  ;;  %v79_v44 = vmax.bf16 %v63_v38, %v47_v37  ;;  %v236_v45 = vmax.bf16 %v220_v30, %v204_v35  ;;  %v142_v47 = vmax.bf16 %v126_v33, %v110_v36  ;;  %v299_v49 = vmax.bf16 %v283_v25, %v267_v40  ;;  %v284_v50 = vld [vmem:[%s879_s8 + $0x30] sm:$0xf]  ;;  %v190_v52 = vld [vmem:[%s876_s5 + $0x38] sm:$0xf] }
  0x31   :  { %v127_v48 = vld [vmem:[%s874_s3 + $0x3c] sm:$0xf]  ;;  %v205_v51 = vmax.bf16 %v189_v32, %v173_v42  ;;  %v253_v55 = vld [vmem:[%s878_s7 + $0x34] sm:$0xf]  ;;  %v222_v59 = vld [vmem:[%s877_s6 + $0x38] sm:$0xf] }
  0x32   :  { %v111_v53 = vmax.bf16 %v95_v39, %v79_v44  ;;  %v268_v54 = vmax.bf16 %v252_v41, %v236_v45  ;;  %v174_v56 = vmax.bf16 %v158_v43, %v142_v47  ;;  %v159_v57 = vld [vmem:[%s875_s4 + $0x3c] sm:$0xf]  ;;  %316 = vst.msk [vmem:[%s880_s9 + $0x2c] sm:$0xf] %vm304_vm0, %v299_v49  ;;  %v285_v62 = vld [vmem:[%s879_s8 + $0x34] sm:$0xf] }
  0x33   :  { %v237_v58 = vmax.bf16 %v221_v46, %v205_v51  ;;  %v191_v0 = vld [vmem:[%s876_s5 + $0x3c] sm:$0xf]  ;;  %v254_v2 = vld [vmem:[%s878_s7 + $0x38] sm:$0xf] }
  0x34   :  { %v143_v60 = vmax.bf16 %v127_v48, %v111_v53  ;;  %v300_v61 = vmax.bf16 %v284_v50, %v268_v54  ;;  %v206_v63 = vmax.bf16 %v190_v52, %v174_v56  ;;  %v223_v5 = vld [vmem:[%s877_s6 + $0x3c] sm:$0xf]  ;;  %v286_v7 = vld [vmem:[%s879_s8 + $0x38] sm:$0xf] }
  0x35   :  { %v269_v1 = vmax.bf16 %v253_v55, %v237_v58  ;;  %v255_v10 = vld [vmem:[%s878_s7 + $0x3c] sm:$0xf] }
  0x36   :  { %v175_v3 = vmax.bf16 %v159_v57, %v143_v60  ;;  %317 = vst.msk [vmem:[%s880_s9 + $0x30] sm:$0xf] %vm304_vm0, %v300_v61  ;;  %v238_v4 = vmax.bf16 %v222_v59, %v206_v63  ;;  %v287_v13 = vld [vmem:[%s879_s8 + $0x3c] sm:$0xf] }
  0x37   :  { %v301_v6 = vmax.bf16 %v285_v62, %v269_v1 }
  0x38   :  { %v207_v8 = vmax.bf16 %v191_v0, %v175_v3  ;;  %v270_v9 = vmax.bf16 %v254_v2, %v238_v4 }
  0x39   :  { %318 = vst.msk [vmem:[%s880_s9 + $0x34] sm:$0xf] %vm304_vm0, %v301_v6 }
  0x3a   :  { %v239_v11 = vmax.bf16 %v223_v5, %v207_v8  ;;  %v302_v12 = vmax.bf16 %v286_v7, %v270_v9 }
  0x3c   :  { %v271_v14 = vmax.bf16 %v255_v10, %v239_v11  ;;  %319 = vst.msk [vmem:[%s880_s9 + $0x38] sm:$0xf] %vm304_vm0, %v302_v12 }
  0x3e   :  { %v303_v15 = vmax.bf16 %v287_v13, %v271_v14 }
  0x40   :  { %320 = vst.msk [vmem:[%s880_s9 + $0x3c] sm:$0xf] %vm304_vm0, %v303_v15 }

// kernel: resnet18_binary_forward.24
= control target key start
LH: loop header
LB: loop body
LE: loop exit
PB: predicated region body
PF: predicated region fallthrough
CT: control target
= control target key end

     0   :  { %s1327_s15 = smov 0   ;;  %s1329_s16 = smov 0   ;;  %s1514_s0 = inlined_call_operand.vmem [shape: bf16[128,768], index: 0, kind: input, shape index: {}]   ;;  %s1515_s1 = inlined_call_operand.vmem [shape: bf16[768,128], index: 1, kind: input, shape index: {}]   ;;  %s1516_s2 = inlined_call_operand.vmem [shape: f32[1,128], index: 2, kind: input, shape index: {}]   ;;  %s1517_s3 = inlined_call_operand.vmem [shape: f32[1,128], index: 3, kind: input, shape index: {}]   ;;  %s1518_s4 = inlined_call_operand.vmem [shape: bf16[128,128], index: 4, kind: output, shape index: {}]  }
   0x1   :  { %s1331_s17 = smov 0   ;;  %s1333_s18 = smov 0  }
   0x2   :  { %s1335_s19 = smov 0  }
   0x3 LB: > { %s23_s20 = sadd.s32 1, %s1295_s18  ;;  %p42_p1 = scmp.ne.s32.totalorder %s1287_s16, %s1283_s15  ;;  %s1299_s19 = sphi %s1335_s19, %s14_s19   ;;  %s1295_s18 = sphi %s1333_s18, %s1522_s18   ;;  %s1291_s17 = sphi %s1331_s17, %s1521_s17   ;;  %s1287_s16 = sphi %s1329_s16, %s1520_s16   ;;  %s1283_s15 = sphi %s1327_s15, %s1519_s15  }
   0x4   : > { %p24_p0 = scmp.ge.s32.totalorder %s23_s20, 3  ;;  %p43_p2 = scmp.eq.s32.totalorder %s1299_s19, 0 }
   0x5   : > { %s35_s22 = sadd.s32 1, %s1287_s16  ;;  %p972_p5 = scmp.ge.s32.totalorder %s1299_s19, 3 }
   0x6   : > { %s1524_s20 = smov (%p24_p0, %s23_s20), 0  ;;  %p44_p3 = por %p43_p2, %p42_p1 }
   0x7   : > { %s31_s21 = ssub.s32 %s1295_s18, %s1524_s20  ;;  %168 = sbr.rel (%p972_p5) target bundleno = 26 (0x1a), region = 24 }
   0x8   : > { %p33_p4 = scmp.eq.s32.totalorder %s31_s21, 0 }
   0xa   : > { %s1362_s23 = scalar_select %p33_p4, %s1287_s16, %s35_s22  }
   0xe   : > { %171 = sbr.rel (!%p44_p3) target bundleno = 26 (0x1a), region = 28  ;;  %s173_s24 = sand.u32 (%p44_p3), 1, %s1287_s16  }
   0xf   : > { %s1036_s25 = sshll.u32 (%p44_p3), %s1295_s18, 3  ;;  %s973_s26 = sshll.u32 (%p44_p3), %s173_s24, 7 }
  0x10   : > { %s1370_s29 = scalar_lea.vmem (%p44_p3), %s1514_s0, %s1036_s25  ;;  %s175_s30 = scalar_lea.vmem (%p44_p3), [#allocation3], %s973_s26 }
  0x11   : > { %v239_v0 = vld [vmem:[%s1370_s29] sm:$0xff] (%p44_p3)  ;;  %v241_v1 = vld [vmem:[%s1370_s29 + $0x18] sm:$0xff] (%p44_p3)  ;;  %v243_v2 = vld [vmem:[%s1370_s29 + $0x30] sm:$0xff] (%p44_p3) }
  0x12   : > { %240 = vst [vmem:[%s175_s30] sm:$0xff] (%p44_p3), %v239_v0  ;;  %242 = vst [vmem:[%s175_s30 + $0x8] sm:$0xff] (%p44_p3), %v241_v1  ;;  %v245_v3 = vld [vmem:[%s1370_s29 + $0x48] sm:$0xff] (%p44_p3)  ;;  %v247_v4 = vld [vmem:[%s1370_s29 + $0x60] sm:$0xff] (%p44_p3) }
  0x13   : > { %244 = vst [vmem:[%s175_s30 + $0x10] sm:$0xff] (%p44_p3), %v243_v2  ;;  %v249_v5 = vld [vmem:[%s1370_s29 + $0x78] sm:$0xff] (%p44_p3)  ;;  %246 = vst [vmem:[%s175_s30 + $0x18] sm:$0xff] (%p44_p3), %v245_v3  ;;  %v251_v6 = vld [vmem:[%s1370_s29 + $0x90] sm:$0xff] (%p44_p3) }
  0x14   : > { %248 = vst [vmem:[%s175_s30 + $0x20] sm:$0xff] (%p44_p3), %v247_v4  ;;  %250 = vst [vmem:[%s175_s30 + $0x28] sm:$0xff] (%p44_p3), %v249_v5  ;;  %v253_v7 = vld [vmem:[%s1370_s29 + $0xa8] sm:$0xff] (%p44_p3)  ;;  %v255_v8 = vld [vmem:[%s1370_s29 + $0xc0] sm:$0xff] (%p44_p3) }
  0x15   : > { %252 = vst [vmem:[%s175_s30 + $0x30] sm:$0xff] %v251_v6  ;;  %254 = vst [vmem:[%s175_s30 + $0x38] sm:$0xff] %v253_v7  ;;  %v257_v9 = vld [vmem:[%s1370_s29 + $0xd8] sm:$0xff]  ;;  %v259_v10 = vld [vmem:[%s1370_s29 + $0xf0] sm:$0xff] }
  0x16   : > { %256 = vst [vmem:[%s175_s30 + $0x40] sm:$0xff] %v255_v8  ;;  %v261_v11 = vld [vmem:[%s1370_s29 + $0x108] sm:$0xff]  ;;  %258 = vst [vmem:[%s175_s30 + $0x48] sm:$0xff] %v257_v9  ;;  %v263_v12 = vld [vmem:[%s1370_s29 + $0x120] sm:$0xff] }
  0x17   : > { %260 = vst [vmem:[%s175_s30 + $0x50] sm:$0xff] %v259_v10  ;;  %262 = vst [vmem:[%s175_s30 + $0x58] sm:$0xff] %v261_v11  ;;  %v265_v13 = vld [vmem:[%s1370_s29 + $0x138] sm:$0xff]  ;;  %v267_v14 = vld [vmem:[%s1370_s29 + $0x150] sm:$0xff] }
  0x18   : > { %264 = vst [vmem:[%s175_s30 + $0x60] sm:$0xff] %v263_v12  ;;  %266 = vst [vmem:[%s175_s30 + $0x68] sm:$0xff] %v265_v13  ;;  %v269_v15 = vld [vmem:[%s1370_s29 + $0x168] sm:$0xff] }
  0x19   : > { %268 = vst [vmem:[%s175_s30 + $0x70] sm:$0xff] %v267_v14  ;;  %270 = vst [vmem:[%s175_s30 + $0x78] sm:$0xff] %v269_v15 }
  0x1a PF: > { %p976_p6 = scmp.ge.s32.totalorder %s1299_s19, 1  ;;  %p284_p7 = scmp.lt.s32.totalorder %s1299_s19, 4 }
  0x1c   : > { %p285_p8 = pnand %p976_p6, %p284_p7 }
  0x1d   : > { %s291_s5 = sand.u32 (!%p285_p8), 1, %s1283_s15   ;;  %s978_s6 = sshll.u32 (!%p285_p8), %s1291_s17, 5 }
  0x1e   : > { %288 = sbr.rel (%p285_p8) target bundleno = 341 (0x155), region = 70  ;;  %s977_s7 = sshll.u32 (!%p285_p8), %s291_s5, 7 }
  0x1f   : > { %p324_p9 = scmp.lt.s32.totalorder (!%p285_p8), %s978_s6, 95  ;;  %s1397_s12 = scalar_lea.vmem (!%p285_p8), [#allocation3], %s977_s7 }
  0x20   : > { %p980_p10 = scmp.ne.s32.totalorder (!%p285_p8), %s1291_s17, 0 }
  0x25   : > { %s1526_s6 = smov (!%p324_p9, %s978_s6), 95  ;;  %339 = sbr.rel (%p980_p10) target bundleno = 47 (0x2f), region = 78 }
  0x26   : > { %s979_s8 = sshll.u32 %s1526_s6, 2  ;;  %v1301_v16 = vmov (!%p980_p10), 0.0  }
  0x27   : > { %s1395_s11 = scalar_lea.vmem %s1515_s1, %s979_s8  ;;  %340 = vst [vmem:[#allocation2] sm:$0xff] (!%p980_p10), %v1301_v16  ;;  %341 = vst [vmem:[#allocation2 + $0x8] sm:$0xff] (!%p980_p10), %v1301_v16 }
  0x28   : > { %342 = vst [vmem:[#allocation2 + $0x10] sm:$0xff] (!%p980_p10), %v1301_v16  ;;  %343 = vst [vmem:[#allocation2 + $0x18] sm:$0xff] (!%p980_p10), %v1301_v16 }
  0x29   : > { %344 = vst [vmem:[#allocation2 + $0x20] sm:$0xff] (!%p980_p10), %v1301_v16  ;;  %345 = vst [vmem:[#allocation2 + $0x28] sm:$0xff] (!%p980_p10), %v1301_v16 }
  0x2a   : > { %346 = vst [vmem:[#allocation2 + $0x30] sm:$0xff] (!%p980_p10), %v1301_v16  ;;  %347 = vst [vmem:[#allocation2 + $0x38] sm:$0xff] (!%p980_p10), %v1301_v16 }
  0x2b   : > { %348 = vst [vmem:[#allocation2 + $0x40] sm:$0xff] (!%p980_p10), %v1301_v16  ;;  %349 = vst [vmem:[#allocation2 + $0x48] sm:$0xff] (!%p980_p10), %v1301_v16 }
  0x2c   : > { %350 = vst [vmem:[#allocation2 + $0x50] sm:$0xff] %v1301_v16  ;;  %351 = vst [vmem:[#allocation2 + $0x58] sm:$0xff] %v1301_v16 }
  0x2d   : > { %352 = vst [vmem:[#allocation2 + $0x60] sm:$0xff] %v1301_v16  ;;  %353 = vst [vmem:[#allocation2 + $0x68] sm:$0xff] %v1301_v16 }
  0x2e   : > { %354 = vst [vmem:[#allocation2 + $0x70] sm:$0xff] %v1301_v16  ;;  %355 = vst [vmem:[#allocation2 + $0x78] sm:$0xff] %v1301_v16 }
  0x2f PF: > { %v1221_v17 = vld [vmem:[%s1395_s11 + $0x40] sm:$0xff]   ;;  %v1223_v19 = vld [vmem:[%s1395_s11 + $0x48] sm:$0xff]   ;;  %v1225_v21 = vld [vmem:[%s1395_s11 + $0x50] sm:$0xff]   ;;  %p1013_p11 = scmp.ne.s32.totalorder %s1291_s17, 2 }
  0x30   : > { %v1222_v18 = vld [vmem:[%s1395_s11] sm:$0xff]   ;;  %1100 = vmatprep.subr.bf16.mxu0 %v1221_v17  ;;  %1164 = vmatprep.subr.bf16.mxu1 %v1221_v17  ;;  %v1224_v20 = vld [vmem:[%s1395_s11 + $0x8] sm:$0xff]   ;;  %v1226_v22 = vld [vmem:[%s1395_s11 + $0x10] sm:$0xff]  }
  0x31   : > { %1101 = vmatpush3.bf16.msra.mxu0 %v1222_v18  ;;  %1172 = vmatpush3.bf16.msra.mxu1 %v1222_v18  ;;  %v1227_v23 = vld [vmem:[%s1395_s11 + $0x58] sm:$0xff]   ;;  %v1229_v25 = vld [vmem:[%s1395_s11 + $0x60] sm:$0xff]   ;;  %v1231_v27 = vld [vmem:[%s1395_s11 + $0x68] sm:$0xff]  }
  0x32   : > { %1102 = vmatprep.subr.bf16.mxu0 %v1223_v19  ;;  %1165 = vmatprep.subr.bf16.mxu1 %v1223_v19  ;;  %v1228_v24 = vld [vmem:[%s1395_s11 + $0x18] sm:$0xff]   ;;  %v1230_v26 = vld [vmem:[%s1395_s11 + $0x20] sm:$0xff]   ;;  %v1232_v30 = vld [vmem:[%s1395_s11 + $0x28] sm:$0xff]  }
  0x33   : > { %v1239_v28 = vld [vmem:[%s1397_s12 + $0x4] ss:$8 sps:$4 sm:$0xff]   ;;  %v1233_v31 = vld [vmem:[%s1395_s11 + $0x70] sm:$0xff]   ;;  %v1235_v33 = vld [vmem:[%s1395_s11 + $0x78] sm:$0xff]  }
  0x34   : > { %v1242_v29 = vld [vmem:[%s1397_s12 + $0x44] ss:$8 sps:$4 sm:$0xff]   ;;  %628 = vmatprep.mubr.bf16.mxu0 %v1239_v28  ;;  %v1234_v32 = vld [vmem:[%s1395_s11 + $0x30] sm:$0xff]   ;;  %v1236_v34 = vld [vmem:[%s1395_s11 + $0x38] sm:$0xff]  }
  0x35   : > { %1103 = vmatpush3.bf16.msra.mxu0 %v1224_v20  ;;  %1173 = vmatpush3.bf16.msra.mxu1 %v1224_v20  ;;  %v1237_v35 = vld [vmem:[%s1397_s12] ss:$8 sps:$4 sm:$0xff]   ;;  %v1243_v37 = vld [vmem:[%s1397_s12 + $0x14] ss:$8 sps:$4 sm:$0xff]   ;;  %v1247_v39 = vld [vmem:[%s1397_s12 + $0x10] ss:$8 sps:$4 sm:$0xff]  }
  0x36   : > { %1104 = vmatprep.subr.bf16.mxu0 %v1225_v21  ;;  %1166 = vmatprep.subr.bf16.mxu1 %v1225_v21  ;;  %v1240_v36 = vld [vmem:[%s1397_s12 + $0x40] ss:$8 sps:$4 sm:$0xff]   ;;  %v1245_v38 = vld [vmem:[%s1397_s12 + $0x54] ss:$8 sps:$4 sm:$0xff]   ;;  %v1248_v40 = vld [vmem:[%s1397_s12 + $0x50] ss:$8 sps:$4 sm:$0xff]  }
  0x37   : > { %660 = vmatprep.mubr.bf16.mxu1 %v1242_v29  ;;  %v1249_v41 = vld [vmem:[%s1397_s12 + $0x24] ss:$8 sps:$4 sm:$0xff]   ;;  %v1253_v43 = vld [vmem:[%s1397_s12 + $0x20] ss:$8 sps:$4 sm:$0xff]   ;;  %v1255_v45 = vld [vmem:[%s1397_s12 + $0x34] ss:$8 sps:$4 sm:$0xff]  }
  0x38   : > { %v1251_v42 = vld [vmem:[%s1397_s12 + $0x64] ss:$8 sps:$4 sm:$0xff]   ;;  %v1254_v44 = vld [vmem:[%s1397_s12 + $0x60] ss:$8 sps:$4 sm:$0xff]   ;;  %v1257_v46 = vld [vmem:[%s1397_s12 + $0x74] ss:$8 sps:$4 sm:$0xff]  }
  0x39   : > { %1105 = vmatpush3.bf16.msra.mxu0 %v1226_v22  ;;  %1174 = vmatpush3.bf16.msra.mxu1 %v1226_v22  ;;  %v1259_v47 = vld [vmem:[%s1397_s12 + $0x30] ss:$8 sps:$4 sm:$0xff]   ;;  %v356_v51 = vld [vmem:[#allocation2] sm:$0xff]  ;;  %v357_v59 = vld [vmem:[#allocation2 + $0x8] sm:$0xff] }
  0x3a   : > { %1106 = vmatprep.subr.bf16.mxu0 %v1227_v23  ;;  %1167 = vmatprep.subr.bf16.mxu1 %v1227_v23  ;;  %v1260_v48 = vld [vmem:[%s1397_s12 + $0x70] ss:$8 sps:$4 sm:$0xff]   ;;  %v364_v53 = vld [vmem:[#allocation2 + $0x40] sm:$0xff]  ;;  %v365_v61 = vld [vmem:[#allocation2 + $0x48] sm:$0xff] }
  0x3b   : > { %v358_v7 = vld [vmem:[#allocation2 + $0x10] sm:$0xff]  ;;  %v359_v15 = vld [vmem:[#allocation2 + $0x18] sm:$0xff]  ;;  %v368_v29 = vld [vmem:[#allocation2 + $0x60] sm:$0xff] }
  0x3c   : > { %v366_v9 = vld [vmem:[#allocation2 + $0x50] sm:$0xff]  ;;  %v367_v17 = vld [vmem:[#allocation2 + $0x58] sm:$0xff] }
  0x3d   : > { %1107 = vmatpush3.bf16.msra.mxu0 %v1228_v24  ;;  %1175 = vmatpush3.bf16.msra.mxu1 %v1228_v24 }
  0x3e   : > { %1108 = vmatprep.subr.bf16.mxu0 %v1229_v25  ;;  %1168 = vmatprep.subr.bf16.mxu1 %v1229_v25 }
  0x41   : > { %1109 = vmatpush3.bf16.msra.mxu0 %v1230_v26  ;;  %1176 = vmatpush3.bf16.msra.mxu1 %v1230_v26 }
  0x42   : > { %1110 = vmatprep.subr.bf16.mxu0 %v1231_v27  ;;  %1169 = vmatprep.subr.bf16.mxu1 %v1231_v27  ;;  %v360_v27 = vld [vmem:[#allocation2 + $0x20] sm:$0xff] }
  0x45   : > { %1111 = vmatpush3.bf16.msra.mxu0 %v1232_v30  ;;  %1177 = vmatpush3.bf16.msra.mxu1 %v1232_v30 }
  0x46   : > { %1112 = vmatprep.subr.bf16.mxu0 %v1233_v31  ;;  %1170 = vmatprep.subr.bf16.mxu1 %v1233_v31 }
  0x49   : > { %1113 = vmatpush3.bf16.msra.mxu0 %v1234_v32  ;;  %1178 = vmatpush3.bf16.msra.mxu1 %v1234_v32 }
  0x4a   : > { %1114 = vmatprep.subr.bf16.mxu0 %v1235_v33  ;;  %1171 = vmatprep.subr.bf16.mxu1 %v1235_v33 }
  0x4d   : > { %1115 = vmatpush3.bf16.msra.mxu0 %v1236_v34  ;;  %1179 = vmatpush3.bf16.msra.mxu1 %v1236_v34 }
  0x50   : > { %629 = vmatmul.mubr.bf16.vlgmr.msra.gmra.mrb[0].mxu0 %v1237_v35  ;;  %661 = vmatmul.mubr.bf16.vlgmr.msra.gmra.mrb[0].mxu1 %v1240_v36  ;;  %v361_v35 = vld [vmem:[#allocation2 + $0x28] sm:$0xff] }
  0x51   : > { %636 = vmatprep.mubr.bf16.mxu0 %v1243_v37  ;;  %668 = vmatprep.mubr.bf16.mxu1 %v1245_v38  ;;  %v369_v37 = vld [vmem:[#allocation2 + $0x68] sm:$0xff] }
  0x58   : > { %637 = vmatmul.mubr.bf16.gmra.mrb[4].mxu0 %v1247_v39  ;;  %669 = vmatmul.mubr.bf16.gmra.mrb[4].mxu1 %v1248_v40 }
  0x59   : > { %644 = vmatprep.mubr.bf16.mxu0 %v1249_v41  ;;  %676 = vmatprep.mubr.bf16.mxu1 %v1251_v42 }
  0x60   : > { %645 = vmatmul.mubr.bf16.gmra.mrb[8].mxu0 %v1253_v43  ;;  %677 = vmatmul.mubr.bf16.gmra.mrb[8].mxu1 %v1254_v44 }
  0x61   : > { %652 = vmatprep.mubr.bf16.mxu0 %v1255_v45  ;;  %684 = vmatprep.mubr.bf16.mxu1 %v1257_v46 }
  0x68   : > { %653 = vmatmul.mubr.bf16.gmra.mrb[12].mxu0 %v1259_v47  ;;  %685 = vmatmul.mubr.bf16.gmra.mrb[12].mxu1 %v1260_v48  ;;  %v362_v47 = vld [vmem:[#allocation2 + $0x30] sm:$0xff] }
 0x123   : > { %v1116_v49 = vpop.f32.mrb[0].mxu0  ;;  %v1140_v50 = vpop.f32.mrb[0].mxu1 }
 0x124   : > { %v1117_v52 = vpop.f32.mrb[1].mxu0  ;;  %v1141_v54 = vpop.f32.mrb[1].mxu1 }
 0x125   : > { %v1118_v55 = vadd.f32 %v1117_v52, %v1116_v49  ;;  %v1142_v56 = vadd.f32 %v1141_v54, %v1140_v50  ;;  %v1119_v57 = vpop.f32.mrb[2].mxu0  ;;  %v1143_v58 = vpop.f32.mrb[2].mxu1  ;;  %v370_v49 = vld [vmem:[#allocation2 + $0x70] sm:$0xff] }
 0x126   : > { %v1120_v60 = vpop.f32.mrb[3].mxu0  ;;  %v1144_v62 = vpop.f32.mrb[3].mxu1 }
 0x127   : > { %v693_v63 = vadd.f32 %v1118_v55, %v356_v51  ;;  %v701_v0 = vadd.f32 %v1142_v56, %v364_v53  ;;  %v1121_v1 = vadd.f32 %v1120_v60, %v1119_v57  ;;  %v1145_v2 = vadd.f32 %v1144_v62, %v1143_v58  ;;  %v363_v55 = vld [vmem:[#allocation2 + $0x38] sm:$0xff] }
 0x128   : > { %v371_v57 = vld [vmem:[#allocation2 + $0x78] sm:$0xff] }
 0x129   : > { %709 = vst [vmem:[#allocation2] sm:$0xff] %v693_v63  ;;  %717 = vst [vmem:[#allocation2 + $0x40] sm:$0xff] %v701_v0  ;;  %v694_v3 = vadd.f32 %v1121_v1, %v357_v59  ;;  %v702_v4 = vadd.f32 %v1145_v2, %v365_v61 }
 0x12b   : > { %710 = vst [vmem:[#allocation2 + $0x8] sm:$0xff] %v694_v3  ;;  %718 = vst [vmem:[#allocation2 + $0x48] sm:$0xff] %v702_v4  ;;  %v1122_v5 = vpop.f32.mrb[4].mxu0  ;;  %v1146_v6 = vpop.f32.mrb[4].mxu1  ;;  %v1436_v3 = vld [vmem:[%s1516_s2] ss:$0 sm:$0xff] (!%p1013_p11) }
 0x12c   : > { %v1123_v8 = vpop.f32.mrb[5].mxu0  ;;  %v1147_v10 = vpop.f32.mrb[5].mxu1 }
 0x12d   : > { %v1124_v11 = vadd.f32 %v1123_v8, %v1122_v5  ;;  %v1148_v12 = vadd.f32 %v1147_v10, %v1146_v6  ;;  %v1125_v13 = vpop.f32.mrb[6].mxu0  ;;  %v1149_v14 = vpop.f32.mrb[6].mxu1  ;;  %v1443_v6 = vld [vmem:[%s1517_s3] ss:$0 sm:$0xff] (!%p1013_p11) }
 0x12e   : > { %v1126_v16 = vpop.f32.mrb[7].mxu0  ;;  %v1150_v18 = vpop.f32.mrb[7].mxu1 }
 0x12f   : > { %v695_v19 = vadd.f32 %v1124_v11, %v358_v7  ;;  %v703_v20 = vadd.f32 %v1148_v12, %v366_v9  ;;  %v1127_v21 = vadd.f32 %v1126_v16, %v1125_v13  ;;  %v1151_v22 = vadd.f32 %v1150_v18, %v1149_v14 }
 0x130   : > { %v729_v1 = vld [vmem:[#allocation2] sm:$0xff] (!%p1013_p11) }
 0x131   : > { %711 = vst [vmem:[#allocation2 + $0x10] sm:$0xff] %v695_v19  ;;  %719 = vst [vmem:[#allocation2 + $0x50] sm:$0xff] %v703_v20  ;;  %v696_v23 = vadd.f32 %v1127_v21, %v359_v15  ;;  %v704_v24 = vadd.f32 %v1151_v22, %v367_v17  ;;  %v752_v4 = vmul.f32 (!%p1013_p11), %v1436_v3, %v729_v1 }
 0x132   : > { %v730_v2 = vld [vmem:[#allocation2 + $0x8] sm:$0xff] (!%p1013_p11) }
 0x133   : > { %712 = vst [vmem:[#allocation2 + $0x18] sm:$0xff] %v696_v23  ;;  %720 = vst [vmem:[#allocation2 + $0x58] sm:$0xff] %v704_v24  ;;  %v1128_v25 = vpop.f32.mrb[8].mxu0  ;;  %v1152_v26 = vpop.f32.mrb[8].mxu1  ;;  %v753_v5 = vmul.f32 (!%p1013_p11), %v1436_v3, %v730_v2  ;;  %v775_v14 = vadd.f32 (!%p1013_p11), %v1443_v6, %v752_v4  ;;  %v737_v23 = vld [vmem:[#allocation2 + $0x40] sm:$0xff] (!%p1013_p11) }
 0x134   : > { %v1129_v28 = vpop.f32.mrb[9].mxu0  ;;  %v1153_v30 = vpop.f32.mrb[9].mxu1 }
 0x135   : > { %v1130_v31 = vadd.f32 %v1129_v28, %v1128_v25  ;;  %v1154_v32 = vadd.f32 %v1153_v30, %v1152_v26  ;;  %v1131_v33 = vpop.f32.mrb[10].mxu0  ;;  %v1155_v34 = vpop.f32.mrb[10].mxu1  ;;  %v776_v15 = vadd.f32 (!%p1013_p11), %v1443_v6, %v753_v5  ;;  %v791_v24 = vmax.f32 (!%p1013_p11), %v775_v14, 0.0  ;;  %v738_v28 = vld [vmem:[#allocation2 + $0x48] sm:$0xff] (!%p1013_p11) }
 0x136   : > { %v1132_v36 = vpop.f32.mrb[11].mxu0  ;;  %v1156_v38 = vpop.f32.mrb[11].mxu1 }
 0x137   : > { %v697_v39 = vadd.f32 %v1130_v31, %v360_v27  ;;  %v705_v40 = vadd.f32 %v1154_v32, %v368_v29  ;;  %v1133_v41 = vadd.f32 %v1132_v36, %v1131_v33  ;;  %v1157_v42 = vadd.f32 %v1156_v38, %v1155_v34 }
 0x138   : > { %v731_v7 = vld [vmem:[#allocation2 + $0x10] sm:$0xff] (!%p1013_p11)  ;;  %v792_v25 = vmax.f32 (!%p1013_p11), %v776_v15, 0.0  ;;  %v760_v38 = vmul.f32 (!%p1013_p11), %v1436_v3, %v737_v23 }
 0x139   : > { %713 = vst [vmem:[#allocation2 + $0x20] sm:$0xff] %v697_v39  ;;  %721 = vst [vmem:[#allocation2 + $0x60] sm:$0xff] %v705_v40  ;;  %v698_v43 = vadd.f32 %v1133_v41, %v361_v35  ;;  %v706_v44 = vadd.f32 %v1157_v42, %v369_v37  ;;  %v754_v9 = vmul.f32 (!%p1013_p11), %v1436_v3, %v731_v7  ;;  %v739_v33 = vld [vmem:[#allocation2 + $0x50] sm:$0xff] (!%p1013_p11) }
 0x13a   : > { %v732_v8 = vld [vmem:[#allocation2 + $0x18] sm:$0xff] (!%p1013_p11)  ;;  %v1056_v35 = vpack.c.bf16 (!%p1013_p11), %v792_v25, %v791_v24 }
 0x13b   : > { %714 = vst [vmem:[#allocation2 + $0x28] sm:$0xff] %v698_v43  ;;  %722 = vst [vmem:[#allocation2 + $0x68] sm:$0xff] %v706_v44  ;;  %v1134_v45 = vpop.f32.mrb[12].mxu0  ;;  %v1158_v46 = vpop.f32.mrb[12].mxu1  ;;  %v755_v10 = vmul.f32 (!%p1013_p11), %v1436_v3, %v732_v8  ;;  %v777_v19 = vadd.f32 (!%p1013_p11), %v1443_v6, %v754_v9  ;;  %v740_v34 = vld [vmem:[#allocation2 + $0x58] sm:$0xff] (!%p1013_p11)  ;;  %v761_v44 = vmul.f32 (!%p1013_p11), %v1436_v3, %v738_v28 }
 0x13c   : > { %v1135_v48 = vpop.f32.mrb[13].mxu0  ;;  %v1159_v50 = vpop.f32.mrb[13].mxu1  ;;  %1057 = vst [vmem:[%s1518_s4] sm:$0xff] (!%p1013_p11), %v1056_v35  }
 0x13d   : > { %v1136_v51 = vadd.f32 %v1135_v48, %v1134_v45  ;;  %v1160_v52 = vadd.f32 %v1159_v50, %v1158_v46  ;;  %v1137_v53 = vpop.f32.mrb[14].mxu0  ;;  %v1161_v54 = vpop.f32.mrb[14].mxu1  ;;  %728 = sbr.rel (%p1013_p11) target bundleno = 341 (0x155), region = 82  ;;  %v778_v20 = vadd.f32 (!%p1013_p11), %v1443_v6, %v755_v10  ;;  %v793_v29 = vmax.f32 (!%p1013_p11), %v777_v19, 0.0 }
 0x13e   : > { %v1138_v56 = vpop.f32.mrb[15].mxu0  ;;  %v1162_v58 = vpop.f32.mrb[15].mxu1  ;;  %v762_v48 = vmul.f32 (!%p1013_p11), %v1436_v3, %v739_v33 }
 0x13f   : > { %v699_v59 = vadd.f32 %v1136_v51, %v362_v47  ;;  %v707_v60 = vadd.f32 %v1160_v52, %v370_v49  ;;  %v1139_v61 = vadd.f32 %v1138_v56, %v1137_v53  ;;  %v1163_v62 = vadd.f32 %v1162_v58, %v1161_v54 }
 0x140   : > { %v733_v11 = vld [vmem:[#allocation2 + $0x20] sm:$0xff] (!%p1013_p11)  ;;  %v794_v30 = vmax.f32 (!%p1013_p11), %v778_v20, 0.0  ;;  %v783_v47 = vadd.f32 (!%p1013_p11), %v1443_v6, %v760_v38  ;;  %v763_v49 = vmul.f32 (!%p1013_p11), %v1436_v3, %v740_v34  ;;  %v784_v52 = vadd.f32 (!%p1013_p11), %v1443_v6, %v761_v44 }
 0x141   : > { %715 = vst [vmem:[#allocation2 + $0x30] sm:$0xff] %v699_v59  ;;  %723 = vst [vmem:[#allocation2 + $0x70] sm:$0xff] %v707_v60  ;;  %v700_v63 = vadd.f32 %v1139_v61, %v363_v55  ;;  %v708_v0 = vadd.f32 %v1163_v62, %v371_v57  ;;  %v756_v16 = vmul.f32 (!%p1013_p11), %v1436_v3, %v733_v11  ;;  %v741_v39 = vld [vmem:[#allocation2 + $0x60] sm:$0xff] (!%p1013_p11) }
 0x142   : > { %v734_v12 = vld [vmem:[#allocation2 + $0x28] sm:$0xff] (!%p1013_p11)  ;;  %v1061_v41 = vpack.c.bf16 (!%p1013_p11), %v794_v30, %v793_v29  ;;  %v764_v53 = vmul.f32 (!%p1013_p11), %v1436_v3, %v741_v39  ;;  %v799_v55 = vmax.f32 (!%p1013_p11), %v783_v47, 0.0  ;;  %v785_v56 = vadd.f32 (!%p1013_p11), %v1443_v6, %v762_v48 }
 0x143   : > { %716 = vst [vmem:[#allocation2 + $0x38] sm:$0xff] %v700_v63  ;;  %724 = vst [vmem:[#allocation2 + $0x78] sm:$0xff] %v708_v0  ;;  %v757_v17 = vmul.f32 (!%p1013_p11), %v1436_v3, %v734_v12  ;;  %v779_v26 = vadd.f32 (!%p1013_p11), %v1443_v6, %v756_v16  ;;  %v742_v40 = vld [vmem:[#allocation2 + $0x68] sm:$0xff] (!%p1013_p11)  ;;  %v786_v57 = vadd.f32 (!%p1013_p11), %v1443_v6, %v763_v49  ;;  %v800_v59 = vmax.f32 (!%p1013_p11), %v784_v52, 0.0 }
 0x144   : > { %1093 = vst [vmem:[%s1518_s4 + $0x8] sm:$0xff] %v1061_v41   ;;  %v765_v54 = vmul.f32 %v1436_v3, %v742_v40  ;;  %v787_v60 = vadd.f32 %v1443_v6, %v764_v53  ;;  %v801_v63 = vmax.f32 %v785_v56, 0.0 }
 0x145   : > { %v780_v27 = vadd.f32 %v1443_v6, %v757_v17  ;;  %v795_v36 = vmax.f32 %v779_v26, 0.0  ;;  %v802_v0 = vmax.f32 %v786_v57, 0.0  ;;  %v1076_v2 = vpack.c.bf16 %v800_v59, %v799_v55 }
 0x146   : > { %v788_v61 = vadd.f32 %v1443_v6, %v765_v54  ;;  %v803_v4 = vmax.f32 %v787_v60, 0.0 }
 0x147   : > { %v796_v37 = vmax.f32 %v780_v27, 0.0  ;;  %v1081_v8 = vpack.c.bf16 %v802_v0, %v801_v63  ;;  %1096 = vst [vmem:[%s1518_s4 + $0x20] sm:$0xff] %v1076_v2  }
 0x148   : > { %v735_v13 = vld [vmem:[#allocation2 + $0x30] sm:$0xff]  ;;  %v804_v5 = vmax.f32 %v788_v61, 0.0 }
 0x149   : > { %v758_v21 = vmul.f32 %v1436_v3, %v735_v13  ;;  %v743_v45 = vld [vmem:[#allocation2 + $0x70] sm:$0xff]  ;;  %v1066_v46 = vpack.c.bf16 %v796_v37, %v795_v36  ;;  %1097 = vst [vmem:[%s1518_s4 + $0x28] sm:$0xff] %v1081_v8  }
 0x14a   : > { %v736_v18 = vld [vmem:[#allocation2 + $0x38] sm:$0xff]  ;;  %v766_v58 = vmul.f32 %v1436_v3, %v743_v45  ;;  %v1086_v10 = vpack.c.bf16 %v804_v5, %v803_v4 }
 0x14b   : > { %v759_v22 = vmul.f32 %v1436_v3, %v736_v18  ;;  %v781_v31 = vadd.f32 %v1443_v6, %v758_v21  ;;  %v744_v50 = vld [vmem:[#allocation2 + $0x78] sm:$0xff]  ;;  %1094 = vst [vmem:[%s1518_s4 + $0x10] sm:$0xff] %v1066_v46  }
 0x14c   : > { %v767_v62 = vmul.f32 %v1436_v3, %v744_v50  ;;  %v789_v1 = vadd.f32 %v1443_v6, %v766_v58  ;;  %1098 = vst [vmem:[%s1518_s4 + $0x30] sm:$0xff] %v1086_v10  }
 0x14d   : > { %v782_v32 = vadd.f32 %v1443_v6, %v759_v22  ;;  %v797_v42 = vmax.f32 %v781_v31, 0.0 }
 0x14e   : > { %v790_v7 = vadd.f32 %v1443_v6, %v767_v62  ;;  %v805_v9 = vmax.f32 %v789_v1, 0.0 }
 0x14f   : > { %v798_v43 = vmax.f32 %v782_v32, 0.0 }
 0x150   : > { %v806_v11 = vmax.f32 %v790_v7, 0.0 }
 0x151   : > { %v1071_v51 = vpack.c.bf16 %v798_v43, %v797_v42 }
 0x152   : > { %v1091_v3 = vpack.c.bf16 %v806_v11, %v805_v9 }
 0x153   : > { %1095 = vst [vmem:[%s1518_s4 + $0x18] sm:$0xff] %v1071_v51  }
 0x154   : > { %1099 = vst [vmem:[%s1518_s4 + $0x38] sm:$0xff] %v1091_v3  }
 0x155 PF: > { %s14_s19 = sadd.s32 1, %s1299_s19   ;;  %s1519_s15 = smov %s1287_s16 }
 0x156   : > { %p11_p12 = scmp.ge.s32.totalorder %s14_s19, 5   ;;  %s1520_s16 = smov %s1362_s23 }
 0x157   : > { %s1521_s17 = smov %s1295_s18  ;;  %s1522_s18 = smov %s1524_s20 }
 0x158   :  { %13 = sbr.rel (!%p11_p12) target bundleno = 3 (0x3), region = 120 }

// kernel: resnet18_binary_forward.25
= control target key start
LH: loop header
LB: loop body
LE: loop exit
PB: predicated region body
PF: predicated region fallthrough
CT: control target
= control target key end

     0   :  { %s1484_s18 = smov 0   ;;  %s1486_s19 = smov 0   ;;  %s1695_s0 = inlined_call_operand.vmem [shape: bf16[128,768], index: 0, kind: input, shape index: {}]   ;;  %s1696_s1 = inlined_call_operand.vmem [shape: bf16[768,128], index: 1, kind: input, shape index: {}]   ;;  %s1697_s2 = inlined_call_operand.vmem [shape: f32[1,128], index: 2, kind: input, shape index: {}]   ;;  %s1698_s3 = inlined_call_operand.vmem [shape: f32[1,128], index: 3, kind: input, shape index: {}]   ;;  %s1699_s4 = inlined_call_operand.vmem [shape: bf16[128,128], index: 4, kind: input, shape index: {}]   ;;  %s1700_s5 = inlined_call_operand.vmem [shape: bf16[128,128], index: 5, kind: output, shape index: {}]  }
   0x1   :  { %s1488_s20 = smov 0   ;;  %s1490_s21 = smov 0  }
   0x2   :  { %s1492_s22 = smov 0  }
   0x3 LB: > { %s24_s23 = sadd.s32 1, %s1447_s21  ;;  %p43_p1 = scmp.ne.s32.totalorder %s1439_s19, %s1435_s18  ;;  %s1451_s22 = sphi %s1492_s22, %s15_s22   ;;  %s1447_s21 = sphi %s1490_s21, %s1704_s21   ;;  %s1443_s20 = sphi %s1488_s20, %s1703_s20   ;;  %s1439_s19 = sphi %s1486_s19, %s1702_s19   ;;  %s1435_s18 = sphi %s1484_s18, %s1701_s18  }
   0x4   : > { %p25_p0 = scmp.ge.s32.totalorder %s24_s23, 3  ;;  %p44_p2 = scmp.eq.s32.totalorder %s1451_s22, 0 }
   0x5   : > { %s36_s25 = sadd.s32 1, %s1439_s19  ;;  %p1085_p5 = scmp.ge.s32.totalorder %s1451_s22, 3 }
   0x6   : > { %s1706_s23 = smov (%p25_p0, %s24_s23), 0  ;;  %p45_p3 = por %p44_p2, %p43_p1 }
   0x7   : > { %s32_s24 = ssub.s32 %s1447_s21, %s1706_s23  ;;  %204 = sbr.rel (%p1085_p5) target bundleno = 26 (0x1a), region = 28 }
   0x8   : > { %p34_p4 = scmp.eq.s32.totalorder %s32_s24, 0 }
   0xa   : > { %s1519_s26 = scalar_select %p34_p4, %s1439_s19, %s36_s25  }
   0xe   : > { %207 = sbr.rel (!%p45_p3) target bundleno = 26 (0x1a), region = 32  ;;  %s209_s27 = sand.u32 (%p45_p3), 1, %s1439_s19  }
   0xf   : > { %s1149_s28 = sshll.u32 (%p45_p3), %s1447_s21, 3  ;;  %s1086_s29 = sshll.u32 (%p45_p3), %s209_s27, 7 }
  0x10   : > { %s1527_s7 = scalar_lea.vmem (%p45_p3), %s1695_s0, %s1149_s28  ;;  %s211_s8 = scalar_lea.vmem (%p45_p3), [#allocation3], %s1086_s29 }
  0x11   : > { %v275_v0 = vld [vmem:[%s1527_s7] sm:$0xff] (%p45_p3)  ;;  %v277_v1 = vld [vmem:[%s1527_s7 + $0x18] sm:$0xff] (%p45_p3)  ;;  %v279_v2 = vld [vmem:[%s1527_s7 + $0x30] sm:$0xff] (%p45_p3) }
  0x12   : > { %276 = vst [vmem:[%s211_s8] sm:$0xff] (%p45_p3), %v275_v0  ;;  %278 = vst [vmem:[%s211_s8 + $0x8] sm:$0xff] (%p45_p3), %v277_v1  ;;  %v281_v3 = vld [vmem:[%s1527_s7 + $0x48] sm:$0xff] (%p45_p3)  ;;  %v283_v4 = vld [vmem:[%s1527_s7 + $0x60] sm:$0xff] (%p45_p3) }
  0x13   : > { %280 = vst [vmem:[%s211_s8 + $0x10] sm:$0xff] (%p45_p3), %v279_v2  ;;  %v285_v5 = vld [vmem:[%s1527_s7 + $0x78] sm:$0xff] (%p45_p3)  ;;  %282 = vst [vmem:[%s211_s8 + $0x18] sm:$0xff] (%p45_p3), %v281_v3  ;;  %v287_v6 = vld [vmem:[%s1527_s7 + $0x90] sm:$0xff] (%p45_p3) }
  0x14   : > { %284 = vst [vmem:[%s211_s8 + $0x20] sm:$0xff] (%p45_p3), %v283_v4  ;;  %286 = vst [vmem:[%s211_s8 + $0x28] sm:$0xff] (%p45_p3), %v285_v5  ;;  %v289_v7 = vld [vmem:[%s1527_s7 + $0xa8] sm:$0xff] (%p45_p3)  ;;  %v291_v8 = vld [vmem:[%s1527_s7 + $0xc0] sm:$0xff] (%p45_p3) }
  0x15   : > { %288 = vst [vmem:[%s211_s8 + $0x30] sm:$0xff] %v287_v6  ;;  %290 = vst [vmem:[%s211_s8 + $0x38] sm:$0xff] %v289_v7  ;;  %v293_v9 = vld [vmem:[%s1527_s7 + $0xd8] sm:$0xff]  ;;  %v295_v10 = vld [vmem:[%s1527_s7 + $0xf0] sm:$0xff] }
  0x16   : > { %292 = vst [vmem:[%s211_s8 + $0x40] sm:$0xff] %v291_v8  ;;  %v297_v11 = vld [vmem:[%s1527_s7 + $0x108] sm:$0xff]  ;;  %294 = vst [vmem:[%s211_s8 + $0x48] sm:$0xff] %v293_v9  ;;  %v299_v12 = vld [vmem:[%s1527_s7 + $0x120] sm:$0xff] }
  0x17   : > { %296 = vst [vmem:[%s211_s8 + $0x50] sm:$0xff] %v295_v10  ;;  %298 = vst [vmem:[%s211_s8 + $0x58] sm:$0xff] %v297_v11  ;;  %v301_v13 = vld [vmem:[%s1527_s7 + $0x138] sm:$0xff]  ;;  %v303_v14 = vld [vmem:[%s1527_s7 + $0x150] sm:$0xff] }
  0x18   : > { %300 = vst [vmem:[%s211_s8 + $0x60] sm:$0xff] %v299_v12  ;;  %302 = vst [vmem:[%s211_s8 + $0x68] sm:$0xff] %v301_v13  ;;  %v305_v15 = vld [vmem:[%s1527_s7 + $0x168] sm:$0xff] }
  0x19   : > { %304 = vst [vmem:[%s211_s8 + $0x70] sm:$0xff] %v303_v14  ;;  %306 = vst [vmem:[%s211_s8 + $0x78] sm:$0xff] %v305_v15 }
  0x1a PF: > { %p1089_p6 = scmp.ge.s32.totalorder %s1451_s22, 1  ;;  %p320_p7 = scmp.lt.s32.totalorder %s1451_s22, 4 }
  0x1c   : > { %p321_p8 = pnand %p1089_p6, %p320_p7 }
  0x1d   : > { %s327_s9 = sand.u32 (!%p321_p8), 1, %s1435_s18   ;;  %s1091_s10 = sshll.u32 (!%p321_p8), %s1443_s20, 5 }
  0x1e   : > { %324 = sbr.rel (%p321_p8) target bundleno = 343 (0x157), region = 74  ;;  %s1090_s11 = sshll.u32 (!%p321_p8), %s327_s9, 7 }
  0x1f   : > { %p367_p9 = scmp.lt.s32.totalorder (!%p321_p8), %s1091_s10, 95  ;;  %s1554_s16 = scalar_lea.vmem (!%p321_p8), [#allocation3], %s1090_s11 }
  0x20   : > { %p1093_p10 = scmp.ne.s32.totalorder (!%p321_p8), %s1443_s20, 0 }
  0x25   : > { %s1708_s10 = smov (!%p367_p9, %s1091_s10), 95  ;;  %388 = sbr.rel (%p1093_p10) target bundleno = 47 (0x2f), region = 82 }
  0x26   : > { %s1092_s12 = sshll.u32 %s1708_s10, 2  ;;  %v1453_v16 = vmov (!%p1093_p10), 0.0  }
  0x27   : > { %s1552_s15 = scalar_lea.vmem %s1696_s1, %s1092_s12  ;;  %389 = vst [vmem:[#allocation2] sm:$0xff] (!%p1093_p10), %v1453_v16  ;;  %390 = vst [vmem:[#allocation2 + $0x8] sm:$0xff] (!%p1093_p10), %v1453_v16 }
  0x28   : > { %391 = vst [vmem:[#allocation2 + $0x10] sm:$0xff] (!%p1093_p10), %v1453_v16  ;;  %392 = vst [vmem:[#allocation2 + $0x18] sm:$0xff] (!%p1093_p10), %v1453_v16 }
  0x29   : > { %393 = vst [vmem:[#allocation2 + $0x20] sm:$0xff] (!%p1093_p10), %v1453_v16  ;;  %394 = vst [vmem:[#allocation2 + $0x28] sm:$0xff] (!%p1093_p10), %v1453_v16 }
  0x2a   : > { %395 = vst [vmem:[#allocation2 + $0x30] sm:$0xff] (!%p1093_p10), %v1453_v16  ;;  %396 = vst [vmem:[#allocation2 + $0x38] sm:$0xff] (!%p1093_p10), %v1453_v16 }
  0x2b   : > { %397 = vst [vmem:[#allocation2 + $0x40] sm:$0xff] (!%p1093_p10), %v1453_v16  ;;  %398 = vst [vmem:[#allocation2 + $0x48] sm:$0xff] (!%p1093_p10), %v1453_v16 }
  0x2c   : > { %399 = vst [vmem:[#allocation2 + $0x50] sm:$0xff] %v1453_v16  ;;  %400 = vst [vmem:[#allocation2 + $0x58] sm:$0xff] %v1453_v16 }
  0x2d   : > { %401 = vst [vmem:[#allocation2 + $0x60] sm:$0xff] %v1453_v16  ;;  %402 = vst [vmem:[#allocation2 + $0x68] sm:$0xff] %v1453_v16 }
  0x2e   : > { %403 = vst [vmem:[#allocation2 + $0x70] sm:$0xff] %v1453_v16  ;;  %404 = vst [vmem:[#allocation2 + $0x78] sm:$0xff] %v1453_v16 }
  0x2f PF: > { %v1373_v17 = vld [vmem:[%s1552_s15 + $0x40] sm:$0xff]   ;;  %v1375_v19 = vld [vmem:[%s1552_s15 + $0x48] sm:$0xff]   ;;  %v1377_v21 = vld [vmem:[%s1552_s15 + $0x50] sm:$0xff]   ;;  %p1126_p11 = scmp.ne.s32.totalorder %s1443_s20, 2 }
  0x30   : > { %v1374_v18 = vld [vmem:[%s1552_s15] sm:$0xff]   ;;  %1252 = vmatprep.subr.bf16.mxu0 %v1373_v17  ;;  %1316 = vmatprep.subr.bf16.mxu1 %v1373_v17  ;;  %v1376_v20 = vld [vmem:[%s1552_s15 + $0x8] sm:$0xff]   ;;  %v1378_v22 = vld [vmem:[%s1552_s15 + $0x10] sm:$0xff]  }
  0x31   : > { %1253 = vmatpush3.bf16.msra.mxu0 %v1374_v18  ;;  %1324 = vmatpush3.bf16.msra.mxu1 %v1374_v18  ;;  %v1379_v23 = vld [vmem:[%s1552_s15 + $0x58] sm:$0xff]   ;;  %v1381_v25 = vld [vmem:[%s1552_s15 + $0x60] sm:$0xff]   ;;  %v1383_v27 = vld [vmem:[%s1552_s15 + $0x68] sm:$0xff]  }
  0x32   : > { %1254 = vmatprep.subr.bf16.mxu0 %v1375_v19  ;;  %1317 = vmatprep.subr.bf16.mxu1 %v1375_v19  ;;  %v1380_v24 = vld [vmem:[%s1552_s15 + $0x18] sm:$0xff]   ;;  %v1382_v26 = vld [vmem:[%s1552_s15 + $0x20] sm:$0xff]   ;;  %v1384_v30 = vld [vmem:[%s1552_s15 + $0x28] sm:$0xff]  }
  0x33   : > { %v1391_v28 = vld [vmem:[%s1554_s16 + $0x4] ss:$8 sps:$4 sm:$0xff]   ;;  %v1385_v31 = vld [vmem:[%s1552_s15 + $0x70] sm:$0xff]   ;;  %v1387_v33 = vld [vmem:[%s1552_s15 + $0x78] sm:$0xff]  }
  0x34   : > { %v1394_v29 = vld [vmem:[%s1554_s16 + $0x44] ss:$8 sps:$4 sm:$0xff]   ;;  %677 = vmatprep.mubr.bf16.mxu0 %v1391_v28  ;;  %v1386_v32 = vld [vmem:[%s1552_s15 + $0x30] sm:$0xff]   ;;  %v1388_v34 = vld [vmem:[%s1552_s15 + $0x38] sm:$0xff]  }
  0x35   : > { %1255 = vmatpush3.bf16.msra.mxu0 %v1376_v20  ;;  %1325 = vmatpush3.bf16.msra.mxu1 %v1376_v20  ;;  %v1389_v35 = vld [vmem:[%s1554_s16] ss:$8 sps:$4 sm:$0xff]   ;;  %v1395_v37 = vld [vmem:[%s1554_s16 + $0x14] ss:$8 sps:$4 sm:$0xff]   ;;  %v1399_v39 = vld [vmem:[%s1554_s16 + $0x10] ss:$8 sps:$4 sm:$0xff]  }
  0x36   : > { %1256 = vmatprep.subr.bf16.mxu0 %v1377_v21  ;;  %1318 = vmatprep.subr.bf16.mxu1 %v1377_v21  ;;  %v1392_v36 = vld [vmem:[%s1554_s16 + $0x40] ss:$8 sps:$4 sm:$0xff]   ;;  %v1397_v38 = vld [vmem:[%s1554_s16 + $0x54] ss:$8 sps:$4 sm:$0xff]   ;;  %v1400_v40 = vld [vmem:[%s1554_s16 + $0x50] ss:$8 sps:$4 sm:$0xff]  }
  0x37   : > { %709 = vmatprep.mubr.bf16.mxu1 %v1394_v29  ;;  %v1401_v41 = vld [vmem:[%s1554_s16 + $0x24] ss:$8 sps:$4 sm:$0xff]   ;;  %v1405_v43 = vld [vmem:[%s1554_s16 + $0x20] ss:$8 sps:$4 sm:$0xff]   ;;  %v1407_v45 = vld [vmem:[%s1554_s16 + $0x34] ss:$8 sps:$4 sm:$0xff]  }
  0x38   : > { %v1403_v42 = vld [vmem:[%s1554_s16 + $0x64] ss:$8 sps:$4 sm:$0xff]   ;;  %v1406_v44 = vld [vmem:[%s1554_s16 + $0x60] ss:$8 sps:$4 sm:$0xff]   ;;  %v1409_v46 = vld [vmem:[%s1554_s16 + $0x74] ss:$8 sps:$4 sm:$0xff]  }
  0x39   : > { %1257 = vmatpush3.bf16.msra.mxu0 %v1378_v22  ;;  %1326 = vmatpush3.bf16.msra.mxu1 %v1378_v22  ;;  %v1411_v47 = vld [vmem:[%s1554_s16 + $0x30] ss:$8 sps:$4 sm:$0xff]   ;;  %v405_v51 = vld [vmem:[#allocation2] sm:$0xff]  ;;  %v406_v59 = vld [vmem:[#allocation2 + $0x8] sm:$0xff] }
  0x3a   : > { %1258 = vmatprep.subr.bf16.mxu0 %v1379_v23  ;;  %1319 = vmatprep.subr.bf16.mxu1 %v1379_v23  ;;  %v1412_v48 = vld [vmem:[%s1554_s16 + $0x70] ss:$8 sps:$4 sm:$0xff]   ;;  %v413_v53 = vld [vmem:[#allocation2 + $0x40] sm:$0xff]  ;;  %v414_v61 = vld [vmem:[#allocation2 + $0x48] sm:$0xff] }
  0x3b   : > { %v407_v7 = vld [vmem:[#allocation2 + $0x10] sm:$0xff]  ;;  %v408_v15 = vld [vmem:[#allocation2 + $0x18] sm:$0xff]  ;;  %v417_v29 = vld [vmem:[#allocation2 + $0x60] sm:$0xff] }
  0x3c   : > { %v415_v9 = vld [vmem:[#allocation2 + $0x50] sm:$0xff]  ;;  %v416_v17 = vld [vmem:[#allocation2 + $0x58] sm:$0xff] }
  0x3d   : > { %1259 = vmatpush3.bf16.msra.mxu0 %v1380_v24  ;;  %1327 = vmatpush3.bf16.msra.mxu1 %v1380_v24 }
  0x3e   : > { %1260 = vmatprep.subr.bf16.mxu0 %v1381_v25  ;;  %1320 = vmatprep.subr.bf16.mxu1 %v1381_v25 }
  0x41   : > { %1261 = vmatpush3.bf16.msra.mxu0 %v1382_v26  ;;  %1328 = vmatpush3.bf16.msra.mxu1 %v1382_v26 }
  0x42   : > { %1262 = vmatprep.subr.bf16.mxu0 %v1383_v27  ;;  %1321 = vmatprep.subr.bf16.mxu1 %v1383_v27  ;;  %v409_v27 = vld [vmem:[#allocation2 + $0x20] sm:$0xff] }
  0x45   : > { %1263 = vmatpush3.bf16.msra.mxu0 %v1384_v30  ;;  %1329 = vmatpush3.bf16.msra.mxu1 %v1384_v30 }
  0x46   : > { %1264 = vmatprep.subr.bf16.mxu0 %v1385_v31  ;;  %1322 = vmatprep.subr.bf16.mxu1 %v1385_v31 }
  0x49   : > { %1265 = vmatpush3.bf16.msra.mxu0 %v1386_v32  ;;  %1330 = vmatpush3.bf16.msra.mxu1 %v1386_v32 }
  0x4a   : > { %1266 = vmatprep.subr.bf16.mxu0 %v1387_v33  ;;  %1323 = vmatprep.subr.bf16.mxu1 %v1387_v33 }
  0x4d   : > { %1267 = vmatpush3.bf16.msra.mxu0 %v1388_v34  ;;  %1331 = vmatpush3.bf16.msra.mxu1 %v1388_v34 }
  0x50   : > { %678 = vmatmul.mubr.bf16.vlgmr.msra.gmra.mrb[0].mxu0 %v1389_v35  ;;  %710 = vmatmul.mubr.bf16.vlgmr.msra.gmra.mrb[0].mxu1 %v1392_v36  ;;  %v410_v35 = vld [vmem:[#allocation2 + $0x28] sm:$0xff] }
  0x51   : > { %685 = vmatprep.mubr.bf16.mxu0 %v1395_v37  ;;  %717 = vmatprep.mubr.bf16.mxu1 %v1397_v38  ;;  %v418_v37 = vld [vmem:[#allocation2 + $0x68] sm:$0xff] }
  0x58   : > { %686 = vmatmul.mubr.bf16.gmra.mrb[4].mxu0 %v1399_v39  ;;  %718 = vmatmul.mubr.bf16.gmra.mrb[4].mxu1 %v1400_v40 }
  0x59   : > { %693 = vmatprep.mubr.bf16.mxu0 %v1401_v41  ;;  %725 = vmatprep.mubr.bf16.mxu1 %v1403_v42 }
  0x60   : > { %694 = vmatmul.mubr.bf16.gmra.mrb[8].mxu0 %v1405_v43  ;;  %726 = vmatmul.mubr.bf16.gmra.mrb[8].mxu1 %v1406_v44 }
  0x61   : > { %701 = vmatprep.mubr.bf16.mxu0 %v1407_v45  ;;  %733 = vmatprep.mubr.bf16.mxu1 %v1409_v46 }
  0x68   : > { %702 = vmatmul.mubr.bf16.gmra.mrb[12].mxu0 %v1411_v47  ;;  %734 = vmatmul.mubr.bf16.gmra.mrb[12].mxu1 %v1412_v48  ;;  %v411_v47 = vld [vmem:[#allocation2 + $0x30] sm:$0xff] }
 0x123   : > { %v1268_v49 = vpop.f32.mrb[0].mxu0  ;;  %v1292_v50 = vpop.f32.mrb[0].mxu1 }
 0x124   : > { %v1269_v52 = vpop.f32.mrb[1].mxu0  ;;  %v1293_v54 = vpop.f32.mrb[1].mxu1 }
 0x125   : > { %v1270_v55 = vadd.f32 %v1269_v52, %v1268_v49  ;;  %v1294_v56 = vadd.f32 %v1293_v54, %v1292_v50  ;;  %v1271_v57 = vpop.f32.mrb[2].mxu0  ;;  %v1295_v58 = vpop.f32.mrb[2].mxu1  ;;  %v419_v49 = vld [vmem:[#allocation2 + $0x70] sm:$0xff] }
 0x126   : > { %v1272_v60 = vpop.f32.mrb[3].mxu0  ;;  %v1296_v62 = vpop.f32.mrb[3].mxu1 }
 0x127   : > { %v742_v63 = vadd.f32 %v1270_v55, %v405_v51  ;;  %v750_v0 = vadd.f32 %v1294_v56, %v413_v53  ;;  %v1273_v1 = vadd.f32 %v1272_v60, %v1271_v57  ;;  %v1297_v2 = vadd.f32 %v1296_v62, %v1295_v58  ;;  %v412_v55 = vld [vmem:[#allocation2 + $0x38] sm:$0xff] }
 0x128   : > { %v420_v57 = vld [vmem:[#allocation2 + $0x78] sm:$0xff] }
 0x129   : > { %758 = vst [vmem:[#allocation2] sm:$0xff] %v742_v63  ;;  %766 = vst [vmem:[#allocation2 + $0x40] sm:$0xff] %v750_v0  ;;  %v743_v3 = vadd.f32 %v1273_v1, %v406_v59  ;;  %v751_v4 = vadd.f32 %v1297_v2, %v414_v61 }
 0x12b   : > { %759 = vst [vmem:[#allocation2 + $0x8] sm:$0xff] %v743_v3  ;;  %767 = vst [vmem:[#allocation2 + $0x48] sm:$0xff] %v751_v4  ;;  %v1274_v5 = vpop.f32.mrb[4].mxu0  ;;  %v1298_v6 = vpop.f32.mrb[4].mxu1  ;;  %v1593_v3 = vld [vmem:[%s1697_s2] ss:$0 sm:$0xff] (!%p1126_p11) }
 0x12c   : > { %v1275_v8 = vpop.f32.mrb[5].mxu0  ;;  %v1299_v10 = vpop.f32.mrb[5].mxu1 }
 0x12d   : > { %v1276_v11 = vadd.f32 %v1275_v8, %v1274_v5  ;;  %v1300_v12 = vadd.f32 %v1299_v10, %v1298_v6  ;;  %v1277_v13 = vpop.f32.mrb[6].mxu0  ;;  %v1301_v14 = vpop.f32.mrb[6].mxu1  ;;  %v1600_v6 = vld [vmem:[%s1698_s3] ss:$0 sm:$0xff] (!%p1126_p11) }
 0x12e   : > { %v1278_v16 = vpop.f32.mrb[7].mxu0  ;;  %v1302_v18 = vpop.f32.mrb[7].mxu1 }
 0x12f   : > { %v744_v19 = vadd.f32 %v1276_v11, %v407_v7  ;;  %v752_v20 = vadd.f32 %v1300_v12, %v415_v9  ;;  %v1279_v21 = vadd.f32 %v1278_v16, %v1277_v13  ;;  %v1303_v22 = vadd.f32 %v1302_v18, %v1301_v14  ;;  %v1167_v7 = vld [vmem:[%s1699_s4] sm:$0xff] (!%p1126_p11)   ;;  %v1238_v13 = vld [vmem:[%s1699_s4 + $0x8] sm:$0xff] (!%p1126_p11)  }
 0x130   : > { %v778_v1 = vld [vmem:[#allocation2] sm:$0xff] (!%p1126_p11)  ;;  %v1168_v9 = vunpack.c.l.bf16 (!%p1126_p11), %v1167_v7  ;;  %v1169_v10 = vunpack.c.h.bf16 (!%p1126_p11), %v1167_v7  ;;  %v1172_v18 = vunpack.c.l.bf16 (!%p1126_p11), %v1238_v13 }
 0x131   : > { %760 = vst [vmem:[#allocation2 + $0x10] sm:$0xff] %v744_v19  ;;  %768 = vst [vmem:[#allocation2 + $0x50] sm:$0xff] %v752_v20  ;;  %v745_v23 = vadd.f32 %v1279_v21, %v408_v15  ;;  %v753_v24 = vadd.f32 %v1303_v22, %v416_v17  ;;  %v801_v4 = vmul.f32 (!%p1126_p11), %v1593_v3, %v778_v1  ;;  %v1239_v20 = vld [vmem:[%s1699_s4 + $0x10] sm:$0xff] (!%p1126_p11)   ;;  %v1173_v22 = vunpack.c.h.bf16 (!%p1126_p11), %v1238_v13 }
 0x132   : > { %v779_v2 = vld [vmem:[#allocation2 + $0x8] sm:$0xff] (!%p1126_p11) }
 0x133   : > { %761 = vst [vmem:[#allocation2 + $0x18] sm:$0xff] %v745_v23  ;;  %769 = vst [vmem:[#allocation2 + $0x58] sm:$0xff] %v753_v24  ;;  %v1280_v25 = vpop.f32.mrb[8].mxu0  ;;  %v1304_v26 = vpop.f32.mrb[8].mxu1  ;;  %v802_v5 = vmul.f32 (!%p1126_p11), %v1593_v3, %v779_v2  ;;  %v824_v15 = vadd.f32 (!%p1126_p11), %v1600_v6, %v801_v4 }
 0x134   : > { %v1281_v28 = vpop.f32.mrb[9].mxu0  ;;  %v1305_v30 = vpop.f32.mrb[9].mxu1 }
 0x135   : > { %v1282_v31 = vadd.f32 %v1281_v28, %v1280_v25  ;;  %v1306_v32 = vadd.f32 %v1305_v30, %v1304_v26  ;;  %v1283_v33 = vpop.f32.mrb[10].mxu0  ;;  %v1307_v34 = vpop.f32.mrb[10].mxu1  ;;  %v825_v16 = vadd.f32 (!%p1126_p11), %v1600_v6, %v802_v5  ;;  %v872_v26 = vadd.f32 (!%p1126_p11), %v1168_v9, %v824_v15 }
 0x136   : > { %v1284_v36 = vpop.f32.mrb[11].mxu0  ;;  %v1308_v38 = vpop.f32.mrb[11].mxu1 }
 0x137   : > { %v746_v39 = vadd.f32 %v1282_v31, %v409_v27  ;;  %v754_v40 = vadd.f32 %v1306_v32, %v417_v29  ;;  %v1285_v41 = vadd.f32 %v1284_v36, %v1283_v33  ;;  %v1309_v42 = vadd.f32 %v1308_v38, %v1307_v34 }
 0x138   : > { %v780_v8 = vld [vmem:[#allocation2 + $0x10] sm:$0xff] (!%p1126_p11)  ;;  %v873_v27 = vadd.f32 (!%p1126_p11), %v1169_v10, %v825_v16  ;;  %v1176_v29 = vunpack.c.l.bf16 (!%p1126_p11), %v1239_v20  ;;  %v1177_v34 = vunpack.c.h.bf16 (!%p1126_p11), %v1239_v20  ;;  %v888_v36 = vmax.f32 (!%p1126_p11), %v872_v26, 0.0 }
 0x139   : > { %762 = vst [vmem:[#allocation2 + $0x20] sm:$0xff] %v746_v39  ;;  %770 = vst [vmem:[#allocation2 + $0x60] sm:$0xff] %v754_v40  ;;  %v747_v43 = vadd.f32 %v1285_v41, %v410_v35  ;;  %v755_v44 = vadd.f32 %v1309_v42, %v418_v37  ;;  %v803_v12 = vmul.f32 (!%p1126_p11), %v1593_v3, %v780_v8  ;;  %v1240_v35 = vld [vmem:[%s1699_s4 + $0x18] sm:$0xff] (!%p1126_p11)   ;;  %v1243_v10 = vld [vmem:[%s1699_s4 + $0x30] sm:$0xff] (!%p1126_p11)  }
 0x13a   : > { %v781_v11 = vld [vmem:[#allocation2 + $0x18] sm:$0xff] (!%p1126_p11)  ;;  %v889_v37 = vmax.f32 (!%p1126_p11), %v873_v27, 0.0 }
 0x13b   : > { %763 = vst [vmem:[#allocation2 + $0x28] sm:$0xff] %v747_v43  ;;  %771 = vst [vmem:[#allocation2 + $0x68] sm:$0xff] %v755_v44  ;;  %v1286_v45 = vpop.f32.mrb[12].mxu0  ;;  %v1310_v46 = vpop.f32.mrb[12].mxu1  ;;  %v804_v17 = vmul.f32 (!%p1126_p11), %v1593_v3, %v781_v11  ;;  %v826_v21 = vadd.f32 (!%p1126_p11), %v1600_v6, %v803_v12  ;;  %v786_v44 = vld [vmem:[#allocation2 + $0x40] sm:$0xff] (!%p1126_p11) }
 0x13c   : > { %v1287_v48 = vpop.f32.mrb[13].mxu0  ;;  %v1311_v50 = vpop.f32.mrb[13].mxu1 }
 0x13d   : > { %v1288_v51 = vadd.f32 %v1287_v48, %v1286_v45  ;;  %v1312_v52 = vadd.f32 %v1311_v50, %v1310_v46  ;;  %v1289_v53 = vpop.f32.mrb[14].mxu0  ;;  %v1313_v54 = vpop.f32.mrb[14].mxu1  ;;  %777 = sbr.rel (%p1126_p11) target bundleno = 343 (0x157), region = 86  ;;  %v827_v28 = vadd.f32 (!%p1126_p11), %v1600_v6, %v804_v17  ;;  %v874_v31 = vadd.f32 (!%p1126_p11), %v1172_v18, %v826_v21  ;;  %v787_v45 = vld [vmem:[#allocation2 + $0x48] sm:$0xff] (!%p1126_p11)  ;;  %v1241_v50 = vld [vmem:[%s1699_s4 + $0x20] sm:$0xff] (!%p1126_p11)  }
 0x13e   : > { %v1290_v56 = vpop.f32.mrb[15].mxu0  ;;  %v1314_v58 = vpop.f32.mrb[15].mxu1  ;;  %v1201_v46 = vpack.c.bf16 (!%p1126_p11), %v889_v37, %v888_v36  ;;  %v1185_v1 = vunpack.c.h.bf16 (!%p1126_p11), %v1241_v50 }
 0x13f   : > { %v748_v59 = vadd.f32 %v1288_v51, %v411_v47  ;;  %v756_v60 = vadd.f32 %v1312_v52, %v419_v49  ;;  %v1291_v61 = vadd.f32 %v1290_v56, %v1289_v53  ;;  %v1315_v62 = vadd.f32 %v1314_v58, %v1313_v54 }
 0x140   : > { %v782_v14 = vld [vmem:[#allocation2 + $0x20] sm:$0xff] (!%p1126_p11)  ;;  %v875_v38 = vadd.f32 (!%p1126_p11), %v1173_v22, %v827_v28  ;;  %v890_v40 = vmax.f32 (!%p1126_p11), %v874_v31, 0.0  ;;  %v1180_v49 = vunpack.c.l.bf16 (!%p1126_p11), %v1240_v35  ;;  %v1181_v54 = vunpack.c.h.bf16 (!%p1126_p11), %v1240_v35  ;;  %1202 = vst [vmem:[%s1700_s5] sm:$0xff] (!%p1126_p11), %v1201_v46  }
 0x141   : > { %764 = vst [vmem:[#allocation2 + $0x30] sm:$0xff] %v748_v59  ;;  %772 = vst [vmem:[#allocation2 + $0x70] sm:$0xff] %v756_v60  ;;  %v749_v63 = vadd.f32 %v1291_v61, %v412_v55  ;;  %v757_v0 = vadd.f32 %v1315_v62, %v420_v57  ;;  %v805_v23 = vmul.f32 (!%p1126_p11), %v1593_v3, %v782_v14  ;;  %v788_v55 = vld [vmem:[#allocation2 + $0x50] sm:$0xff] (!%p1126_p11)  ;;  %v789_v60 = vld [vmem:[#allocation2 + $0x58] sm:$0xff] (!%p1126_p11) }
 0x142   : > { %v783_v19 = vld [vmem:[#allocation2 + $0x28] sm:$0xff] (!%p1126_p11)  ;;  %v891_v47 = vmax.f32 (!%p1126_p11), %v875_v38, 0.0  ;;  %v809_v58 = vmul.f32 (!%p1126_p11), %v1593_v3, %v786_v44  ;;  %v810_v59 = vmul.f32 (!%p1126_p11), %v1593_v3, %v787_v45  ;;  %v790_v2 = vld [vmem:[#allocation2 + $0x60] sm:$0xff] (!%p1126_p11)  ;;  %v811_v8 = vmul.f32 (!%p1126_p11), %v1593_v3, %v788_v55 }
 0x143   : > { %765 = vst [vmem:[#allocation2 + $0x38] sm:$0xff] %v749_v63  ;;  %773 = vst [vmem:[#allocation2 + $0x78] sm:$0xff] %v757_v0  ;;  %v806_v24 = vmul.f32 (!%p1126_p11), %v1593_v3, %v783_v19  ;;  %v828_v32 = vadd.f32 (!%p1126_p11), %v1600_v6, %v805_v23  ;;  %v1242_v61 = vld [vmem:[%s1699_s4 + $0x28] sm:$0xff] (!%p1126_p11)   ;;  %v1184_v0 = vunpack.c.l.bf16 (!%p1126_p11), %v1241_v50  ;;  %v812_v12 = vmul.f32 (!%p1126_p11), %v1593_v3, %v789_v60 }
 0x144   : > { %v1206_v56 = vpack.c.bf16 %v891_v47, %v890_v40  ;;  %v832_v5 = vadd.f32 %v1600_v6, %v809_v58  ;;  %v833_v7 = vadd.f32 %v1600_v6, %v810_v59  ;;  %v791_v9 = vld [vmem:[#allocation2 + $0x68] sm:$0xff]  ;;  %v1188_v13 = vunpack.c.l.bf16 %v1242_v61 }
 0x145   : > { %v829_v33 = vadd.f32 %v1600_v6, %v806_v24  ;;  %v876_v41 = vadd.f32 %v1176_v29, %v828_v32  ;;  %v1189_v14 = vunpack.c.h.bf16 %v1242_v61  ;;  %v834_v17 = vadd.f32 %v1600_v6, %v811_v8  ;;  %v1244_v29 = vld [vmem:[%s1699_s4 + $0x38] sm:$0xff]  }
 0x146   : > { %1245 = vst [vmem:[%s1700_s5 + $0x8] sm:$0xff] %v1206_v56   ;;  %v880_v15 = vadd.f32 %v1184_v0, %v832_v5  ;;  %v881_v16 = vadd.f32 %v1185_v1, %v833_v7  ;;  %v813_v18 = vmul.f32 %v1593_v3, %v790_v2  ;;  %v835_v21 = vadd.f32 %v1600_v6, %v812_v12 }
 0x147   : > { %v877_v42 = vadd.f32 %v1177_v34, %v829_v33  ;;  %v892_v51 = vmax.f32 %v876_v41, 0.0  ;;  %v814_v22 = vmul.f32 %v1593_v3, %v791_v9  ;;  %v1192_v23 = vunpack.c.l.bf16 %v1243_v10 }
 0x148   : > { %v784_v25 = vld [vmem:[#allocation2 + $0x30] sm:$0xff]  ;;  %v897_v26 = vmax.f32 %v881_v16, 0.0  ;;  %v882_v27 = vadd.f32 %v1188_v13, %v834_v17  ;;  %v836_v28 = vadd.f32 %v1600_v6, %v813_v18  ;;  %v1193_v32 = vunpack.c.h.bf16 %v1243_v10 }
 0x149   : > { %v807_v39 = vmul.f32 %v1593_v3, %v784_v25  ;;  %v893_v52 = vmax.f32 %v877_v42, 0.0  ;;  %v792_v19 = vld [vmem:[#allocation2 + $0x70] sm:$0xff]  ;;  %v896_v25 = vmax.f32 %v880_v15, 0.0  ;;  %v837_v31 = vadd.f32 %v1600_v6, %v814_v22 }
 0x14a   : > { %v785_v30 = vld [vmem:[#allocation2 + $0x38] sm:$0xff]  ;;  %v815_v33 = vmul.f32 %v1593_v3, %v792_v19  ;;  %v898_v35 = vmax.f32 %v882_v27, 0.0  ;;  %v884_v36 = vadd.f32 %v1192_v23, %v836_v28  ;;  %v1196_v41 = vunpack.c.l.bf16 %v1244_v29 }
 0x14b   : > { %v808_v43 = vmul.f32 %v1593_v3, %v785_v30  ;;  %v830_v48 = vadd.f32 %v1600_v6, %v807_v39  ;;  %v1211_v62 = vpack.c.bf16 %v893_v52, %v892_v51  ;;  %v793_v24 = vld [vmem:[#allocation2 + $0x78] sm:$0xff]  ;;  %v883_v30 = vadd.f32 %v1189_v14, %v835_v21 }
 0x14c   : > { %v1221_v34 = vpack.c.bf16 %v897_v26, %v896_v25  ;;  %v816_v37 = vmul.f32 %v1593_v3, %v793_v24  ;;  %v885_v39 = vadd.f32 %v1193_v32, %v837_v31  ;;  %v838_v40 = vadd.f32 %v1600_v6, %v815_v33 }
 0x14d   : > { %v831_v53 = vadd.f32 %v1600_v6, %v808_v43  ;;  %v878_v57 = vadd.f32 %v1180_v49, %v830_v48  ;;  %1246 = vst [vmem:[%s1700_s5 + $0x10] sm:$0xff] %v1211_v62   ;;  %v899_v38 = vmax.f32 %v883_v30, 0.0  ;;  %v900_v42 = vmax.f32 %v884_v36, 0.0 }
 0x14e   : > { %1248 = vst [vmem:[%s1700_s5 + $0x20] sm:$0xff] %v1221_v34   ;;  %v839_v43 = vadd.f32 %v1600_v6, %v816_v37  ;;  %v1197_v44 = vunpack.c.h.bf16 %v1244_v29  ;;  %v901_v46 = vmax.f32 %v885_v39, 0.0  ;;  %v886_v47 = vadd.f32 %v1196_v41, %v838_v40 }
 0x14f   : > { %v879_v63 = vadd.f32 %v1181_v54, %v831_v53  ;;  %v894_v4 = vmax.f32 %v878_v57, 0.0  ;;  %v1226_v45 = vpack.c.bf16 %v899_v38, %v898_v35 }
 0x150   : > { %v887_v48 = vadd.f32 %v1197_v44, %v839_v43  ;;  %v1231_v3 = vpack.c.bf16 %v901_v46, %v900_v42  ;;  %v902_v49 = vmax.f32 %v886_v47, 0.0 }
 0x151   : > { %v895_v11 = vmax.f32 %v879_v63, 0.0  ;;  %1249 = vst [vmem:[%s1700_s5 + $0x28] sm:$0xff] %v1226_v45  }
 0x152   : > { %v903_v50 = vmax.f32 %v887_v48, 0.0  ;;  %1250 = vst [vmem:[%s1700_s5 + $0x30] sm:$0xff] %v1231_v3  }
 0x153   : > { %v1216_v20 = vpack.c.bf16 %v895_v11, %v894_v4 }
 0x154   : > { %v1236_v51 = vpack.c.bf16 %v903_v50, %v902_v49 }
 0x155   : > { %1247 = vst [vmem:[%s1700_s5 + $0x18] sm:$0xff] %v1216_v20  }
 0x156   : > { %1251 = vst [vmem:[%s1700_s5 + $0x38] sm:$0xff] %v1236_v51  }
 0x157 PF: > { %s15_s22 = sadd.s32 1, %s1451_s22   ;;  %s1701_s18 = smov %s1439_s19 }
 0x158   : > { %p12_p12 = scmp.ge.s32.totalorder %s15_s22, 5   ;;  %s1702_s19 = smov %s1519_s26 }
 0x159   : > { %s1703_s20 = smov %s1447_s21  ;;  %s1704_s21 = smov %s1706_s23 }
 0x15a   :  { %14 = sbr.rel (!%p12_p12) target bundleno = 3 (0x3), region = 127 }

// kernel: resnet18_binary_forward.29
= control target key start
LH: loop header
LB: loop body
LE: loop exit
PB: predicated region body
PF: predicated region fallthrough
CT: control target
= control target key end

     0   :  { %s877_s15 = smov 0   ;;  %s879_s16 = smov 0   ;;  %s980_s0 = inlined_call_operand.vmem [shape: bf16[32,768], index: 0, kind: input, shape index: {}]   ;;  %s981_s1 = inlined_call_operand.vmem [shape: bf16[768,128], index: 1, kind: input, shape index: {}]   ;;  %s982_s2 = inlined_call_operand.vmem [shape: f32[1,128], index: 2, kind: input, shape index: {}]   ;;  %s983_s3 = inlined_call_operand.vmem [shape: f32[1,128], index: 3, kind: input, shape index: {}]   ;;  %s984_s4 = inlined_call_operand.vmem [shape: bf16[32,128], index: 4, kind: output, shape index: {}]  }
   0x1   :  { %s881_s17 = smov 0   ;;  %s883_s18 = smov 0  }
   0x2   :  { %s885_s19 = smov 0  }
   0x3 LB: > { %s23_s20 = sadd.s32 1, %s845_s18  ;;  %p42_p1 = scmp.ne.s32.totalorder %s837_s16, %s833_s15  ;;  %s849_s19 = sphi %s885_s19, %s14_s19   ;;  %s845_s18 = sphi %s883_s18, %s988_s18   ;;  %s841_s17 = sphi %s881_s17, %s987_s17   ;;  %s837_s16 = sphi %s879_s16, %s986_s16   ;;  %s833_s15 = sphi %s877_s15, %s985_s15  }
   0x4   : > { %p24_p0 = scmp.ge.s32.totalorder %s23_s20, 3  ;;  %p43_p2 = scmp.eq.s32.totalorder %s849_s19, 0 }
   0x5   : > { %s35_s22 = sadd.s32 1, %s837_s16  ;;  %p648_p5 = scmp.ge.s32.totalorder %s849_s19, 3 }
   0x6   : > { %s990_s20 = smov (%p24_p0, %s23_s20), 0  ;;  %p44_p3 = por %p43_p2, %p42_p1 }
   0x7   : > { %s31_s21 = ssub.s32 %s845_s18, %s990_s20  ;;  %168 = sbr.rel (%p648_p5) target bundleno = 21 (0x15), region = 24 }
   0x8   : > { %p33_p4 = scmp.eq.s32.totalorder %s31_s21, 0 }
   0xa   : > { %s912_s23 = scalar_select %p33_p4, %s837_s16, %s35_s22  }
   0xe   : > { %171 = sbr.rel (!%p44_p3) target bundleno = 21 (0x15), region = 28  ;;  %s173_s24 = sand.u32 (%p44_p3), 1, %s837_s16  }
   0xf   : > { %s688_s25 = sshll.u32 (%p44_p3), %s845_s18, 3  ;;  %s649_s26 = sshll.u32 (%p44_p3), %s173_s24, 5 }
  0x10   : > { %s181_s29 = scalar_lea.vmem (%p44_p3), %s980_s0, %s688_s25  ;;  %s175_s30 = scalar_lea.vmem (%p44_p3), [#allocation3], %s649_s26 }
  0x11   : > { %v215_v0 = vld [vmem:[%s181_s29] sm:$0xff] (%p44_p3)  ;;  %v217_v1 = vld [vmem:[%s181_s29 + $0x18] sm:$0xff] (%p44_p3)  ;;  %v219_v2 = vld [vmem:[%s181_s29 + $0x30] sm:$0xff] (%p44_p3) }
  0x12   : > { %216 = vst [vmem:[%s175_s30] sm:$0xff] (%p44_p3), %v215_v0  ;;  %218 = vst [vmem:[%s175_s30 + $0x8] sm:$0xff] (%p44_p3), %v217_v1  ;;  %v221_v3 = vld [vmem:[%s181_s29 + $0x48] sm:$0xff] (%p44_p3) }
  0x13   : > { %220 = vst [vmem:[%s175_s30 + $0x10] sm:$0xff] (%p44_p3), %v219_v2  ;;  %222 = vst [vmem:[%s175_s30 + $0x18] sm:$0xff] (%p44_p3), %v221_v3 }
  0x15 PF: > { %p652_p6 = scmp.ge.s32.totalorder %s849_s19, 1  ;;  %p236_p7 = scmp.lt.s32.totalorder %s849_s19, 4 }
  0x17   : > { %p237_p8 = pnand %p652_p6, %p236_p7 }
  0x18   : > { %s243_s5 = sand.u32 (!%p237_p8), 1, %s833_s15   ;;  %s654_s6 = sshll.u32 (!%p237_p8), %s841_s17, 5 }
  0x19   : > { %240 = sbr.rel (%p237_p8) target bundleno = 308 (0x134), region = 70  ;;  %s653_s7 = sshll.u32 (!%p237_p8), %s243_s5, 5 }
  0x1a   : > { %p276_p9 = scmp.lt.s32.totalorder (!%p237_p8), %s654_s6, 95  ;;  %s929_s12 = scalar_lea.vmem (!%p237_p8), [#allocation3], %s653_s7 }
  0x1b   : > { %p656_p10 = scmp.ne.s32.totalorder (!%p237_p8), %s841_s17, 0 }
  0x20   : > { %s992_s6 = smov (!%p276_p9, %s654_s6), 95  ;;  %291 = sbr.rel (%p656_p10) target bundleno = 39 (0x27), region = 78 }
  0x21   : > { %s655_s8 = sshll.u32 %s992_s6, 2  ;;  %v851_v4 = vmov (!%p656_p10), 0.0  }
  0x22   : > { %s927_s11 = scalar_lea.vmem %s981_s1, %s655_s8  ;;  %292 = vst [vmem:[#allocation2] sm:$0xff] (!%p656_p10), %v851_v4  ;;  %293 = vst [vmem:[#allocation2 + $0x8] sm:$0xff] (!%p656_p10), %v851_v4 }
  0x23   : > { %294 = vst [vmem:[#allocation2 + $0x10] sm:$0xff] (!%p656_p10), %v851_v4  ;;  %295 = vst [vmem:[#allocation2 + $0x18] sm:$0xff] (!%p656_p10), %v851_v4 }
  0x27 PF: > { %v789_v5 = vld [vmem:[%s927_s11 + $0x40] sm:$0xff]   ;;  %v791_v7 = vld [vmem:[%s927_s11 + $0x48] sm:$0xff]   ;;  %v793_v9 = vld [vmem:[%s927_s11 + $0x50] sm:$0xff]   ;;  %p677_p11 = scmp.ne.s32.totalorder %s841_s17, 2 }
  0x28   : > { %v790_v6 = vld [vmem:[%s927_s11] sm:$0xff]   ;;  %704 = vmatprep.subr.bf16.mxu0 %v789_v5  ;;  %732 = vmatprep.subr.bf16.mxu1 %v789_v5  ;;  %v792_v8 = vld [vmem:[%s927_s11 + $0x8] sm:$0xff]   ;;  %v794_v10 = vld [vmem:[%s927_s11 + $0x10] sm:$0xff]  }
  0x29   : > { %705 = vmatpush3.bf16.msra.mxu0 %v790_v6  ;;  %740 = vmatpush3.bf16.msra.mxu1 %v790_v6  ;;  %v795_v11 = vld [vmem:[%s927_s11 + $0x58] sm:$0xff]   ;;  %v797_v13 = vld [vmem:[%s927_s11 + $0x60] sm:$0xff]   ;;  %v799_v15 = vld [vmem:[%s927_s11 + $0x68] sm:$0xff]  }
  0x2a   : > { %706 = vmatprep.subr.bf16.mxu0 %v791_v7  ;;  %733 = vmatprep.subr.bf16.mxu1 %v791_v7  ;;  %v796_v12 = vld [vmem:[%s927_s11 + $0x18] sm:$0xff]   ;;  %v798_v14 = vld [vmem:[%s927_s11 + $0x20] sm:$0xff]   ;;  %v800_v18 = vld [vmem:[%s927_s11 + $0x28] sm:$0xff]  }
  0x2b   : > { %v807_v16 = vld [vmem:[%s929_s12 + $0x4] ss:$8 sps:$4 sm:$0xff]   ;;  %v810_v17 = vld [vmem:[%s929_s12 + $0x14] ss:$8 sps:$4 sm:$0xff]   ;;  %v805_v23 = vld [vmem:[%s929_s12] ss:$8 sps:$4 sm:$0xff]  }
  0x2c   : > { %v801_v19 = vld [vmem:[%s927_s11 + $0x70] sm:$0xff]   ;;  %484 = vmatprep.mubr.bf16.mxu0 %v807_v16  ;;  %492 = vmatprep.mubr.bf16.mxu1 %v810_v17  ;;  %v803_v21 = vld [vmem:[%s927_s11 + $0x78] sm:$0xff]   ;;  %v296_v27 = vld [vmem:[#allocation2] sm:$0xff] }
  0x2d   : > { %707 = vmatpush3.bf16.msra.mxu0 %v792_v8  ;;  %741 = vmatpush3.bf16.msra.mxu1 %v792_v8  ;;  %v802_v20 = vld [vmem:[%s927_s11 + $0x30] sm:$0xff]   ;;  %v804_v22 = vld [vmem:[%s927_s11 + $0x38] sm:$0xff]   ;;  %v297_v35 = vld [vmem:[#allocation2 + $0x8] sm:$0xff] }
  0x2e   : > { %708 = vmatprep.subr.bf16.mxu0 %v793_v9  ;;  %734 = vmatprep.subr.bf16.mxu1 %v793_v9  ;;  %v808_v24 = vld [vmem:[%s929_s12 + $0x10] ss:$8 sps:$4 sm:$0xff]   ;;  %v678_v47 = vld [vmem:[%s982_s2] ss:$0 sm:$0xff] (!%p677_p11) }
  0x2f   : > { %v298_v29 = vld [vmem:[#allocation2 + $0x10] sm:$0xff]  ;;  %v299_v37 = vld [vmem:[#allocation2 + $0x18] sm:$0xff]  ;;  %v679_v50 = vld [vmem:[%s983_s3] ss:$0 sm:$0xff] (!%p677_p11) }
  0x31   : > { %709 = vmatpush3.bf16.msra.mxu0 %v794_v10  ;;  %742 = vmatpush3.bf16.msra.mxu1 %v794_v10 }
  0x32   : > { %710 = vmatprep.subr.bf16.mxu0 %v795_v11  ;;  %735 = vmatprep.subr.bf16.mxu1 %v795_v11 }
  0x35   : > { %711 = vmatpush3.bf16.msra.mxu0 %v796_v12  ;;  %743 = vmatpush3.bf16.msra.mxu1 %v796_v12 }
  0x36   : > { %712 = vmatprep.subr.bf16.mxu0 %v797_v13  ;;  %736 = vmatprep.subr.bf16.mxu1 %v797_v13 }
  0x39   : > { %713 = vmatpush3.bf16.msra.mxu0 %v798_v14  ;;  %744 = vmatpush3.bf16.msra.mxu1 %v798_v14 }
  0x3a   : > { %714 = vmatprep.subr.bf16.mxu0 %v799_v15  ;;  %737 = vmatprep.subr.bf16.mxu1 %v799_v15 }
  0x3d   : > { %715 = vmatpush3.bf16.msra.mxu0 %v800_v18  ;;  %745 = vmatpush3.bf16.msra.mxu1 %v800_v18 }
  0x3e   : > { %716 = vmatprep.subr.bf16.mxu0 %v801_v19  ;;  %738 = vmatprep.subr.bf16.mxu1 %v801_v19 }
  0x41   : > { %717 = vmatpush3.bf16.msra.mxu0 %v802_v20  ;;  %746 = vmatpush3.bf16.msra.mxu1 %v802_v20 }
  0x42   : > { %718 = vmatprep.subr.bf16.mxu0 %v803_v21  ;;  %739 = vmatprep.subr.bf16.mxu1 %v803_v21 }
  0x45   : > { %719 = vmatpush3.bf16.msra.mxu0 %v804_v22  ;;  %747 = vmatpush3.bf16.msra.mxu1 %v804_v22 }
  0x48   : > { %485 = vmatmul.mubr.bf16.vlgmr.msra.gmra.mrb[0].mxu0 %v805_v23  ;;  %493 = vmatmul.mubr.bf16.vlgmr.msra.gmra.mrb[0].mxu1 %v808_v24 }
 0x11b   : > { %v720_v25 = vpop.f32.mrb[0].mxu0  ;;  %v726_v26 = vpop.f32.mrb[0].mxu1 }
 0x11c   : > { %v721_v28 = vpop.f32.mrb[1].mxu0  ;;  %v727_v30 = vpop.f32.mrb[1].mxu1 }
 0x11d   : > { %v722_v31 = vadd.f32 %v721_v28, %v720_v25  ;;  %v728_v32 = vadd.f32 %v727_v30, %v726_v26  ;;  %v723_v33 = vpop.f32.mrb[2].mxu0  ;;  %v729_v34 = vpop.f32.mrb[2].mxu1  ;;  %512 = sbr.rel (%p677_p11) target bundleno = 308 (0x134), region = 82 }
 0x11e   : > { %v724_v36 = vpop.f32.mrb[3].mxu0  ;;  %v730_v38 = vpop.f32.mrb[3].mxu1 }
 0x11f   : > { %v501_v39 = vadd.f32 %v722_v31, %v296_v27  ;;  %v503_v40 = vadd.f32 %v728_v32, %v298_v29  ;;  %v725_v41 = vadd.f32 %v724_v36, %v723_v33  ;;  %v731_v42 = vadd.f32 %v730_v38, %v729_v34 }
 0x121   : > { %505 = vst [vmem:[#allocation2] sm:$0xff] %v501_v39  ;;  %507 = vst [vmem:[#allocation2 + $0x10] sm:$0xff] %v503_v40  ;;  %v502_v43 = vadd.f32 %v725_v41, %v297_v35  ;;  %v504_v44 = vadd.f32 %v731_v42, %v299_v37 }
 0x123   : > { %506 = vst [vmem:[#allocation2 + $0x8] sm:$0xff] %v502_v43  ;;  %508 = vst [vmem:[#allocation2 + $0x18] sm:$0xff] %v504_v44 }
 0x128   : > { %v513_v45 = vld [vmem:[#allocation2] sm:$0xff]  ;;  %v515_v51 = vld [vmem:[#allocation2 + $0x10] sm:$0xff] }
 0x129   : > { %v524_v48 = vmul.f32 %v678_v47, %v513_v45  ;;  %v526_v53 = vmul.f32 %v678_v47, %v515_v51 }
 0x12a   : > { %v514_v46 = vld [vmem:[#allocation2 + $0x8] sm:$0xff]  ;;  %v516_v52 = vld [vmem:[#allocation2 + $0x18] sm:$0xff] }
 0x12b   : > { %v525_v49 = vmul.f32 %v678_v47, %v514_v46  ;;  %v527_v54 = vmul.f32 %v678_v47, %v516_v52  ;;  %v535_v55 = vadd.f32 %v679_v50, %v524_v48  ;;  %v537_v57 = vadd.f32 %v679_v50, %v526_v53 }
 0x12d   : > { %v536_v56 = vadd.f32 %v679_v50, %v525_v49  ;;  %v538_v58 = vadd.f32 %v679_v50, %v527_v54  ;;  %v539_v59 = vmax.f32 %v535_v55, 0.0  ;;  %v541_v61 = vmax.f32 %v537_v57, 0.0 }
 0x12f   : > { %v540_v60 = vmax.f32 %v536_v56, 0.0  ;;  %v542_v62 = vmax.f32 %v538_v58, 0.0 }
 0x131   : > { %v696_v63 = vpack.c.bf16 %v540_v60, %v539_v59  ;;  %v701_v0 = vpack.c.bf16 %v542_v62, %v541_v61 }
 0x133   : > { %697 = vst [vmem:[%s984_s4] sm:$0xff] %v696_v63   ;;  %703 = vst [vmem:[%s984_s4 + $0x8] sm:$0xff] %v701_v0  }
 0x134 PF: > { %s14_s19 = sadd.s32 1, %s849_s19   ;;  %s985_s15 = smov %s837_s16 }
 0x135   : > { %p11_p12 = scmp.ge.s32.totalorder %s14_s19, 5   ;;  %s986_s16 = smov %s912_s23 }
 0x136   : > { %s987_s17 = smov %s845_s18  ;;  %s988_s18 = smov %s990_s20 }
 0x137   :  { %13 = sbr.rel (!%p11_p12) target bundleno = 3 (0x3), region = 120 }

// kernel: resnet18_binary_forward.28
= control target key start
LH: loop header
LB: loop body
LE: loop exit
PB: predicated region body
PF: predicated region fallthrough
CT: control target
= control target key end

     0   :  { %s358_s1 = inlined_call_operand.vmem [shape: bf16[128,128], index: 1, kind: input, shape index: {}]   ;;  %s359_s0 = inlined_call_operand.vmem [shape: bf16[32,128], index: 0, kind: input, shape index: {}]   ;;  %s360_s2 = inlined_call_operand.vmem [shape: f32[1,128], index: 2, kind: input, shape index: {}]   ;;  %s361_s3 = inlined_call_operand.vmem [shape: f32[1,128], index: 3, kind: input, shape index: {}]   ;;  %s362_s4 = inlined_call_operand.vmem [shape: bf16[32,128], index: 4, kind: output, shape index: {}]  }
   0x1   :  { %v281_v0 = vld [vmem:[%s358_s1] sm:$0xff]   ;;  %v282_v1 = vld [vmem:[%s358_s1 + $0x8] sm:$0xff]   ;;  %v283_v2 = vld [vmem:[%s358_s1 + $0x10] sm:$0xff]  }
   0x2   :  { %261 = vmatprep.subr.bf16.mxu0 %v281_v0  ;;  %v284_v3 = vld [vmem:[%s358_s1 + $0x18] sm:$0xff]   ;;  %v289_v4 = vld [vmem:[%s359_s0] sm:$0xff]   ;;  %v286_v6 = vld [vmem:[%s358_s1 + $0x28] sm:$0xff]  }
   0x3   :  { %262 = vmatpush3.bf16.msra.mxu0 %v281_v0  ;;  %277 = vmatprep.mubr.bf16.mxu0 %v289_v4  ;;  %v285_v5 = vld [vmem:[%s358_s1 + $0x20] sm:$0xff]   ;;  %v287_v7 = vld [vmem:[%s358_s1 + $0x30] sm:$0xff]   ;;  %v288_v8 = vld [vmem:[%s358_s1 + $0x38] sm:$0xff]  }
   0x4   :  { %263 = vmatprep.subr.bf16.mxu0 %v282_v1  ;;  %v290_v9 = vld [vmem:[%s359_s0 + $0x8] sm:$0xff]   ;;  %v230_v10 = vld [vmem:[%s360_s2] ss:$0 sm:$0xff] }
   0x5   :  { %v231_v14 = vld [vmem:[%s361_s3] ss:$0 sm:$0xff] }
   0x7   :  { %264 = vmatpush3.bf16.msra.mxu0 %v282_v1 }
   0x8   :  { %265 = vmatprep.subr.bf16.mxu0 %v283_v2 }
   0xb   :  { %266 = vmatpush3.bf16.msra.mxu0 %v283_v2 }
   0xc   :  { %267 = vmatprep.subr.bf16.mxu0 %v284_v3 }
   0xf   :  { %268 = vmatpush3.bf16.msra.mxu0 %v284_v3 }
  0x10   :  { %269 = vmatprep.subr.bf16.mxu0 %v285_v5 }
  0x13   :  { %270 = vmatpush3.bf16.msra.mxu0 %v285_v5 }
  0x14   :  { %271 = vmatprep.subr.bf16.mxu0 %v286_v6 }
  0x17   :  { %272 = vmatpush3.bf16.msra.mxu0 %v286_v6 }
  0x18   :  { %273 = vmatprep.subr.bf16.mxu0 %v287_v7 }
  0x1b   :  { %274 = vmatpush3.bf16.msra.mxu0 %v287_v7 }
  0x1c   :  { %275 = vmatprep.subr.bf16.mxu0 %v288_v8 }
  0x1f   :  { %276 = vmatpush3.bf16.msra.mxu0 %v288_v8 }
  0x22   :  { %278 = vmatmul.mubr.bf16.vlgmr.msra.gmra.mrb[0].mxu0 %v290_v9 }
  0xf5   :  { %v279_v11 = vpop.f32.mrb[0].mxu0 }
  0xf6   :  { %v183_v12 = vmul.f32 %v279_v11, %v230_v10  ;;  %v144_v13 = vpop.f32.mrb[1].mxu0 }
  0xf7   :  { %v181_v15 = vmul.f32 %v230_v10, %v144_v13  ;;  %v280_v16 = vpop.f32.mrb[2].mxu0 }
  0xf8   :  { %v184_v17 = vmul.f32 %v280_v16, %v230_v10  ;;  %v147_v18 = vpop.f32.mrb[3].mxu0  ;;  %v194_v20 = vadd.f32 %v231_v14, %v183_v12 }
  0xf9   :  { %v182_v19 = vmul.f32 %v230_v10, %v147_v18  ;;  %v192_v22 = vadd.f32 %v231_v14, %v181_v15 }
  0xfa   :  { %v195_v21 = vadd.f32 %v231_v14, %v184_v17 }
  0xfb   :  { %v193_v23 = vadd.f32 %v231_v14, %v182_v19 }
  0xfc   :  { %v248_v24 = vpack.c.bf16 %v195_v21, %v194_v20 }
  0xfd   :  { %v243_v25 = vpack.c.bf16 %v193_v23, %v192_v22 }
  0xfe   :  { %250 = vst [vmem:[%s362_s4 + $0x8] sm:$0xff] %v248_v24  }
  0xff   :  { %244 = vst [vmem:[%s362_s4] sm:$0xff] %v243_v25  }

// kernel: resnet18_binary_forward.31
= control target key start
LH: loop header
LB: loop body
LE: loop exit
PB: predicated region body
PF: predicated region fallthrough
CT: control target
= control target key end

     0   :  { %s877_s15 = smov 0   ;;  %s879_s16 = smov 0   ;;  %s980_s0 = inlined_call_operand.vmem [shape: bf16[32,1280], index: 0, kind: input, shape index: {}]   ;;  %s981_s1 = inlined_call_operand.vmem [shape: bf16[1280,128], index: 1, kind: input, shape index: {}]   ;;  %s982_s2 = inlined_call_operand.vmem [shape: f32[1,128], index: 2, kind: input, shape index: {}]   ;;  %s983_s3 = inlined_call_operand.vmem [shape: f32[1,128], index: 3, kind: input, shape index: {}]   ;;  %s984_s4 = inlined_call_operand.vmem [shape: bf16[32,128], index: 4, kind: output, shape index: {}]  }
   0x1   :  { %s881_s17 = smov 0   ;;  %s883_s18 = smov 0  }
   0x2   :  { %s885_s19 = smov 0  }
   0x3 LB: > { %s23_s20 = sadd.s32 1, %s845_s18  ;;  %p42_p1 = scmp.ne.s32.totalorder %s837_s16, %s833_s15  ;;  %s849_s19 = sphi %s885_s19, %s14_s19   ;;  %s845_s18 = sphi %s883_s18, %s988_s18   ;;  %s841_s17 = sphi %s881_s17, %s987_s17   ;;  %s837_s16 = sphi %s879_s16, %s986_s16   ;;  %s833_s15 = sphi %s877_s15, %s985_s15  }
   0x4   : > { %p24_p0 = scmp.ge.s32.totalorder %s23_s20, 5  ;;  %p43_p2 = scmp.eq.s32.totalorder %s849_s19, 0 }
   0x5   : > { %s35_s22 = sadd.s32 1, %s837_s16  ;;  %p648_p5 = scmp.ge.s32.totalorder %s849_s19, 5 }
   0x6   : > { %s990_s20 = smov (%p24_p0, %s23_s20), 0  ;;  %p44_p3 = por %p43_p2, %p42_p1 }
   0x7   : > { %s31_s21 = ssub.s32 %s845_s18, %s990_s20  ;;  %168 = sbr.rel (%p648_p5) target bundleno = 21 (0x15), region = 24 }
   0x8   : > { %p33_p4 = scmp.eq.s32.totalorder %s31_s21, 0 }
   0xa   : > { %s912_s23 = scalar_select %p33_p4, %s837_s16, %s35_s22  }
   0xe   : > { %171 = sbr.rel (!%p44_p3) target bundleno = 21 (0x15), region = 28  ;;  %s173_s24 = sand.u32 (%p44_p3), 1, %s837_s16  }
   0xf   : > { %s688_s25 = sshll.u32 (%p44_p3), %s845_s18, 3  ;;  %s649_s26 = sshll.u32 (%p44_p3), %s173_s24, 5 }
  0x10   : > { %s181_s29 = scalar_lea.vmem (%p44_p3), %s980_s0, %s688_s25  ;;  %s175_s30 = scalar_lea.vmem (%p44_p3), [#allocation3], %s649_s26 }
  0x11   : > { %v215_v0 = vld [vmem:[%s181_s29] sm:$0xff] (%p44_p3)  ;;  %v217_v1 = vld [vmem:[%s181_s29 + $0x28] sm:$0xff] (%p44_p3)  ;;  %v219_v2 = vld [vmem:[%s181_s29 + $0x50] sm:$0xff] (%p44_p3) }
  0x12   : > { %216 = vst [vmem:[%s175_s30] sm:$0xff] (%p44_p3), %v215_v0  ;;  %218 = vst [vmem:[%s175_s30 + $0x8] sm:$0xff] (%p44_p3), %v217_v1  ;;  %v221_v3 = vld [vmem:[%s181_s29 + $0x78] sm:$0xff] (%p44_p3) }
  0x13   : > { %220 = vst [vmem:[%s175_s30 + $0x10] sm:$0xff] (%p44_p3), %v219_v2  ;;  %222 = vst [vmem:[%s175_s30 + $0x18] sm:$0xff] (%p44_p3), %v221_v3 }
  0x15 PF: > { %p652_p6 = scmp.ge.s32.totalorder %s849_s19, 1  ;;  %p236_p7 = scmp.lt.s32.totalorder %s849_s19, 6 }
  0x17   : > { %p237_p8 = pnand %p652_p6, %p236_p7 }
  0x18   : > { %s243_s5 = sand.u32 (!%p237_p8), 1, %s833_s15   ;;  %s654_s6 = sshll.u32 (!%p237_p8), %s841_s17, 5 }
  0x19   : > { %240 = sbr.rel (%p237_p8) target bundleno = 308 (0x134), region = 70  ;;  %s653_s7 = sshll.u32 (!%p237_p8), %s243_s5, 5 }
  0x1a   : > { %p276_p9 = scmp.lt.s32.totalorder (!%p237_p8), %s654_s6, 159  ;;  %s929_s12 = scalar_lea.vmem (!%p237_p8), [#allocation3], %s653_s7 }
  0x1b   : > { %p656_p10 = scmp.ne.s32.totalorder (!%p237_p8), %s841_s17, 0 }
  0x20   : > { %s992_s6 = smov (!%p276_p9, %s654_s6), 159  ;;  %291 = sbr.rel (%p656_p10) target bundleno = 39 (0x27), region = 78 }
  0x21   : > { %s655_s8 = sshll.u32 %s992_s6, 2  ;;  %v851_v4 = vmov (!%p656_p10), 0.0  }
  0x22   : > { %s927_s11 = scalar_lea.vmem %s981_s1, %s655_s8  ;;  %292 = vst [vmem:[#allocation2] sm:$0xff] (!%p656_p10), %v851_v4  ;;  %293 = vst [vmem:[#allocation2 + $0x8] sm:$0xff] (!%p656_p10), %v851_v4 }
  0x23   : > { %294 = vst [vmem:[#allocation2 + $0x10] sm:$0xff] (!%p656_p10), %v851_v4  ;;  %295 = vst [vmem:[#allocation2 + $0x18] sm:$0xff] (!%p656_p10), %v851_v4 }
  0x27 PF: > { %v789_v5 = vld [vmem:[%s927_s11 + $0x40] sm:$0xff]   ;;  %v791_v7 = vld [vmem:[%s927_s11 + $0x48] sm:$0xff]   ;;  %v793_v9 = vld [vmem:[%s927_s11 + $0x50] sm:$0xff]   ;;  %p677_p11 = scmp.ne.s32.totalorder %s841_s17, 4 }
  0x28   : > { %v790_v6 = vld [vmem:[%s927_s11] sm:$0xff]   ;;  %704 = vmatprep.subr.bf16.mxu0 %v789_v5  ;;  %732 = vmatprep.subr.bf16.mxu1 %v789_v5  ;;  %v792_v8 = vld [vmem:[%s927_s11 + $0x8] sm:$0xff]   ;;  %v794_v10 = vld [vmem:[%s927_s11 + $0x10] sm:$0xff]  }
  0x29   : > { %705 = vmatpush3.bf16.msra.mxu0 %v790_v6  ;;  %740 = vmatpush3.bf16.msra.mxu1 %v790_v6  ;;  %v795_v11 = vld [vmem:[%s927_s11 + $0x58] sm:$0xff]   ;;  %v797_v13 = vld [vmem:[%s927_s11 + $0x60] sm:$0xff]   ;;  %v799_v15 = vld [vmem:[%s927_s11 + $0x68] sm:$0xff]  }
  0x2a   : > { %706 = vmatprep.subr.bf16.mxu0 %v791_v7  ;;  %733 = vmatprep.subr.bf16.mxu1 %v791_v7  ;;  %v796_v12 = vld [vmem:[%s927_s11 + $0x18] sm:$0xff]   ;;  %v798_v14 = vld [vmem:[%s927_s11 + $0x20] sm:$0xff]   ;;  %v800_v18 = vld [vmem:[%s927_s11 + $0x28] sm:$0xff]  }
  0x2b   : > { %v807_v16 = vld [vmem:[%s929_s12 + $0x4] ss:$8 sps:$4 sm:$0xff]   ;;  %v810_v17 = vld [vmem:[%s929_s12 + $0x14] ss:$8 sps:$4 sm:$0xff]   ;;  %v805_v23 = vld [vmem:[%s929_s12] ss:$8 sps:$4 sm:$0xff]  }
  0x2c   : > { %v801_v19 = vld [vmem:[%s927_s11 + $0x70] sm:$0xff]   ;;  %484 = vmatprep.mubr.bf16.mxu0 %v807_v16  ;;  %492 = vmatprep.mubr.bf16.mxu1 %v810_v17  ;;  %v803_v21 = vld [vmem:[%s927_s11 + $0x78] sm:$0xff]   ;;  %v296_v27 = vld [vmem:[#allocation2] sm:$0xff] }
  0x2d   : > { %707 = vmatpush3.bf16.msra.mxu0 %v792_v8  ;;  %741 = vmatpush3.bf16.msra.mxu1 %v792_v8  ;;  %v802_v20 = vld [vmem:[%s927_s11 + $0x30] sm:$0xff]   ;;  %v804_v22 = vld [vmem:[%s927_s11 + $0x38] sm:$0xff]   ;;  %v297_v35 = vld [vmem:[#allocation2 + $0x8] sm:$0xff] }
  0x2e   : > { %708 = vmatprep.subr.bf16.mxu0 %v793_v9  ;;  %734 = vmatprep.subr.bf16.mxu1 %v793_v9  ;;  %v808_v24 = vld [vmem:[%s929_s12 + $0x10] ss:$8 sps:$4 sm:$0xff]   ;;  %v678_v47 = vld [vmem:[%s982_s2] ss:$0 sm:$0xff] (!%p677_p11) }
  0x2f   : > { %v298_v29 = vld [vmem:[#allocation2 + $0x10] sm:$0xff]  ;;  %v299_v37 = vld [vmem:[#allocation2 + $0x18] sm:$0xff]  ;;  %v679_v50 = vld [vmem:[%s983_s3] ss:$0 sm:$0xff] (!%p677_p11) }
  0x31   : > { %709 = vmatpush3.bf16.msra.mxu0 %v794_v10  ;;  %742 = vmatpush3.bf16.msra.mxu1 %v794_v10 }
  0x32   : > { %710 = vmatprep.subr.bf16.mxu0 %v795_v11  ;;  %735 = vmatprep.subr.bf16.mxu1 %v795_v11 }
  0x35   : > { %711 = vmatpush3.bf16.msra.mxu0 %v796_v12  ;;  %743 = vmatpush3.bf16.msra.mxu1 %v796_v12 }
  0x36   : > { %712 = vmatprep.subr.bf16.mxu0 %v797_v13  ;;  %736 = vmatprep.subr.bf16.mxu1 %v797_v13 }
  0x39   : > { %713 = vmatpush3.bf16.msra.mxu0 %v798_v14  ;;  %744 = vmatpush3.bf16.msra.mxu1 %v798_v14 }
  0x3a   : > { %714 = vmatprep.subr.bf16.mxu0 %v799_v15  ;;  %737 = vmatprep.subr.bf16.mxu1 %v799_v15 }
  0x3d   : > { %715 = vmatpush3.bf16.msra.mxu0 %v800_v18  ;;  %745 = vmatpush3.bf16.msra.mxu1 %v800_v18 }
  0x3e   : > { %716 = vmatprep.subr.bf16.mxu0 %v801_v19  ;;  %738 = vmatprep.subr.bf16.mxu1 %v801_v19 }
  0x41   : > { %717 = vmatpush3.bf16.msra.mxu0 %v802_v20  ;;  %746 = vmatpush3.bf16.msra.mxu1 %v802_v20 }
  0x42   : > { %718 = vmatprep.subr.bf16.mxu0 %v803_v21  ;;  %739 = vmatprep.subr.bf16.mxu1 %v803_v21 }
  0x45   : > { %719 = vmatpush3.bf16.msra.mxu0 %v804_v22  ;;  %747 = vmatpush3.bf16.msra.mxu1 %v804_v22 }
  0x48   : > { %485 = vmatmul.mubr.bf16.vlgmr.msra.gmra.mrb[0].mxu0 %v805_v23  ;;  %493 = vmatmul.mubr.bf16.vlgmr.msra.gmra.mrb[0].mxu1 %v808_v24 }
 0x11b   : > { %v720_v25 = vpop.f32.mrb[0].mxu0  ;;  %v726_v26 = vpop.f32.mrb[0].mxu1 }
 0x11c   : > { %v721_v28 = vpop.f32.mrb[1].mxu0  ;;  %v727_v30 = vpop.f32.mrb[1].mxu1 }
 0x11d   : > { %v722_v31 = vadd.f32 %v721_v28, %v720_v25  ;;  %v728_v32 = vadd.f32 %v727_v30, %v726_v26  ;;  %v723_v33 = vpop.f32.mrb[2].mxu0  ;;  %v729_v34 = vpop.f32.mrb[2].mxu1  ;;  %512 = sbr.rel (%p677_p11) target bundleno = 308 (0x134), region = 82 }
 0x11e   : > { %v724_v36 = vpop.f32.mrb[3].mxu0  ;;  %v730_v38 = vpop.f32.mrb[3].mxu1 }
 0x11f   : > { %v501_v39 = vadd.f32 %v722_v31, %v296_v27  ;;  %v503_v40 = vadd.f32 %v728_v32, %v298_v29  ;;  %v725_v41 = vadd.f32 %v724_v36, %v723_v33  ;;  %v731_v42 = vadd.f32 %v730_v38, %v729_v34 }
 0x121   : > { %505 = vst [vmem:[#allocation2] sm:$0xff] %v501_v39  ;;  %507 = vst [vmem:[#allocation2 + $0x10] sm:$0xff] %v503_v40  ;;  %v502_v43 = vadd.f32 %v725_v41, %v297_v35  ;;  %v504_v44 = vadd.f32 %v731_v42, %v299_v37 }
 0x123   : > { %506 = vst [vmem:[#allocation2 + $0x8] sm:$0xff] %v502_v43  ;;  %508 = vst [vmem:[#allocation2 + $0x18] sm:$0xff] %v504_v44 }
 0x128   : > { %v513_v45 = vld [vmem:[#allocation2] sm:$0xff]  ;;  %v515_v51 = vld [vmem:[#allocation2 + $0x10] sm:$0xff] }
 0x129   : > { %v524_v48 = vmul.f32 %v678_v47, %v513_v45  ;;  %v526_v53 = vmul.f32 %v678_v47, %v515_v51 }
 0x12a   : > { %v514_v46 = vld [vmem:[#allocation2 + $0x8] sm:$0xff]  ;;  %v516_v52 = vld [vmem:[#allocation2 + $0x18] sm:$0xff] }
 0x12b   : > { %v525_v49 = vmul.f32 %v678_v47, %v514_v46  ;;  %v527_v54 = vmul.f32 %v678_v47, %v516_v52  ;;  %v535_v55 = vadd.f32 %v679_v50, %v524_v48  ;;  %v537_v57 = vadd.f32 %v679_v50, %v526_v53 }
 0x12d   : > { %v536_v56 = vadd.f32 %v679_v50, %v525_v49  ;;  %v538_v58 = vadd.f32 %v679_v50, %v527_v54  ;;  %v539_v59 = vmax.f32 %v535_v55, 0.0  ;;  %v541_v61 = vmax.f32 %v537_v57, 0.0 }
 0x12f   : > { %v540_v60 = vmax.f32 %v536_v56, 0.0  ;;  %v542_v62 = vmax.f32 %v538_v58, 0.0 }
 0x131   : > { %v696_v63 = vpack.c.bf16 %v540_v60, %v539_v59  ;;  %v701_v0 = vpack.c.bf16 %v542_v62, %v541_v61 }
 0x133   : > { %697 = vst [vmem:[%s984_s4] sm:$0xff] %v696_v63   ;;  %703 = vst [vmem:[%s984_s4 + $0x8] sm:$0xff] %v701_v0  }
 0x134 PF: > { %s14_s19 = sadd.s32 1, %s849_s19   ;;  %s985_s15 = smov %s837_s16 }
 0x135   : > { %p11_p12 = scmp.ge.s32.totalorder %s14_s19, 7   ;;  %s986_s16 = smov %s912_s23 }
 0x136   : > { %s987_s17 = smov %s845_s18  ;;  %s988_s18 = smov %s990_s20 }
 0x137   :  { %13 = sbr.rel (!%p11_p12) target bundleno = 3 (0x3), region = 120 }

// kernel: resnet18_binary_forward.30
= control target key start
LH: loop header
LB: loop body
LE: loop exit
PB: predicated region body
PF: predicated region fallthrough
CT: control target
= control target key end

     0   :  { %s968_s18 = smov 0   ;;  %s970_s19 = smov 0   ;;  %s1077_s0 = inlined_call_operand.vmem [shape: bf16[32,1280], index: 0, kind: input, shape index: {}]   ;;  %s1078_s1 = inlined_call_operand.vmem [shape: bf16[1280,128], index: 1, kind: input, shape index: {}]   ;;  %s1079_s2 = inlined_call_operand.vmem [shape: f32[1,128], index: 2, kind: input, shape index: {}]   ;;  %s1080_s3 = inlined_call_operand.vmem [shape: f32[1,128], index: 3, kind: input, shape index: {}]   ;;  %s1081_s4 = inlined_call_operand.vmem [shape: bf16[32,128], index: 4, kind: input, shape index: {}]   ;;  %s1082_s5 = inlined_call_operand.vmem [shape: bf16[32,128], index: 5, kind: output, shape index: {}]  }
   0x1   :  { %s972_s20 = smov 0   ;;  %s974_s21 = smov 0  }
   0x2   :  { %s976_s22 = smov 0  }
   0x3 LB: > { %s24_s23 = sadd.s32 1, %s931_s21  ;;  %p43_p1 = scmp.ne.s32.totalorder %s923_s19, %s919_s18  ;;  %s935_s22 = sphi %s976_s22, %s15_s22   ;;  %s931_s21 = sphi %s974_s21, %s1086_s21   ;;  %s927_s20 = sphi %s972_s20, %s1085_s20   ;;  %s923_s19 = sphi %s970_s19, %s1084_s19   ;;  %s919_s18 = sphi %s968_s18, %s1083_s18  }
   0x4   : > { %p25_p0 = scmp.ge.s32.totalorder %s24_s23, 5  ;;  %p44_p2 = scmp.eq.s32.totalorder %s935_s22, 0 }
   0x5   : > { %s36_s25 = sadd.s32 1, %s923_s19  ;;  %p725_p5 = scmp.ge.s32.totalorder %s935_s22, 5 }
   0x6   : > { %s1088_s23 = smov (%p25_p0, %s24_s23), 0  ;;  %p45_p3 = por %p44_p2, %p43_p1 }
   0x7   : > { %s32_s24 = ssub.s32 %s931_s21, %s1088_s23  ;;  %204 = sbr.rel (%p725_p5) target bundleno = 21 (0x15), region = 28 }
   0x8   : > { %p34_p4 = scmp.eq.s32.totalorder %s32_s24, 0 }
   0xa   : > { %s1003_s26 = scalar_select %p34_p4, %s923_s19, %s36_s25  }
   0xe   : > { %207 = sbr.rel (!%p45_p3) target bundleno = 21 (0x15), region = 32  ;;  %s209_s27 = sand.u32 (%p45_p3), 1, %s923_s19  }
   0xf   : > { %s765_s28 = sshll.u32 (%p45_p3), %s931_s21, 3  ;;  %s726_s29 = sshll.u32 (%p45_p3), %s209_s27, 5 }
  0x10   : > { %s217_s7 = scalar_lea.vmem (%p45_p3), %s1077_s0, %s765_s28  ;;  %s211_s8 = scalar_lea.vmem (%p45_p3), [#allocation3], %s726_s29 }
  0x11   : > { %v251_v0 = vld [vmem:[%s217_s7] sm:$0xff] (%p45_p3)  ;;  %v253_v1 = vld [vmem:[%s217_s7 + $0x28] sm:$0xff] (%p45_p3)  ;;  %v255_v2 = vld [vmem:[%s217_s7 + $0x50] sm:$0xff] (%p45_p3) }
  0x12   : > { %252 = vst [vmem:[%s211_s8] sm:$0xff] (%p45_p3), %v251_v0  ;;  %254 = vst [vmem:[%s211_s8 + $0x8] sm:$0xff] (%p45_p3), %v253_v1  ;;  %v257_v3 = vld [vmem:[%s217_s7 + $0x78] sm:$0xff] (%p45_p3) }
  0x13   : > { %256 = vst [vmem:[%s211_s8 + $0x10] sm:$0xff] (%p45_p3), %v255_v2  ;;  %258 = vst [vmem:[%s211_s8 + $0x18] sm:$0xff] (%p45_p3), %v257_v3 }
  0x15 PF: > { %p729_p6 = scmp.ge.s32.totalorder %s935_s22, 1  ;;  %p272_p7 = scmp.lt.s32.totalorder %s935_s22, 6 }
  0x17   : > { %p273_p8 = pnand %p729_p6, %p272_p7 }
  0x18   : > { %s279_s9 = sand.u32 (!%p273_p8), 1, %s919_s18   ;;  %s731_s10 = sshll.u32 (!%p273_p8), %s927_s20, 5 }
  0x19   : > { %276 = sbr.rel (%p273_p8) target bundleno = 310 (0x136), region = 74  ;;  %s730_s11 = sshll.u32 (!%p273_p8), %s279_s9, 5 }
  0x1a   : > { %p319_p9 = scmp.lt.s32.totalorder (!%p273_p8), %s731_s10, 159  ;;  %s1020_s16 = scalar_lea.vmem (!%p273_p8), [#allocation3], %s730_s11 }
  0x1b   : > { %p733_p10 = scmp.ne.s32.totalorder (!%p273_p8), %s927_s20, 0 }
  0x20   : > { %s1090_s10 = smov (!%p319_p9, %s731_s10), 159  ;;  %340 = sbr.rel (%p733_p10) target bundleno = 39 (0x27), region = 82 }
  0x21   : > { %s732_s12 = sshll.u32 %s1090_s10, 2  ;;  %v937_v4 = vmov (!%p733_p10), 0.0  }
  0x22   : > { %s1018_s15 = scalar_lea.vmem %s1078_s1, %s732_s12  ;;  %341 = vst [vmem:[#allocation2] sm:$0xff] (!%p733_p10), %v937_v4  ;;  %342 = vst [vmem:[#allocation2 + $0x8] sm:$0xff] (!%p733_p10), %v937_v4 }
  0x23   : > { %343 = vst [vmem:[#allocation2 + $0x10] sm:$0xff] (!%p733_p10), %v937_v4  ;;  %344 = vst [vmem:[#allocation2 + $0x18] sm:$0xff] (!%p733_p10), %v937_v4 }
  0x27 PF: > { %v875_v5 = vld [vmem:[%s1018_s15 + $0x40] sm:$0xff]   ;;  %v877_v7 = vld [vmem:[%s1018_s15 + $0x48] sm:$0xff]   ;;  %v879_v9 = vld [vmem:[%s1018_s15 + $0x50] sm:$0xff]   ;;  %p754_p11 = scmp.ne.s32.totalorder %s927_s20, 4 }
  0x28   : > { %v876_v6 = vld [vmem:[%s1018_s15] sm:$0xff]   ;;  %790 = vmatprep.subr.bf16.mxu0 %v875_v5  ;;  %818 = vmatprep.subr.bf16.mxu1 %v875_v5  ;;  %v878_v8 = vld [vmem:[%s1018_s15 + $0x8] sm:$0xff]   ;;  %v880_v10 = vld [vmem:[%s1018_s15 + $0x10] sm:$0xff]  }
  0x29   : > { %791 = vmatpush3.bf16.msra.mxu0 %v876_v6  ;;  %826 = vmatpush3.bf16.msra.mxu1 %v876_v6  ;;  %v881_v11 = vld [vmem:[%s1018_s15 + $0x58] sm:$0xff]   ;;  %v883_v13 = vld [vmem:[%s1018_s15 + $0x60] sm:$0xff]   ;;  %v885_v15 = vld [vmem:[%s1018_s15 + $0x68] sm:$0xff]  }
  0x2a   : > { %792 = vmatprep.subr.bf16.mxu0 %v877_v7  ;;  %819 = vmatprep.subr.bf16.mxu1 %v877_v7  ;;  %v882_v12 = vld [vmem:[%s1018_s15 + $0x18] sm:$0xff]   ;;  %v884_v14 = vld [vmem:[%s1018_s15 + $0x20] sm:$0xff]   ;;  %v886_v18 = vld [vmem:[%s1018_s15 + $0x28] sm:$0xff]  }
  0x2b   : > { %v893_v16 = vld [vmem:[%s1020_s16 + $0x4] ss:$8 sps:$4 sm:$0xff]   ;;  %v896_v17 = vld [vmem:[%s1020_s16 + $0x14] ss:$8 sps:$4 sm:$0xff]   ;;  %v891_v23 = vld [vmem:[%s1020_s16] ss:$8 sps:$4 sm:$0xff]  }
  0x2c   : > { %v887_v19 = vld [vmem:[%s1018_s15 + $0x70] sm:$0xff]   ;;  %533 = vmatprep.mubr.bf16.mxu0 %v893_v16  ;;  %541 = vmatprep.mubr.bf16.mxu1 %v896_v17  ;;  %v889_v21 = vld [vmem:[%s1018_s15 + $0x78] sm:$0xff]   ;;  %v345_v27 = vld [vmem:[#allocation2] sm:$0xff] }
  0x2d   : > { %793 = vmatpush3.bf16.msra.mxu0 %v878_v8  ;;  %827 = vmatpush3.bf16.msra.mxu1 %v878_v8  ;;  %v888_v20 = vld [vmem:[%s1018_s15 + $0x30] sm:$0xff]   ;;  %v890_v22 = vld [vmem:[%s1018_s15 + $0x38] sm:$0xff]   ;;  %v346_v35 = vld [vmem:[#allocation2 + $0x8] sm:$0xff] }
  0x2e   : > { %794 = vmatprep.subr.bf16.mxu0 %v879_v9  ;;  %820 = vmatprep.subr.bf16.mxu1 %v879_v9  ;;  %v894_v24 = vld [vmem:[%s1020_s16 + $0x10] ss:$8 sps:$4 sm:$0xff]   ;;  %v755_v47 = vld [vmem:[%s1079_s2] ss:$0 sm:$0xff] (!%p754_p11)  ;;  %v788_v57 = vld [vmem:[%s1081_s4 + $0x8] sm:$0xff] (!%p754_p11)  }
  0x2f   : > { %v347_v29 = vld [vmem:[#allocation2 + $0x10] sm:$0xff]  ;;  %v348_v37 = vld [vmem:[#allocation2 + $0x18] sm:$0xff]  ;;  %v756_v50 = vld [vmem:[%s1080_s3] ss:$0 sm:$0xff] (!%p754_p11)  ;;  %v776_v61 = vunpack.c.l.bf16 (!%p754_p11), %v788_v57  ;;  %v777_v63 = vunpack.c.h.bf16 (!%p754_p11), %v788_v57 }
  0x30   : > { %v771_v51 = vld [vmem:[%s1081_s4] sm:$0xff] (!%p754_p11)  }
  0x31   : > { %795 = vmatpush3.bf16.msra.mxu0 %v880_v10  ;;  %828 = vmatpush3.bf16.msra.mxu1 %v880_v10  ;;  %v772_v53 = vunpack.c.l.bf16 (!%p754_p11), %v771_v51  ;;  %v773_v54 = vunpack.c.h.bf16 (!%p754_p11), %v771_v51 }
  0x32   : > { %796 = vmatprep.subr.bf16.mxu0 %v881_v11  ;;  %821 = vmatprep.subr.bf16.mxu1 %v881_v11 }
  0x35   : > { %797 = vmatpush3.bf16.msra.mxu0 %v882_v12  ;;  %829 = vmatpush3.bf16.msra.mxu1 %v882_v12 }
  0x36   : > { %798 = vmatprep.subr.bf16.mxu0 %v883_v13  ;;  %822 = vmatprep.subr.bf16.mxu1 %v883_v13 }
  0x39   : > { %799 = vmatpush3.bf16.msra.mxu0 %v884_v14  ;;  %830 = vmatpush3.bf16.msra.mxu1 %v884_v14 }
  0x3a   : > { %800 = vmatprep.subr.bf16.mxu0 %v885_v15  ;;  %823 = vmatprep.subr.bf16.mxu1 %v885_v15 }
  0x3d   : > { %801 = vmatpush3.bf16.msra.mxu0 %v886_v18  ;;  %831 = vmatpush3.bf16.msra.mxu1 %v886_v18 }
  0x3e   : > { %802 = vmatprep.subr.bf16.mxu0 %v887_v19  ;;  %824 = vmatprep.subr.bf16.mxu1 %v887_v19 }
  0x41   : > { %803 = vmatpush3.bf16.msra.mxu0 %v888_v20  ;;  %832 = vmatpush3.bf16.msra.mxu1 %v888_v20 }
  0x42   : > { %804 = vmatprep.subr.bf16.mxu0 %v889_v21  ;;  %825 = vmatprep.subr.bf16.mxu1 %v889_v21 }
  0x45   : > { %805 = vmatpush3.bf16.msra.mxu0 %v890_v22  ;;  %833 = vmatpush3.bf16.msra.mxu1 %v890_v22 }
  0x48   : > { %534 = vmatmul.mubr.bf16.vlgmr.msra.gmra.mrb[0].mxu0 %v891_v23  ;;  %542 = vmatmul.mubr.bf16.vlgmr.msra.gmra.mrb[0].mxu1 %v894_v24 }
 0x11b   : > { %v806_v25 = vpop.f32.mrb[0].mxu0  ;;  %v812_v26 = vpop.f32.mrb[0].mxu1 }
 0x11c   : > { %v807_v28 = vpop.f32.mrb[1].mxu0  ;;  %v813_v30 = vpop.f32.mrb[1].mxu1 }
 0x11d   : > { %v808_v31 = vadd.f32 %v807_v28, %v806_v25  ;;  %v814_v32 = vadd.f32 %v813_v30, %v812_v26  ;;  %v809_v33 = vpop.f32.mrb[2].mxu0  ;;  %v815_v34 = vpop.f32.mrb[2].mxu1  ;;  %561 = sbr.rel (%p754_p11) target bundleno = 310 (0x136), region = 86 }
 0x11e   : > { %v810_v36 = vpop.f32.mrb[3].mxu0  ;;  %v816_v38 = vpop.f32.mrb[3].mxu1 }
 0x11f   : > { %v550_v39 = vadd.f32 %v808_v31, %v345_v27  ;;  %v552_v40 = vadd.f32 %v814_v32, %v347_v29  ;;  %v811_v41 = vadd.f32 %v810_v36, %v809_v33  ;;  %v817_v42 = vadd.f32 %v816_v38, %v815_v34 }
 0x121   : > { %554 = vst [vmem:[#allocation2] sm:$0xff] %v550_v39  ;;  %556 = vst [vmem:[#allocation2 + $0x10] sm:$0xff] %v552_v40  ;;  %v551_v43 = vadd.f32 %v811_v41, %v346_v35  ;;  %v553_v44 = vadd.f32 %v817_v42, %v348_v37 }
 0x123   : > { %555 = vst [vmem:[#allocation2 + $0x8] sm:$0xff] %v551_v43  ;;  %557 = vst [vmem:[#allocation2 + $0x18] sm:$0xff] %v553_v44 }
 0x128   : > { %v562_v45 = vld [vmem:[#allocation2] sm:$0xff]  ;;  %v564_v52 = vld [vmem:[#allocation2 + $0x10] sm:$0xff] }
 0x129   : > { %v573_v48 = vmul.f32 %v755_v47, %v562_v45  ;;  %v575_v56 = vmul.f32 %v755_v47, %v564_v52 }
 0x12a   : > { %v563_v46 = vld [vmem:[#allocation2 + $0x8] sm:$0xff]  ;;  %v565_v55 = vld [vmem:[#allocation2 + $0x18] sm:$0xff] }
 0x12b   : > { %v574_v49 = vmul.f32 %v755_v47, %v563_v46  ;;  %v584_v58 = vadd.f32 %v756_v50, %v573_v48  ;;  %v576_v60 = vmul.f32 %v755_v47, %v565_v55  ;;  %v586_v62 = vadd.f32 %v756_v50, %v575_v56 }
 0x12d   : > { %v585_v59 = vadd.f32 %v756_v50, %v574_v49  ;;  %v596_v0 = vadd.f32 %v772_v53, %v584_v58  ;;  %v587_v2 = vadd.f32 %v756_v50, %v576_v60  ;;  %v598_v3 = vadd.f32 %v776_v61, %v586_v62 }
 0x12f   : > { %v597_v1 = vadd.f32 %v773_v54, %v585_v59  ;;  %v600_v4 = vmax.f32 %v596_v0, 0.0  ;;  %v599_v6 = vadd.f32 %v777_v63, %v587_v2  ;;  %v602_v7 = vmax.f32 %v598_v3, 0.0 }
 0x131   : > { %v601_v5 = vmax.f32 %v597_v1, 0.0  ;;  %v603_v9 = vmax.f32 %v599_v6, 0.0 }
 0x133   : > { %v781_v8 = vpack.c.bf16 %v601_v5, %v600_v4  ;;  %v786_v10 = vpack.c.bf16 %v603_v9, %v602_v7 }
 0x135   : > { %782 = vst [vmem:[%s1082_s5] sm:$0xff] %v781_v8   ;;  %789 = vst [vmem:[%s1082_s5 + $0x8] sm:$0xff] %v786_v10  }
 0x136 PF: > { %s15_s22 = sadd.s32 1, %s935_s22   ;;  %s1083_s18 = smov %s923_s19 }
 0x137   : > { %p12_p12 = scmp.ge.s32.totalorder %s15_s22, 7   ;;  %s1084_s19 = smov %s1003_s26 }
 0x138   : > { %s1085_s20 = smov %s931_s21  ;;  %s1086_s21 = smov %s1088_s23 }
 0x139   :  { %14 = sbr.rel (!%p12_p12) target bundleno = 3 (0x3), region = 127 }

// kernel: resnet18_binary_forward.34
= control target key start
LH: loop header
LB: loop body
LE: loop exit
PB: predicated region body
PF: predicated region fallthrough
CT: control target
= control target key end

     0   :  { %s804_s15 = smov 0   ;;  %s806_s16 = smov 0   ;;  %s889_s0 = inlined_call_operand.vmem [shape: bf16[8,1280], index: 0, kind: input, shape index: {}]   ;;  %s890_s1 = inlined_call_operand.vmem [shape: bf16[1280,256], index: 1, kind: input, shape index: {}]   ;;  %s891_s2 = inlined_call_operand.vmem [shape: f32[1,256], index: 2, kind: input, shape index: {}]   ;;  %s892_s3 = inlined_call_operand.vmem [shape: f32[1,256], index: 3, kind: input, shape index: {}]   ;;  %s893_s4 = inlined_call_operand.vmem [shape: bf16[8,256], index: 4, kind: output, shape index: {}]  }
   0x1   :  { %s808_s17 = smov 0  }
   0x2 LB: > { %s23_s18 = sadd.s32 1, %s772_s16  ;;  %p631_p0 = scmp.ge.s32.totalorder %s776_s17, 1  ;;  %s776_s17 = sphi %s808_s17, %s14_s17   ;;  %s772_s16 = sphi %s806_s16, %s895_s16   ;;  %s768_s15 = sphi %s804_s15, %s894_s15  }
   0x3   : > { %p24_p1 = scmp.ge.s32.totalorder %s23_s18, 5  ;;  %p193_p2 = scmp.lt.s32.totalorder %s776_s17, 6 }
   0x5   : > { %s897_s18 = smov (%p24_p1, %s23_s18), 0  ;;  %p194_p3 = pnand %p631_p0, %p193_p2 }
   0x6   : > { %s632_s19 = sshll.u32 (!%p194_p3), %s768_s15, 1  ;;  %s634_s20 = sshll.u32 (!%p194_p3), %s768_s15, 5 }
   0x7   : > { %197 = sbr.rel (%p194_p3) target bundleno = 321 (0x141), region = 36  ;;  %p232_p4 = scmp.lt.s32.totalorder (!%p194_p3), %s632_s19, 9 }
   0x8   : > { %p240_p5 = scmp.lt.s32.totalorder (!%p194_p3), %s634_s20, 159  ;;  %p637_p6 = scmp.ne.s32.totalorder (!%p194_p3), %s768_s15, 0 }
   0xe   : > { %s899_s19 = smov (!%p232_p4, %s632_s19), 9  ;;  %s901_s20 = smov (!%p240_p5, %s634_s20), 159 }
   0xf   : > { %s633_s21 = sshll.u32 %s899_s19, 2  ;;  %s677_s25 = sshll.u32 %s901_s20, 3  ;;  %v778_v0 = vmov (!%p637_p6), 0.0  }
  0x10   : > { %s829_s24 = scalar_lea.vmem %s889_s0, %s633_s21  ;;  %s834_s28 = scalar_lea.vmem %s890_s1, %s677_s25  ;;  %255 = vst [vmem:[#allocation2] sm:$0xff] (!%p637_p6), %v778_v0  ;;  %256 = vst [vmem:[#allocation2 + $0x8] sm:$0xff] (!%p637_p6), %v778_v0 }
  0x11   : > { %254 = sbr.rel (%p637_p6) target bundleno = 24 (0x18), region = 40 }
  0x18 PF: > { %v704_v1 = vld [vmem:[%s834_s28 + $0x4] ss:$8 sps:$4 sm:$0xff]   ;;  %v706_v2 = vld [vmem:[%s834_s28] ss:$8 sps:$4 sm:$0xff]   ;;  %v707_v3 = vld [vmem:[%s834_s28 + $0x14] ss:$8 sps:$4 sm:$0xff]  }
  0x19   : > { %459 = vmatprep.subr.bf16.mxu0 %v704_v1  ;;  %v709_v4 = vld [vmem:[%s834_s28 + $0x10] ss:$8 sps:$4 sm:$0xff]   ;;  %v710_v5 = vld [vmem:[%s834_s28 + $0x24] ss:$8 sps:$4 sm:$0xff]   ;;  %v712_v6 = vld [vmem:[%s834_s28 + $0x20] ss:$8 sps:$4 sm:$0xff]  }
  0x1a   : > { %460 = vmatpush1.bf16.msra.mxu0 %v706_v2  ;;  %v713_v7 = vld [vmem:[%s834_s28 + $0x34] ss:$8 sps:$4 sm:$0xff]   ;;  %v715_v8 = vld [vmem:[%s834_s28 + $0x30] ss:$8 sps:$4 sm:$0xff]   ;;  %v716_v9 = vld [vmem:[%s834_s28 + $0x44] ss:$8 sps:$4 sm:$0xff]  }
  0x1b   : > { %461 = vmatprep.subr.bf16.mxu0 %v707_v3  ;;  %v718_v10 = vld [vmem:[%s834_s28 + $0x40] ss:$8 sps:$4 sm:$0xff]   ;;  %v719_v11 = vld [vmem:[%s834_s28 + $0x54] ss:$8 sps:$4 sm:$0xff]   ;;  %v721_v12 = vld [vmem:[%s834_s28 + $0x50] ss:$8 sps:$4 sm:$0xff]  }
  0x1c   : > { %v722_v13 = vld [vmem:[%s834_s28 + $0x64] ss:$8 sps:$4 sm:$0xff]   ;;  %v724_v16 = vld [vmem:[%s834_s28 + $0x60] ss:$8 sps:$4 sm:$0xff]   ;;  %v725_v17 = vld [vmem:[%s834_s28 + $0x74] ss:$8 sps:$4 sm:$0xff]  }
  0x1d   : > { %v259_v14 = vld [vmem:[%s829_s24] sm:$0xff]  ;;  %v727_v18 = vld [vmem:[%s834_s28 + $0x70] ss:$8 sps:$4 sm:$0xff]   ;;  %v731_v21 = vld [vmem:[%s834_s28 + $0x94] ss:$8 sps:$4 sm:$0xff]   ;;  %p672_p7 = scmp.ne.s32.totalorder %s768_s15, 4 }
  0x1e   : > { %462 = vmatpush1.bf16.msra.mxu0 %v709_v4  ;;  %v639_v15 = vcombine.high %v259_v14, %v259_v14  ;;  %v728_v19 = vld [vmem:[%s834_s28 + $0x84] ss:$8 sps:$4 sm:$0xff]   ;;  %v730_v20 = vld [vmem:[%s834_s28 + $0x80] ss:$8 sps:$4 sm:$0xff]   ;;  %v733_v22 = vld [vmem:[%s834_s28 + $0x90] ss:$8 sps:$4 sm:$0xff]   ;;  %v638_v35 = vcombine.low %v259_v14, %v259_v14  ;;  %v512_v44 = vlaneseq (!%p672_p7) }
  0x1f   : > { %463 = vmatprep.subr.bf16.mxu0 %v710_v5  ;;  %v734_v23 = vld [vmem:[%s834_s28 + $0xa4] ss:$8 sps:$4 sm:$0xff]   ;;  %v736_v24 = vld [vmem:[%s834_s28 + $0xa0] ss:$8 sps:$4 sm:$0xff]   ;;  %v737_v25 = vld [vmem:[%s834_s28 + $0xb4] ss:$8 sps:$4 sm:$0xff]  }
  0x20   : > { %491 = vmatprep.mubr.bf16.mxu0 %v639_v15  ;;  %v739_v26 = vld [vmem:[%s834_s28 + $0xb0] ss:$8 sps:$4 sm:$0xff]   ;;  %v740_v27 = vld [vmem:[%s834_s28 + $0xc4] ss:$8 sps:$4 sm:$0xff]   ;;  %v742_v28 = vld [vmem:[%s834_s28 + $0xc0] ss:$8 sps:$4 sm:$0xff]  }
  0x21   : > { %v743_v29 = vld [vmem:[%s834_s28 + $0xd4] ss:$8 sps:$4 sm:$0xff]   ;;  %v745_v30 = vld [vmem:[%s834_s28 + $0xd0] ss:$8 sps:$4 sm:$0xff]   ;;  %v746_v31 = vld [vmem:[%s834_s28 + $0xe4] ss:$8 sps:$4 sm:$0xff]  }
  0x22   : > { %464 = vmatpush1.bf16.msra.mxu0 %v712_v6  ;;  %v748_v32 = vld [vmem:[%s834_s28 + $0xe0] ss:$8 sps:$4 sm:$0xff]   ;;  %v749_v33 = vld [vmem:[%s834_s28 + $0xf4] ss:$8 sps:$4 sm:$0xff]   ;;  %v751_v34 = vld [vmem:[%s834_s28 + $0xf0] ss:$8 sps:$4 sm:$0xff]  }
  0x23   : > { %465 = vmatprep.subr.bf16.mxu0 %v713_v7  ;;  %v257_v36 = vld [vmem:[#allocation2] sm:$0xff]  ;;  %v258_v37 = vld [vmem:[#allocation2 + $0x8] sm:$0xff]  ;;  %v513_v45 = vshrl.u32 (!%p672_p7), %v512_v44, 7 }
  0x24   : > { %v510_v46 = vld [vmem:[%s891_s2] sm:$0x3] (!%p672_p7) }
  0x25   : > { %v524_v47 = vld [vmem:[%s892_s3] sm:$0x3] (!%p672_p7)  ;;  %v514_v48 = vsub.s32 (!%p672_p7), 0, %v513_v45  ;;  %v518_v49 = vsub.s32 (!%p672_p7), 1, %v513_v45 }
  0x26   : > { %466 = vmatpush1.bf16.msra.mxu0 %v715_v8 }
  0x27   : > { %467 = vmatprep.subr.bf16.mxu0 %v716_v9  ;;  %v515_v52 = vrot.slane (!%p672_p7), %v510_v46, %v514_v48  ;;  %v519_v53 = vrot.slane (!%p672_p7), %v510_v46, %v518_v49  ;;  %v529_v54 = vrot.slane (!%p672_p7), %v524_v47, %v514_v48  ;;  %v533_v55 = vrot.slane (!%p672_p7), %v524_v47, %v518_v49 }
  0x2a   : > { %468 = vmatpush1.bf16.msra.mxu0 %v718_v10 }
  0x2b   : > { %469 = vmatprep.subr.bf16.mxu0 %v719_v11 }
  0x2e   : > { %470 = vmatpush1.bf16.msra.mxu0 %v721_v12 }
  0x2f   : > { %471 = vmatprep.subr.bf16.mxu0 %v722_v13 }
  0x32   : > { %472 = vmatpush1.bf16.msra.mxu0 %v724_v16 }
  0x33   : > { %473 = vmatprep.subr.bf16.mxu0 %v725_v17 }
  0x36   : > { %474 = vmatpush1.bf16.msra.mxu0 %v727_v18 }
  0x37   : > { %475 = vmatprep.subr.bf16.mxu0 %v728_v19 }
  0x3a   : > { %476 = vmatpush1.bf16.msra.mxu0 %v730_v20 }
  0x3b   : > { %477 = vmatprep.subr.bf16.mxu0 %v731_v21 }
  0x3e   : > { %478 = vmatpush1.bf16.msra.mxu0 %v733_v22 }
  0x3f   : > { %479 = vmatprep.subr.bf16.mxu0 %v734_v23 }
  0x42   : > { %480 = vmatpush1.bf16.msra.mxu0 %v736_v24 }
  0x43   : > { %481 = vmatprep.subr.bf16.mxu0 %v737_v25 }
  0x46   : > { %482 = vmatpush1.bf16.msra.mxu0 %v739_v26 }
  0x47   : > { %483 = vmatprep.subr.bf16.mxu0 %v740_v27 }
  0x4a   : > { %484 = vmatpush1.bf16.msra.mxu0 %v742_v28 }
  0x4b   : > { %485 = vmatprep.subr.bf16.mxu0 %v743_v29 }
  0x4e   : > { %486 = vmatpush1.bf16.msra.mxu0 %v745_v30 }
  0x4f   : > { %487 = vmatprep.subr.bf16.mxu0 %v746_v31 }
  0x52   : > { %488 = vmatpush1.bf16.msra.mxu0 %v748_v32 }
  0x53   : > { %489 = vmatprep.subr.bf16.mxu0 %v749_v33 }
  0x56   : > { %490 = vmatpush1.bf16.msra.mxu0 %v751_v34 }
  0x59   : > { %492 = vmatmul.mubr.bf16.vlgmr.msra.gmra.mrb[0].mxu0 %v638_v35 }
 0x12a   : > { %507 = sbr.rel (%p672_p7) target bundleno = 321 (0x141), region = 44 }
 0x12c   : > { %v493_v38 = vpop.f32.mrb[0].mxu0 }
 0x12d   : > { %v500_v39 = vadd.f32 %v493_v38, %v257_v36  ;;  %v495_v40 = vpop.f32.mrb[1].mxu0 }
 0x12e   : > { %v501_v41 = vadd.f32 %v495_v40, %v258_v37  ;;  %v497_v42 = vpop.f32.mrb[2].mxu0 }
 0x12f   : > { %502 = vst [vmem:[#allocation2] sm:$0xff] %v500_v39  ;;  %v498_v43 = vpop.f32.mrb[3].mxu0 }
 0x130   : > { %503 = vst [vmem:[#allocation2 + $0x8] sm:$0xff] %v501_v41 }
 0x136   : > { %v508_v50 = vld [vmem:[#allocation2] sm:$0xff] }
 0x137   : > { %v509_v51 = vld [vmem:[#allocation2 + $0x8] sm:$0xff]  ;;  %v522_v56 = vmul.f32 %v515_v52, %v508_v50 }
 0x138   : > { %v523_v57 = vmul.f32 %v519_v53, %v509_v51 }
 0x139   : > { %v536_v58 = vadd.f32 %v529_v54, %v522_v56 }
 0x13a   : > { %v537_v59 = vadd.f32 %v533_v55, %v523_v57 }
 0x13b   : > { %v538_v60 = vmax.f32 %v536_v58, 0.0 }
 0x13c   : > { %v539_v61 = vmax.f32 %v537_v59, 0.0 }
 0x13e   : > { %v678_v62 = vpack.c.bf16 %v539_v61, %v538_v60 }
 0x140   : > { %548 = vst [vmem:[%s893_s4] sm:$0xff] %v678_v62 }
 0x141 PF: > { %s14_s17 = sadd.s32 1, %s776_s17   ;;  %s894_s15 = smov %s772_s16 }
 0x142   : > { %p11_p8 = scmp.ge.s32.totalorder %s14_s17, 7   ;;  %s895_s16 = smov %s897_s18 }
 0x144   :  { %13 = sbr.rel (!%p11_p8) target bundleno = 2 (0x2), region = 77 }

// kernel: resnet18_binary_forward.33
= control target key start
LH: loop header
LB: loop body
LE: loop exit
PB: predicated region body
PF: predicated region fallthrough
CT: control target
= control target key end

     0   :  { %v257_v1 = vmov 0   ;;  %v175_v18 = vlaneseq  ;;  %s343_s1 = inlined_call_operand.vmem [shape: bf16[128,256], index: 1, kind: input, shape index: {}]   ;;  %s344_s0 = inlined_call_operand.vmem [shape: bf16[8,128], index: 0, kind: input, shape index: {}]   ;;  %s345_s2 = inlined_call_operand.vmem [shape: f32[1,256], index: 2, kind: input, shape index: {}]   ;;  %s346_s3 = inlined_call_operand.vmem [shape: f32[1,256], index: 3, kind: input, shape index: {}]   ;;  %s347_s4 = inlined_call_operand.vmem [shape: bf16[8,256], index: 4, kind: output, shape index: {}]  }
   0x1   :  { %v233_v0 = vld [vmem:[%s343_s1 + $0x4] ss:$8 sps:$4 sm:$0xff]   ;;  %155 = vmatprep.mubr.bf16.mxu0 %v257_v1  ;;  %v235_v2 = vld [vmem:[%s343_s1] ss:$8 sps:$4 sm:$0xff]   ;;  %v236_v3 = vld [vmem:[%s343_s1 + $0x14] ss:$8 sps:$4 sm:$0xff]  }
   0x2   :  { %123 = vmatprep.subr.bf16.mxu0 %v233_v0  ;;  %v238_v4 = vld [vmem:[%s343_s1 + $0x10] ss:$8 sps:$4 sm:$0xff]   ;;  %v239_v5 = vld [vmem:[%s343_s1 + $0x24] ss:$8 sps:$4 sm:$0xff]   ;;  %v241_v6 = vld [vmem:[%s343_s1 + $0x20] ss:$8 sps:$4 sm:$0xff]  }
   0x3   :  { %124 = vmatpush1.bf16.msra.mxu0 %v235_v2  ;;  %v242_v7 = vld [vmem:[%s343_s1 + $0x34] ss:$8 sps:$4 sm:$0xff]   ;;  %v244_v8 = vld [vmem:[%s343_s1 + $0x30] ss:$8 sps:$4 sm:$0xff]   ;;  %v245_v9 = vld [vmem:[%s343_s1 + $0x44] ss:$8 sps:$4 sm:$0xff]  }
   0x4   :  { %125 = vmatprep.subr.bf16.mxu0 %v236_v3  ;;  %v247_v10 = vld [vmem:[%s343_s1 + $0x40] ss:$8 sps:$4 sm:$0xff]   ;;  %v248_v11 = vld [vmem:[%s343_s1 + $0x54] ss:$8 sps:$4 sm:$0xff]   ;;  %v250_v12 = vld [vmem:[%s343_s1 + $0x50] ss:$8 sps:$4 sm:$0xff]  }
   0x5   :  { %v251_v13 = vld [vmem:[%s343_s1 + $0x64] ss:$8 sps:$4 sm:$0xff]   ;;  %v253_v14 = vld [vmem:[%s343_s1 + $0x60] ss:$8 sps:$4 sm:$0xff]   ;;  %v254_v15 = vld [vmem:[%s343_s1 + $0x74] ss:$8 sps:$4 sm:$0xff]  }
   0x6   :  { %v256_v16 = vld [vmem:[%s343_s1 + $0x70] ss:$8 sps:$4 sm:$0xff]   ;;  %v26_v17 = vld [vmem:[%s344_s0] sm:$0xf]  ;;  %v176_v19 = vshrl.u32 %v175_v18, 7 }
   0x7   :  { %126 = vmatpush1.bf16.msra.mxu0 %v238_v4  ;;  %v173_v21 = vld [vmem:[%s345_s2] sm:$0x3] }
   0x8   :  { %127 = vmatprep.subr.bf16.mxu0 %v239_v5  ;;  %v177_v20 = vsub.s32 0, %v176_v19  ;;  %v181_v22 = vsub.s32 1, %v176_v19  ;;  %v187_v23 = vld [vmem:[%s346_s3] sm:$0x3] }
   0xa   :  { %v178_v24 = vrot.slane %v173_v21, %v177_v20  ;;  %v182_v25 = vrot.slane %v173_v21, %v181_v22  ;;  %v192_v26 = vrot.slane %v187_v23, %v177_v20  ;;  %v196_v28 = vrot.slane %v187_v23, %v181_v22 }
   0xb   :  { %128 = vmatpush1.bf16.msra.mxu0 %v241_v6 }
   0xc   :  { %129 = vmatprep.subr.bf16.mxu0 %v242_v7 }
   0xf   :  { %130 = vmatpush1.bf16.msra.mxu0 %v244_v8 }
  0x10   :  { %131 = vmatprep.subr.bf16.mxu0 %v245_v9 }
  0x13   :  { %132 = vmatpush1.bf16.msra.mxu0 %v247_v10 }
  0x14   :  { %133 = vmatprep.subr.bf16.mxu0 %v248_v11 }
  0x17   :  { %134 = vmatpush1.bf16.msra.mxu0 %v250_v12 }
  0x18   :  { %135 = vmatprep.subr.bf16.mxu0 %v251_v13 }
  0x1b   :  { %136 = vmatpush1.bf16.msra.mxu0 %v253_v14 }
  0x1c   :  { %137 = vmatprep.subr.bf16.mxu0 %v254_v15 }
  0x1f   :  { %138 = vmatpush1.bf16.msra.mxu0 %v256_v16 }
  0x22   :  { %156 = vmatmul.mubr.bf16.vlgmr.msra.gmra.mrb[0].mxu0 %v26_v17 }
  0xf5   :  { %v157_v27 = vpop.f32.mrb[0].mxu0 }
  0xf6   :  { %v185_v29 = vmul.f32 %v178_v24, %v157_v27  ;;  %v159_v30 = vpop.f32.mrb[1].mxu0 }
  0xf7   :  { %v186_v31 = vmul.f32 %v182_v25, %v159_v30  ;;  %v161_v32 = vpop.f32.mrb[2].mxu0 }
  0xf8   :  { %v199_v33 = vadd.f32 %v192_v26, %v185_v29  ;;  %v162_v34 = vpop.f32.mrb[3].mxu0 }
  0xf9   :  { %v200_v35 = vadd.f32 %v196_v28, %v186_v31 }
  0xfb   :  { %v231_v36 = vpack.c.bf16 %v200_v35, %v199_v33 }
  0xfd   :  { %209 = vst [vmem:[%s347_s4] sm:$0xff] %v231_v36 }

// kernel: resnet18_binary_forward.35
= control target key start
LH: loop header
LB: loop body
LE: loop exit
PB: predicated region body
PF: predicated region fallthrough
CT: control target
= control target key end

     0   :  { %s1202_s18 = smov 0   ;;  %s1204_s19 = smov 0   ;;  %s1323_s0 = inlined_call_operand.vmem [shape: bf16[8,2560], index: 0, kind: input, shape index: {}]   ;;  %s1324_s1 = inlined_call_operand.vmem [shape: bf16[2560,256], index: 1, kind: input, shape index: {}]   ;;  %s1325_s2 = inlined_call_operand.vmem [shape: f32[1,256], index: 2, kind: input, shape index: {}]   ;;  %s1326_s3 = inlined_call_operand.vmem [shape: f32[1,256], index: 3, kind: input, shape index: {}]   ;;  %s1327_s4 = inlined_call_operand.vmem [shape: bf16[8,256], index: 4, kind: input, shape index: {}]   ;;  %s1328_s5 = inlined_call_operand.vmem [shape: bf16[8,256], index: 5, kind: output, shape index: {}]  }
   0x1   :  { %s1206_s20 = smov 0  }
   0x2 LB: > { %s24_s21 = sadd.s32 1, %s1165_s19  ;;  %p940_p0 = scmp.ge.s32.totalorder %s1169_s20, 1  ;;  %s1169_s20 = sphi %s1206_s20, %s15_s20   ;;  %s1165_s19 = sphi %s1204_s19, %s1330_s19   ;;  %s1161_s18 = sphi %s1202_s18, %s1329_s18  }
   0x3   : > { %p25_p1 = scmp.ge.s32.totalorder %s24_s21, 5  ;;  %p228_p2 = scmp.lt.s32.totalorder %s1169_s20, 6 }
   0x5   : > { %s1332_s21 = smov (%p25_p1, %s24_s21), 0  ;;  %p229_p3 = pnand %p940_p0, %p228_p2 }
   0x6   : > { %s941_s22 = sshll.u32 (!%p229_p3), %s1161_s18, 2  ;;  %s943_s23 = sshll.u32 (!%p229_p3), %s1161_s18, 6 }
   0x7   : > { %232 = sbr.rel (%p229_p3) target bundleno = 326 (0x146), region = 40  ;;  %p274_p4 = scmp.lt.s32.totalorder (!%p229_p3), %s941_s22, 19 }
   0x8   : > { %p282_p5 = scmp.lt.s32.totalorder (!%p229_p3), %s943_s23, 319  ;;  %p946_p6 = scmp.ne.s32.totalorder (!%p229_p3), %s1161_s18, 0 }
   0xe   : > { %s1334_s22 = smov (!%p274_p4, %s941_s22), 19  ;;  %s1336_s23 = smov (!%p282_p5, %s943_s23), 319 }
   0xf   : > { %s942_s24 = sshll.u32 %s1334_s22, 2  ;;  %s1020_s28 = sshll.u32 %s1336_s23, 3  ;;  %v1171_v0 = vmov (!%p946_p6), 0.0  }
  0x10   : > { %s1227_s27 = scalar_lea.vmem %s1323_s0, %s942_s24  ;;  %s1232_s6 = scalar_lea.vmem %s1324_s1, %s1020_s28  ;;  %302 = vst [vmem:[#allocation2] sm:$0xff] (!%p946_p6), %v1171_v0  ;;  %303 = vst [vmem:[#allocation2 + $0x8] sm:$0xff] (!%p946_p6), %v1171_v0 }
  0x11   : > { %301 = sbr.rel (%p946_p6) target bundleno = 24 (0x18), region = 44 }
  0x18 PF: > { %v1047_v1 = vld [vmem:[%s1232_s6 + $0x4] ss:$8 sps:$4 sm:$0xff]   ;;  %v1051_v3 = vld [vmem:[%s1232_s6] ss:$8 sps:$4 sm:$0xff]   ;;  %v1053_v5 = vld [vmem:[%s1232_s6 + $0x14] ss:$8 sps:$4 sm:$0xff]  }
  0x19   : > { %v1049_v2 = vld [vmem:[%s1232_s6 + $0x104] ss:$8 sps:$4 sm:$0xff]   ;;  %706 = vmatprep.subr.bf16.mxu0 %v1047_v1  ;;  %v1052_v4 = vld [vmem:[%s1232_s6 + $0x100] ss:$8 sps:$4 sm:$0xff]   ;;  %v1055_v6 = vld [vmem:[%s1232_s6 + $0x114] ss:$8 sps:$4 sm:$0xff]  }
  0x1a   : > { %747 = vmatprep.subr.bf16.mxu1 %v1049_v2  ;;  %707 = vmatpush1.bf16.msra.mxu0 %v1051_v3  ;;  %v1057_v7 = vld [vmem:[%s1232_s6 + $0x10] ss:$8 sps:$4 sm:$0xff]   ;;  %v1059_v9 = vld [vmem:[%s1232_s6 + $0x24] ss:$8 sps:$4 sm:$0xff]   ;;  %v1063_v11 = vld [vmem:[%s1232_s6 + $0x20] ss:$8 sps:$4 sm:$0xff]  }
  0x1b   : > { %748 = vmatpush1.bf16.msra.mxu1 %v1052_v4  ;;  %708 = vmatprep.subr.bf16.mxu0 %v1053_v5  ;;  %v1058_v8 = vld [vmem:[%s1232_s6 + $0x110] ss:$8 sps:$4 sm:$0xff]   ;;  %v1061_v10 = vld [vmem:[%s1232_s6 + $0x124] ss:$8 sps:$4 sm:$0xff]   ;;  %v1064_v12 = vld [vmem:[%s1232_s6 + $0x120] ss:$8 sps:$4 sm:$0xff]  }
  0x1c   : > { %749 = vmatprep.subr.bf16.mxu1 %v1055_v6  ;;  %v1065_v13 = vld [vmem:[%s1232_s6 + $0x34] ss:$8 sps:$4 sm:$0xff]   ;;  %v1069_v15 = vld [vmem:[%s1232_s6 + $0x30] ss:$8 sps:$4 sm:$0xff]   ;;  %v1071_v17 = vld [vmem:[%s1232_s6 + $0x44] ss:$8 sps:$4 sm:$0xff]  }
  0x1d   : > { %v1067_v14 = vld [vmem:[%s1232_s6 + $0x134] ss:$8 sps:$4 sm:$0xff]   ;;  %v1070_v16 = vld [vmem:[%s1232_s6 + $0x130] ss:$8 sps:$4 sm:$0xff]   ;;  %v1073_v18 = vld [vmem:[%s1232_s6 + $0x144] ss:$8 sps:$4 sm:$0xff]  }
  0x1e   : > { %709 = vmatpush1.bf16.msra.mxu0 %v1057_v7  ;;  %v1075_v19 = vld [vmem:[%s1232_s6 + $0x40] ss:$8 sps:$4 sm:$0xff]   ;;  %v1077_v21 = vld [vmem:[%s1232_s6 + $0x54] ss:$8 sps:$4 sm:$0xff]   ;;  %v1081_v23 = vld [vmem:[%s1232_s6 + $0x50] ss:$8 sps:$4 sm:$0xff]  }
  0x1f   : > { %750 = vmatpush1.bf16.msra.mxu1 %v1058_v8  ;;  %710 = vmatprep.subr.bf16.mxu0 %v1059_v9  ;;  %v1076_v20 = vld [vmem:[%s1232_s6 + $0x140] ss:$8 sps:$4 sm:$0xff]   ;;  %v1079_v22 = vld [vmem:[%s1232_s6 + $0x154] ss:$8 sps:$4 sm:$0xff]   ;;  %v1082_v24 = vld [vmem:[%s1232_s6 + $0x150] ss:$8 sps:$4 sm:$0xff]  }
  0x20   : > { %751 = vmatprep.subr.bf16.mxu1 %v1061_v10  ;;  %v1083_v25 = vld [vmem:[%s1232_s6 + $0x64] ss:$8 sps:$4 sm:$0xff]   ;;  %v1087_v27 = vld [vmem:[%s1232_s6 + $0x60] ss:$8 sps:$4 sm:$0xff]   ;;  %v1089_v29 = vld [vmem:[%s1232_s6 + $0x74] ss:$8 sps:$4 sm:$0xff]  }
  0x21   : > { %v1085_v26 = vld [vmem:[%s1232_s6 + $0x164] ss:$8 sps:$4 sm:$0xff]   ;;  %v1088_v28 = vld [vmem:[%s1232_s6 + $0x160] ss:$8 sps:$4 sm:$0xff]   ;;  %v1091_v30 = vld [vmem:[%s1232_s6 + $0x174] ss:$8 sps:$4 sm:$0xff]  }
  0x22   : > { %711 = vmatpush1.bf16.msra.mxu0 %v1063_v11  ;;  %v1093_v31 = vld [vmem:[%s1232_s6 + $0x70] ss:$8 sps:$4 sm:$0xff]   ;;  %v1095_v33 = vld [vmem:[%s1232_s6 + $0x84] ss:$8 sps:$4 sm:$0xff]   ;;  %v1099_v35 = vld [vmem:[%s1232_s6 + $0x80] ss:$8 sps:$4 sm:$0xff]  }
  0x23   : > { %752 = vmatpush1.bf16.msra.mxu1 %v1064_v12  ;;  %712 = vmatprep.subr.bf16.mxu0 %v1065_v13  ;;  %v1094_v32 = vld [vmem:[%s1232_s6 + $0x170] ss:$8 sps:$4 sm:$0xff]   ;;  %v1097_v34 = vld [vmem:[%s1232_s6 + $0x184] ss:$8 sps:$4 sm:$0xff]   ;;  %v1100_v36 = vld [vmem:[%s1232_s6 + $0x180] ss:$8 sps:$4 sm:$0xff]  }
  0x24   : > { %753 = vmatprep.subr.bf16.mxu1 %v1067_v14  ;;  %v1101_v37 = vld [vmem:[%s1232_s6 + $0x94] ss:$8 sps:$4 sm:$0xff]   ;;  %v1105_v39 = vld [vmem:[%s1232_s6 + $0x90] ss:$8 sps:$4 sm:$0xff]   ;;  %v1107_v41 = vld [vmem:[%s1232_s6 + $0xa4] ss:$8 sps:$4 sm:$0xff]  }
  0x25   : > { %v1103_v38 = vld [vmem:[%s1232_s6 + $0x194] ss:$8 sps:$4 sm:$0xff]   ;;  %v1106_v40 = vld [vmem:[%s1232_s6 + $0x190] ss:$8 sps:$4 sm:$0xff]   ;;  %v1109_v42 = vld [vmem:[%s1232_s6 + $0x1a4] ss:$8 sps:$4 sm:$0xff]  }
  0x26   : > { %713 = vmatpush1.bf16.msra.mxu0 %v1069_v15  ;;  %v1111_v43 = vld [vmem:[%s1232_s6 + $0xa0] ss:$8 sps:$4 sm:$0xff]   ;;  %v1113_v45 = vld [vmem:[%s1232_s6 + $0xb4] ss:$8 sps:$4 sm:$0xff]   ;;  %v1117_v50 = vld [vmem:[%s1232_s6 + $0xb0] ss:$8 sps:$4 sm:$0xff]  }
  0x27   : > { %754 = vmatpush1.bf16.msra.mxu1 %v1070_v16  ;;  %714 = vmatprep.subr.bf16.mxu0 %v1071_v17  ;;  %v1112_v44 = vld [vmem:[%s1232_s6 + $0x1a0] ss:$8 sps:$4 sm:$0xff]   ;;  %v1115_v46 = vld [vmem:[%s1232_s6 + $0x1b4] ss:$8 sps:$4 sm:$0xff]   ;;  %v1118_v51 = vld [vmem:[%s1232_s6 + $0x1b0] ss:$8 sps:$4 sm:$0xff]  }
  0x28   : > { %755 = vmatprep.subr.bf16.mxu1 %v1073_v18  ;;  %v306_v47 = vld [vmem:[%s1227_s27] sm:$0xff]  ;;  %v307_v49 = vld [vmem:[%s1227_s27 + $0x8] sm:$0xff]  ;;  %v1125_v57 = vld [vmem:[%s1232_s6 + $0xd4] ss:$8 sps:$4 sm:$0xff]   ;;  %p1015_p7 = scmp.ne.s32.totalorder %s1161_s18, 4 }
  0x29   : > { %v948_v48 = vcombine.high %v306_v47, %v306_v47  ;;  %v950_v52 = vcombine.high %v307_v49, %v307_v49  ;;  %v1119_v53 = vld [vmem:[%s1232_s6 + $0xc4] ss:$8 sps:$4 sm:$0xff]   ;;  %v1123_v55 = vld [vmem:[%s1232_s6 + $0xc0] ss:$8 sps:$4 sm:$0xff]   ;;  %v1127_v58 = vld [vmem:[%s1232_s6 + $0x1d4] ss:$8 sps:$4 sm:$0xff]   ;;  %v947_v5 = vcombine.low %v306_v47, %v306_v47  ;;  %v949_v6 = vcombine.low %v307_v49, %v307_v49 }
  0x2a   : > { %715 = vmatpush1.bf16.msra.mxu0 %v1075_v19  ;;  %v1121_v54 = vld [vmem:[%s1232_s6 + $0x1c4] ss:$8 sps:$4 sm:$0xff]   ;;  %v1124_v56 = vld [vmem:[%s1232_s6 + $0x1c0] ss:$8 sps:$4 sm:$0xff]   ;;  %v1129_v59 = vld [vmem:[%s1232_s6 + $0xd0] ss:$8 sps:$4 sm:$0xff]  }
  0x2b   : > { %756 = vmatpush1.bf16.msra.mxu1 %v1076_v20  ;;  %716 = vmatprep.subr.bf16.mxu0 %v1077_v21  ;;  %v1130_v60 = vld [vmem:[%s1232_s6 + $0x1d0] ss:$8 sps:$4 sm:$0xff]   ;;  %v1131_v61 = vld [vmem:[%s1232_s6 + $0xe4] ss:$8 sps:$4 sm:$0xff]   ;;  %v1135_v63 = vld [vmem:[%s1232_s6 + $0xe0] ss:$8 sps:$4 sm:$0xff]   ;;  %v800_v21 = vlaneseq (!%p1015_p7) }
  0x2c   : > { %757 = vmatprep.subr.bf16.mxu1 %v1079_v22  ;;  %738 = vmatprep.mubr.bf16.mxu0 %v948_v48  ;;  %v1133_v62 = vld [vmem:[%s1232_s6 + $0x1e4] ss:$8 sps:$4 sm:$0xff]   ;;  %v1136_v0 = vld [vmem:[%s1232_s6 + $0x1e0] ss:$8 sps:$4 sm:$0xff]   ;;  %v1137_v1 = vld [vmem:[%s1232_s6 + $0xf4] ss:$8 sps:$4 sm:$0xff]  }
  0x2d   : > { %779 = vmatprep.mubr.bf16.mxu1 %v950_v52  ;;  %v1139_v2 = vld [vmem:[%s1232_s6 + $0x1f4] ss:$8 sps:$4 sm:$0xff]   ;;  %v1141_v3 = vld [vmem:[%s1232_s6 + $0xf0] ss:$8 sps:$4 sm:$0xff]   ;;  %v304_v8 = vld [vmem:[#allocation2] sm:$0xff]  ;;  %v801_v22 = vshrl.u32 (!%p1015_p7), %v800_v21, 7 }
  0x2e   : > { %717 = vmatpush1.bf16.msra.mxu0 %v1081_v23  ;;  %v1142_v4 = vld [vmem:[%s1232_s6 + $0x1f0] ss:$8 sps:$4 sm:$0xff]   ;;  %v305_v12 = vld [vmem:[#allocation2 + $0x8] sm:$0xff]  ;;  %v798_v23 = vld [vmem:[%s1325_s2] sm:$0x3] (!%p1015_p7) }
  0x2f   : > { %758 = vmatpush1.bf16.msra.mxu1 %v1082_v24  ;;  %718 = vmatprep.subr.bf16.mxu0 %v1083_v25  ;;  %v812_v24 = vld [vmem:[%s1326_s3] sm:$0x3] (!%p1015_p7)  ;;  %v802_v25 = vsub.s32 (!%p1015_p7), 0, %v801_v22 }
  0x30   : > { %759 = vmatprep.subr.bf16.mxu1 %v1085_v26  ;;  %v806_v26 = vsub.s32 (!%p1015_p7), 1, %v801_v22 }
  0x32   : > { %719 = vmatpush1.bf16.msra.mxu0 %v1087_v27 }
  0x33   : > { %760 = vmatpush1.bf16.msra.mxu1 %v1088_v28  ;;  %720 = vmatprep.subr.bf16.mxu0 %v1089_v29  ;;  %v826_v29 = vld [vmem:[%s1327_s4] sm:$0xff] (!%p1015_p7) }
  0x34   : > { %761 = vmatprep.subr.bf16.mxu1 %v1091_v30  ;;  %v803_v30 = vrot.slane (!%p1015_p7), %v798_v23, %v802_v25 }
  0x36   : > { %721 = vmatpush1.bf16.msra.mxu0 %v1093_v31  ;;  %v807_v31 = vrot.slane (!%p1015_p7), %v798_v23, %v806_v26 }
  0x37   : > { %762 = vmatpush1.bf16.msra.mxu1 %v1094_v32  ;;  %722 = vmatprep.subr.bf16.mxu0 %v1095_v33  ;;  %v817_v32 = vrot.slane (!%p1015_p7), %v812_v24, %v802_v25  ;;  %v821_v33 = vrot.slane (!%p1015_p7), %v812_v24, %v806_v26 }
  0x38   : > { %763 = vmatprep.subr.bf16.mxu1 %v1097_v34 }
  0x3a   : > { %723 = vmatpush1.bf16.msra.mxu0 %v1099_v35 }
  0x3b   : > { %764 = vmatpush1.bf16.msra.mxu1 %v1100_v36  ;;  %724 = vmatprep.subr.bf16.mxu0 %v1101_v37  ;;  %v827_v36 = vunpack.c.l.bf16 (!%p1015_p7), %v826_v29  ;;  %v828_v37 = vunpack.c.h.bf16 (!%p1015_p7), %v826_v29 }
  0x3c   : > { %765 = vmatprep.subr.bf16.mxu1 %v1103_v38 }
  0x3e   : > { %725 = vmatpush1.bf16.msra.mxu0 %v1105_v39 }
  0x3f   : > { %766 = vmatpush1.bf16.msra.mxu1 %v1106_v40  ;;  %726 = vmatprep.subr.bf16.mxu0 %v1107_v41 }
  0x40   : > { %767 = vmatprep.subr.bf16.mxu1 %v1109_v42 }
  0x42   : > { %727 = vmatpush1.bf16.msra.mxu0 %v1111_v43 }
  0x43   : > { %768 = vmatpush1.bf16.msra.mxu1 %v1112_v44  ;;  %728 = vmatprep.subr.bf16.mxu0 %v1113_v45 }
  0x44   : > { %769 = vmatprep.subr.bf16.mxu1 %v1115_v46 }
  0x46   : > { %729 = vmatpush1.bf16.msra.mxu0 %v1117_v50 }
  0x47   : > { %770 = vmatpush1.bf16.msra.mxu1 %v1118_v51  ;;  %730 = vmatprep.subr.bf16.mxu0 %v1119_v53 }
  0x48   : > { %771 = vmatprep.subr.bf16.mxu1 %v1121_v54 }
  0x4a   : > { %731 = vmatpush1.bf16.msra.mxu0 %v1123_v55 }
  0x4b   : > { %772 = vmatpush1.bf16.msra.mxu1 %v1124_v56  ;;  %732 = vmatprep.subr.bf16.mxu0 %v1125_v57 }
  0x4c   : > { %773 = vmatprep.subr.bf16.mxu1 %v1127_v58 }
  0x4e   : > { %733 = vmatpush1.bf16.msra.mxu0 %v1129_v59 }
  0x4f   : > { %774 = vmatpush1.bf16.msra.mxu1 %v1130_v60  ;;  %734 = vmatprep.subr.bf16.mxu0 %v1131_v61 }
  0x50   : > { %775 = vmatprep.subr.bf16.mxu1 %v1133_v62 }
  0x52   : > { %735 = vmatpush1.bf16.msra.mxu0 %v1135_v63 }
  0x53   : > { %776 = vmatpush1.bf16.msra.mxu1 %v1136_v0  ;;  %736 = vmatprep.subr.bf16.mxu0 %v1137_v1 }
  0x54   : > { %777 = vmatprep.subr.bf16.mxu1 %v1139_v2 }
  0x56   : > { %737 = vmatpush1.bf16.msra.mxu0 %v1141_v3 }
  0x57   : > { %778 = vmatpush1.bf16.msra.mxu1 %v1142_v4 }
  0x59   : > { %739 = vmatmul.mubr.bf16.vlgmr.msra.gmra.mrb[0].mxu0 %v947_v5 }
  0x5a   : > { %780 = vmatmul.mubr.bf16.vlgmr.msra.gmra.mrb[0].mxu1 %v949_v6 }
 0x12c   : > { %v740_v7 = vpop.f32.mrb[0].mxu0 }
 0x12d   : > { %v781_v9 = vpop.f32.mrb[0].mxu1  ;;  %v742_v11 = vpop.f32.mrb[1].mxu0  ;;  %795 = sbr.rel (%p1015_p7) target bundleno = 326 (0x146), region = 48 }
 0x12e   : > { %v782_v10 = vadd.f32 %v781_v9, %v740_v7  ;;  %v783_v13 = vpop.f32.mrb[1].mxu1  ;;  %v744_v15 = vpop.f32.mrb[2].mxu0 }
 0x12f   : > { %v784_v14 = vadd.f32 %v783_v13, %v742_v11  ;;  %v785_v16 = vpop.f32.mrb[2].mxu1  ;;  %v745_v18 = vpop.f32.mrb[3].mxu0 }
 0x130   : > { %v788_v17 = vadd.f32 %v782_v10, %v304_v8  ;;  %v786_v19 = vpop.f32.mrb[3].mxu1 }
 0x131   : > { %v789_v20 = vadd.f32 %v784_v14, %v305_v12 }
 0x132   : > { %790 = vst [vmem:[#allocation2] sm:$0xff] %v788_v17 }
 0x133   : > { %791 = vst [vmem:[#allocation2 + $0x8] sm:$0xff] %v789_v20 }
 0x139   : > { %v796_v27 = vld [vmem:[#allocation2] sm:$0xff] }
 0x13a   : > { %v797_v28 = vld [vmem:[#allocation2 + $0x8] sm:$0xff]  ;;  %v810_v34 = vmul.f32 %v803_v30, %v796_v27 }
 0x13b   : > { %v811_v35 = vmul.f32 %v807_v31, %v797_v28 }
 0x13c   : > { %v824_v38 = vadd.f32 %v817_v32, %v810_v34 }
 0x13d   : > { %v825_v39 = vadd.f32 %v821_v33, %v811_v35 }
 0x13e   : > { %v829_v40 = vadd.f32 %v827_v36, %v824_v38 }
 0x13f   : > { %v830_v41 = vadd.f32 %v828_v37, %v825_v39 }
 0x140   : > { %v831_v42 = vmax.f32 %v829_v40, 0.0 }
 0x141   : > { %v832_v43 = vmax.f32 %v830_v41, 0.0 }
 0x143   : > { %v1021_v44 = vpack.c.bf16 %v832_v43, %v831_v42 }
 0x145   : > { %841 = vst [vmem:[%s1328_s5] sm:$0xff] %v1021_v44 }
 0x146 PF: > { %s15_s20 = sadd.s32 1, %s1169_s20   ;;  %s1329_s18 = smov %s1165_s19 }
 0x147   : > { %p12_p8 = scmp.ge.s32.totalorder %s15_s20, 7   ;;  %s1330_s19 = smov %s1332_s21 }
 0x149   :  { %14 = sbr.rel (!%p12_p8) target bundleno = 2 (0x2), region = 84 }

// kernel: resnet18_binary_forward.36
= control target key start
LH: loop header
LB: loop body
LE: loop exit
PB: predicated region body
PF: predicated region fallthrough
CT: control target
= control target key end

     0   :  { %s1129_s15 = smov 0   ;;  %s1131_s16 = smov 0   ;;  %s1247_s0 = inlined_call_operand.vmem [shape: bf16[8,2560], index: 0, kind: input, shape index: {}]   ;;  %s1248_s1 = inlined_call_operand.vmem [shape: bf16[2560,256], index: 1, kind: input, shape index: {}]   ;;  %s1249_s2 = inlined_call_operand.vmem [shape: f32[1,256], index: 2, kind: input, shape index: {}]   ;;  %s1250_s3 = inlined_call_operand.vmem [shape: f32[1,256], index: 3, kind: input, shape index: {}]   ;;  %s1251_s4 = inlined_call_operand.vmem [shape: bf16[8,256], index: 4, kind: output, shape index: {}]  }
   0x1   :  { %s1133_s17 = smov 0  }
   0x2 LB: > { %s23_s18 = sadd.s32 1, %s1097_s16  ;;  %p872_p0 = scmp.ge.s32.totalorder %s1101_s17, 1  ;;  %s1101_s17 = sphi %s1133_s17, %s14_s17   ;;  %s1097_s16 = sphi %s1131_s16, %s1253_s16   ;;  %s1093_s15 = sphi %s1129_s15, %s1252_s15  }
   0x3   : > { %p24_p1 = scmp.ge.s32.totalorder %s23_s18, 5  ;;  %p193_p2 = scmp.lt.s32.totalorder %s1101_s17, 6 }
   0x5   : > { %s1255_s18 = smov (%p24_p1, %s23_s18), 0  ;;  %p194_p3 = pnand %p872_p0, %p193_p2 }
   0x6   : > { %s873_s19 = sshll.u32 (!%p194_p3), %s1093_s15, 2  ;;  %s875_s20 = sshll.u32 (!%p194_p3), %s1093_s15, 6 }
   0x7   : > { %197 = sbr.rel (%p194_p3) target bundleno = 324 (0x144), region = 36  ;;  %p232_p4 = scmp.lt.s32.totalorder (!%p194_p3), %s873_s19, 19 }
   0x8   : > { %p240_p5 = scmp.lt.s32.totalorder (!%p194_p3), %s875_s20, 319  ;;  %p878_p6 = scmp.ne.s32.totalorder (!%p194_p3), %s1093_s15, 0 }
   0xe   : > { %s1257_s19 = smov (!%p232_p4, %s873_s19), 19  ;;  %s1259_s20 = smov (!%p240_p5, %s875_s20), 319 }
   0xf   : > { %s874_s21 = sshll.u32 %s1257_s19, 2  ;;  %s952_s25 = sshll.u32 %s1259_s20, 3  ;;  %v1103_v0 = vmov (!%p878_p6), 0.0  }
  0x10   : > { %s1154_s24 = scalar_lea.vmem %s1247_s0, %s874_s21  ;;  %s1159_s28 = scalar_lea.vmem %s1248_s1, %s952_s25  ;;  %255 = vst [vmem:[#allocation2] sm:$0xff] (!%p878_p6), %v1103_v0  ;;  %256 = vst [vmem:[#allocation2 + $0x8] sm:$0xff] (!%p878_p6), %v1103_v0 }
  0x11   : > { %254 = sbr.rel (%p878_p6) target bundleno = 24 (0x18), region = 40 }
  0x18 PF: > { %v979_v1 = vld [vmem:[%s1159_s28 + $0x4] ss:$8 sps:$4 sm:$0xff]   ;;  %v983_v3 = vld [vmem:[%s1159_s28] ss:$8 sps:$4 sm:$0xff]   ;;  %v985_v5 = vld [vmem:[%s1159_s28 + $0x14] ss:$8 sps:$4 sm:$0xff]  }
  0x19   : > { %v981_v2 = vld [vmem:[%s1159_s28 + $0x104] ss:$8 sps:$4 sm:$0xff]   ;;  %659 = vmatprep.subr.bf16.mxu0 %v979_v1  ;;  %v984_v4 = vld [vmem:[%s1159_s28 + $0x100] ss:$8 sps:$4 sm:$0xff]   ;;  %v987_v6 = vld [vmem:[%s1159_s28 + $0x114] ss:$8 sps:$4 sm:$0xff]  }
  0x1a   : > { %700 = vmatprep.subr.bf16.mxu1 %v981_v2  ;;  %660 = vmatpush1.bf16.msra.mxu0 %v983_v3  ;;  %v989_v7 = vld [vmem:[%s1159_s28 + $0x10] ss:$8 sps:$4 sm:$0xff]   ;;  %v991_v9 = vld [vmem:[%s1159_s28 + $0x24] ss:$8 sps:$4 sm:$0xff]   ;;  %v995_v11 = vld [vmem:[%s1159_s28 + $0x20] ss:$8 sps:$4 sm:$0xff]  }
  0x1b   : > { %701 = vmatpush1.bf16.msra.mxu1 %v984_v4  ;;  %661 = vmatprep.subr.bf16.mxu0 %v985_v5  ;;  %v990_v8 = vld [vmem:[%s1159_s28 + $0x110] ss:$8 sps:$4 sm:$0xff]   ;;  %v993_v10 = vld [vmem:[%s1159_s28 + $0x124] ss:$8 sps:$4 sm:$0xff]   ;;  %v996_v12 = vld [vmem:[%s1159_s28 + $0x120] ss:$8 sps:$4 sm:$0xff]  }
  0x1c   : > { %702 = vmatprep.subr.bf16.mxu1 %v987_v6  ;;  %v997_v13 = vld [vmem:[%s1159_s28 + $0x34] ss:$8 sps:$4 sm:$0xff]   ;;  %v1001_v15 = vld [vmem:[%s1159_s28 + $0x30] ss:$8 sps:$4 sm:$0xff]   ;;  %v1003_v17 = vld [vmem:[%s1159_s28 + $0x44] ss:$8 sps:$4 sm:$0xff]  }
  0x1d   : > { %v999_v14 = vld [vmem:[%s1159_s28 + $0x134] ss:$8 sps:$4 sm:$0xff]   ;;  %v1002_v16 = vld [vmem:[%s1159_s28 + $0x130] ss:$8 sps:$4 sm:$0xff]   ;;  %v1005_v18 = vld [vmem:[%s1159_s28 + $0x144] ss:$8 sps:$4 sm:$0xff]  }
  0x1e   : > { %662 = vmatpush1.bf16.msra.mxu0 %v989_v7  ;;  %v1007_v19 = vld [vmem:[%s1159_s28 + $0x40] ss:$8 sps:$4 sm:$0xff]   ;;  %v1009_v21 = vld [vmem:[%s1159_s28 + $0x54] ss:$8 sps:$4 sm:$0xff]   ;;  %v1013_v23 = vld [vmem:[%s1159_s28 + $0x50] ss:$8 sps:$4 sm:$0xff]  }
  0x1f   : > { %703 = vmatpush1.bf16.msra.mxu1 %v990_v8  ;;  %663 = vmatprep.subr.bf16.mxu0 %v991_v9  ;;  %v1008_v20 = vld [vmem:[%s1159_s28 + $0x140] ss:$8 sps:$4 sm:$0xff]   ;;  %v1011_v22 = vld [vmem:[%s1159_s28 + $0x154] ss:$8 sps:$4 sm:$0xff]   ;;  %v1014_v24 = vld [vmem:[%s1159_s28 + $0x150] ss:$8 sps:$4 sm:$0xff]  }
  0x20   : > { %704 = vmatprep.subr.bf16.mxu1 %v993_v10  ;;  %v1015_v25 = vld [vmem:[%s1159_s28 + $0x64] ss:$8 sps:$4 sm:$0xff]   ;;  %v1019_v27 = vld [vmem:[%s1159_s28 + $0x60] ss:$8 sps:$4 sm:$0xff]   ;;  %v1021_v29 = vld [vmem:[%s1159_s28 + $0x74] ss:$8 sps:$4 sm:$0xff]  }
  0x21   : > { %v1017_v26 = vld [vmem:[%s1159_s28 + $0x164] ss:$8 sps:$4 sm:$0xff]   ;;  %v1020_v28 = vld [vmem:[%s1159_s28 + $0x160] ss:$8 sps:$4 sm:$0xff]   ;;  %v1023_v30 = vld [vmem:[%s1159_s28 + $0x174] ss:$8 sps:$4 sm:$0xff]  }
  0x22   : > { %664 = vmatpush1.bf16.msra.mxu0 %v995_v11  ;;  %v1025_v31 = vld [vmem:[%s1159_s28 + $0x70] ss:$8 sps:$4 sm:$0xff]   ;;  %v1027_v33 = vld [vmem:[%s1159_s28 + $0x84] ss:$8 sps:$4 sm:$0xff]   ;;  %v1031_v35 = vld [vmem:[%s1159_s28 + $0x80] ss:$8 sps:$4 sm:$0xff]  }
  0x23   : > { %705 = vmatpush1.bf16.msra.mxu1 %v996_v12  ;;  %665 = vmatprep.subr.bf16.mxu0 %v997_v13  ;;  %v1026_v32 = vld [vmem:[%s1159_s28 + $0x170] ss:$8 sps:$4 sm:$0xff]   ;;  %v1029_v34 = vld [vmem:[%s1159_s28 + $0x184] ss:$8 sps:$4 sm:$0xff]   ;;  %v1032_v36 = vld [vmem:[%s1159_s28 + $0x180] ss:$8 sps:$4 sm:$0xff]  }
  0x24   : > { %706 = vmatprep.subr.bf16.mxu1 %v999_v14  ;;  %v1033_v37 = vld [vmem:[%s1159_s28 + $0x94] ss:$8 sps:$4 sm:$0xff]   ;;  %v1037_v39 = vld [vmem:[%s1159_s28 + $0x90] ss:$8 sps:$4 sm:$0xff]   ;;  %v1039_v41 = vld [vmem:[%s1159_s28 + $0xa4] ss:$8 sps:$4 sm:$0xff]  }
  0x25   : > { %v1035_v38 = vld [vmem:[%s1159_s28 + $0x194] ss:$8 sps:$4 sm:$0xff]   ;;  %v1038_v40 = vld [vmem:[%s1159_s28 + $0x190] ss:$8 sps:$4 sm:$0xff]   ;;  %v1041_v42 = vld [vmem:[%s1159_s28 + $0x1a4] ss:$8 sps:$4 sm:$0xff]  }
  0x26   : > { %666 = vmatpush1.bf16.msra.mxu0 %v1001_v15  ;;  %v1043_v43 = vld [vmem:[%s1159_s28 + $0xa0] ss:$8 sps:$4 sm:$0xff]   ;;  %v1045_v45 = vld [vmem:[%s1159_s28 + $0xb4] ss:$8 sps:$4 sm:$0xff]   ;;  %v1049_v50 = vld [vmem:[%s1159_s28 + $0xb0] ss:$8 sps:$4 sm:$0xff]  }
  0x27   : > { %707 = vmatpush1.bf16.msra.mxu1 %v1002_v16  ;;  %667 = vmatprep.subr.bf16.mxu0 %v1003_v17  ;;  %v1044_v44 = vld [vmem:[%s1159_s28 + $0x1a0] ss:$8 sps:$4 sm:$0xff]   ;;  %v1047_v46 = vld [vmem:[%s1159_s28 + $0x1b4] ss:$8 sps:$4 sm:$0xff]   ;;  %v1050_v51 = vld [vmem:[%s1159_s28 + $0x1b0] ss:$8 sps:$4 sm:$0xff]  }
  0x28   : > { %708 = vmatprep.subr.bf16.mxu1 %v1005_v18  ;;  %v259_v47 = vld [vmem:[%s1154_s24] sm:$0xff]  ;;  %v260_v49 = vld [vmem:[%s1154_s24 + $0x8] sm:$0xff]  ;;  %v1057_v57 = vld [vmem:[%s1159_s28 + $0xd4] ss:$8 sps:$4 sm:$0xff]   ;;  %p947_p7 = scmp.ne.s32.totalorder %s1093_s15, 4 }
  0x29   : > { %v880_v48 = vcombine.high %v259_v47, %v259_v47  ;;  %v882_v52 = vcombine.high %v260_v49, %v260_v49  ;;  %v1051_v53 = vld [vmem:[%s1159_s28 + $0xc4] ss:$8 sps:$4 sm:$0xff]   ;;  %v1055_v55 = vld [vmem:[%s1159_s28 + $0xc0] ss:$8 sps:$4 sm:$0xff]   ;;  %v1059_v58 = vld [vmem:[%s1159_s28 + $0x1d4] ss:$8 sps:$4 sm:$0xff]   ;;  %v879_v5 = vcombine.low %v259_v47, %v259_v47  ;;  %v881_v6 = vcombine.low %v260_v49, %v260_v49 }
  0x2a   : > { %668 = vmatpush1.bf16.msra.mxu0 %v1007_v19  ;;  %v1053_v54 = vld [vmem:[%s1159_s28 + $0x1c4] ss:$8 sps:$4 sm:$0xff]   ;;  %v1056_v56 = vld [vmem:[%s1159_s28 + $0x1c0] ss:$8 sps:$4 sm:$0xff]   ;;  %v1061_v59 = vld [vmem:[%s1159_s28 + $0xd0] ss:$8 sps:$4 sm:$0xff]  }
  0x2b   : > { %709 = vmatpush1.bf16.msra.mxu1 %v1008_v20  ;;  %669 = vmatprep.subr.bf16.mxu0 %v1009_v21  ;;  %v1062_v60 = vld [vmem:[%s1159_s28 + $0x1d0] ss:$8 sps:$4 sm:$0xff]   ;;  %v1063_v61 = vld [vmem:[%s1159_s28 + $0xe4] ss:$8 sps:$4 sm:$0xff]   ;;  %v1067_v63 = vld [vmem:[%s1159_s28 + $0xe0] ss:$8 sps:$4 sm:$0xff]   ;;  %v753_v21 = vlaneseq (!%p947_p7) }
  0x2c   : > { %710 = vmatprep.subr.bf16.mxu1 %v1011_v22  ;;  %691 = vmatprep.mubr.bf16.mxu0 %v880_v48  ;;  %v1065_v62 = vld [vmem:[%s1159_s28 + $0x1e4] ss:$8 sps:$4 sm:$0xff]   ;;  %v1068_v0 = vld [vmem:[%s1159_s28 + $0x1e0] ss:$8 sps:$4 sm:$0xff]   ;;  %v1069_v1 = vld [vmem:[%s1159_s28 + $0xf4] ss:$8 sps:$4 sm:$0xff]  }
  0x2d   : > { %732 = vmatprep.mubr.bf16.mxu1 %v882_v52  ;;  %v1071_v2 = vld [vmem:[%s1159_s28 + $0x1f4] ss:$8 sps:$4 sm:$0xff]   ;;  %v1073_v3 = vld [vmem:[%s1159_s28 + $0xf0] ss:$8 sps:$4 sm:$0xff]   ;;  %v257_v8 = vld [vmem:[#allocation2] sm:$0xff]  ;;  %v754_v22 = vshrl.u32 (!%p947_p7), %v753_v21, 7 }
  0x2e   : > { %670 = vmatpush1.bf16.msra.mxu0 %v1013_v23  ;;  %v1074_v4 = vld [vmem:[%s1159_s28 + $0x1f0] ss:$8 sps:$4 sm:$0xff]   ;;  %v258_v12 = vld [vmem:[#allocation2 + $0x8] sm:$0xff]  ;;  %v751_v23 = vld [vmem:[%s1249_s2] sm:$0x3] (!%p947_p7) }
  0x2f   : > { %711 = vmatpush1.bf16.msra.mxu1 %v1014_v24  ;;  %671 = vmatprep.subr.bf16.mxu0 %v1015_v25  ;;  %v765_v24 = vld [vmem:[%s1250_s3] sm:$0x3] (!%p947_p7)  ;;  %v755_v25 = vsub.s32 (!%p947_p7), 0, %v754_v22 }
  0x30   : > { %712 = vmatprep.subr.bf16.mxu1 %v1017_v26  ;;  %v759_v26 = vsub.s32 (!%p947_p7), 1, %v754_v22 }
  0x32   : > { %672 = vmatpush1.bf16.msra.mxu0 %v1019_v27 }
  0x33   : > { %713 = vmatpush1.bf16.msra.mxu1 %v1020_v28  ;;  %673 = vmatprep.subr.bf16.mxu0 %v1021_v29  ;;  %v756_v29 = vrot.slane (!%p947_p7), %v751_v23, %v755_v25 }
  0x34   : > { %714 = vmatprep.subr.bf16.mxu1 %v1023_v30  ;;  %v760_v30 = vrot.slane (!%p947_p7), %v751_v23, %v759_v26 }
  0x36   : > { %674 = vmatpush1.bf16.msra.mxu0 %v1025_v31  ;;  %v770_v31 = vrot.slane (!%p947_p7), %v765_v24, %v755_v25 }
  0x37   : > { %715 = vmatpush1.bf16.msra.mxu1 %v1026_v32  ;;  %675 = vmatprep.subr.bf16.mxu0 %v1027_v33  ;;  %v774_v32 = vrot.slane (!%p947_p7), %v765_v24, %v759_v26 }
  0x38   : > { %716 = vmatprep.subr.bf16.mxu1 %v1029_v34 }
  0x3a   : > { %676 = vmatpush1.bf16.msra.mxu0 %v1031_v35 }
  0x3b   : > { %717 = vmatpush1.bf16.msra.mxu1 %v1032_v36  ;;  %677 = vmatprep.subr.bf16.mxu0 %v1033_v37 }
  0x3c   : > { %718 = vmatprep.subr.bf16.mxu1 %v1035_v38 }
  0x3e   : > { %678 = vmatpush1.bf16.msra.mxu0 %v1037_v39 }
  0x3f   : > { %719 = vmatpush1.bf16.msra.mxu1 %v1038_v40  ;;  %679 = vmatprep.subr.bf16.mxu0 %v1039_v41 }
  0x40   : > { %720 = vmatprep.subr.bf16.mxu1 %v1041_v42 }
  0x42   : > { %680 = vmatpush1.bf16.msra.mxu0 %v1043_v43 }
  0x43   : > { %721 = vmatpush1.bf16.msra.mxu1 %v1044_v44  ;;  %681 = vmatprep.subr.bf16.mxu0 %v1045_v45 }
  0x44   : > { %722 = vmatprep.subr.bf16.mxu1 %v1047_v46 }
  0x46   : > { %682 = vmatpush1.bf16.msra.mxu0 %v1049_v50 }
  0x47   : > { %723 = vmatpush1.bf16.msra.mxu1 %v1050_v51  ;;  %683 = vmatprep.subr.bf16.mxu0 %v1051_v53 }
  0x48   : > { %724 = vmatprep.subr.bf16.mxu1 %v1053_v54 }
  0x4a   : > { %684 = vmatpush1.bf16.msra.mxu0 %v1055_v55 }
  0x4b   : > { %725 = vmatpush1.bf16.msra.mxu1 %v1056_v56  ;;  %685 = vmatprep.subr.bf16.mxu0 %v1057_v57 }
  0x4c   : > { %726 = vmatprep.subr.bf16.mxu1 %v1059_v58 }
  0x4e   : > { %686 = vmatpush1.bf16.msra.mxu0 %v1061_v59 }
  0x4f   : > { %727 = vmatpush1.bf16.msra.mxu1 %v1062_v60  ;;  %687 = vmatprep.subr.bf16.mxu0 %v1063_v61 }
  0x50   : > { %728 = vmatprep.subr.bf16.mxu1 %v1065_v62 }
  0x52   : > { %688 = vmatpush1.bf16.msra.mxu0 %v1067_v63 }
  0x53   : > { %729 = vmatpush1.bf16.msra.mxu1 %v1068_v0  ;;  %689 = vmatprep.subr.bf16.mxu0 %v1069_v1 }
  0x54   : > { %730 = vmatprep.subr.bf16.mxu1 %v1071_v2 }
  0x56   : > { %690 = vmatpush1.bf16.msra.mxu0 %v1073_v3 }
  0x57   : > { %731 = vmatpush1.bf16.msra.mxu1 %v1074_v4 }
  0x59   : > { %692 = vmatmul.mubr.bf16.vlgmr.msra.gmra.mrb[0].mxu0 %v879_v5 }
  0x5a   : > { %733 = vmatmul.mubr.bf16.vlgmr.msra.gmra.mrb[0].mxu1 %v881_v6 }
 0x12c   : > { %v693_v7 = vpop.f32.mrb[0].mxu0 }
 0x12d   : > { %v734_v9 = vpop.f32.mrb[0].mxu1  ;;  %v695_v11 = vpop.f32.mrb[1].mxu0  ;;  %748 = sbr.rel (%p947_p7) target bundleno = 324 (0x144), region = 44 }
 0x12e   : > { %v735_v10 = vadd.f32 %v734_v9, %v693_v7  ;;  %v736_v13 = vpop.f32.mrb[1].mxu1  ;;  %v697_v15 = vpop.f32.mrb[2].mxu0 }
 0x12f   : > { %v737_v14 = vadd.f32 %v736_v13, %v695_v11  ;;  %v738_v16 = vpop.f32.mrb[2].mxu1  ;;  %v698_v18 = vpop.f32.mrb[3].mxu0 }
 0x130   : > { %v741_v17 = vadd.f32 %v735_v10, %v257_v8  ;;  %v739_v19 = vpop.f32.mrb[3].mxu1 }
 0x131   : > { %v742_v20 = vadd.f32 %v737_v14, %v258_v12 }
 0x132   : > { %743 = vst [vmem:[#allocation2] sm:$0xff] %v741_v17 }
 0x133   : > { %744 = vst [vmem:[#allocation2 + $0x8] sm:$0xff] %v742_v20 }
 0x139   : > { %v749_v27 = vld [vmem:[#allocation2] sm:$0xff] }
 0x13a   : > { %v750_v28 = vld [vmem:[#allocation2 + $0x8] sm:$0xff]  ;;  %v763_v33 = vmul.f32 %v756_v29, %v749_v27 }
 0x13b   : > { %v764_v34 = vmul.f32 %v760_v30, %v750_v28 }
 0x13c   : > { %v777_v35 = vadd.f32 %v770_v31, %v763_v33 }
 0x13d   : > { %v778_v36 = vadd.f32 %v774_v32, %v764_v34 }
 0x13e   : > { %v779_v37 = vmax.f32 %v777_v35, 0.0 }
 0x13f   : > { %v780_v38 = vmax.f32 %v778_v36, 0.0 }
 0x141   : > { %v953_v39 = vpack.c.bf16 %v780_v38, %v779_v37 }
 0x143   : > { %789 = vst [vmem:[%s1251_s4] sm:$0xff] %v953_v39 }
 0x144 PF: > { %s14_s17 = sadd.s32 1, %s1101_s17   ;;  %s1252_s15 = smov %s1097_s16 }
 0x145   : > { %p11_p8 = scmp.ge.s32.totalorder %s14_s17, 7   ;;  %s1253_s16 = smov %s1255_s18 }
 0x147   :  { %13 = sbr.rel (!%p11_p8) target bundleno = 2 (0x2), region = 77 }

// kernel: resnet18_binary_forward.39
= control target key start
LH: loop header
LB: loop body
LE: loop exit
PB: predicated region body
PF: predicated region fallthrough
CT: control target
= control target key end

     0   :  { %s1802_s15 = smov 0   ;;  %s1804_s16 = smov 0   ;;  %s1999_s0 = inlined_call_operand.vmem [shape: bf16[8,2560], index: 0, kind: input, shape index: {}]   ;;  %s2000_s1 = inlined_call_operand.vmem [shape: bf16[2560,512], index: 1, kind: input, shape index: {}]   ;;  %s2001_s2 = inlined_call_operand.vmem [shape: f32[1,512], index: 2, kind: input, shape index: {}]   ;;  %s2002_s3 = inlined_call_operand.vmem [shape: f32[1,512], index: 3, kind: input, shape index: {}]   ;;  %s2003_s4 = inlined_call_operand.vmem [shape: bf16[8,512], index: 4, kind: output, shape index: {}]  }
   0x1   :  { %s1806_s17 = smov 0  }
   0x2 LB: > { %s23_s18 = sadd.s32 1, %s1770_s16  ;;  %p1383_p0 = scmp.ge.s32.totalorder %s1774_s17, 1  ;;  %s1774_s17 = sphi %s1806_s17, %s14_s17   ;;  %s1770_s16 = sphi %s1804_s16, %s2005_s16   ;;  %s1766_s15 = sphi %s1802_s15, %s2004_s15  }
   0x3   : > { %p24_p1 = scmp.ge.s32.totalorder %s23_s18, 5  ;;  %p193_p2 = scmp.lt.s32.totalorder %s1774_s17, 6 }
   0x5   : > { %s2007_s18 = smov (%p24_p1, %s23_s18), 0  ;;  %p194_p3 = pnand %p1383_p0, %p193_p2 }
   0x6   : > { %s1384_s19 = sshll.u32 (!%p194_p3), %s1766_s15, 2  ;;  %s1386_s20 = sshll.u32 (!%p194_p3), %s1766_s15, 6 }
   0x7   : > { %197 = sbr.rel (%p194_p3) target bundleno = 388 (0x184), region = 36  ;;  %p232_p4 = scmp.lt.s32.totalorder (!%p194_p3), %s1384_s19, 19 }
   0x8   : > { %p240_p5 = scmp.lt.s32.totalorder (!%p194_p3), %s1386_s20, 319  ;;  %p1389_p6 = scmp.ne.s32.totalorder (!%p194_p3), %s1766_s15, 0 }
   0xe   : > { %s2009_s19 = smov (!%p232_p4, %s1384_s19), 19  ;;  %s2011_s20 = smov (!%p240_p5, %s1386_s20), 319 }
   0xf   : > { %s1385_s21 = sshll.u32 %s2009_s19, 2  ;;  %s1528_s25 = sshll.u32 %s2011_s20, 4  ;;  %v1776_v0 = vmov (!%p1389_p6), 0.0  }
  0x10   : > { %s1827_s24 = scalar_lea.vmem %s1999_s0, %s1385_s21  ;;  %s1832_s28 = scalar_lea.vmem %s2000_s1, %s1528_s25  ;;  %255 = vst [vmem:[#allocation2] sm:$0xff] (!%p1389_p6), %v1776_v0  ;;  %256 = vst [vmem:[#allocation2 + $0x8] sm:$0xff] (!%p1389_p6), %v1776_v0 }
  0x11   : > { %254 = sbr.rel (%p1389_p6) target bundleno = 24 (0x18), region = 40  ;;  %257 = vst [vmem:[#allocation2 + $0x10] sm:$0xff] (!%p1389_p6), %v1776_v0  ;;  %258 = vst [vmem:[#allocation2 + $0x18] sm:$0xff] (!%p1389_p6), %v1776_v0 }
  0x18 PF: > { %v1556_v1 = vld [vmem:[%s1832_s28 + $0x4] ss:$16 sps:$4 sm:$0xff]   ;;  %v1560_v3 = vld [vmem:[%s1832_s28] ss:$16 sps:$4 sm:$0xff]   ;;  %v264_v49 = vld [vmem:[%s1827_s24 + $0x8] sm:$0xff]  ;;  %p1522_p7 = scmp.ne.s32.totalorder %s1766_s15, 4 }
  0x19   : > { %v1558_v2 = vld [vmem:[%s1832_s28 + $0x204] ss:$16 sps:$4 sm:$0xff]   ;;  %1047 = vmatprep.subr.bf16.mxu0 %v1556_v1  ;;  %v1561_v4 = vld [vmem:[%s1832_s28 + $0x200] ss:$16 sps:$4 sm:$0xff]   ;;  %v1393_v52 = vcombine.high %v264_v49, %v264_v49 }
  0x1a   : > { %1088 = vmatprep.subr.bf16.mxu1 %v1558_v2  ;;  %v1562_v5 = vld [vmem:[%s1832_s28 + $0x24] ss:$16 sps:$4 sm:$0xff]   ;;  %1048 = vmatpush1.bf16.msra.mxu0 %v1560_v3  ;;  %v1566_v7 = vld [vmem:[%s1832_s28 + $0x20] ss:$16 sps:$4 sm:$0xff]  }
  0x1b   : > { %1089 = vmatpush1.bf16.msra.mxu1 %v1561_v4  ;;  %v1564_v6 = vld [vmem:[%s1832_s28 + $0x224] ss:$16 sps:$4 sm:$0xff]   ;;  %1049 = vmatprep.subr.bf16.mxu0 %v1562_v5  ;;  %v1567_v8 = vld [vmem:[%s1832_s28 + $0x220] ss:$16 sps:$4 sm:$0xff]   ;;  %v1658_v5 = vld [vmem:[%s1832_s28 + $0xc] ss:$16 sps:$4 sm:$0xff]  }
  0x1c   : > { %1090 = vmatprep.subr.bf16.mxu1 %v1564_v6  ;;  %v1568_v9 = vld [vmem:[%s1832_s28 + $0x44] ss:$16 sps:$4 sm:$0xff]   ;;  %v1572_v11 = vld [vmem:[%s1832_s28 + $0x40] ss:$16 sps:$4 sm:$0xff]   ;;  %1120 = vmatprep.mubr.bf16.mxu1 %v1393_v52  ;;  %v1661_v6 = vld [vmem:[%s1832_s28 + $0x20c] ss:$16 sps:$4 sm:$0xff]  }
  0x1d   : > { %v1570_v10 = vld [vmem:[%s1832_s28 + $0x244] ss:$16 sps:$4 sm:$0xff]   ;;  %v1573_v12 = vld [vmem:[%s1832_s28 + $0x240] ss:$16 sps:$4 sm:$0xff]  }
  0x1e   : > { %1050 = vmatpush1.bf16.msra.mxu0 %v1566_v7  ;;  %v1574_v13 = vld [vmem:[%s1832_s28 + $0x64] ss:$16 sps:$4 sm:$0xff]   ;;  %v1578_v15 = vld [vmem:[%s1832_s28 + $0x60] ss:$16 sps:$4 sm:$0xff]  }
  0x1f   : > { %1091 = vmatpush1.bf16.msra.mxu1 %v1567_v8  ;;  %1051 = vmatprep.subr.bf16.mxu0 %v1568_v9  ;;  %v1576_v14 = vld [vmem:[%s1832_s28 + $0x264] ss:$16 sps:$4 sm:$0xff]   ;;  %v1579_v16 = vld [vmem:[%s1832_s28 + $0x260] ss:$16 sps:$4 sm:$0xff]   ;;  %v1908_v8 = vcombine.low %v264_v49, %v264_v49  ;;  %v1656_v9 = vld [vmem:[%s1832_s28 + $0x8] ss:$16 sps:$4 sm:$0xff]  }
  0x20   : > { %1092 = vmatprep.subr.bf16.mxu1 %v1570_v10  ;;  %v1580_v17 = vld [vmem:[%s1832_s28 + $0x84] ss:$16 sps:$4 sm:$0xff]   ;;  %v1584_v19 = vld [vmem:[%s1832_s28 + $0x80] ss:$16 sps:$4 sm:$0xff]   ;;  %v1659_v10 = vld [vmem:[%s1832_s28 + $0x208] ss:$16 sps:$4 sm:$0xff]  }
  0x21   : > { %v1582_v18 = vld [vmem:[%s1832_s28 + $0x284] ss:$16 sps:$4 sm:$0xff]   ;;  %v1585_v20 = vld [vmem:[%s1832_s28 + $0x280] ss:$16 sps:$4 sm:$0xff]   ;;  %v1716_v49 = vld [vmem:[%s1832_s28 + $0x148] ss:$16 sps:$4 sm:$0xff]  }
  0x22   : > { %1052 = vmatpush1.bf16.msra.mxu0 %v1572_v11  ;;  %v1586_v21 = vld [vmem:[%s1832_s28 + $0xa4] ss:$16 sps:$4 sm:$0xff]   ;;  %v1590_v23 = vld [vmem:[%s1832_s28 + $0xa0] ss:$16 sps:$4 sm:$0xff]   ;;  %v1664_v11 = vld [vmem:[%s1832_s28 + $0x2c] ss:$16 sps:$4 sm:$0xff]  }
  0x23   : > { %1093 = vmatpush1.bf16.msra.mxu1 %v1573_v12  ;;  %1053 = vmatprep.subr.bf16.mxu0 %v1574_v13  ;;  %v1588_v22 = vld [vmem:[%s1832_s28 + $0x2a4] ss:$16 sps:$4 sm:$0xff]   ;;  %v1591_v24 = vld [vmem:[%s1832_s28 + $0x2a0] ss:$16 sps:$4 sm:$0xff]   ;;  %v1667_v12 = vld [vmem:[%s1832_s28 + $0x22c] ss:$16 sps:$4 sm:$0xff]  }
  0x24   : > { %1094 = vmatprep.subr.bf16.mxu1 %v1576_v14  ;;  %v1592_v25 = vld [vmem:[%s1832_s28 + $0xc4] ss:$16 sps:$4 sm:$0xff]   ;;  %v1596_v27 = vld [vmem:[%s1832_s28 + $0xc0] ss:$16 sps:$4 sm:$0xff]   ;;  %v1662_v13 = vld [vmem:[%s1832_s28 + $0x28] ss:$16 sps:$4 sm:$0xff]  }
  0x25   : > { %v1594_v26 = vld [vmem:[%s1832_s28 + $0x2c4] ss:$16 sps:$4 sm:$0xff]   ;;  %v1597_v28 = vld [vmem:[%s1832_s28 + $0x2c0] ss:$16 sps:$4 sm:$0xff]   ;;  %v1665_v14 = vld [vmem:[%s1832_s28 + $0x228] ss:$16 sps:$4 sm:$0xff]  }
  0x26   : > { %1054 = vmatpush1.bf16.msra.mxu0 %v1578_v15  ;;  %v1598_v29 = vld [vmem:[%s1832_s28 + $0xe4] ss:$16 sps:$4 sm:$0xff]   ;;  %v1602_v31 = vld [vmem:[%s1832_s28 + $0xe0] ss:$16 sps:$4 sm:$0xff]   ;;  %v1670_v15 = vld [vmem:[%s1832_s28 + $0x4c] ss:$16 sps:$4 sm:$0xff]  }
  0x27   : > { %1095 = vmatpush1.bf16.msra.mxu1 %v1579_v16  ;;  %1055 = vmatprep.subr.bf16.mxu0 %v1580_v17  ;;  %v1600_v30 = vld [vmem:[%s1832_s28 + $0x2e4] ss:$16 sps:$4 sm:$0xff]   ;;  %v1603_v32 = vld [vmem:[%s1832_s28 + $0x2e0] ss:$16 sps:$4 sm:$0xff]   ;;  %v1673_v16 = vld [vmem:[%s1832_s28 + $0x24c] ss:$16 sps:$4 sm:$0xff]  }
  0x28   : > { %1096 = vmatprep.subr.bf16.mxu1 %v1582_v18  ;;  %v1604_v33 = vld [vmem:[%s1832_s28 + $0x104] ss:$16 sps:$4 sm:$0xff]   ;;  %v1608_v35 = vld [vmem:[%s1832_s28 + $0x100] ss:$16 sps:$4 sm:$0xff]   ;;  %v1668_v17 = vld [vmem:[%s1832_s28 + $0x48] ss:$16 sps:$4 sm:$0xff]  }
  0x29   : > { %v1606_v34 = vld [vmem:[%s1832_s28 + $0x304] ss:$16 sps:$4 sm:$0xff]   ;;  %v1609_v36 = vld [vmem:[%s1832_s28 + $0x300] ss:$16 sps:$4 sm:$0xff]   ;;  %v1671_v18 = vld [vmem:[%s1832_s28 + $0x248] ss:$16 sps:$4 sm:$0xff]  }
  0x2a   : > { %1056 = vmatpush1.bf16.msra.mxu0 %v1584_v19  ;;  %v1610_v37 = vld [vmem:[%s1832_s28 + $0x124] ss:$16 sps:$4 sm:$0xff]   ;;  %v1614_v39 = vld [vmem:[%s1832_s28 + $0x120] ss:$16 sps:$4 sm:$0xff]   ;;  %v1676_v19 = vld [vmem:[%s1832_s28 + $0x6c] ss:$16 sps:$4 sm:$0xff]  }
  0x2b   : > { %1097 = vmatpush1.bf16.msra.mxu1 %v1585_v20  ;;  %1057 = vmatprep.subr.bf16.mxu0 %v1586_v21  ;;  %v1612_v38 = vld [vmem:[%s1832_s28 + $0x324] ss:$16 sps:$4 sm:$0xff]   ;;  %v1615_v40 = vld [vmem:[%s1832_s28 + $0x320] ss:$16 sps:$4 sm:$0xff]   ;;  %v1679_v20 = vld [vmem:[%s1832_s28 + $0x26c] ss:$16 sps:$4 sm:$0xff]  }
  0x2c   : > { %1098 = vmatprep.subr.bf16.mxu1 %v1588_v22  ;;  %v1616_v41 = vld [vmem:[%s1832_s28 + $0x144] ss:$16 sps:$4 sm:$0xff]   ;;  %v1620_v43 = vld [vmem:[%s1832_s28 + $0x140] ss:$16 sps:$4 sm:$0xff]   ;;  %v1674_v21 = vld [vmem:[%s1832_s28 + $0x68] ss:$16 sps:$4 sm:$0xff]  }
  0x2d   : > { %v1618_v42 = vld [vmem:[%s1832_s28 + $0x344] ss:$16 sps:$4 sm:$0xff]   ;;  %v1621_v44 = vld [vmem:[%s1832_s28 + $0x340] ss:$16 sps:$4 sm:$0xff]   ;;  %v1677_v22 = vld [vmem:[%s1832_s28 + $0x268] ss:$16 sps:$4 sm:$0xff]  }
  0x2e   : > { %1058 = vmatpush1.bf16.msra.mxu0 %v1590_v23  ;;  %v1622_v45 = vld [vmem:[%s1832_s28 + $0x164] ss:$16 sps:$4 sm:$0xff]   ;;  %v1626_v50 = vld [vmem:[%s1832_s28 + $0x160] ss:$16 sps:$4 sm:$0xff]   ;;  %v1682_v23 = vld [vmem:[%s1832_s28 + $0x8c] ss:$16 sps:$4 sm:$0xff]  }
  0x2f   : > { %1099 = vmatpush1.bf16.msra.mxu1 %v1591_v24  ;;  %1059 = vmatprep.subr.bf16.mxu0 %v1592_v25  ;;  %v1624_v46 = vld [vmem:[%s1832_s28 + $0x364] ss:$16 sps:$4 sm:$0xff]   ;;  %v1627_v51 = vld [vmem:[%s1832_s28 + $0x360] ss:$16 sps:$4 sm:$0xff]   ;;  %v1685_v24 = vld [vmem:[%s1832_s28 + $0x28c] ss:$16 sps:$4 sm:$0xff]  }
  0x30   : > { %1100 = vmatprep.subr.bf16.mxu1 %v1594_v26  ;;  %v263_v47 = vld [vmem:[%s1827_s24] sm:$0xff]  ;;  %v1680_v25 = vld [vmem:[%s1832_s28 + $0x88] ss:$16 sps:$4 sm:$0xff]  }
  0x31   : > { %v1882_v48 = vcombine.high %v263_v47, %v263_v47  ;;  %v1628_v53 = vld [vmem:[%s1832_s28 + $0x184] ss:$16 sps:$4 sm:$0xff]   ;;  %v1632_v55 = vld [vmem:[%s1832_s28 + $0x180] ss:$16 sps:$4 sm:$0xff]   ;;  %v1906_v7 = vcombine.low %v263_v47, %v263_v47  ;;  %v1683_v26 = vld [vmem:[%s1832_s28 + $0x288] ss:$16 sps:$4 sm:$0xff]  }
  0x32   : > { %1060 = vmatpush1.bf16.msra.mxu0 %v1596_v27  ;;  %v1630_v54 = vld [vmem:[%s1832_s28 + $0x384] ss:$16 sps:$4 sm:$0xff]   ;;  %v1633_v56 = vld [vmem:[%s1832_s28 + $0x380] ss:$16 sps:$4 sm:$0xff]   ;;  %v1688_v27 = vld [vmem:[%s1832_s28 + $0xac] ss:$16 sps:$4 sm:$0xff]  }
  0x33   : > { %1101 = vmatpush1.bf16.msra.mxu1 %v1597_v28  ;;  %1061 = vmatprep.subr.bf16.mxu0 %v1598_v29  ;;  %v1634_v57 = vld [vmem:[%s1832_s28 + $0x1a4] ss:$16 sps:$4 sm:$0xff]   ;;  %v1638_v59 = vld [vmem:[%s1832_s28 + $0x1a0] ss:$16 sps:$4 sm:$0xff]   ;;  %v1691_v28 = vld [vmem:[%s1832_s28 + $0x2ac] ss:$16 sps:$4 sm:$0xff]  }
  0x34   : > { %1102 = vmatprep.subr.bf16.mxu1 %v1600_v30  ;;  %1079 = vmatprep.mubr.bf16.mxu0 %v1882_v48  ;;  %v1636_v58 = vld [vmem:[%s1832_s28 + $0x3a4] ss:$16 sps:$4 sm:$0xff]   ;;  %v1639_v60 = vld [vmem:[%s1832_s28 + $0x3a0] ss:$16 sps:$4 sm:$0xff]   ;;  %v1686_v29 = vld [vmem:[%s1832_s28 + $0xa8] ss:$16 sps:$4 sm:$0xff]  }
  0x35   : > { %v1640_v61 = vld [vmem:[%s1832_s28 + $0x1c4] ss:$16 sps:$4 sm:$0xff]   ;;  %v1644_v63 = vld [vmem:[%s1832_s28 + $0x1c0] ss:$16 sps:$4 sm:$0xff]   ;;  %v1689_v30 = vld [vmem:[%s1832_s28 + $0x2a8] ss:$16 sps:$4 sm:$0xff]  }
  0x36   : > { %1062 = vmatpush1.bf16.msra.mxu0 %v1602_v31  ;;  %v1642_v62 = vld [vmem:[%s1832_s28 + $0x3c4] ss:$16 sps:$4 sm:$0xff]   ;;  %v1645_v0 = vld [vmem:[%s1832_s28 + $0x3c0] ss:$16 sps:$4 sm:$0xff]   ;;  %v1694_v31 = vld [vmem:[%s1832_s28 + $0xcc] ss:$16 sps:$4 sm:$0xff]  }
  0x37   : > { %1103 = vmatpush1.bf16.msra.mxu1 %v1603_v32  ;;  %1063 = vmatprep.subr.bf16.mxu0 %v1604_v33  ;;  %v1646_v1 = vld [vmem:[%s1832_s28 + $0x1e4] ss:$16 sps:$4 sm:$0xff]   ;;  %v1650_v3 = vld [vmem:[%s1832_s28 + $0x1e0] ss:$16 sps:$4 sm:$0xff]   ;;  %v1697_v32 = vld [vmem:[%s1832_s28 + $0x2cc] ss:$16 sps:$4 sm:$0xff]  }
  0x38   : > { %1104 = vmatprep.subr.bf16.mxu1 %v1606_v34  ;;  %v1648_v2 = vld [vmem:[%s1832_s28 + $0x3e4] ss:$16 sps:$4 sm:$0xff]   ;;  %v1651_v4 = vld [vmem:[%s1832_s28 + $0x3e0] ss:$16 sps:$4 sm:$0xff]   ;;  %v1692_v33 = vld [vmem:[%s1832_s28 + $0xc8] ss:$16 sps:$4 sm:$0xff]  }
  0x39   : > { %v1695_v34 = vld [vmem:[%s1832_s28 + $0x2c8] ss:$16 sps:$4 sm:$0xff]   ;;  %v1718_v47 = vld [vmem:[%s1832_s28 + $0x14c] ss:$16 sps:$4 sm:$0xff]  }
  0x3a   : > { %1064 = vmatpush1.bf16.msra.mxu0 %v1608_v35  ;;  %v1700_v35 = vld [vmem:[%s1832_s28 + $0xec] ss:$16 sps:$4 sm:$0xff]  }
  0x3b   : > { %1105 = vmatpush1.bf16.msra.mxu1 %v1609_v36  ;;  %1065 = vmatprep.subr.bf16.mxu0 %v1610_v37  ;;  %v1703_v36 = vld [vmem:[%s1832_s28 + $0x2ec] ss:$16 sps:$4 sm:$0xff]   ;;  %v1698_v37 = vld [vmem:[%s1832_s28 + $0xe8] ss:$16 sps:$4 sm:$0xff]  }
  0x3c   : > { %1106 = vmatprep.subr.bf16.mxu1 %v1612_v38  ;;  %v1701_v38 = vld [vmem:[%s1832_s28 + $0x2e8] ss:$16 sps:$4 sm:$0xff]  }
  0x3e   : > { %1066 = vmatpush1.bf16.msra.mxu0 %v1614_v39  ;;  %v1706_v39 = vld [vmem:[%s1832_s28 + $0x10c] ss:$16 sps:$4 sm:$0xff]  }
  0x3f   : > { %1107 = vmatpush1.bf16.msra.mxu1 %v1615_v40  ;;  %1067 = vmatprep.subr.bf16.mxu0 %v1616_v41  ;;  %v1709_v40 = vld [vmem:[%s1832_s28 + $0x30c] ss:$16 sps:$4 sm:$0xff]   ;;  %v1704_v41 = vld [vmem:[%s1832_s28 + $0x108] ss:$16 sps:$4 sm:$0xff]  }
  0x40   : > { %1108 = vmatprep.subr.bf16.mxu1 %v1618_v42  ;;  %v1707_v42 = vld [vmem:[%s1832_s28 + $0x308] ss:$16 sps:$4 sm:$0xff]  }
  0x42   : > { %1068 = vmatpush1.bf16.msra.mxu0 %v1620_v43  ;;  %v1712_v43 = vld [vmem:[%s1832_s28 + $0x12c] ss:$16 sps:$4 sm:$0xff]  }
  0x43   : > { %1109 = vmatpush1.bf16.msra.mxu1 %v1621_v44  ;;  %1069 = vmatprep.subr.bf16.mxu0 %v1622_v45  ;;  %v1715_v44 = vld [vmem:[%s1832_s28 + $0x32c] ss:$16 sps:$4 sm:$0xff]   ;;  %v1710_v45 = vld [vmem:[%s1832_s28 + $0x128] ss:$16 sps:$4 sm:$0xff]  }
  0x44   : > { %1110 = vmatprep.subr.bf16.mxu1 %v1624_v46  ;;  %v1713_v46 = vld [vmem:[%s1832_s28 + $0x328] ss:$16 sps:$4 sm:$0xff]  }
  0x46   : > { %1070 = vmatpush1.bf16.msra.mxu0 %v1626_v50  ;;  %v1719_v50 = vld [vmem:[%s1832_s28 + $0x348] ss:$16 sps:$4 sm:$0xff]  }
  0x47   : > { %1111 = vmatpush1.bf16.msra.mxu1 %v1627_v51  ;;  %1071 = vmatprep.subr.bf16.mxu0 %v1628_v53  ;;  %v1724_v51 = vld [vmem:[%s1832_s28 + $0x16c] ss:$16 sps:$4 sm:$0xff]   ;;  %v1722_v53 = vld [vmem:[%s1832_s28 + $0x168] ss:$16 sps:$4 sm:$0xff]  }
  0x48   : > { %1112 = vmatprep.subr.bf16.mxu1 %v1630_v54  ;;  %v1725_v54 = vld [vmem:[%s1832_s28 + $0x368] ss:$16 sps:$4 sm:$0xff]  }
  0x4a   : > { %1072 = vmatpush1.bf16.msra.mxu0 %v1632_v55  ;;  %v1730_v55 = vld [vmem:[%s1832_s28 + $0x18c] ss:$16 sps:$4 sm:$0xff]  }
  0x4b   : > { %1113 = vmatpush1.bf16.msra.mxu1 %v1633_v56  ;;  %1073 = vmatprep.subr.bf16.mxu0 %v1634_v57  ;;  %v1733_v56 = vld [vmem:[%s1832_s28 + $0x38c] ss:$16 sps:$4 sm:$0xff]   ;;  %v1728_v57 = vld [vmem:[%s1832_s28 + $0x188] ss:$16 sps:$4 sm:$0xff]  }
  0x4c   : > { %1114 = vmatprep.subr.bf16.mxu1 %v1636_v58  ;;  %v1731_v58 = vld [vmem:[%s1832_s28 + $0x388] ss:$16 sps:$4 sm:$0xff]  }
  0x4e   : > { %1074 = vmatpush1.bf16.msra.mxu0 %v1638_v59  ;;  %v1736_v59 = vld [vmem:[%s1832_s28 + $0x1ac] ss:$16 sps:$4 sm:$0xff]  }
  0x4f   : > { %1115 = vmatpush1.bf16.msra.mxu1 %v1639_v60  ;;  %1075 = vmatprep.subr.bf16.mxu0 %v1640_v61  ;;  %v1739_v60 = vld [vmem:[%s1832_s28 + $0x3ac] ss:$16 sps:$4 sm:$0xff]   ;;  %v1734_v61 = vld [vmem:[%s1832_s28 + $0x1a8] ss:$16 sps:$4 sm:$0xff]  }
  0x50   : > { %1116 = vmatprep.subr.bf16.mxu1 %v1642_v62  ;;  %v1737_v62 = vld [vmem:[%s1832_s28 + $0x3a8] ss:$16 sps:$4 sm:$0xff]  }
  0x52   : > { %1076 = vmatpush1.bf16.msra.mxu0 %v1644_v63  ;;  %v1742_v63 = vld [vmem:[%s1832_s28 + $0x1cc] ss:$16 sps:$4 sm:$0xff]  }
  0x53   : > { %1117 = vmatpush1.bf16.msra.mxu1 %v1645_v0  ;;  %1077 = vmatprep.subr.bf16.mxu0 %v1646_v1  ;;  %v1745_v0 = vld [vmem:[%s1832_s28 + $0x3cc] ss:$16 sps:$4 sm:$0xff]   ;;  %v1740_v1 = vld [vmem:[%s1832_s28 + $0x1c8] ss:$16 sps:$4 sm:$0xff]  }
  0x54   : > { %1118 = vmatprep.subr.bf16.mxu1 %v1648_v2  ;;  %v1743_v2 = vld [vmem:[%s1832_s28 + $0x3c8] ss:$16 sps:$4 sm:$0xff]  }
  0x56   : > { %1078 = vmatpush1.bf16.msra.mxu0 %v1650_v3  ;;  %v1748_v3 = vld [vmem:[%s1832_s28 + $0x1ec] ss:$16 sps:$4 sm:$0xff]  }
  0x57   : > { %1119 = vmatpush1.bf16.msra.mxu1 %v1651_v4  ;;  %1129 = vmatprep.subr.bf16.mxu0 %v1658_v5  ;;  %v1751_v4 = vld [vmem:[%s1832_s28 + $0x3ec] ss:$16 sps:$4 sm:$0xff]   ;;  %v1746_v5 = vld [vmem:[%s1832_s28 + $0x1e8] ss:$16 sps:$4 sm:$0xff]  }
  0x58   : > { %1170 = vmatprep.subr.bf16.mxu1 %v1661_v6  ;;  %v1749_v6 = vld [vmem:[%s1832_s28 + $0x3e8] ss:$16 sps:$4 sm:$0xff]  }
  0x59   : > { %1080 = vmatmul.mubr.bf16.vlgmr.msra.gmra.mrb[0].mxu0 %v1906_v7 }
  0x5a   : > { %1121 = vmatmul.mubr.bf16.vlgmr.msra.gmra.mrb[0].mxu1 %v1908_v8  ;;  %1130 = vmatpush1.bf16.msra.mxu0 %v1656_v9 }
  0x5b   : > { %1171 = vmatpush1.bf16.msra.mxu1 %v1659_v10  ;;  %1131 = vmatprep.subr.bf16.mxu0 %v1664_v11  ;;  %v259_v10 = vld [vmem:[#allocation2] sm:$0xff] }
  0x5c   : > { %1172 = vmatprep.subr.bf16.mxu1 %v1667_v12  ;;  %1161 = vmatprep.mubr.bf16.mxu0 %v1882_v48  ;;  %v1721_v48 = vld [vmem:[%s1832_s28 + $0x34c] ss:$16 sps:$4 sm:$0xff]  }
  0x5d   : > { %1202 = vmatprep.mubr.bf16.mxu1 %v1393_v52  ;;  %v1727_v52 = vld [vmem:[%s1832_s28 + $0x36c] ss:$16 sps:$4 sm:$0xff]  }
  0x5e   : > { %1132 = vmatpush1.bf16.msra.mxu0 %v1662_v13 }
  0x5f   : > { %1173 = vmatpush1.bf16.msra.mxu1 %v1665_v14  ;;  %1133 = vmatprep.subr.bf16.mxu0 %v1670_v15  ;;  %v260_v14 = vld [vmem:[#allocation2 + $0x8] sm:$0xff] }
  0x60   : > { %1174 = vmatprep.subr.bf16.mxu1 %v1673_v16 }
  0x62   : > { %1134 = vmatpush1.bf16.msra.mxu0 %v1668_v17 }
  0x63   : > { %1175 = vmatpush1.bf16.msra.mxu1 %v1671_v18  ;;  %1135 = vmatprep.subr.bf16.mxu0 %v1676_v19 }
  0x64   : > { %1176 = vmatprep.subr.bf16.mxu1 %v1679_v20 }
  0x66   : > { %1136 = vmatpush1.bf16.msra.mxu0 %v1674_v21 }
  0x67   : > { %1177 = vmatpush1.bf16.msra.mxu1 %v1677_v22  ;;  %1137 = vmatprep.subr.bf16.mxu0 %v1682_v23 }
  0x68   : > { %1178 = vmatprep.subr.bf16.mxu1 %v1685_v24 }
  0x6a   : > { %1138 = vmatpush1.bf16.msra.mxu0 %v1680_v25 }
  0x6b   : > { %1179 = vmatpush1.bf16.msra.mxu1 %v1683_v26  ;;  %1139 = vmatprep.subr.bf16.mxu0 %v1688_v27  ;;  %v262_v26 = vld [vmem:[#allocation2 + $0x18] sm:$0xff] }
  0x6c   : > { %1180 = vmatprep.subr.bf16.mxu1 %v1691_v28 }
  0x6e   : > { %1140 = vmatpush1.bf16.msra.mxu0 %v1686_v29 }
  0x6f   : > { %1181 = vmatpush1.bf16.msra.mxu1 %v1689_v30  ;;  %1141 = vmatprep.subr.bf16.mxu0 %v1694_v31 }
  0x70   : > { %1182 = vmatprep.subr.bf16.mxu1 %v1697_v32 }
  0x72   : > { %1142 = vmatpush1.bf16.msra.mxu0 %v1692_v33 }
  0x73   : > { %1183 = vmatpush1.bf16.msra.mxu1 %v1695_v34  ;;  %1143 = vmatprep.subr.bf16.mxu0 %v1700_v35  ;;  %v1229_v35 = vlaneseq (!%p1522_p7) }
  0x74   : > { %1184 = vmatprep.subr.bf16.mxu1 %v1703_v36 }
  0x75   : > { %v1230_v36 = vshrl.u32 (!%p1522_p7), %v1229_v35, 7 }
  0x76   : > { %1144 = vmatpush1.bf16.msra.mxu0 %v1698_v37  ;;  %v1227_v37 = vld [vmem:[%s2001_s2] sm:$0xf] (!%p1522_p7) }
  0x77   : > { %1185 = vmatpush1.bf16.msra.mxu1 %v1701_v38  ;;  %1145 = vmatprep.subr.bf16.mxu0 %v1706_v39  ;;  %v1253_v38 = vld [vmem:[%s2002_s3] sm:$0xf] (!%p1522_p7)  ;;  %v1231_v39 = vsub.s32 (!%p1522_p7), 0, %v1230_v36 }
  0x78   : > { %1186 = vmatprep.subr.bf16.mxu1 %v1709_v40  ;;  %v1235_v40 = vsub.s32 (!%p1522_p7), 1, %v1230_v36 }
  0x7a   : > { %1146 = vmatpush1.bf16.msra.mxu0 %v1704_v41  ;;  %v1239_v41 = vsub.s32 (!%p1522_p7), 2, %v1230_v36 }
  0x7b   : > { %1187 = vmatpush1.bf16.msra.mxu1 %v1707_v42  ;;  %1147 = vmatprep.subr.bf16.mxu0 %v1712_v43  ;;  %v1243_v42 = vsub.s32 (!%p1522_p7), 3, %v1230_v36 }
  0x7c   : > { %1188 = vmatprep.subr.bf16.mxu1 %v1715_v44 }
  0x7e   : > { %1148 = vmatpush1.bf16.msra.mxu0 %v1710_v45  ;;  %v1232_v45 = vrot.slane (!%p1522_p7), %v1227_v37, %v1231_v39 }
  0x7f   : > { %1189 = vmatpush1.bf16.msra.mxu1 %v1713_v46  ;;  %1149 = vmatprep.subr.bf16.mxu0 %v1718_v47  ;;  %v1236_v46 = vrot.slane (!%p1522_p7), %v1227_v37, %v1235_v40  ;;  %v1258_v47 = vrot.slane (!%p1522_p7), %v1253_v38, %v1231_v39 }
  0x80   : > { %1190 = vmatprep.subr.bf16.mxu1 %v1721_v48  ;;  %v1262_v48 = vrot.slane (!%p1522_p7), %v1253_v38, %v1235_v40 }
  0x82   : > { %1150 = vmatpush1.bf16.msra.mxu0 %v1716_v49 }
  0x83   : > { %1191 = vmatpush1.bf16.msra.mxu1 %v1719_v50  ;;  %1151 = vmatprep.subr.bf16.mxu0 %v1724_v51  ;;  %v1240_v51 = vrot.slane (!%p1522_p7), %v1227_v37, %v1239_v41 }
  0x84   : > { %1192 = vmatprep.subr.bf16.mxu1 %v1727_v52  ;;  %v1244_v52 = vrot.slane (!%p1522_p7), %v1227_v37, %v1243_v42 }
  0x86   : > { %1152 = vmatpush1.bf16.msra.mxu0 %v1722_v53  ;;  %v1266_v53 = vrot.slane (!%p1522_p7), %v1253_v38, %v1239_v41 }
  0x87   : > { %1193 = vmatpush1.bf16.msra.mxu1 %v1725_v54  ;;  %1153 = vmatprep.subr.bf16.mxu0 %v1730_v55  ;;  %v1270_v54 = vrot.slane (!%p1522_p7), %v1253_v38, %v1243_v42 }
  0x88   : > { %1194 = vmatprep.subr.bf16.mxu1 %v1733_v56 }
  0x8a   : > { %1154 = vmatpush1.bf16.msra.mxu0 %v1728_v57 }
  0x8b   : > { %1195 = vmatpush1.bf16.msra.mxu1 %v1731_v58  ;;  %1155 = vmatprep.subr.bf16.mxu0 %v1736_v59 }
  0x8c   : > { %1196 = vmatprep.subr.bf16.mxu1 %v1739_v60 }
  0x8e   : > { %1156 = vmatpush1.bf16.msra.mxu0 %v1734_v61 }
  0x8f   : > { %1197 = vmatpush1.bf16.msra.mxu1 %v1737_v62  ;;  %1157 = vmatprep.subr.bf16.mxu0 %v1742_v63 }
  0x90   : > { %1198 = vmatprep.subr.bf16.mxu1 %v1745_v0 }
  0x92   : > { %1158 = vmatpush1.bf16.msra.mxu0 %v1740_v1 }
  0x93   : > { %1199 = vmatpush1.bf16.msra.mxu1 %v1743_v2  ;;  %1159 = vmatprep.subr.bf16.mxu0 %v1748_v3 }
  0x94   : > { %1200 = vmatprep.subr.bf16.mxu1 %v1751_v4 }
  0x96   : > { %1160 = vmatpush1.bf16.msra.mxu0 %v1746_v5 }
  0x97   : > { %1201 = vmatpush1.bf16.msra.mxu1 %v1749_v6 }
  0x99   : > { %1162 = vmatmul.mubr.bf16.vlgmr.msra.gmra.mrb[4].mxu0 %v1906_v7  ;;  %v261_v7 = vld [vmem:[#allocation2 + $0x10] sm:$0xff] }
  0x9a   : > { %1203 = vmatmul.mubr.bf16.vlgmr.msra.gmra.mrb[4].mxu1 %v1908_v8 }
 0x12c   : > { %v1081_v9 = vpop.f32.mrb[0].mxu0 }
 0x12d   : > { %v1122_v11 = vpop.f32.mrb[0].mxu1  ;;  %v1083_v13 = vpop.f32.mrb[1].mxu0 }
 0x12e   : > { %v1123_v12 = vadd.f32 %v1122_v11, %v1081_v9  ;;  %v1124_v15 = vpop.f32.mrb[1].mxu1  ;;  %v1085_v17 = vpop.f32.mrb[2].mxu0 }
 0x12f   : > { %v1125_v16 = vadd.f32 %v1124_v15, %v1083_v13  ;;  %v1126_v18 = vpop.f32.mrb[2].mxu1  ;;  %v1086_v20 = vpop.f32.mrb[3].mxu0 }
 0x130   : > { %v1211_v19 = vadd.f32 %v1123_v12, %v259_v10  ;;  %v1127_v21 = vpop.f32.mrb[3].mxu1 }
 0x131   : > { %v1212_v22 = vadd.f32 %v1125_v16, %v260_v14 }
 0x132   : > { %1215 = vst [vmem:[#allocation2] sm:$0xff] %v1211_v19 }
 0x133   : > { %1216 = vst [vmem:[#allocation2 + $0x8] sm:$0xff] %v1212_v22 }
 0x139   : > { %v1223_v43 = vld [vmem:[#allocation2] sm:$0xff] (!%p1522_p7) }
 0x13a   : > { %v1224_v44 = vld [vmem:[#allocation2 + $0x8] sm:$0xff] (!%p1522_p7)  ;;  %v1249_v55 = vmul.f32 (!%p1522_p7), %v1232_v45, %v1223_v43 }
 0x13b   : > { %v1250_v56 = vmul.f32 (!%p1522_p7), %v1236_v46, %v1224_v44 }
 0x13c   : > { %v1275_v59 = vadd.f32 (!%p1522_p7), %v1258_v47, %v1249_v55 }
 0x13d   : > { %v1276_v60 = vadd.f32 (!%p1522_p7), %v1262_v48, %v1250_v56 }
 0x13e   : > { %v1279_v63 = vmax.f32 (!%p1522_p7), %v1275_v59, 0.0 }
 0x13f   : > { %v1280_v0 = vmax.f32 (!%p1522_p7), %v1276_v60, 0.0 }
 0x141   : > { %v1529_v3 = vpack.c.bf16 (!%p1522_p7), %v1280_v0, %v1279_v63 }
 0x143   : > { %1299 = vst [vmem:[%s2003_s4] sm:$0xff] (!%p1522_p7), %v1529_v3 }
 0x16c   : > { %v1163_v23 = vpop.f32.mrb[4].mxu0 }
 0x16d   : > { %v1204_v24 = vpop.f32.mrb[4].mxu1  ;;  %v1165_v25 = vpop.f32.mrb[5].mxu0  ;;  %1222 = sbr.rel (%p1522_p7) target bundleno = 388 (0x184), region = 44 }
 0x16e   : > { %v1205_v8 = vadd.f32 %v1204_v24, %v1163_v23  ;;  %v1206_v27 = vpop.f32.mrb[5].mxu1  ;;  %v1167_v29 = vpop.f32.mrb[6].mxu0 }
 0x16f   : > { %v1207_v28 = vadd.f32 %v1206_v27, %v1165_v25  ;;  %v1208_v30 = vpop.f32.mrb[6].mxu1  ;;  %v1168_v32 = vpop.f32.mrb[7].mxu0 }
 0x170   : > { %v1213_v31 = vadd.f32 %v1205_v8, %v261_v7  ;;  %v1209_v33 = vpop.f32.mrb[7].mxu1 }
 0x171   : > { %v1214_v34 = vadd.f32 %v1207_v28, %v262_v26 }
 0x172   : > { %1217 = vst [vmem:[#allocation2 + $0x10] sm:$0xff] %v1213_v31 }
 0x173   : > { %1218 = vst [vmem:[#allocation2 + $0x18] sm:$0xff] %v1214_v34 }
 0x179   : > { %v1225_v49 = vld [vmem:[#allocation2 + $0x10] sm:$0xff] }
 0x17a   : > { %v1226_v50 = vld [vmem:[#allocation2 + $0x18] sm:$0xff]  ;;  %v1251_v57 = vmul.f32 %v1240_v51, %v1225_v49 }
 0x17b   : > { %v1252_v58 = vmul.f32 %v1244_v52, %v1226_v50 }
 0x17c   : > { %v1277_v61 = vadd.f32 %v1266_v53, %v1251_v57 }
 0x17d   : > { %v1278_v62 = vadd.f32 %v1270_v54, %v1252_v58 }
 0x17e   : > { %v1281_v1 = vmax.f32 %v1277_v61, 0.0 }
 0x17f   : > { %v1282_v2 = vmax.f32 %v1278_v62, 0.0 }
 0x181   : > { %v1530_v4 = vpack.c.bf16 %v1282_v2, %v1281_v1 }
 0x183   : > { %1300 = vst [vmem:[%s2003_s4 + $0x8] sm:$0xff] %v1530_v4 }
 0x184 PF: > { %s14_s17 = sadd.s32 1, %s1774_s17   ;;  %s2004_s15 = smov %s1770_s16 }
 0x185   : > { %p11_p8 = scmp.ge.s32.totalorder %s14_s17, 7   ;;  %s2005_s16 = smov %s2007_s18 }
 0x187   :  { %13 = sbr.rel (!%p11_p8) target bundleno = 2 (0x2), region = 77 }

// kernel: resnet18_binary_forward.38
= control target key start
LH: loop header
LB: loop body
LE: loop exit
PB: predicated region body
PF: predicated region fallthrough
CT: control target
= control target key end

     0   :  { %s992_s1 = inlined_call_operand.vmem [shape: bf16[256,512], index: 1, kind: input, shape index: {}]   ;;  %s993_s0 = inlined_call_operand.vmem [shape: bf16[8,256], index: 0, kind: input, shape index: {}]   ;;  %s994_s2 = inlined_call_operand.vmem [shape: f32[1,512], index: 2, kind: input, shape index: {}]   ;;  %s995_s3 = inlined_call_operand.vmem [shape: f32[1,512], index: 3, kind: input, shape index: {}]   ;;  %s996_s4 = inlined_call_operand.vmem [shape: bf16[8,512], index: 4, kind: output, shape index: {}]  }
   0x1   :  { %v662_v0 = vld [vmem:[%s992_s1 + $0x4] ss:$16 sps:$4 sm:$0xff]   ;;  %v664_v1 = vld [vmem:[%s992_s1 + $0xc] ss:$16 sps:$4 sm:$0xff]   ;;  %v666_v2 = vld [vmem:[%s992_s1] ss:$16 sps:$4 sm:$0xff]  }
   0x2   :  { %421 = vmatprep.subr.bf16.mxu0 %v662_v0  ;;  %v667_v3 = vld [vmem:[%s992_s1 + $0x8] ss:$16 sps:$4 sm:$0xff]   ;;  %462 = vmatprep.subr.bf16.mxu1 %v664_v1  ;;  %v668_v4 = vld [vmem:[%s992_s1 + $0x24] ss:$16 sps:$4 sm:$0xff]   ;;  %v670_v5 = vld [vmem:[%s992_s1 + $0x2c] ss:$16 sps:$4 sm:$0xff]  }
   0x3   :  { %422 = vmatpush1.bf16.msra.mxu0 %v666_v2  ;;  %463 = vmatpush1.bf16.msra.mxu1 %v667_v3  ;;  %v672_v6 = vld [vmem:[%s992_s1 + $0x20] ss:$16 sps:$4 sm:$0xff]   ;;  %v673_v7 = vld [vmem:[%s992_s1 + $0x28] ss:$16 sps:$4 sm:$0xff]   ;;  %v674_v8 = vld [vmem:[%s992_s1 + $0x44] ss:$16 sps:$4 sm:$0xff]   ;;  %v520_v3 = vlaneseq }
   0x4   :  { %423 = vmatprep.subr.bf16.mxu0 %v668_v4  ;;  %464 = vmatprep.subr.bf16.mxu1 %v670_v5  ;;  %v676_v9 = vld [vmem:[%s992_s1 + $0x4c] ss:$16 sps:$4 sm:$0xff]   ;;  %v678_v10 = vld [vmem:[%s992_s1 + $0x40] ss:$16 sps:$4 sm:$0xff]   ;;  %v679_v11 = vld [vmem:[%s992_s1 + $0x48] ss:$16 sps:$4 sm:$0xff]  }
   0x5   :  { %v680_v12 = vld [vmem:[%s992_s1 + $0x64] ss:$16 sps:$4 sm:$0xff]   ;;  %v682_v13 = vld [vmem:[%s992_s1 + $0x6c] ss:$16 sps:$4 sm:$0xff]   ;;  %v684_v14 = vld [vmem:[%s992_s1 + $0x60] ss:$16 sps:$4 sm:$0xff]  }
   0x6   :  { %v685_v15 = vld [vmem:[%s992_s1 + $0x68] ss:$16 sps:$4 sm:$0xff]   ;;  %v686_v16 = vld [vmem:[%s992_s1 + $0x84] ss:$16 sps:$4 sm:$0xff]   ;;  %v688_v17 = vld [vmem:[%s992_s1 + $0x8c] ss:$16 sps:$4 sm:$0xff]  }
   0x7   :  { %424 = vmatpush1.bf16.msra.mxu0 %v672_v6  ;;  %465 = vmatpush1.bf16.msra.mxu1 %v673_v7  ;;  %v690_v18 = vld [vmem:[%s992_s1 + $0x80] ss:$16 sps:$4 sm:$0xff]   ;;  %v691_v19 = vld [vmem:[%s992_s1 + $0x88] ss:$16 sps:$4 sm:$0xff]   ;;  %v692_v20 = vld [vmem:[%s992_s1 + $0xa4] ss:$16 sps:$4 sm:$0xff]  }
   0x8   :  { %425 = vmatprep.subr.bf16.mxu0 %v674_v8  ;;  %466 = vmatprep.subr.bf16.mxu1 %v676_v9  ;;  %v694_v21 = vld [vmem:[%s992_s1 + $0xac] ss:$16 sps:$4 sm:$0xff]   ;;  %v696_v22 = vld [vmem:[%s992_s1 + $0xa0] ss:$16 sps:$4 sm:$0xff]   ;;  %v697_v23 = vld [vmem:[%s992_s1 + $0xa8] ss:$16 sps:$4 sm:$0xff]  }
   0x9   :  { %v698_v24 = vld [vmem:[%s992_s1 + $0xc4] ss:$16 sps:$4 sm:$0xff]   ;;  %v700_v25 = vld [vmem:[%s992_s1 + $0xcc] ss:$16 sps:$4 sm:$0xff]   ;;  %v702_v26 = vld [vmem:[%s992_s1 + $0xc0] ss:$16 sps:$4 sm:$0xff]  }
   0xa   :  { %v703_v27 = vld [vmem:[%s992_s1 + $0xc8] ss:$16 sps:$4 sm:$0xff]   ;;  %v704_v28 = vld [vmem:[%s992_s1 + $0xe4] ss:$16 sps:$4 sm:$0xff]   ;;  %v706_v29 = vld [vmem:[%s992_s1 + $0xec] ss:$16 sps:$4 sm:$0xff]  }
   0xb   :  { %426 = vmatpush1.bf16.msra.mxu0 %v678_v10  ;;  %467 = vmatpush1.bf16.msra.mxu1 %v679_v11  ;;  %v708_v30 = vld [vmem:[%s992_s1 + $0xe0] ss:$16 sps:$4 sm:$0xff]   ;;  %v709_v31 = vld [vmem:[%s992_s1 + $0xe8] ss:$16 sps:$4 sm:$0xff]   ;;  %v710_v32 = vld [vmem:[%s992_s1 + $0x104] ss:$16 sps:$4 sm:$0xff]  }
   0xc   :  { %427 = vmatprep.subr.bf16.mxu0 %v680_v12  ;;  %468 = vmatprep.subr.bf16.mxu1 %v682_v13  ;;  %v712_v33 = vld [vmem:[%s992_s1 + $0x10c] ss:$16 sps:$4 sm:$0xff]   ;;  %v714_v34 = vld [vmem:[%s992_s1 + $0x100] ss:$16 sps:$4 sm:$0xff]   ;;  %v715_v35 = vld [vmem:[%s992_s1 + $0x108] ss:$16 sps:$4 sm:$0xff]  }
   0xd   :  { %v716_v36 = vld [vmem:[%s992_s1 + $0x124] ss:$16 sps:$4 sm:$0xff]   ;;  %v718_v37 = vld [vmem:[%s992_s1 + $0x12c] ss:$16 sps:$4 sm:$0xff]   ;;  %v720_v38 = vld [vmem:[%s992_s1 + $0x120] ss:$16 sps:$4 sm:$0xff]  }
   0xe   :  { %v721_v39 = vld [vmem:[%s992_s1 + $0x128] ss:$16 sps:$4 sm:$0xff]   ;;  %v722_v40 = vld [vmem:[%s992_s1 + $0x144] ss:$16 sps:$4 sm:$0xff]   ;;  %v724_v41 = vld [vmem:[%s992_s1 + $0x14c] ss:$16 sps:$4 sm:$0xff]  }
   0xf   :  { %428 = vmatpush1.bf16.msra.mxu0 %v684_v14  ;;  %469 = vmatpush1.bf16.msra.mxu1 %v685_v15  ;;  %v726_v42 = vld [vmem:[%s992_s1 + $0x140] ss:$16 sps:$4 sm:$0xff]   ;;  %v727_v43 = vld [vmem:[%s992_s1 + $0x148] ss:$16 sps:$4 sm:$0xff]   ;;  %v728_v44 = vld [vmem:[%s992_s1 + $0x164] ss:$16 sps:$4 sm:$0xff]  }
  0x10   :  { %429 = vmatprep.subr.bf16.mxu0 %v686_v16  ;;  %470 = vmatprep.subr.bf16.mxu1 %v688_v17  ;;  %v730_v45 = vld [vmem:[%s992_s1 + $0x16c] ss:$16 sps:$4 sm:$0xff]   ;;  %v29_v46 = vld [vmem:[%s993_s0] sm:$0xff]  ;;  %v733_v49 = vld [vmem:[%s992_s1 + $0x168] ss:$16 sps:$4 sm:$0xff]   ;;  %v521_v4 = vshrl.u32 %v520_v3, 7 }
  0x11   :  { %v593_v47 = vcombine.high %v29_v46, %v29_v46  ;;  %v732_v48 = vld [vmem:[%s992_s1 + $0x160] ss:$16 sps:$4 sm:$0xff]   ;;  %v734_v50 = vld [vmem:[%s992_s1 + $0x184] ss:$16 sps:$4 sm:$0xff]   ;;  %v736_v51 = vld [vmem:[%s992_s1 + $0x18c] ss:$16 sps:$4 sm:$0xff]   ;;  %v592_v2 = vcombine.low %v29_v46, %v29_v46 }
  0x12   :  { %v738_v52 = vld [vmem:[%s992_s1 + $0x180] ss:$16 sps:$4 sm:$0xff]   ;;  %v739_v53 = vld [vmem:[%s992_s1 + $0x188] ss:$16 sps:$4 sm:$0xff]   ;;  %v740_v54 = vld [vmem:[%s992_s1 + $0x1a4] ss:$16 sps:$4 sm:$0xff]  }
  0x13   :  { %430 = vmatpush1.bf16.msra.mxu0 %v690_v18  ;;  %471 = vmatpush1.bf16.msra.mxu1 %v691_v19  ;;  %v742_v55 = vld [vmem:[%s992_s1 + $0x1ac] ss:$16 sps:$4 sm:$0xff]   ;;  %v744_v56 = vld [vmem:[%s992_s1 + $0x1a0] ss:$16 sps:$4 sm:$0xff]   ;;  %v745_v57 = vld [vmem:[%s992_s1 + $0x1a8] ss:$16 sps:$4 sm:$0xff]  }
  0x14   :  { %431 = vmatprep.subr.bf16.mxu0 %v692_v20  ;;  %472 = vmatprep.subr.bf16.mxu1 %v694_v21  ;;  %v746_v58 = vld [vmem:[%s992_s1 + $0x1c4] ss:$16 sps:$4 sm:$0xff]   ;;  %v748_v59 = vld [vmem:[%s992_s1 + $0x1cc] ss:$16 sps:$4 sm:$0xff]   ;;  %v750_v60 = vld [vmem:[%s992_s1 + $0x1c0] ss:$16 sps:$4 sm:$0xff]  }
  0x15   :  { %453 = vmatprep.mubr.bf16.mxu0 %v593_v47  ;;  %494 = vmatprep.mubr.bf16.mxu1 %v593_v47  ;;  %v751_v61 = vld [vmem:[%s992_s1 + $0x1c8] ss:$16 sps:$4 sm:$0xff]   ;;  %v752_v62 = vld [vmem:[%s992_s1 + $0x1e4] ss:$16 sps:$4 sm:$0xff]   ;;  %v754_v63 = vld [vmem:[%s992_s1 + $0x1ec] ss:$16 sps:$4 sm:$0xff]  }
  0x16   :  { %v756_v0 = vld [vmem:[%s992_s1 + $0x1e0] ss:$16 sps:$4 sm:$0xff]   ;;  %v757_v1 = vld [vmem:[%s992_s1 + $0x1e8] ss:$16 sps:$4 sm:$0xff]   ;;  %v522_v5 = vsub.s32 0, %v521_v4  ;;  %v530_v6 = vsub.s32 2, %v521_v4 }
  0x17   :  { %432 = vmatpush1.bf16.msra.mxu0 %v696_v22  ;;  %473 = vmatpush1.bf16.msra.mxu1 %v697_v23  ;;  %v518_v7 = vld [vmem:[%s994_s2] sm:$0xf]  ;;  %v526_v8 = vsub.s32 1, %v521_v4  ;;  %v534_v9 = vsub.s32 3, %v521_v4 }
  0x18   :  { %433 = vmatprep.subr.bf16.mxu0 %v698_v24  ;;  %474 = vmatprep.subr.bf16.mxu1 %v700_v25  ;;  %v544_v10 = vld [vmem:[%s995_s3] sm:$0xf]  ;;  %v523_v11 = vrot.slane %v518_v7, %v522_v5  ;;  %v531_v12 = vrot.slane %v518_v7, %v530_v6 }
  0x19   :  { %v527_v13 = vrot.slane %v518_v7, %v526_v8  ;;  %v535_v14 = vrot.slane %v518_v7, %v534_v9  ;;  %v549_v15 = vrot.slane %v544_v10, %v522_v5  ;;  %v557_v16 = vrot.slane %v544_v10, %v530_v6 }
  0x1a   :  { %v553_v19 = vrot.slane %v544_v10, %v526_v8  ;;  %v561_v20 = vrot.slane %v544_v10, %v534_v9 }
  0x1b   :  { %434 = vmatpush1.bf16.msra.mxu0 %v702_v26  ;;  %475 = vmatpush1.bf16.msra.mxu1 %v703_v27 }
  0x1c   :  { %435 = vmatprep.subr.bf16.mxu0 %v704_v28  ;;  %476 = vmatprep.subr.bf16.mxu1 %v706_v29 }
  0x1f   :  { %436 = vmatpush1.bf16.msra.mxu0 %v708_v30  ;;  %477 = vmatpush1.bf16.msra.mxu1 %v709_v31 }
  0x20   :  { %437 = vmatprep.subr.bf16.mxu0 %v710_v32  ;;  %478 = vmatprep.subr.bf16.mxu1 %v712_v33 }
  0x23   :  { %438 = vmatpush1.bf16.msra.mxu0 %v714_v34  ;;  %479 = vmatpush1.bf16.msra.mxu1 %v715_v35 }
  0x24   :  { %439 = vmatprep.subr.bf16.mxu0 %v716_v36  ;;  %480 = vmatprep.subr.bf16.mxu1 %v718_v37 }
  0x27   :  { %440 = vmatpush1.bf16.msra.mxu0 %v720_v38  ;;  %481 = vmatpush1.bf16.msra.mxu1 %v721_v39 }
  0x28   :  { %441 = vmatprep.subr.bf16.mxu0 %v722_v40  ;;  %482 = vmatprep.subr.bf16.mxu1 %v724_v41 }
  0x2b   :  { %442 = vmatpush1.bf16.msra.mxu0 %v726_v42  ;;  %483 = vmatpush1.bf16.msra.mxu1 %v727_v43 }
  0x2c   :  { %443 = vmatprep.subr.bf16.mxu0 %v728_v44  ;;  %484 = vmatprep.subr.bf16.mxu1 %v730_v45 }
  0x2f   :  { %444 = vmatpush1.bf16.msra.mxu0 %v732_v48  ;;  %485 = vmatpush1.bf16.msra.mxu1 %v733_v49 }
  0x30   :  { %445 = vmatprep.subr.bf16.mxu0 %v734_v50  ;;  %486 = vmatprep.subr.bf16.mxu1 %v736_v51 }
  0x33   :  { %446 = vmatpush1.bf16.msra.mxu0 %v738_v52  ;;  %487 = vmatpush1.bf16.msra.mxu1 %v739_v53 }
  0x34   :  { %447 = vmatprep.subr.bf16.mxu0 %v740_v54  ;;  %488 = vmatprep.subr.bf16.mxu1 %v742_v55 }
  0x37   :  { %448 = vmatpush1.bf16.msra.mxu0 %v744_v56  ;;  %489 = vmatpush1.bf16.msra.mxu1 %v745_v57 }
  0x38   :  { %449 = vmatprep.subr.bf16.mxu0 %v746_v58  ;;  %490 = vmatprep.subr.bf16.mxu1 %v748_v59 }
  0x3b   :  { %450 = vmatpush1.bf16.msra.mxu0 %v750_v60  ;;  %491 = vmatpush1.bf16.msra.mxu1 %v751_v61 }
  0x3c   :  { %451 = vmatprep.subr.bf16.mxu0 %v752_v62  ;;  %492 = vmatprep.subr.bf16.mxu1 %v754_v63 }
  0x3f   :  { %452 = vmatpush1.bf16.msra.mxu0 %v756_v0  ;;  %493 = vmatpush1.bf16.msra.mxu1 %v757_v1 }
  0x42   :  { %454 = vmatmul.mubr.bf16.vlgmr.msra.gmra.mrb[0].mxu0 %v592_v2  ;;  %495 = vmatmul.mubr.bf16.vlgmr.msra.gmra.mrb[0].mxu1 %v592_v2 }
 0x115   :  { %v455_v17 = vpop.f32.mrb[0].mxu0  ;;  %v496_v18 = vpop.f32.mrb[0].mxu1 }
 0x116   :  { %v540_v21 = vmul.f32 %v523_v11, %v455_v17  ;;  %v542_v22 = vmul.f32 %v531_v12, %v496_v18  ;;  %v457_v23 = vpop.f32.mrb[1].mxu0  ;;  %v498_v24 = vpop.f32.mrb[1].mxu1 }
 0x117   :  { %v541_v25 = vmul.f32 %v527_v13, %v457_v23  ;;  %v543_v26 = vmul.f32 %v535_v14, %v498_v24  ;;  %v459_v27 = vpop.f32.mrb[2].mxu0  ;;  %v500_v28 = vpop.f32.mrb[2].mxu1 }
 0x118   :  { %v566_v29 = vadd.f32 %v549_v15, %v540_v21  ;;  %v568_v30 = vadd.f32 %v557_v16, %v542_v22  ;;  %v460_v31 = vpop.f32.mrb[3].mxu0  ;;  %v501_v32 = vpop.f32.mrb[3].mxu1 }
 0x119   :  { %v567_v33 = vadd.f32 %v553_v19, %v541_v25  ;;  %v569_v34 = vadd.f32 %v561_v20, %v543_v26 }
 0x11b   :  { %v660_v35 = vpack.c.bf16 %v567_v33, %v566_v29  ;;  %v661_v36 = vpack.c.bf16 %v569_v34, %v568_v30 }
 0x11d   :  { %586 = vst [vmem:[%s996_s4] sm:$0xff] %v660_v35  ;;  %587 = vst [vmem:[%s996_s4 + $0x8] sm:$0xff] %v661_v36 }

// kernel: resnet18_binary_forward.40
= control target key start
LH: loop header
LB: loop body
LE: loop exit
PB: predicated region body
PF: predicated region fallthrough
CT: control target
= control target key end

     0   :  { %s1880_s18 = smov 0   ;;  %s1882_s19 = smov 0   ;;  %s2083_s0 = inlined_call_operand.vmem [shape: bf16[8,4608], index: 0, kind: input, shape index: {}]   ;;  %s2084_s1 = inlined_call_operand.vmem [shape: bf16[4608,512], index: 1, kind: input, shape index: {}]   ;;  %s2085_s2 = inlined_call_operand.vmem [shape: f32[1,512], index: 2, kind: input, shape index: {}]   ;;  %s2086_s3 = inlined_call_operand.vmem [shape: f32[1,512], index: 3, kind: input, shape index: {}]   ;;  %s2087_s4 = inlined_call_operand.vmem [shape: bf16[8,512], index: 4, kind: input, shape index: {}]   ;;  %s2088_s5 = inlined_call_operand.vmem [shape: bf16[8,512], index: 5, kind: output, shape index: {}]  }
   0x1   :  { %s1884_s20 = smov 0  }
   0x2 LB: > { %s24_s21 = sadd.s32 1, %s1843_s19  ;;  %p1456_p0 = scmp.ge.s32.totalorder %s1847_s20, 1  ;;  %s1847_s20 = sphi %s1884_s20, %s15_s20   ;;  %s1843_s19 = sphi %s1882_s19, %s2090_s19   ;;  %s1839_s18 = sphi %s1880_s18, %s2089_s18  }
   0x3   : > { %p25_p1 = scmp.ge.s32.totalorder %s24_s21, 9  ;;  %p228_p2 = scmp.lt.s32.totalorder %s1847_s20, 10 }
   0x5   : > { %s2092_s21 = smov (%p25_p1, %s24_s21), 0  ;;  %p229_p3 = pnand %p1456_p0, %p228_p2 }
   0x6   : > { %s1457_s22 = sshll.u32 (!%p229_p3), %s1839_s18, 2  ;;  %s1459_s23 = sshll.u32 (!%p229_p3), %s1839_s18, 6 }
   0x7   : > { %232 = sbr.rel (%p229_p3) target bundleno = 390 (0x186), region = 40  ;;  %p274_p4 = scmp.lt.s32.totalorder (!%p229_p3), %s1457_s22, 35 }
   0x8   : > { %p282_p5 = scmp.lt.s32.totalorder (!%p229_p3), %s1459_s23, 575  ;;  %p1462_p6 = scmp.ne.s32.totalorder (!%p229_p3), %s1839_s18, 0 }
   0xe   : > { %s2094_s22 = smov (!%p274_p4, %s1457_s22), 35  ;;  %s2096_s23 = smov (!%p282_p5, %s1459_s23), 575 }
   0xf   : > { %s1458_s24 = sshll.u32 %s2094_s22, 2  ;;  %s1601_s28 = sshll.u32 %s2096_s23, 4  ;;  %v1849_v0 = vmov (!%p1462_p6), 0.0  }
  0x10   : > { %s1905_s27 = scalar_lea.vmem %s2083_s0, %s1458_s24  ;;  %s1910_s6 = scalar_lea.vmem %s2084_s1, %s1601_s28  ;;  %302 = vst [vmem:[#allocation2] sm:$0xff] (!%p1462_p6), %v1849_v0  ;;  %303 = vst [vmem:[#allocation2 + $0x8] sm:$0xff] (!%p1462_p6), %v1849_v0 }
  0x11   : > { %301 = sbr.rel (%p1462_p6) target bundleno = 24 (0x18), region = 44  ;;  %304 = vst [vmem:[#allocation2 + $0x10] sm:$0xff] (!%p1462_p6), %v1849_v0  ;;  %305 = vst [vmem:[#allocation2 + $0x18] sm:$0xff] (!%p1462_p6), %v1849_v0 }
  0x18 PF: > { %v1629_v1 = vld [vmem:[%s1910_s6 + $0x4] ss:$16 sps:$4 sm:$0xff]   ;;  %v1633_v3 = vld [vmem:[%s1910_s6] ss:$16 sps:$4 sm:$0xff]   ;;  %v311_v49 = vld [vmem:[%s1905_s27 + $0x8] sm:$0xff]  ;;  %p1595_p7 = scmp.ne.s32.totalorder %s1839_s18, 8 }
  0x19   : > { %v1631_v2 = vld [vmem:[%s1910_s6 + $0x204] ss:$16 sps:$4 sm:$0xff]   ;;  %1094 = vmatprep.subr.bf16.mxu0 %v1629_v1  ;;  %v1634_v4 = vld [vmem:[%s1910_s6 + $0x200] ss:$16 sps:$4 sm:$0xff]   ;;  %v1466_v52 = vcombine.high %v311_v49, %v311_v49 }
  0x1a   : > { %1135 = vmatprep.subr.bf16.mxu1 %v1631_v2  ;;  %v1635_v5 = vld [vmem:[%s1910_s6 + $0x24] ss:$16 sps:$4 sm:$0xff]   ;;  %1095 = vmatpush1.bf16.msra.mxu0 %v1633_v3  ;;  %v1639_v7 = vld [vmem:[%s1910_s6 + $0x20] ss:$16 sps:$4 sm:$0xff]  }
  0x1b   : > { %1136 = vmatpush1.bf16.msra.mxu1 %v1634_v4  ;;  %v1637_v6 = vld [vmem:[%s1910_s6 + $0x224] ss:$16 sps:$4 sm:$0xff]   ;;  %1096 = vmatprep.subr.bf16.mxu0 %v1635_v5  ;;  %v1640_v8 = vld [vmem:[%s1910_s6 + $0x220] ss:$16 sps:$4 sm:$0xff]   ;;  %v1731_v5 = vld [vmem:[%s1910_s6 + $0xc] ss:$16 sps:$4 sm:$0xff]  }
  0x1c   : > { %1137 = vmatprep.subr.bf16.mxu1 %v1637_v6  ;;  %v1641_v9 = vld [vmem:[%s1910_s6 + $0x44] ss:$16 sps:$4 sm:$0xff]   ;;  %v1645_v11 = vld [vmem:[%s1910_s6 + $0x40] ss:$16 sps:$4 sm:$0xff]   ;;  %1167 = vmatprep.mubr.bf16.mxu1 %v1466_v52  ;;  %v1734_v6 = vld [vmem:[%s1910_s6 + $0x20c] ss:$16 sps:$4 sm:$0xff]  }
  0x1d   : > { %v1643_v10 = vld [vmem:[%s1910_s6 + $0x244] ss:$16 sps:$4 sm:$0xff]   ;;  %v1646_v12 = vld [vmem:[%s1910_s6 + $0x240] ss:$16 sps:$4 sm:$0xff]  }
  0x1e   : > { %1097 = vmatpush1.bf16.msra.mxu0 %v1639_v7  ;;  %v1647_v13 = vld [vmem:[%s1910_s6 + $0x64] ss:$16 sps:$4 sm:$0xff]   ;;  %v1651_v15 = vld [vmem:[%s1910_s6 + $0x60] ss:$16 sps:$4 sm:$0xff]  }
  0x1f   : > { %1138 = vmatpush1.bf16.msra.mxu1 %v1640_v8  ;;  %1098 = vmatprep.subr.bf16.mxu0 %v1641_v9  ;;  %v1649_v14 = vld [vmem:[%s1910_s6 + $0x264] ss:$16 sps:$4 sm:$0xff]   ;;  %v1652_v16 = vld [vmem:[%s1910_s6 + $0x260] ss:$16 sps:$4 sm:$0xff]   ;;  %v1986_v8 = vcombine.low %v311_v49, %v311_v49  ;;  %v1729_v9 = vld [vmem:[%s1910_s6 + $0x8] ss:$16 sps:$4 sm:$0xff]  }
  0x20   : > { %1139 = vmatprep.subr.bf16.mxu1 %v1643_v10  ;;  %v1653_v17 = vld [vmem:[%s1910_s6 + $0x84] ss:$16 sps:$4 sm:$0xff]   ;;  %v1657_v19 = vld [vmem:[%s1910_s6 + $0x80] ss:$16 sps:$4 sm:$0xff]   ;;  %v1732_v10 = vld [vmem:[%s1910_s6 + $0x208] ss:$16 sps:$4 sm:$0xff]  }
  0x21   : > { %v1655_v18 = vld [vmem:[%s1910_s6 + $0x284] ss:$16 sps:$4 sm:$0xff]   ;;  %v1658_v20 = vld [vmem:[%s1910_s6 + $0x280] ss:$16 sps:$4 sm:$0xff]   ;;  %v1789_v49 = vld [vmem:[%s1910_s6 + $0x148] ss:$16 sps:$4 sm:$0xff]  }
  0x22   : > { %1099 = vmatpush1.bf16.msra.mxu0 %v1645_v11  ;;  %v1659_v21 = vld [vmem:[%s1910_s6 + $0xa4] ss:$16 sps:$4 sm:$0xff]   ;;  %v1663_v23 = vld [vmem:[%s1910_s6 + $0xa0] ss:$16 sps:$4 sm:$0xff]   ;;  %v1737_v11 = vld [vmem:[%s1910_s6 + $0x2c] ss:$16 sps:$4 sm:$0xff]  }
  0x23   : > { %1140 = vmatpush1.bf16.msra.mxu1 %v1646_v12  ;;  %1100 = vmatprep.subr.bf16.mxu0 %v1647_v13  ;;  %v1661_v22 = vld [vmem:[%s1910_s6 + $0x2a4] ss:$16 sps:$4 sm:$0xff]   ;;  %v1664_v24 = vld [vmem:[%s1910_s6 + $0x2a0] ss:$16 sps:$4 sm:$0xff]   ;;  %v1740_v12 = vld [vmem:[%s1910_s6 + $0x22c] ss:$16 sps:$4 sm:$0xff]  }
  0x24   : > { %1141 = vmatprep.subr.bf16.mxu1 %v1649_v14  ;;  %v1665_v25 = vld [vmem:[%s1910_s6 + $0xc4] ss:$16 sps:$4 sm:$0xff]   ;;  %v1669_v27 = vld [vmem:[%s1910_s6 + $0xc0] ss:$16 sps:$4 sm:$0xff]   ;;  %v1735_v13 = vld [vmem:[%s1910_s6 + $0x28] ss:$16 sps:$4 sm:$0xff]  }
  0x25   : > { %v1667_v26 = vld [vmem:[%s1910_s6 + $0x2c4] ss:$16 sps:$4 sm:$0xff]   ;;  %v1670_v28 = vld [vmem:[%s1910_s6 + $0x2c0] ss:$16 sps:$4 sm:$0xff]   ;;  %v1738_v14 = vld [vmem:[%s1910_s6 + $0x228] ss:$16 sps:$4 sm:$0xff]  }
  0x26   : > { %1101 = vmatpush1.bf16.msra.mxu0 %v1651_v15  ;;  %v1671_v29 = vld [vmem:[%s1910_s6 + $0xe4] ss:$16 sps:$4 sm:$0xff]   ;;  %v1675_v31 = vld [vmem:[%s1910_s6 + $0xe0] ss:$16 sps:$4 sm:$0xff]   ;;  %v1743_v15 = vld [vmem:[%s1910_s6 + $0x4c] ss:$16 sps:$4 sm:$0xff]  }
  0x27   : > { %1142 = vmatpush1.bf16.msra.mxu1 %v1652_v16  ;;  %1102 = vmatprep.subr.bf16.mxu0 %v1653_v17  ;;  %v1673_v30 = vld [vmem:[%s1910_s6 + $0x2e4] ss:$16 sps:$4 sm:$0xff]   ;;  %v1676_v32 = vld [vmem:[%s1910_s6 + $0x2e0] ss:$16 sps:$4 sm:$0xff]   ;;  %v1746_v16 = vld [vmem:[%s1910_s6 + $0x24c] ss:$16 sps:$4 sm:$0xff]  }
  0x28   : > { %1143 = vmatprep.subr.bf16.mxu1 %v1655_v18  ;;  %v1677_v33 = vld [vmem:[%s1910_s6 + $0x104] ss:$16 sps:$4 sm:$0xff]   ;;  %v1681_v35 = vld [vmem:[%s1910_s6 + $0x100] ss:$16 sps:$4 sm:$0xff]   ;;  %v1741_v17 = vld [vmem:[%s1910_s6 + $0x48] ss:$16 sps:$4 sm:$0xff]  }
  0x29   : > { %v1679_v34 = vld [vmem:[%s1910_s6 + $0x304] ss:$16 sps:$4 sm:$0xff]   ;;  %v1682_v36 = vld [vmem:[%s1910_s6 + $0x300] ss:$16 sps:$4 sm:$0xff]   ;;  %v1744_v18 = vld [vmem:[%s1910_s6 + $0x248] ss:$16 sps:$4 sm:$0xff]  }
  0x2a   : > { %1103 = vmatpush1.bf16.msra.mxu0 %v1657_v19  ;;  %v1683_v37 = vld [vmem:[%s1910_s6 + $0x124] ss:$16 sps:$4 sm:$0xff]   ;;  %v1687_v39 = vld [vmem:[%s1910_s6 + $0x120] ss:$16 sps:$4 sm:$0xff]   ;;  %v1749_v19 = vld [vmem:[%s1910_s6 + $0x6c] ss:$16 sps:$4 sm:$0xff]  }
  0x2b   : > { %1144 = vmatpush1.bf16.msra.mxu1 %v1658_v20  ;;  %1104 = vmatprep.subr.bf16.mxu0 %v1659_v21  ;;  %v1685_v38 = vld [vmem:[%s1910_s6 + $0x324] ss:$16 sps:$4 sm:$0xff]   ;;  %v1688_v40 = vld [vmem:[%s1910_s6 + $0x320] ss:$16 sps:$4 sm:$0xff]   ;;  %v1752_v20 = vld [vmem:[%s1910_s6 + $0x26c] ss:$16 sps:$4 sm:$0xff]  }
  0x2c   : > { %1145 = vmatprep.subr.bf16.mxu1 %v1661_v22  ;;  %v1689_v41 = vld [vmem:[%s1910_s6 + $0x144] ss:$16 sps:$4 sm:$0xff]   ;;  %v1693_v43 = vld [vmem:[%s1910_s6 + $0x140] ss:$16 sps:$4 sm:$0xff]   ;;  %v1747_v21 = vld [vmem:[%s1910_s6 + $0x68] ss:$16 sps:$4 sm:$0xff]  }
  0x2d   : > { %v1691_v42 = vld [vmem:[%s1910_s6 + $0x344] ss:$16 sps:$4 sm:$0xff]   ;;  %v1694_v44 = vld [vmem:[%s1910_s6 + $0x340] ss:$16 sps:$4 sm:$0xff]   ;;  %v1750_v22 = vld [vmem:[%s1910_s6 + $0x268] ss:$16 sps:$4 sm:$0xff]  }
  0x2e   : > { %1105 = vmatpush1.bf16.msra.mxu0 %v1663_v23  ;;  %v1695_v45 = vld [vmem:[%s1910_s6 + $0x164] ss:$16 sps:$4 sm:$0xff]   ;;  %v1699_v50 = vld [vmem:[%s1910_s6 + $0x160] ss:$16 sps:$4 sm:$0xff]   ;;  %v1755_v23 = vld [vmem:[%s1910_s6 + $0x8c] ss:$16 sps:$4 sm:$0xff]  }
  0x2f   : > { %1146 = vmatpush1.bf16.msra.mxu1 %v1664_v24  ;;  %1106 = vmatprep.subr.bf16.mxu0 %v1665_v25  ;;  %v1697_v46 = vld [vmem:[%s1910_s6 + $0x364] ss:$16 sps:$4 sm:$0xff]   ;;  %v1700_v51 = vld [vmem:[%s1910_s6 + $0x360] ss:$16 sps:$4 sm:$0xff]   ;;  %v1758_v24 = vld [vmem:[%s1910_s6 + $0x28c] ss:$16 sps:$4 sm:$0xff]  }
  0x30   : > { %1147 = vmatprep.subr.bf16.mxu1 %v1667_v26  ;;  %v310_v47 = vld [vmem:[%s1905_s27] sm:$0xff]  ;;  %v1753_v25 = vld [vmem:[%s1910_s6 + $0x88] ss:$16 sps:$4 sm:$0xff]  }
  0x31   : > { %v1960_v48 = vcombine.high %v310_v47, %v310_v47  ;;  %v1701_v53 = vld [vmem:[%s1910_s6 + $0x184] ss:$16 sps:$4 sm:$0xff]   ;;  %v1705_v55 = vld [vmem:[%s1910_s6 + $0x180] ss:$16 sps:$4 sm:$0xff]   ;;  %v1984_v7 = vcombine.low %v310_v47, %v310_v47  ;;  %v1756_v26 = vld [vmem:[%s1910_s6 + $0x288] ss:$16 sps:$4 sm:$0xff]  }
  0x32   : > { %1107 = vmatpush1.bf16.msra.mxu0 %v1669_v27  ;;  %v1703_v54 = vld [vmem:[%s1910_s6 + $0x384] ss:$16 sps:$4 sm:$0xff]   ;;  %v1706_v56 = vld [vmem:[%s1910_s6 + $0x380] ss:$16 sps:$4 sm:$0xff]   ;;  %v1761_v27 = vld [vmem:[%s1910_s6 + $0xac] ss:$16 sps:$4 sm:$0xff]  }
  0x33   : > { %1148 = vmatpush1.bf16.msra.mxu1 %v1670_v28  ;;  %1108 = vmatprep.subr.bf16.mxu0 %v1671_v29  ;;  %v1707_v57 = vld [vmem:[%s1910_s6 + $0x1a4] ss:$16 sps:$4 sm:$0xff]   ;;  %v1711_v59 = vld [vmem:[%s1910_s6 + $0x1a0] ss:$16 sps:$4 sm:$0xff]   ;;  %v1764_v28 = vld [vmem:[%s1910_s6 + $0x2ac] ss:$16 sps:$4 sm:$0xff]  }
  0x34   : > { %1149 = vmatprep.subr.bf16.mxu1 %v1673_v30  ;;  %1126 = vmatprep.mubr.bf16.mxu0 %v1960_v48  ;;  %v1709_v58 = vld [vmem:[%s1910_s6 + $0x3a4] ss:$16 sps:$4 sm:$0xff]   ;;  %v1712_v60 = vld [vmem:[%s1910_s6 + $0x3a0] ss:$16 sps:$4 sm:$0xff]   ;;  %v1759_v29 = vld [vmem:[%s1910_s6 + $0xa8] ss:$16 sps:$4 sm:$0xff]  }
  0x35   : > { %v1713_v61 = vld [vmem:[%s1910_s6 + $0x1c4] ss:$16 sps:$4 sm:$0xff]   ;;  %v1717_v63 = vld [vmem:[%s1910_s6 + $0x1c0] ss:$16 sps:$4 sm:$0xff]   ;;  %v1762_v30 = vld [vmem:[%s1910_s6 + $0x2a8] ss:$16 sps:$4 sm:$0xff]  }
  0x36   : > { %1109 = vmatpush1.bf16.msra.mxu0 %v1675_v31  ;;  %v1715_v62 = vld [vmem:[%s1910_s6 + $0x3c4] ss:$16 sps:$4 sm:$0xff]   ;;  %v1718_v0 = vld [vmem:[%s1910_s6 + $0x3c0] ss:$16 sps:$4 sm:$0xff]   ;;  %v1767_v31 = vld [vmem:[%s1910_s6 + $0xcc] ss:$16 sps:$4 sm:$0xff]  }
  0x37   : > { %1150 = vmatpush1.bf16.msra.mxu1 %v1676_v32  ;;  %1110 = vmatprep.subr.bf16.mxu0 %v1677_v33  ;;  %v1719_v1 = vld [vmem:[%s1910_s6 + $0x1e4] ss:$16 sps:$4 sm:$0xff]   ;;  %v1723_v3 = vld [vmem:[%s1910_s6 + $0x1e0] ss:$16 sps:$4 sm:$0xff]   ;;  %v1770_v32 = vld [vmem:[%s1910_s6 + $0x2cc] ss:$16 sps:$4 sm:$0xff]  }
  0x38   : > { %1151 = vmatprep.subr.bf16.mxu1 %v1679_v34  ;;  %v1721_v2 = vld [vmem:[%s1910_s6 + $0x3e4] ss:$16 sps:$4 sm:$0xff]   ;;  %v1724_v4 = vld [vmem:[%s1910_s6 + $0x3e0] ss:$16 sps:$4 sm:$0xff]   ;;  %v1765_v33 = vld [vmem:[%s1910_s6 + $0xc8] ss:$16 sps:$4 sm:$0xff]  }
  0x39   : > { %v1768_v34 = vld [vmem:[%s1910_s6 + $0x2c8] ss:$16 sps:$4 sm:$0xff]   ;;  %v1791_v47 = vld [vmem:[%s1910_s6 + $0x14c] ss:$16 sps:$4 sm:$0xff]  }
  0x3a   : > { %1111 = vmatpush1.bf16.msra.mxu0 %v1681_v35  ;;  %v1773_v35 = vld [vmem:[%s1910_s6 + $0xec] ss:$16 sps:$4 sm:$0xff]  }
  0x3b   : > { %1152 = vmatpush1.bf16.msra.mxu1 %v1682_v36  ;;  %1112 = vmatprep.subr.bf16.mxu0 %v1683_v37  ;;  %v1776_v36 = vld [vmem:[%s1910_s6 + $0x2ec] ss:$16 sps:$4 sm:$0xff]   ;;  %v1771_v37 = vld [vmem:[%s1910_s6 + $0xe8] ss:$16 sps:$4 sm:$0xff]  }
  0x3c   : > { %1153 = vmatprep.subr.bf16.mxu1 %v1685_v38  ;;  %v1774_v38 = vld [vmem:[%s1910_s6 + $0x2e8] ss:$16 sps:$4 sm:$0xff]  }
  0x3e   : > { %1113 = vmatpush1.bf16.msra.mxu0 %v1687_v39  ;;  %v1779_v39 = vld [vmem:[%s1910_s6 + $0x10c] ss:$16 sps:$4 sm:$0xff]  }
  0x3f   : > { %1154 = vmatpush1.bf16.msra.mxu1 %v1688_v40  ;;  %1114 = vmatprep.subr.bf16.mxu0 %v1689_v41  ;;  %v1782_v40 = vld [vmem:[%s1910_s6 + $0x30c] ss:$16 sps:$4 sm:$0xff]   ;;  %v1777_v41 = vld [vmem:[%s1910_s6 + $0x108] ss:$16 sps:$4 sm:$0xff]  }
  0x40   : > { %1155 = vmatprep.subr.bf16.mxu1 %v1691_v42  ;;  %v1780_v42 = vld [vmem:[%s1910_s6 + $0x308] ss:$16 sps:$4 sm:$0xff]  }
  0x42   : > { %1115 = vmatpush1.bf16.msra.mxu0 %v1693_v43  ;;  %v1785_v43 = vld [vmem:[%s1910_s6 + $0x12c] ss:$16 sps:$4 sm:$0xff]  }
  0x43   : > { %1156 = vmatpush1.bf16.msra.mxu1 %v1694_v44  ;;  %1116 = vmatprep.subr.bf16.mxu0 %v1695_v45  ;;  %v1788_v44 = vld [vmem:[%s1910_s6 + $0x32c] ss:$16 sps:$4 sm:$0xff]   ;;  %v1783_v45 = vld [vmem:[%s1910_s6 + $0x128] ss:$16 sps:$4 sm:$0xff]  }
  0x44   : > { %1157 = vmatprep.subr.bf16.mxu1 %v1697_v46  ;;  %v1786_v46 = vld [vmem:[%s1910_s6 + $0x328] ss:$16 sps:$4 sm:$0xff]  }
  0x46   : > { %1117 = vmatpush1.bf16.msra.mxu0 %v1699_v50  ;;  %v1792_v50 = vld [vmem:[%s1910_s6 + $0x348] ss:$16 sps:$4 sm:$0xff]  }
  0x47   : > { %1158 = vmatpush1.bf16.msra.mxu1 %v1700_v51  ;;  %1118 = vmatprep.subr.bf16.mxu0 %v1701_v53  ;;  %v1797_v51 = vld [vmem:[%s1910_s6 + $0x16c] ss:$16 sps:$4 sm:$0xff]   ;;  %v1795_v53 = vld [vmem:[%s1910_s6 + $0x168] ss:$16 sps:$4 sm:$0xff]  }
  0x48   : > { %1159 = vmatprep.subr.bf16.mxu1 %v1703_v54  ;;  %v1798_v54 = vld [vmem:[%s1910_s6 + $0x368] ss:$16 sps:$4 sm:$0xff]  }
  0x4a   : > { %1119 = vmatpush1.bf16.msra.mxu0 %v1705_v55  ;;  %v1803_v55 = vld [vmem:[%s1910_s6 + $0x18c] ss:$16 sps:$4 sm:$0xff]  }
  0x4b   : > { %1160 = vmatpush1.bf16.msra.mxu1 %v1706_v56  ;;  %1120 = vmatprep.subr.bf16.mxu0 %v1707_v57  ;;  %v1806_v56 = vld [vmem:[%s1910_s6 + $0x38c] ss:$16 sps:$4 sm:$0xff]   ;;  %v1801_v57 = vld [vmem:[%s1910_s6 + $0x188] ss:$16 sps:$4 sm:$0xff]  }
  0x4c   : > { %1161 = vmatprep.subr.bf16.mxu1 %v1709_v58  ;;  %v1804_v58 = vld [vmem:[%s1910_s6 + $0x388] ss:$16 sps:$4 sm:$0xff]  }
  0x4e   : > { %1121 = vmatpush1.bf16.msra.mxu0 %v1711_v59  ;;  %v1809_v59 = vld [vmem:[%s1910_s6 + $0x1ac] ss:$16 sps:$4 sm:$0xff]  }
  0x4f   : > { %1162 = vmatpush1.bf16.msra.mxu1 %v1712_v60  ;;  %1122 = vmatprep.subr.bf16.mxu0 %v1713_v61  ;;  %v1812_v60 = vld [vmem:[%s1910_s6 + $0x3ac] ss:$16 sps:$4 sm:$0xff]   ;;  %v1807_v61 = vld [vmem:[%s1910_s6 + $0x1a8] ss:$16 sps:$4 sm:$0xff]  }
  0x50   : > { %1163 = vmatprep.subr.bf16.mxu1 %v1715_v62  ;;  %v1810_v62 = vld [vmem:[%s1910_s6 + $0x3a8] ss:$16 sps:$4 sm:$0xff]  }
  0x52   : > { %1123 = vmatpush1.bf16.msra.mxu0 %v1717_v63  ;;  %v1815_v63 = vld [vmem:[%s1910_s6 + $0x1cc] ss:$16 sps:$4 sm:$0xff]  }
  0x53   : > { %1164 = vmatpush1.bf16.msra.mxu1 %v1718_v0  ;;  %1124 = vmatprep.subr.bf16.mxu0 %v1719_v1  ;;  %v1818_v0 = vld [vmem:[%s1910_s6 + $0x3cc] ss:$16 sps:$4 sm:$0xff]   ;;  %v1813_v1 = vld [vmem:[%s1910_s6 + $0x1c8] ss:$16 sps:$4 sm:$0xff]  }
  0x54   : > { %1165 = vmatprep.subr.bf16.mxu1 %v1721_v2  ;;  %v1816_v2 = vld [vmem:[%s1910_s6 + $0x3c8] ss:$16 sps:$4 sm:$0xff]  }
  0x56   : > { %1125 = vmatpush1.bf16.msra.mxu0 %v1723_v3  ;;  %v1821_v3 = vld [vmem:[%s1910_s6 + $0x1ec] ss:$16 sps:$4 sm:$0xff]  }
  0x57   : > { %1166 = vmatpush1.bf16.msra.mxu1 %v1724_v4  ;;  %1176 = vmatprep.subr.bf16.mxu0 %v1731_v5  ;;  %v1824_v4 = vld [vmem:[%s1910_s6 + $0x3ec] ss:$16 sps:$4 sm:$0xff]   ;;  %v1819_v5 = vld [vmem:[%s1910_s6 + $0x1e8] ss:$16 sps:$4 sm:$0xff]  }
  0x58   : > { %1217 = vmatprep.subr.bf16.mxu1 %v1734_v6  ;;  %v1822_v6 = vld [vmem:[%s1910_s6 + $0x3e8] ss:$16 sps:$4 sm:$0xff]  }
  0x59   : > { %1127 = vmatmul.mubr.bf16.vlgmr.msra.gmra.mrb[0].mxu0 %v1984_v7 }
  0x5a   : > { %1168 = vmatmul.mubr.bf16.vlgmr.msra.gmra.mrb[0].mxu1 %v1986_v8  ;;  %1177 = vmatpush1.bf16.msra.mxu0 %v1729_v9 }
  0x5b   : > { %1218 = vmatpush1.bf16.msra.mxu1 %v1732_v10  ;;  %1178 = vmatprep.subr.bf16.mxu0 %v1737_v11  ;;  %v306_v10 = vld [vmem:[#allocation2] sm:$0xff] }
  0x5c   : > { %1219 = vmatprep.subr.bf16.mxu1 %v1740_v12  ;;  %1208 = vmatprep.mubr.bf16.mxu0 %v1960_v48  ;;  %v1794_v48 = vld [vmem:[%s1910_s6 + $0x34c] ss:$16 sps:$4 sm:$0xff]  }
  0x5d   : > { %1249 = vmatprep.mubr.bf16.mxu1 %v1466_v52  ;;  %v1800_v52 = vld [vmem:[%s1910_s6 + $0x36c] ss:$16 sps:$4 sm:$0xff]  }
  0x5e   : > { %1179 = vmatpush1.bf16.msra.mxu0 %v1735_v13 }
  0x5f   : > { %1220 = vmatpush1.bf16.msra.mxu1 %v1738_v14  ;;  %1180 = vmatprep.subr.bf16.mxu0 %v1743_v15  ;;  %v307_v14 = vld [vmem:[#allocation2 + $0x8] sm:$0xff] }
  0x60   : > { %1221 = vmatprep.subr.bf16.mxu1 %v1746_v16 }
  0x62   : > { %1181 = vmatpush1.bf16.msra.mxu0 %v1741_v17 }
  0x63   : > { %1222 = vmatpush1.bf16.msra.mxu1 %v1744_v18  ;;  %1182 = vmatprep.subr.bf16.mxu0 %v1749_v19 }
  0x64   : > { %1223 = vmatprep.subr.bf16.mxu1 %v1752_v20 }
  0x66   : > { %1183 = vmatpush1.bf16.msra.mxu0 %v1747_v21 }
  0x67   : > { %1224 = vmatpush1.bf16.msra.mxu1 %v1750_v22  ;;  %1184 = vmatprep.subr.bf16.mxu0 %v1755_v23 }
  0x68   : > { %1225 = vmatprep.subr.bf16.mxu1 %v1758_v24 }
  0x6a   : > { %1185 = vmatpush1.bf16.msra.mxu0 %v1753_v25 }
  0x6b   : > { %1226 = vmatpush1.bf16.msra.mxu1 %v1756_v26  ;;  %1186 = vmatprep.subr.bf16.mxu0 %v1761_v27  ;;  %v309_v26 = vld [vmem:[#allocation2 + $0x18] sm:$0xff] }
  0x6c   : > { %1227 = vmatprep.subr.bf16.mxu1 %v1764_v28 }
  0x6e   : > { %1187 = vmatpush1.bf16.msra.mxu0 %v1759_v29 }
  0x6f   : > { %1228 = vmatpush1.bf16.msra.mxu1 %v1762_v30  ;;  %1188 = vmatprep.subr.bf16.mxu0 %v1767_v31 }
  0x70   : > { %1229 = vmatprep.subr.bf16.mxu1 %v1770_v32 }
  0x72   : > { %1189 = vmatpush1.bf16.msra.mxu0 %v1765_v33 }
  0x73   : > { %1230 = vmatpush1.bf16.msra.mxu1 %v1768_v34  ;;  %1190 = vmatprep.subr.bf16.mxu0 %v1773_v35  ;;  %v1276_v35 = vlaneseq (!%p1595_p7) }
  0x74   : > { %1231 = vmatprep.subr.bf16.mxu1 %v1776_v36 }
  0x75   : > { %v1277_v36 = vshrl.u32 (!%p1595_p7), %v1276_v35, 7 }
  0x76   : > { %1191 = vmatpush1.bf16.msra.mxu0 %v1771_v37  ;;  %v1274_v37 = vld [vmem:[%s2085_s2] sm:$0xf] (!%p1595_p7) }
  0x77   : > { %1232 = vmatpush1.bf16.msra.mxu1 %v1774_v38  ;;  %1192 = vmatprep.subr.bf16.mxu0 %v1779_v39  ;;  %v1300_v38 = vld [vmem:[%s2086_s3] sm:$0xf] (!%p1595_p7)  ;;  %v1278_v39 = vsub.s32 (!%p1595_p7), 0, %v1277_v36 }
  0x78   : > { %1233 = vmatprep.subr.bf16.mxu1 %v1782_v40  ;;  %v1282_v40 = vsub.s32 (!%p1595_p7), 1, %v1277_v36 }
  0x7a   : > { %1193 = vmatpush1.bf16.msra.mxu0 %v1777_v41  ;;  %v1286_v41 = vsub.s32 (!%p1595_p7), 2, %v1277_v36 }
  0x7b   : > { %1234 = vmatpush1.bf16.msra.mxu1 %v1780_v42  ;;  %1194 = vmatprep.subr.bf16.mxu0 %v1785_v43  ;;  %v1290_v42 = vsub.s32 (!%p1595_p7), 3, %v1277_v36 }
  0x7c   : > { %1235 = vmatprep.subr.bf16.mxu1 %v1788_v44 }
  0x7e   : > { %1195 = vmatpush1.bf16.msra.mxu0 %v1783_v45  ;;  %v1326_v45 = vld [vmem:[%s2087_s4] sm:$0xff] (!%p1595_p7) }
  0x7f   : > { %1236 = vmatpush1.bf16.msra.mxu1 %v1786_v46  ;;  %1196 = vmatprep.subr.bf16.mxu0 %v1791_v47  ;;  %v1279_v46 = vrot.slane (!%p1595_p7), %v1274_v37, %v1278_v39  ;;  %v1283_v47 = vrot.slane (!%p1595_p7), %v1274_v37, %v1282_v40 }
  0x80   : > { %1237 = vmatprep.subr.bf16.mxu1 %v1794_v48  ;;  %v1305_v48 = vrot.slane (!%p1595_p7), %v1300_v38, %v1278_v39 }
  0x82   : > { %1197 = vmatpush1.bf16.msra.mxu0 %v1789_v49  ;;  %v1309_v49 = vrot.slane (!%p1595_p7), %v1300_v38, %v1282_v40 }
  0x83   : > { %1238 = vmatpush1.bf16.msra.mxu1 %v1792_v50  ;;  %1198 = vmatprep.subr.bf16.mxu0 %v1797_v51 }
  0x84   : > { %1239 = vmatprep.subr.bf16.mxu1 %v1800_v52  ;;  %v1327_v52 = vld [vmem:[%s2087_s4 + $0x8] sm:$0xff] (!%p1595_p7) }
  0x86   : > { %1199 = vmatpush1.bf16.msra.mxu0 %v1795_v53  ;;  %v1287_v53 = vrot.slane (!%p1595_p7), %v1274_v37, %v1286_v41 }
  0x87   : > { %1240 = vmatpush1.bf16.msra.mxu1 %v1798_v54  ;;  %1200 = vmatprep.subr.bf16.mxu0 %v1803_v55  ;;  %v1291_v54 = vrot.slane (!%p1595_p7), %v1274_v37, %v1290_v42  ;;  %v1313_v55 = vrot.slane (!%p1595_p7), %v1300_v38, %v1286_v41 }
  0x88   : > { %1241 = vmatprep.subr.bf16.mxu1 %v1806_v56  ;;  %v1317_v56 = vrot.slane (!%p1595_p7), %v1300_v38, %v1290_v42 }
  0x8a   : > { %1201 = vmatpush1.bf16.msra.mxu0 %v1801_v57 }
  0x8b   : > { %1242 = vmatpush1.bf16.msra.mxu1 %v1804_v58  ;;  %1202 = vmatprep.subr.bf16.mxu0 %v1809_v59  ;;  %v1328_v59 = vunpack.c.l.bf16 (!%p1595_p7), %v1326_v45 }
  0x8c   : > { %1243 = vmatprep.subr.bf16.mxu1 %v1812_v60  ;;  %v1329_v60 = vunpack.c.h.bf16 (!%p1595_p7), %v1326_v45 }
  0x8e   : > { %1203 = vmatpush1.bf16.msra.mxu0 %v1807_v61 }
  0x8f   : > { %1244 = vmatpush1.bf16.msra.mxu1 %v1810_v62  ;;  %1204 = vmatprep.subr.bf16.mxu0 %v1815_v63  ;;  %v1330_v63 = vunpack.c.l.bf16 (!%p1595_p7), %v1327_v52 }
  0x90   : > { %1245 = vmatprep.subr.bf16.mxu1 %v1818_v0  ;;  %v1331_v0 = vunpack.c.h.bf16 (!%p1595_p7), %v1327_v52 }
  0x92   : > { %1205 = vmatpush1.bf16.msra.mxu0 %v1813_v1 }
  0x93   : > { %1246 = vmatpush1.bf16.msra.mxu1 %v1816_v2  ;;  %1206 = vmatprep.subr.bf16.mxu0 %v1821_v3 }
  0x94   : > { %1247 = vmatprep.subr.bf16.mxu1 %v1824_v4 }
  0x96   : > { %1207 = vmatpush1.bf16.msra.mxu0 %v1819_v5 }
  0x97   : > { %1248 = vmatpush1.bf16.msra.mxu1 %v1822_v6 }
  0x99   : > { %1209 = vmatmul.mubr.bf16.vlgmr.msra.gmra.mrb[4].mxu0 %v1984_v7  ;;  %v308_v7 = vld [vmem:[#allocation2 + $0x10] sm:$0xff] }
  0x9a   : > { %1250 = vmatmul.mubr.bf16.vlgmr.msra.gmra.mrb[4].mxu1 %v1986_v8 }
 0x12c   : > { %v1128_v9 = vpop.f32.mrb[0].mxu0 }
 0x12d   : > { %v1169_v11 = vpop.f32.mrb[0].mxu1  ;;  %v1130_v13 = vpop.f32.mrb[1].mxu0 }
 0x12e   : > { %v1170_v12 = vadd.f32 %v1169_v11, %v1128_v9  ;;  %v1171_v15 = vpop.f32.mrb[1].mxu1  ;;  %v1132_v17 = vpop.f32.mrb[2].mxu0 }
 0x12f   : > { %v1172_v16 = vadd.f32 %v1171_v15, %v1130_v13  ;;  %v1173_v18 = vpop.f32.mrb[2].mxu1  ;;  %v1133_v20 = vpop.f32.mrb[3].mxu0 }
 0x130   : > { %v1258_v19 = vadd.f32 %v1170_v12, %v306_v10  ;;  %v1174_v21 = vpop.f32.mrb[3].mxu1 }
 0x131   : > { %v1259_v22 = vadd.f32 %v1172_v16, %v307_v14 }
 0x132   : > { %1262 = vst [vmem:[#allocation2] sm:$0xff] %v1258_v19 }
 0x133   : > { %1263 = vst [vmem:[#allocation2 + $0x8] sm:$0xff] %v1259_v22 }
 0x139   : > { %v1270_v43 = vld [vmem:[#allocation2] sm:$0xff] (!%p1595_p7) }
 0x13a   : > { %v1271_v44 = vld [vmem:[#allocation2 + $0x8] sm:$0xff] (!%p1595_p7)  ;;  %v1296_v57 = vmul.f32 (!%p1595_p7), %v1279_v46, %v1270_v43 }
 0x13b   : > { %v1297_v58 = vmul.f32 (!%p1595_p7), %v1283_v47, %v1271_v44 }
 0x13c   : > { %v1322_v1 = vadd.f32 (!%p1595_p7), %v1305_v48, %v1296_v57 }
 0x13d   : > { %v1323_v2 = vadd.f32 (!%p1595_p7), %v1309_v49, %v1297_v58 }
 0x13e   : > { %v1332_v5 = vadd.f32 (!%p1595_p7), %v1328_v59, %v1322_v1 }
 0x13f   : > { %v1333_v6 = vadd.f32 (!%p1595_p7), %v1329_v60, %v1323_v2 }
 0x140   : > { %v1336_v11 = vmax.f32 (!%p1595_p7), %v1332_v5, 0.0 }
 0x141   : > { %v1337_v12 = vmax.f32 (!%p1595_p7), %v1333_v6, 0.0 }
 0x143   : > { %v1602_v15 = vpack.c.bf16 (!%p1595_p7), %v1337_v12, %v1336_v11 }
 0x145   : > { %1356 = vst [vmem:[%s2088_s5] sm:$0xff] (!%p1595_p7), %v1602_v15 }
 0x16c   : > { %v1210_v23 = vpop.f32.mrb[4].mxu0 }
 0x16d   : > { %v1251_v24 = vpop.f32.mrb[4].mxu1  ;;  %v1212_v25 = vpop.f32.mrb[5].mxu0  ;;  %1269 = sbr.rel (%p1595_p7) target bundleno = 390 (0x186), region = 48 }
 0x16e   : > { %v1252_v8 = vadd.f32 %v1251_v24, %v1210_v23  ;;  %v1253_v27 = vpop.f32.mrb[5].mxu1  ;;  %v1214_v29 = vpop.f32.mrb[6].mxu0 }
 0x16f   : > { %v1254_v28 = vadd.f32 %v1253_v27, %v1212_v25  ;;  %v1255_v30 = vpop.f32.mrb[6].mxu1  ;;  %v1215_v32 = vpop.f32.mrb[7].mxu0 }
 0x170   : > { %v1260_v31 = vadd.f32 %v1252_v8, %v308_v7  ;;  %v1256_v33 = vpop.f32.mrb[7].mxu1 }
 0x171   : > { %v1261_v34 = vadd.f32 %v1254_v28, %v309_v26 }
 0x172   : > { %1264 = vst [vmem:[#allocation2 + $0x10] sm:$0xff] %v1260_v31 }
 0x173   : > { %1265 = vst [vmem:[#allocation2 + $0x18] sm:$0xff] %v1261_v34 }
 0x179   : > { %v1272_v50 = vld [vmem:[#allocation2 + $0x10] sm:$0xff] }
 0x17a   : > { %v1273_v51 = vld [vmem:[#allocation2 + $0x18] sm:$0xff]  ;;  %v1298_v61 = vmul.f32 %v1287_v53, %v1272_v50 }
 0x17b   : > { %v1299_v62 = vmul.f32 %v1291_v54, %v1273_v51 }
 0x17c   : > { %v1324_v3 = vadd.f32 %v1313_v55, %v1298_v61 }
 0x17d   : > { %v1325_v4 = vadd.f32 %v1317_v56, %v1299_v62 }
 0x17e   : > { %v1334_v9 = vadd.f32 %v1330_v63, %v1324_v3 }
 0x17f   : > { %v1335_v10 = vadd.f32 %v1331_v0, %v1325_v4 }
 0x180   : > { %v1338_v13 = vmax.f32 %v1334_v9, 0.0 }
 0x181   : > { %v1339_v14 = vmax.f32 %v1335_v10, 0.0 }
 0x183   : > { %v1603_v16 = vpack.c.bf16 %v1339_v14, %v1338_v13 }
 0x185   : > { %1357 = vst [vmem:[%s2088_s5 + $0x8] sm:$0xff] %v1603_v16 }
 0x186 PF: > { %s15_s20 = sadd.s32 1, %s1847_s20   ;;  %s2089_s18 = smov %s1843_s19 }
 0x187   : > { %p12_p8 = scmp.ge.s32.totalorder %s15_s20, 11   ;;  %s2090_s19 = smov %s2092_s21 }
 0x189   :  { %14 = sbr.rel (!%p12_p8) target bundleno = 2 (0x2), region = 84 }

// kernel: resnet18_binary_forward.41
= control target key start
LH: loop header
LB: loop body
LE: loop exit
PB: predicated region body
PF: predicated region fallthrough
CT: control target
= control target key end

     0   :  { %s1802_s15 = smov 0   ;;  %s1804_s16 = smov 0   ;;  %s1999_s0 = inlined_call_operand.vmem [shape: bf16[8,4608], index: 0, kind: input, shape index: {}]   ;;  %s2000_s1 = inlined_call_operand.vmem [shape: bf16[4608,512], index: 1, kind: input, shape index: {}]   ;;  %s2001_s2 = inlined_call_operand.vmem [shape: f32[1,512], index: 2, kind: input, shape index: {}]   ;;  %s2002_s3 = inlined_call_operand.vmem [shape: f32[1,512], index: 3, kind: input, shape index: {}]   ;;  %s2003_s4 = inlined_call_operand.vmem [shape: bf16[8,512], index: 4, kind: output, shape index: {}]  }
   0x1   :  { %s1806_s17 = smov 0  }
   0x2 LB: > { %s23_s18 = sadd.s32 1, %s1770_s16  ;;  %p1383_p0 = scmp.ge.s32.totalorder %s1774_s17, 1  ;;  %s1774_s17 = sphi %s1806_s17, %s14_s17   ;;  %s1770_s16 = sphi %s1804_s16, %s2005_s16   ;;  %s1766_s15 = sphi %s1802_s15, %s2004_s15  }
   0x3   : > { %p24_p1 = scmp.ge.s32.totalorder %s23_s18, 9  ;;  %p193_p2 = scmp.lt.s32.totalorder %s1774_s17, 10 }
   0x5   : > { %s2007_s18 = smov (%p24_p1, %s23_s18), 0  ;;  %p194_p3 = pnand %p1383_p0, %p193_p2 }
   0x6   : > { %s1384_s19 = sshll.u32 (!%p194_p3), %s1766_s15, 2  ;;  %s1386_s20 = sshll.u32 (!%p194_p3), %s1766_s15, 6 }
   0x7   : > { %197 = sbr.rel (%p194_p3) target bundleno = 388 (0x184), region = 36  ;;  %p232_p4 = scmp.lt.s32.totalorder (!%p194_p3), %s1384_s19, 35 }
   0x8   : > { %p240_p5 = scmp.lt.s32.totalorder (!%p194_p3), %s1386_s20, 575  ;;  %p1389_p6 = scmp.ne.s32.totalorder (!%p194_p3), %s1766_s15, 0 }
   0xe   : > { %s2009_s19 = smov (!%p232_p4, %s1384_s19), 35  ;;  %s2011_s20 = smov (!%p240_p5, %s1386_s20), 575 }
   0xf   : > { %s1385_s21 = sshll.u32 %s2009_s19, 2  ;;  %s1528_s25 = sshll.u32 %s2011_s20, 4  ;;  %v1776_v0 = vmov (!%p1389_p6), 0.0  }
  0x10   : > { %s1827_s24 = scalar_lea.vmem %s1999_s0, %s1385_s21  ;;  %s1832_s28 = scalar_lea.vmem %s2000_s1, %s1528_s25  ;;  %255 = vst [vmem:[#allocation2] sm:$0xff] (!%p1389_p6), %v1776_v0  ;;  %256 = vst [vmem:[#allocation2 + $0x8] sm:$0xff] (!%p1389_p6), %v1776_v0 }
  0x11   : > { %254 = sbr.rel (%p1389_p6) target bundleno = 24 (0x18), region = 40  ;;  %257 = vst [vmem:[#allocation2 + $0x10] sm:$0xff] (!%p1389_p6), %v1776_v0  ;;  %258 = vst [vmem:[#allocation2 + $0x18] sm:$0xff] (!%p1389_p6), %v1776_v0 }
  0x18 PF: > { %v1556_v1 = vld [vmem:[%s1832_s28 + $0x4] ss:$16 sps:$4 sm:$0xff]   ;;  %v1560_v3 = vld [vmem:[%s1832_s28] ss:$16 sps:$4 sm:$0xff]   ;;  %v264_v49 = vld [vmem:[%s1827_s24 + $0x8] sm:$0xff]  ;;  %p1522_p7 = scmp.ne.s32.totalorder %s1766_s15, 8 }
  0x19   : > { %v1558_v2 = vld [vmem:[%s1832_s28 + $0x204] ss:$16 sps:$4 sm:$0xff]   ;;  %1047 = vmatprep.subr.bf16.mxu0 %v1556_v1  ;;  %v1561_v4 = vld [vmem:[%s1832_s28 + $0x200] ss:$16 sps:$4 sm:$0xff]   ;;  %v1393_v52 = vcombine.high %v264_v49, %v264_v49 }
  0x1a   : > { %1088 = vmatprep.subr.bf16.mxu1 %v1558_v2  ;;  %v1562_v5 = vld [vmem:[%s1832_s28 + $0x24] ss:$16 sps:$4 sm:$0xff]   ;;  %1048 = vmatpush1.bf16.msra.mxu0 %v1560_v3  ;;  %v1566_v7 = vld [vmem:[%s1832_s28 + $0x20] ss:$16 sps:$4 sm:$0xff]  }
  0x1b   : > { %1089 = vmatpush1.bf16.msra.mxu1 %v1561_v4  ;;  %v1564_v6 = vld [vmem:[%s1832_s28 + $0x224] ss:$16 sps:$4 sm:$0xff]   ;;  %1049 = vmatprep.subr.bf16.mxu0 %v1562_v5  ;;  %v1567_v8 = vld [vmem:[%s1832_s28 + $0x220] ss:$16 sps:$4 sm:$0xff]   ;;  %v1658_v5 = vld [vmem:[%s1832_s28 + $0xc] ss:$16 sps:$4 sm:$0xff]  }
  0x1c   : > { %1090 = vmatprep.subr.bf16.mxu1 %v1564_v6  ;;  %v1568_v9 = vld [vmem:[%s1832_s28 + $0x44] ss:$16 sps:$4 sm:$0xff]   ;;  %v1572_v11 = vld [vmem:[%s1832_s28 + $0x40] ss:$16 sps:$4 sm:$0xff]   ;;  %1120 = vmatprep.mubr.bf16.mxu1 %v1393_v52  ;;  %v1661_v6 = vld [vmem:[%s1832_s28 + $0x20c] ss:$16 sps:$4 sm:$0xff]  }
  0x1d   : > { %v1570_v10 = vld [vmem:[%s1832_s28 + $0x244] ss:$16 sps:$4 sm:$0xff]   ;;  %v1573_v12 = vld [vmem:[%s1832_s28 + $0x240] ss:$16 sps:$4 sm:$0xff]  }
  0x1e   : > { %1050 = vmatpush1.bf16.msra.mxu0 %v1566_v7  ;;  %v1574_v13 = vld [vmem:[%s1832_s28 + $0x64] ss:$16 sps:$4 sm:$0xff]   ;;  %v1578_v15 = vld [vmem:[%s1832_s28 + $0x60] ss:$16 sps:$4 sm:$0xff]  }
  0x1f   : > { %1091 = vmatpush1.bf16.msra.mxu1 %v1567_v8  ;;  %1051 = vmatprep.subr.bf16.mxu0 %v1568_v9  ;;  %v1576_v14 = vld [vmem:[%s1832_s28 + $0x264] ss:$16 sps:$4 sm:$0xff]   ;;  %v1579_v16 = vld [vmem:[%s1832_s28 + $0x260] ss:$16 sps:$4 sm:$0xff]   ;;  %v1908_v8 = vcombine.low %v264_v49, %v264_v49  ;;  %v1656_v9 = vld [vmem:[%s1832_s28 + $0x8] ss:$16 sps:$4 sm:$0xff]  }
  0x20   : > { %1092 = vmatprep.subr.bf16.mxu1 %v1570_v10  ;;  %v1580_v17 = vld [vmem:[%s1832_s28 + $0x84] ss:$16 sps:$4 sm:$0xff]   ;;  %v1584_v19 = vld [vmem:[%s1832_s28 + $0x80] ss:$16 sps:$4 sm:$0xff]   ;;  %v1659_v10 = vld [vmem:[%s1832_s28 + $0x208] ss:$16 sps:$4 sm:$0xff]  }
  0x21   : > { %v1582_v18 = vld [vmem:[%s1832_s28 + $0x284] ss:$16 sps:$4 sm:$0xff]   ;;  %v1585_v20 = vld [vmem:[%s1832_s28 + $0x280] ss:$16 sps:$4 sm:$0xff]   ;;  %v1716_v49 = vld [vmem:[%s1832_s28 + $0x148] ss:$16 sps:$4 sm:$0xff]  }
  0x22   : > { %1052 = vmatpush1.bf16.msra.mxu0 %v1572_v11  ;;  %v1586_v21 = vld [vmem:[%s1832_s28 + $0xa4] ss:$16 sps:$4 sm:$0xff]   ;;  %v1590_v23 = vld [vmem:[%s1832_s28 + $0xa0] ss:$16 sps:$4 sm:$0xff]   ;;  %v1664_v11 = vld [vmem:[%s1832_s28 + $0x2c] ss:$16 sps:$4 sm:$0xff]  }
  0x23   : > { %1093 = vmatpush1.bf16.msra.mxu1 %v1573_v12  ;;  %1053 = vmatprep.subr.bf16.mxu0 %v1574_v13  ;;  %v1588_v22 = vld [vmem:[%s1832_s28 + $0x2a4] ss:$16 sps:$4 sm:$0xff]   ;;  %v1591_v24 = vld [vmem:[%s1832_s28 + $0x2a0] ss:$16 sps:$4 sm:$0xff]   ;;  %v1667_v12 = vld [vmem:[%s1832_s28 + $0x22c] ss:$16 sps:$4 sm:$0xff]  }
  0x24   : > { %1094 = vmatprep.subr.bf16.mxu1 %v1576_v14  ;;  %v1592_v25 = vld [vmem:[%s1832_s28 + $0xc4] ss:$16 sps:$4 sm:$0xff]   ;;  %v1596_v27 = vld [vmem:[%s1832_s28 + $0xc0] ss:$16 sps:$4 sm:$0xff]   ;;  %v1662_v13 = vld [vmem:[%s1832_s28 + $0x28] ss:$16 sps:$4 sm:$0xff]  }
  0x25   : > { %v1594_v26 = vld [vmem:[%s1832_s28 + $0x2c4] ss:$16 sps:$4 sm:$0xff]   ;;  %v1597_v28 = vld [vmem:[%s1832_s28 + $0x2c0] ss:$16 sps:$4 sm:$0xff]   ;;  %v1665_v14 = vld [vmem:[%s1832_s28 + $0x228] ss:$16 sps:$4 sm:$0xff]  }
  0x26   : > { %1054 = vmatpush1.bf16.msra.mxu0 %v1578_v15  ;;  %v1598_v29 = vld [vmem:[%s1832_s28 + $0xe4] ss:$16 sps:$4 sm:$0xff]   ;;  %v1602_v31 = vld [vmem:[%s1832_s28 + $0xe0] ss:$16 sps:$4 sm:$0xff]   ;;  %v1670_v15 = vld [vmem:[%s1832_s28 + $0x4c] ss:$16 sps:$4 sm:$0xff]  }
  0x27   : > { %1095 = vmatpush1.bf16.msra.mxu1 %v1579_v16  ;;  %1055 = vmatprep.subr.bf16.mxu0 %v1580_v17  ;;  %v1600_v30 = vld [vmem:[%s1832_s28 + $0x2e4] ss:$16 sps:$4 sm:$0xff]   ;;  %v1603_v32 = vld [vmem:[%s1832_s28 + $0x2e0] ss:$16 sps:$4 sm:$0xff]   ;;  %v1673_v16 = vld [vmem:[%s1832_s28 + $0x24c] ss:$16 sps:$4 sm:$0xff]  }
  0x28   : > { %1096 = vmatprep.subr.bf16.mxu1 %v1582_v18  ;;  %v1604_v33 = vld [vmem:[%s1832_s28 + $0x104] ss:$16 sps:$4 sm:$0xff]   ;;  %v1608_v35 = vld [vmem:[%s1832_s28 + $0x100] ss:$16 sps:$4 sm:$0xff]   ;;  %v1668_v17 = vld [vmem:[%s1832_s28 + $0x48] ss:$16 sps:$4 sm:$0xff]  }
  0x29   : > { %v1606_v34 = vld [vmem:[%s1832_s28 + $0x304] ss:$16 sps:$4 sm:$0xff]   ;;  %v1609_v36 = vld [vmem:[%s1832_s28 + $0x300] ss:$16 sps:$4 sm:$0xff]   ;;  %v1671_v18 = vld [vmem:[%s1832_s28 + $0x248] ss:$16 sps:$4 sm:$0xff]  }
  0x2a   : > { %1056 = vmatpush1.bf16.msra.mxu0 %v1584_v19  ;;  %v1610_v37 = vld [vmem:[%s1832_s28 + $0x124] ss:$16 sps:$4 sm:$0xff]   ;;  %v1614_v39 = vld [vmem:[%s1832_s28 + $0x120] ss:$16 sps:$4 sm:$0xff]   ;;  %v1676_v19 = vld [vmem:[%s1832_s28 + $0x6c] ss:$16 sps:$4 sm:$0xff]  }
  0x2b   : > { %1097 = vmatpush1.bf16.msra.mxu1 %v1585_v20  ;;  %1057 = vmatprep.subr.bf16.mxu0 %v1586_v21  ;;  %v1612_v38 = vld [vmem:[%s1832_s28 + $0x324] ss:$16 sps:$4 sm:$0xff]   ;;  %v1615_v40 = vld [vmem:[%s1832_s28 + $0x320] ss:$16 sps:$4 sm:$0xff]   ;;  %v1679_v20 = vld [vmem:[%s1832_s28 + $0x26c] ss:$16 sps:$4 sm:$0xff]  }
  0x2c   : > { %1098 = vmatprep.subr.bf16.mxu1 %v1588_v22  ;;  %v1616_v41 = vld [vmem:[%s1832_s28 + $0x144] ss:$16 sps:$4 sm:$0xff]   ;;  %v1620_v43 = vld [vmem:[%s1832_s28 + $0x140] ss:$16 sps:$4 sm:$0xff]   ;;  %v1674_v21 = vld [vmem:[%s1832_s28 + $0x68] ss:$16 sps:$4 sm:$0xff]  }
  0x2d   : > { %v1618_v42 = vld [vmem:[%s1832_s28 + $0x344] ss:$16 sps:$4 sm:$0xff]   ;;  %v1621_v44 = vld [vmem:[%s1832_s28 + $0x340] ss:$16 sps:$4 sm:$0xff]   ;;  %v1677_v22 = vld [vmem:[%s1832_s28 + $0x268] ss:$16 sps:$4 sm:$0xff]  }
  0x2e   : > { %1058 = vmatpush1.bf16.msra.mxu0 %v1590_v23  ;;  %v1622_v45 = vld [vmem:[%s1832_s28 + $0x164] ss:$16 sps:$4 sm:$0xff]   ;;  %v1626_v50 = vld [vmem:[%s1832_s28 + $0x160] ss:$16 sps:$4 sm:$0xff]   ;;  %v1682_v23 = vld [vmem:[%s1832_s28 + $0x8c] ss:$16 sps:$4 sm:$0xff]  }
  0x2f   : > { %1099 = vmatpush1.bf16.msra.mxu1 %v1591_v24  ;;  %1059 = vmatprep.subr.bf16.mxu0 %v1592_v25  ;;  %v1624_v46 = vld [vmem:[%s1832_s28 + $0x364] ss:$16 sps:$4 sm:$0xff]   ;;  %v1627_v51 = vld [vmem:[%s1832_s28 + $0x360] ss:$16 sps:$4 sm:$0xff]   ;;  %v1685_v24 = vld [vmem:[%s1832_s28 + $0x28c] ss:$16 sps:$4 sm:$0xff]  }
  0x30   : > { %1100 = vmatprep.subr.bf16.mxu1 %v1594_v26  ;;  %v263_v47 = vld [vmem:[%s1827_s24] sm:$0xff]  ;;  %v1680_v25 = vld [vmem:[%s1832_s28 + $0x88] ss:$16 sps:$4 sm:$0xff]  }
  0x31   : > { %v1882_v48 = vcombine.high %v263_v47, %v263_v47  ;;  %v1628_v53 = vld [vmem:[%s1832_s28 + $0x184] ss:$16 sps:$4 sm:$0xff]   ;;  %v1632_v55 = vld [vmem:[%s1832_s28 + $0x180] ss:$16 sps:$4 sm:$0xff]   ;;  %v1906_v7 = vcombine.low %v263_v47, %v263_v47  ;;  %v1683_v26 = vld [vmem:[%s1832_s28 + $0x288] ss:$16 sps:$4 sm:$0xff]  }
  0x32   : > { %1060 = vmatpush1.bf16.msra.mxu0 %v1596_v27  ;;  %v1630_v54 = vld [vmem:[%s1832_s28 + $0x384] ss:$16 sps:$4 sm:$0xff]   ;;  %v1633_v56 = vld [vmem:[%s1832_s28 + $0x380] ss:$16 sps:$4 sm:$0xff]   ;;  %v1688_v27 = vld [vmem:[%s1832_s28 + $0xac] ss:$16 sps:$4 sm:$0xff]  }
  0x33   : > { %1101 = vmatpush1.bf16.msra.mxu1 %v1597_v28  ;;  %1061 = vmatprep.subr.bf16.mxu0 %v1598_v29  ;;  %v1634_v57 = vld [vmem:[%s1832_s28 + $0x1a4] ss:$16 sps:$4 sm:$0xff]   ;;  %v1638_v59 = vld [vmem:[%s1832_s28 + $0x1a0] ss:$16 sps:$4 sm:$0xff]   ;;  %v1691_v28 = vld [vmem:[%s1832_s28 + $0x2ac] ss:$16 sps:$4 sm:$0xff]  }
  0x34   : > { %1102 = vmatprep.subr.bf16.mxu1 %v1600_v30  ;;  %1079 = vmatprep.mubr.bf16.mxu0 %v1882_v48  ;;  %v1636_v58 = vld [vmem:[%s1832_s28 + $0x3a4] ss:$16 sps:$4 sm:$0xff]   ;;  %v1639_v60 = vld [vmem:[%s1832_s28 + $0x3a0] ss:$16 sps:$4 sm:$0xff]   ;;  %v1686_v29 = vld [vmem:[%s1832_s28 + $0xa8] ss:$16 sps:$4 sm:$0xff]  }
  0x35   : > { %v1640_v61 = vld [vmem:[%s1832_s28 + $0x1c4] ss:$16 sps:$4 sm:$0xff]   ;;  %v1644_v63 = vld [vmem:[%s1832_s28 + $0x1c0] ss:$16 sps:$4 sm:$0xff]   ;;  %v1689_v30 = vld [vmem:[%s1832_s28 + $0x2a8] ss:$16 sps:$4 sm:$0xff]  }
  0x36   : > { %1062 = vmatpush1.bf16.msra.mxu0 %v1602_v31  ;;  %v1642_v62 = vld [vmem:[%s1832_s28 + $0x3c4] ss:$16 sps:$4 sm:$0xff]   ;;  %v1645_v0 = vld [vmem:[%s1832_s28 + $0x3c0] ss:$16 sps:$4 sm:$0xff]   ;;  %v1694_v31 = vld [vmem:[%s1832_s28 + $0xcc] ss:$16 sps:$4 sm:$0xff]  }
  0x37   : > { %1103 = vmatpush1.bf16.msra.mxu1 %v1603_v32  ;;  %1063 = vmatprep.subr.bf16.mxu0 %v1604_v33  ;;  %v1646_v1 = vld [vmem:[%s1832_s28 + $0x1e4] ss:$16 sps:$4 sm:$0xff]   ;;  %v1650_v3 = vld [vmem:[%s1832_s28 + $0x1e0] ss:$16 sps:$4 sm:$0xff]   ;;  %v1697_v32 = vld [vmem:[%s1832_s28 + $0x2cc] ss:$16 sps:$4 sm:$0xff]  }
  0x38   : > { %1104 = vmatprep.subr.bf16.mxu1 %v1606_v34  ;;  %v1648_v2 = vld [vmem:[%s1832_s28 + $0x3e4] ss:$16 sps:$4 sm:$0xff]   ;;  %v1651_v4 = vld [vmem:[%s1832_s28 + $0x3e0] ss:$16 sps:$4 sm:$0xff]   ;;  %v1692_v33 = vld [vmem:[%s1832_s28 + $0xc8] ss:$16 sps:$4 sm:$0xff]  }
  0x39   : > { %v1695_v34 = vld [vmem:[%s1832_s28 + $0x2c8] ss:$16 sps:$4 sm:$0xff]   ;;  %v1718_v47 = vld [vmem:[%s1832_s28 + $0x14c] ss:$16 sps:$4 sm:$0xff]  }
  0x3a   : > { %1064 = vmatpush1.bf16.msra.mxu0 %v1608_v35  ;;  %v1700_v35 = vld [vmem:[%s1832_s28 + $0xec] ss:$16 sps:$4 sm:$0xff]  }
  0x3b   : > { %1105 = vmatpush1.bf16.msra.mxu1 %v1609_v36  ;;  %1065 = vmatprep.subr.bf16.mxu0 %v1610_v37  ;;  %v1703_v36 = vld [vmem:[%s1832_s28 + $0x2ec] ss:$16 sps:$4 sm:$0xff]   ;;  %v1698_v37 = vld [vmem:[%s1832_s28 + $0xe8] ss:$16 sps:$4 sm:$0xff]  }
  0x3c   : > { %1106 = vmatprep.subr.bf16.mxu1 %v1612_v38  ;;  %v1701_v38 = vld [vmem:[%s1832_s28 + $0x2e8] ss:$16 sps:$4 sm:$0xff]  }
  0x3e   : > { %1066 = vmatpush1.bf16.msra.mxu0 %v1614_v39  ;;  %v1706_v39 = vld [vmem:[%s1832_s28 + $0x10c] ss:$16 sps:$4 sm:$0xff]  }
  0x3f   : > { %1107 = vmatpush1.bf16.msra.mxu1 %v1615_v40  ;;  %1067 = vmatprep.subr.bf16.mxu0 %v1616_v41  ;;  %v1709_v40 = vld [vmem:[%s1832_s28 + $0x30c] ss:$16 sps:$4 sm:$0xff]   ;;  %v1704_v41 = vld [vmem:[%s1832_s28 + $0x108] ss:$16 sps:$4 sm:$0xff]  }
  0x40   : > { %1108 = vmatprep.subr.bf16.mxu1 %v1618_v42  ;;  %v1707_v42 = vld [vmem:[%s1832_s28 + $0x308] ss:$16 sps:$4 sm:$0xff]  }
  0x42   : > { %1068 = vmatpush1.bf16.msra.mxu0 %v1620_v43  ;;  %v1712_v43 = vld [vmem:[%s1832_s28 + $0x12c] ss:$16 sps:$4 sm:$0xff]  }
  0x43   : > { %1109 = vmatpush1.bf16.msra.mxu1 %v1621_v44  ;;  %1069 = vmatprep.subr.bf16.mxu0 %v1622_v45  ;;  %v1715_v44 = vld [vmem:[%s1832_s28 + $0x32c] ss:$16 sps:$4 sm:$0xff]   ;;  %v1710_v45 = vld [vmem:[%s1832_s28 + $0x128] ss:$16 sps:$4 sm:$0xff]  }
  0x44   : > { %1110 = vmatprep.subr.bf16.mxu1 %v1624_v46  ;;  %v1713_v46 = vld [vmem:[%s1832_s28 + $0x328] ss:$16 sps:$4 sm:$0xff]  }
  0x46   : > { %1070 = vmatpush1.bf16.msra.mxu0 %v1626_v50  ;;  %v1719_v50 = vld [vmem:[%s1832_s28 + $0x348] ss:$16 sps:$4 sm:$0xff]  }
  0x47   : > { %1111 = vmatpush1.bf16.msra.mxu1 %v1627_v51  ;;  %1071 = vmatprep.subr.bf16.mxu0 %v1628_v53  ;;  %v1724_v51 = vld [vmem:[%s1832_s28 + $0x16c] ss:$16 sps:$4 sm:$0xff]   ;;  %v1722_v53 = vld [vmem:[%s1832_s28 + $0x168] ss:$16 sps:$4 sm:$0xff]  }
  0x48   : > { %1112 = vmatprep.subr.bf16.mxu1 %v1630_v54  ;;  %v1725_v54 = vld [vmem:[%s1832_s28 + $0x368] ss:$16 sps:$4 sm:$0xff]  }
  0x4a   : > { %1072 = vmatpush1.bf16.msra.mxu0 %v1632_v55  ;;  %v1730_v55 = vld [vmem:[%s1832_s28 + $0x18c] ss:$16 sps:$4 sm:$0xff]  }
  0x4b   : > { %1113 = vmatpush1.bf16.msra.mxu1 %v1633_v56  ;;  %1073 = vmatprep.subr.bf16.mxu0 %v1634_v57  ;;  %v1733_v56 = vld [vmem:[%s1832_s28 + $0x38c] ss:$16 sps:$4 sm:$0xff]   ;;  %v1728_v57 = vld [vmem:[%s1832_s28 + $0x188] ss:$16 sps:$4 sm:$0xff]  }
  0x4c   : > { %1114 = vmatprep.subr.bf16.mxu1 %v1636_v58  ;;  %v1731_v58 = vld [vmem:[%s1832_s28 + $0x388] ss:$16 sps:$4 sm:$0xff]  }
  0x4e   : > { %1074 = vmatpush1.bf16.msra.mxu0 %v1638_v59  ;;  %v1736_v59 = vld [vmem:[%s1832_s28 + $0x1ac] ss:$16 sps:$4 sm:$0xff]  }
  0x4f   : > { %1115 = vmatpush1.bf16.msra.mxu1 %v1639_v60  ;;  %1075 = vmatprep.subr.bf16.mxu0 %v1640_v61  ;;  %v1739_v60 = vld [vmem:[%s1832_s28 + $0x3ac] ss:$16 sps:$4 sm:$0xff]   ;;  %v1734_v61 = vld [vmem:[%s1832_s28 + $0x1a8] ss:$16 sps:$4 sm:$0xff]  }
  0x50   : > { %1116 = vmatprep.subr.bf16.mxu1 %v1642_v62  ;;  %v1737_v62 = vld [vmem:[%s1832_s28 + $0x3a8] ss:$16 sps:$4 sm:$0xff]  }
  0x52   : > { %1076 = vmatpush1.bf16.msra.mxu0 %v1644_v63  ;;  %v1742_v63 = vld [vmem:[%s1832_s28 + $0x1cc] ss:$16 sps:$4 sm:$0xff]  }
  0x53   : > { %1117 = vmatpush1.bf16.msra.mxu1 %v1645_v0  ;;  %1077 = vmatprep.subr.bf16.mxu0 %v1646_v1  ;;  %v1745_v0 = vld [vmem:[%s1832_s28 + $0x3cc] ss:$16 sps:$4 sm:$0xff]   ;;  %v1740_v1 = vld [vmem:[%s1832_s28 + $0x1c8] ss:$16 sps:$4 sm:$0xff]  }
  0x54   : > { %1118 = vmatprep.subr.bf16.mxu1 %v1648_v2  ;;  %v1743_v2 = vld [vmem:[%s1832_s28 + $0x3c8] ss:$16 sps:$4 sm:$0xff]  }
  0x56   : > { %1078 = vmatpush1.bf16.msra.mxu0 %v1650_v3  ;;  %v1748_v3 = vld [vmem:[%s1832_s28 + $0x1ec] ss:$16 sps:$4 sm:$0xff]  }
  0x57   : > { %1119 = vmatpush1.bf16.msra.mxu1 %v1651_v4  ;;  %1129 = vmatprep.subr.bf16.mxu0 %v1658_v5  ;;  %v1751_v4 = vld [vmem:[%s1832_s28 + $0x3ec] ss:$16 sps:$4 sm:$0xff]   ;;  %v1746_v5 = vld [vmem:[%s1832_s28 + $0x1e8] ss:$16 sps:$4 sm:$0xff]  }
  0x58   : > { %1170 = vmatprep.subr.bf16.mxu1 %v1661_v6  ;;  %v1749_v6 = vld [vmem:[%s1832_s28 + $0x3e8] ss:$16 sps:$4 sm:$0xff]  }
  0x59   : > { %1080 = vmatmul.mubr.bf16.vlgmr.msra.gmra.mrb[0].mxu0 %v1906_v7 }
  0x5a   : > { %1121 = vmatmul.mubr.bf16.vlgmr.msra.gmra.mrb[0].mxu1 %v1908_v8  ;;  %1130 = vmatpush1.bf16.msra.mxu0 %v1656_v9 }
  0x5b   : > { %1171 = vmatpush1.bf16.msra.mxu1 %v1659_v10  ;;  %1131 = vmatprep.subr.bf16.mxu0 %v1664_v11  ;;  %v259_v10 = vld [vmem:[#allocation2] sm:$0xff] }
  0x5c   : > { %1172 = vmatprep.subr.bf16.mxu1 %v1667_v12  ;;  %1161 = vmatprep.mubr.bf16.mxu0 %v1882_v48  ;;  %v1721_v48 = vld [vmem:[%s1832_s28 + $0x34c] ss:$16 sps:$4 sm:$0xff]  }
  0x5d   : > { %1202 = vmatprep.mubr.bf16.mxu1 %v1393_v52  ;;  %v1727_v52 = vld [vmem:[%s1832_s28 + $0x36c] ss:$16 sps:$4 sm:$0xff]  }
  0x5e   : > { %1132 = vmatpush1.bf16.msra.mxu0 %v1662_v13 }
  0x5f   : > { %1173 = vmatpush1.bf16.msra.mxu1 %v1665_v14  ;;  %1133 = vmatprep.subr.bf16.mxu0 %v1670_v15  ;;  %v260_v14 = vld [vmem:[#allocation2 + $0x8] sm:$0xff] }
  0x60   : > { %1174 = vmatprep.subr.bf16.mxu1 %v1673_v16 }
  0x62   : > { %1134 = vmatpush1.bf16.msra.mxu0 %v1668_v17 }
  0x63   : > { %1175 = vmatpush1.bf16.msra.mxu1 %v1671_v18  ;;  %1135 = vmatprep.subr.bf16.mxu0 %v1676_v19 }
  0x64   : > { %1176 = vmatprep.subr.bf16.mxu1 %v1679_v20 }
  0x66   : > { %1136 = vmatpush1.bf16.msra.mxu0 %v1674_v21 }
  0x67   : > { %1177 = vmatpush1.bf16.msra.mxu1 %v1677_v22  ;;  %1137 = vmatprep.subr.bf16.mxu0 %v1682_v23 }
  0x68   : > { %1178 = vmatprep.subr.bf16.mxu1 %v1685_v24 }
  0x6a   : > { %1138 = vmatpush1.bf16.msra.mxu0 %v1680_v25 }
  0x6b   : > { %1179 = vmatpush1.bf16.msra.mxu1 %v1683_v26  ;;  %1139 = vmatprep.subr.bf16.mxu0 %v1688_v27  ;;  %v262_v26 = vld [vmem:[#allocation2 + $0x18] sm:$0xff] }
  0x6c   : > { %1180 = vmatprep.subr.bf16.mxu1 %v1691_v28 }
  0x6e   : > { %1140 = vmatpush1.bf16.msra.mxu0 %v1686_v29 }
  0x6f   : > { %1181 = vmatpush1.bf16.msra.mxu1 %v1689_v30  ;;  %1141 = vmatprep.subr.bf16.mxu0 %v1694_v31 }
  0x70   : > { %1182 = vmatprep.subr.bf16.mxu1 %v1697_v32 }
  0x72   : > { %1142 = vmatpush1.bf16.msra.mxu0 %v1692_v33 }
  0x73   : > { %1183 = vmatpush1.bf16.msra.mxu1 %v1695_v34  ;;  %1143 = vmatprep.subr.bf16.mxu0 %v1700_v35  ;;  %v1229_v35 = vlaneseq (!%p1522_p7) }
  0x74   : > { %1184 = vmatprep.subr.bf16.mxu1 %v1703_v36 }
  0x75   : > { %v1230_v36 = vshrl.u32 (!%p1522_p7), %v1229_v35, 7 }
  0x76   : > { %1144 = vmatpush1.bf16.msra.mxu0 %v1698_v37  ;;  %v1227_v37 = vld [vmem:[%s2001_s2] sm:$0xf] (!%p1522_p7) }
  0x77   : > { %1185 = vmatpush1.bf16.msra.mxu1 %v1701_v38  ;;  %1145 = vmatprep.subr.bf16.mxu0 %v1706_v39  ;;  %v1253_v38 = vld [vmem:[%s2002_s3] sm:$0xf] (!%p1522_p7)  ;;  %v1231_v39 = vsub.s32 (!%p1522_p7), 0, %v1230_v36 }
  0x78   : > { %1186 = vmatprep.subr.bf16.mxu1 %v1709_v40  ;;  %v1235_v40 = vsub.s32 (!%p1522_p7), 1, %v1230_v36 }
  0x7a   : > { %1146 = vmatpush1.bf16.msra.mxu0 %v1704_v41  ;;  %v1239_v41 = vsub.s32 (!%p1522_p7), 2, %v1230_v36 }
  0x7b   : > { %1187 = vmatpush1.bf16.msra.mxu1 %v1707_v42  ;;  %1147 = vmatprep.subr.bf16.mxu0 %v1712_v43  ;;  %v1243_v42 = vsub.s32 (!%p1522_p7), 3, %v1230_v36 }
  0x7c   : > { %1188 = vmatprep.subr.bf16.mxu1 %v1715_v44 }
  0x7e   : > { %1148 = vmatpush1.bf16.msra.mxu0 %v1710_v45  ;;  %v1232_v45 = vrot.slane (!%p1522_p7), %v1227_v37, %v1231_v39 }
  0x7f   : > { %1189 = vmatpush1.bf16.msra.mxu1 %v1713_v46  ;;  %1149 = vmatprep.subr.bf16.mxu0 %v1718_v47  ;;  %v1236_v46 = vrot.slane (!%p1522_p7), %v1227_v37, %v1235_v40  ;;  %v1258_v47 = vrot.slane (!%p1522_p7), %v1253_v38, %v1231_v39 }
  0x80   : > { %1190 = vmatprep.subr.bf16.mxu1 %v1721_v48  ;;  %v1262_v48 = vrot.slane (!%p1522_p7), %v1253_v38, %v1235_v40 }
  0x82   : > { %1150 = vmatpush1.bf16.msra.mxu0 %v1716_v49 }
  0x83   : > { %1191 = vmatpush1.bf16.msra.mxu1 %v1719_v50  ;;  %1151 = vmatprep.subr.bf16.mxu0 %v1724_v51  ;;  %v1240_v51 = vrot.slane (!%p1522_p7), %v1227_v37, %v1239_v41 }
  0x84   : > { %1192 = vmatprep.subr.bf16.mxu1 %v1727_v52  ;;  %v1244_v52 = vrot.slane (!%p1522_p7), %v1227_v37, %v1243_v42 }
  0x86   : > { %1152 = vmatpush1.bf16.msra.mxu0 %v1722_v53  ;;  %v1266_v53 = vrot.slane (!%p1522_p7), %v1253_v38, %v1239_v41 }
  0x87   : > { %1193 = vmatpush1.bf16.msra.mxu1 %v1725_v54  ;;  %1153 = vmatprep.subr.bf16.mxu0 %v1730_v55  ;;  %v1270_v54 = vrot.slane (!%p1522_p7), %v1253_v38, %v1243_v42 }
  0x88   : > { %1194 = vmatprep.subr.bf16.mxu1 %v1733_v56 }
  0x8a   : > { %1154 = vmatpush1.bf16.msra.mxu0 %v1728_v57 }
  0x8b   : > { %1195 = vmatpush1.bf16.msra.mxu1 %v1731_v58  ;;  %1155 = vmatprep.subr.bf16.mxu0 %v1736_v59 }
  0x8c   : > { %1196 = vmatprep.subr.bf16.mxu1 %v1739_v60 }
  0x8e   : > { %1156 = vmatpush1.bf16.msra.mxu0 %v1734_v61 }
  0x8f   : > { %1197 = vmatpush1.bf16.msra.mxu1 %v1737_v62  ;;  %1157 = vmatprep.subr.bf16.mxu0 %v1742_v63 }
  0x90   : > { %1198 = vmatprep.subr.bf16.mxu1 %v1745_v0 }
  0x92   : > { %1158 = vmatpush1.bf16.msra.mxu0 %v1740_v1 }
  0x93   : > { %1199 = vmatpush1.bf16.msra.mxu1 %v1743_v2  ;;  %1159 = vmatprep.subr.bf16.mxu0 %v1748_v3 }
  0x94   : > { %1200 = vmatprep.subr.bf16.mxu1 %v1751_v4 }
  0x96   : > { %1160 = vmatpush1.bf16.msra.mxu0 %v1746_v5 }
  0x97   : > { %1201 = vmatpush1.bf16.msra.mxu1 %v1749_v6 }
  0x99   : > { %1162 = vmatmul.mubr.bf16.vlgmr.msra.gmra.mrb[4].mxu0 %v1906_v7  ;;  %v261_v7 = vld [vmem:[#allocation2 + $0x10] sm:$0xff] }
  0x9a   : > { %1203 = vmatmul.mubr.bf16.vlgmr.msra.gmra.mrb[4].mxu1 %v1908_v8 }
 0x12c   : > { %v1081_v9 = vpop.f32.mrb[0].mxu0 }
 0x12d   : > { %v1122_v11 = vpop.f32.mrb[0].mxu1  ;;  %v1083_v13 = vpop.f32.mrb[1].mxu0 }
 0x12e   : > { %v1123_v12 = vadd.f32 %v1122_v11, %v1081_v9  ;;  %v1124_v15 = vpop.f32.mrb[1].mxu1  ;;  %v1085_v17 = vpop.f32.mrb[2].mxu0 }
 0x12f   : > { %v1125_v16 = vadd.f32 %v1124_v15, %v1083_v13  ;;  %v1126_v18 = vpop.f32.mrb[2].mxu1  ;;  %v1086_v20 = vpop.f32.mrb[3].mxu0 }
 0x130   : > { %v1211_v19 = vadd.f32 %v1123_v12, %v259_v10  ;;  %v1127_v21 = vpop.f32.mrb[3].mxu1 }
 0x131   : > { %v1212_v22 = vadd.f32 %v1125_v16, %v260_v14 }
 0x132   : > { %1215 = vst [vmem:[#allocation2] sm:$0xff] %v1211_v19 }
 0x133   : > { %1216 = vst [vmem:[#allocation2 + $0x8] sm:$0xff] %v1212_v22 }
 0x139   : > { %v1223_v43 = vld [vmem:[#allocation2] sm:$0xff] (!%p1522_p7) }
 0x13a   : > { %v1224_v44 = vld [vmem:[#allocation2 + $0x8] sm:$0xff] (!%p1522_p7)  ;;  %v1249_v55 = vmul.f32 (!%p1522_p7), %v1232_v45, %v1223_v43 }
 0x13b   : > { %v1250_v56 = vmul.f32 (!%p1522_p7), %v1236_v46, %v1224_v44 }
 0x13c   : > { %v1275_v59 = vadd.f32 (!%p1522_p7), %v1258_v47, %v1249_v55 }
 0x13d   : > { %v1276_v60 = vadd.f32 (!%p1522_p7), %v1262_v48, %v1250_v56 }
 0x13e   : > { %v1279_v63 = vmax.f32 (!%p1522_p7), %v1275_v59, 0.0 }
 0x13f   : > { %v1280_v0 = vmax.f32 (!%p1522_p7), %v1276_v60, 0.0 }
 0x141   : > { %v1529_v3 = vpack.c.bf16 (!%p1522_p7), %v1280_v0, %v1279_v63 }
 0x143   : > { %1299 = vst [vmem:[%s2003_s4] sm:$0xff] (!%p1522_p7), %v1529_v3 }
 0x16c   : > { %v1163_v23 = vpop.f32.mrb[4].mxu0 }
 0x16d   : > { %v1204_v24 = vpop.f32.mrb[4].mxu1  ;;  %v1165_v25 = vpop.f32.mrb[5].mxu0  ;;  %1222 = sbr.rel (%p1522_p7) target bundleno = 388 (0x184), region = 44 }
 0x16e   : > { %v1205_v8 = vadd.f32 %v1204_v24, %v1163_v23  ;;  %v1206_v27 = vpop.f32.mrb[5].mxu1  ;;  %v1167_v29 = vpop.f32.mrb[6].mxu0 }
 0x16f   : > { %v1207_v28 = vadd.f32 %v1206_v27, %v1165_v25  ;;  %v1208_v30 = vpop.f32.mrb[6].mxu1  ;;  %v1168_v32 = vpop.f32.mrb[7].mxu0 }
 0x170   : > { %v1213_v31 = vadd.f32 %v1205_v8, %v261_v7  ;;  %v1209_v33 = vpop.f32.mrb[7].mxu1 }
 0x171   : > { %v1214_v34 = vadd.f32 %v1207_v28, %v262_v26 }
 0x172   : > { %1217 = vst [vmem:[#allocation2 + $0x10] sm:$0xff] %v1213_v31 }
 0x173   : > { %1218 = vst [vmem:[#allocation2 + $0x18] sm:$0xff] %v1214_v34 }
 0x179   : > { %v1225_v49 = vld [vmem:[#allocation2 + $0x10] sm:$0xff] }
 0x17a   : > { %v1226_v50 = vld [vmem:[#allocation2 + $0x18] sm:$0xff]  ;;  %v1251_v57 = vmul.f32 %v1240_v51, %v1225_v49 }
 0x17b   : > { %v1252_v58 = vmul.f32 %v1244_v52, %v1226_v50 }
 0x17c   : > { %v1277_v61 = vadd.f32 %v1266_v53, %v1251_v57 }
 0x17d   : > { %v1278_v62 = vadd.f32 %v1270_v54, %v1252_v58 }
 0x17e   : > { %v1281_v1 = vmax.f32 %v1277_v61, 0.0 }
 0x17f   : > { %v1282_v2 = vmax.f32 %v1278_v62, 0.0 }
 0x181   : > { %v1530_v4 = vpack.c.bf16 %v1282_v2, %v1281_v1 }
 0x183   : > { %1300 = vst [vmem:[%s2003_s4 + $0x8] sm:$0xff] %v1530_v4 }
 0x184 PF: > { %s14_s17 = sadd.s32 1, %s1774_s17   ;;  %s2004_s15 = smov %s1770_s16 }
 0x185   : > { %p11_p8 = scmp.ge.s32.totalorder %s14_s17, 11   ;;  %s2005_s16 = smov %s2007_s18 }
 0x187   :  { %13 = sbr.rel (!%p11_p8) target bundleno = 2 (0x2), region = 77 }

// kernel: resnet18_binary_forward.43
= control target key start
LH: loop header
LB: loop body
LE: loop exit
PB: predicated region body
PF: predicated region fallthrough
CT: control target
= control target key end

     0   :  { %v53_v24 = vlaneseq  ;;  %vm381_vm0 = vcmask 1041409   ;;  %vm384_vm1 = vcmask 1042434   ;;  %v1017_v46 = vmov 0.0   ;;  %s1305_s1 = inlined_call_operand.vmem [shape: bf16[512,128], index: 1, kind: input, shape index: {}]   ;;  %s1306_s0 = inlined_call_operand.vmem [shape: bf16[8,1,512], index: 0, kind: input, shape index: {}]   ;;  %s1307_s3 = inlined_call_operand.vmem [shape: bf16[128,128], index: 3, kind: input, shape index: {}]   ;;  %s1308_s2 = inlined_call_operand.vmem [shape: f32[1,128], index: 2, kind: input, shape index: {}]   ;;  %s1309_s4 = inlined_call_operand.vmem [shape: f32[1,128], index: 4, kind: input, shape index: {}]   ;;  %s1310_s5 = inlined_call_operand.vmem [shape: f32[8,128], index: 5, kind: output, shape index: {}]  }
   0x1   :  { %v977_v0 = vld [vmem:[%s1305_s1 + $0x40] sm:$0xff]   ;;  %v981_v4 = vld [vmem:[%s1305_s1 + $0x48] sm:$0xff]   ;;  %v985_v8 = vld [vmem:[%s1305_s1 + $0x50] sm:$0xff]   ;;  %vm387_vm2 = vcmask 1043459   ;;  %vm390_vm3 = vcmask 1044484   ;;  %vm393_vm4 = vcmask 1045509  }
   0x2   :  { %v978_v1 = vld [vmem:[%s1305_s1 + $0xc0] sm:$0xff]   ;;  %902 = vmatprep.subr.bf16.mxu0 %v977_v0  ;;  %v982_v5 = vld [vmem:[%s1305_s1 + $0xc8] sm:$0xff]   ;;  %v986_v9 = vld [vmem:[%s1305_s1 + $0xd0] sm:$0xff]   ;;  %v54_v29 = vshrl.u32 %v53_v24, 7  ;;  %vm396_vm5 = vcmask 1046534   ;;  %vm399_vm6 = vcmask 1047559  }
   0x3   :  { %v979_v2 = vld [vmem:[%s1305_s1] sm:$0xff]   ;;  %924 = vmatprep.subr.bf16.mxu1 %v978_v1  ;;  %v983_v6 = vld [vmem:[%s1305_s1 + $0x8] sm:$0xff]   ;;  %v987_v10 = vld [vmem:[%s1305_s1 + $0x10] sm:$0xff]   ;;  %vm1018_vm7 = vmmov 0  }
   0x4   :  { %v980_v3 = vld [vmem:[%s1305_s1 + $0x80] sm:$0xff]   ;;  %903 = vmatpush3.bf16.msra.mxu0 %v979_v2  ;;  %v984_v7 = vld [vmem:[%s1305_s1 + $0x88] sm:$0xff]   ;;  %v988_v11 = vld [vmem:[%s1305_s1 + $0x90] sm:$0xff]   ;;  %v59_v34 = vsub.s32 2, %v54_v29  ;;  %v1154_v38 = vsub.s32 6, %v54_v29  ;;  %v1156_v39 = vsub.s32 0, %v54_v29 }
   0x5   :  { %925 = vmatpush3.bf16.msra.mxu1 %v980_v3  ;;  %904 = vmatprep.subr.bf16.mxu0 %v981_v4  ;;  %v989_v12 = vld [vmem:[%s1305_s1 + $0x58] sm:$0xff]   ;;  %v993_v16 = vld [vmem:[%s1305_s1 + $0x60] sm:$0xff]   ;;  %v997_v20 = vld [vmem:[%s1305_s1 + $0x68] sm:$0xff]   ;;  %v1158_v40 = vsub.s32 4, %v54_v29 }
   0x6   :  { %926 = vmatprep.subr.bf16.mxu1 %v982_v5  ;;  %v990_v13 = vld [vmem:[%s1305_s1 + $0xd8] sm:$0xff]   ;;  %v994_v17 = vld [vmem:[%s1305_s1 + $0xe0] sm:$0xff]   ;;  %v998_v21 = vld [vmem:[%s1305_s1 + $0xe8] sm:$0xff]  }
   0x7   :  { %v991_v14 = vld [vmem:[%s1305_s1 + $0x18] sm:$0xff]   ;;  %v995_v18 = vld [vmem:[%s1305_s1 + $0x20] sm:$0xff]   ;;  %v999_v22 = vld [vmem:[%s1305_s1 + $0x28] sm:$0xff]  }
   0x8   :  { %905 = vmatpush3.bf16.msra.mxu0 %v983_v6  ;;  %v992_v15 = vld [vmem:[%s1305_s1 + $0x98] sm:$0xff]   ;;  %v996_v19 = vld [vmem:[%s1305_s1 + $0xa0] sm:$0xff]   ;;  %v1000_v23 = vld [vmem:[%s1305_s1 + $0xa8] sm:$0xff]  }
   0x9   :  { %927 = vmatpush3.bf16.msra.mxu1 %v984_v7  ;;  %906 = vmatprep.subr.bf16.mxu0 %v985_v8  ;;  %v1001_v25 = vld [vmem:[%s1305_s1 + $0x70] sm:$0xff]   ;;  %v1005_v30 = vld [vmem:[%s1305_s1 + $0x78] sm:$0xff]   ;;  %v884_v35 = vld [vmem:[%s1306_s0] sm:$0xff]  }
   0xa   :  { %928 = vmatprep.subr.bf16.mxu1 %v986_v9  ;;  %v1002_v26 = vld [vmem:[%s1305_s1 + $0xf0] sm:$0xff]   ;;  %v1006_v31 = vld [vmem:[%s1305_s1 + $0xf8] sm:$0xff]   ;;  %v899_v36 = vld [vmem:[%s1306_s0 + $0x8] sm:$0xff]   ;;  %v1160_v41 = vunpack.c.l.bf16 %v884_v35  ;;  %v1162_v42 = vunpack.c.h.bf16 %v884_v35 }
   0xb   :  { %v1003_v27 = vld [vmem:[%s1305_s1 + $0x30] sm:$0xff]   ;;  %v1007_v32 = vld [vmem:[%s1305_s1 + $0x38] sm:$0xff]   ;;  %v1164_v43 = vunpack.c.l.bf16 %v899_v36  ;;  %v1166_v44 = vunpack.c.h.bf16 %v899_v36 }
   0xc   :  { %907 = vmatpush3.bf16.msra.mxu0 %v987_v10  ;;  %v1004_v28 = vld [vmem:[%s1305_s1 + $0xb0] sm:$0xff]   ;;  %v1008_v33 = vld [vmem:[%s1305_s1 + $0xb8] sm:$0xff]   ;;  %v60_v51 = vrot.slane %v1160_v41, %v59_v34  ;;  %v76_v52 = vrot.slane %v1162_v42, %v59_v34 }
   0xd   :  { %929 = vmatpush3.bf16.msra.mxu1 %v988_v11  ;;  %908 = vmatprep.subr.bf16.mxu0 %v989_v12  ;;  %v900_v37 = vld [vmem:[%s1306_s0 + $0x10] sm:$0xff]   ;;  %v901_v45 = vld [vmem:[%s1306_s0 + $0x18] sm:$0xff]   ;;  %v92_v53 = vrot.slane %v1164_v43, %v59_v34  ;;  %v108_v54 = vrot.slane %v1166_v44, %v59_v34 }
   0xe   :  { %930 = vmatprep.subr.bf16.mxu1 %v990_v13  ;;  %v1172_v47 = vunpack.c.l.bf16 %v900_v37  ;;  %v1174_v48 = vunpack.c.h.bf16 %v900_v37  ;;  %v1176_v49 = vunpack.c.l.bf16 %v901_v45  ;;  %v1178_v50 = vunpack.c.h.bf16 %v901_v45 }
   0xf   :  { %v214_v59 = vpack.c.bf16 %v60_v51, %v60_v51  ;;  %v218_v60 = vpack.c.bf16 %v76_v52, %v76_v52  ;;  %v222_v61 = vpack.c.bf16 %v92_v53, %v92_v53  ;;  %v226_v62 = vpack.c.bf16 %v108_v54, %v108_v54 }
  0x10   :  { %909 = vmatpush3.bf16.msra.mxu0 %v991_v14  ;;  %v124_v55 = vrot.slane %v1172_v47, %v59_v34  ;;  %v140_v56 = vrot.slane %v1174_v48, %v59_v34  ;;  %v156_v57 = vrot.slane %v1176_v49, %v59_v34  ;;  %v172_v58 = vrot.slane %v1178_v50, %v59_v34 }
  0x11   :  { %931 = vmatpush3.bf16.msra.mxu1 %v992_v15  ;;  %910 = vmatprep.subr.bf16.mxu0 %v993_v16  ;;  %v349_v3 = vunpack.c.l.b16 %v214_v59  ;;  %v353_v4 = vunpack.c.l.b16 %v218_v60  ;;  %v357_v5 = vunpack.c.l.b16 %v222_v61  ;;  %v361_v6 = vunpack.c.l.b16 %v226_v62 }
  0x12   :  { %932 = vmatprep.subr.bf16.mxu1 %v994_v17  ;;  %v230_v63 = vpack.c.bf16 %v124_v55, %v124_v55  ;;  %v234_v0 = vpack.c.bf16 %v140_v56, %v140_v56  ;;  %v238_v1 = vpack.c.bf16 %v156_v57, %v156_v57  ;;  %v242_v2 = vpack.c.bf16 %v172_v58, %v172_v58 }
  0x13   :  { %v401_v11 = vrot.slane %v353_v4, 7  ;;  %v403_v12 = vrot.slane %v357_v5, 6  ;;  %v405_v13 = vrot.slane %v361_v6, 5  ;;  %v68_v14 = vrot.slane %v1160_v41, %v1154_v38 }
  0x14   :  { %911 = vmatpush3.bf16.msra.mxu0 %v995_v18  ;;  %v365_v7 = vunpack.c.l.b16 %v230_v63  ;;  %v369_v8 = vunpack.c.l.b16 %v234_v0  ;;  %v373_v9 = vunpack.c.l.b16 %v238_v1  ;;  %v377_v10 = vunpack.c.l.b16 %v242_v2 }
  0x15   :  { %933 = vmatpush3.bf16.msra.mxu1 %v996_v19  ;;  %912 = vmatprep.subr.bf16.mxu0 %v997_v20  ;;  %v402_v19 = vsel %vm381_vm0, %v401_v11, %v349_v3  ;;  %v84_v20 = vrot.slane %v1162_v42, %v1154_v38  ;;  %v132_v24 = vrot.slane %v1172_v47, %v1154_v38 }
  0x16   :  { %934 = vmatprep.subr.bf16.mxu1 %v998_v21  ;;  %v407_v15 = vrot.slane %v365_v7, 4  ;;  %v409_v16 = vrot.slane %v369_v8, 3  ;;  %v411_v17 = vrot.slane %v373_v9, 2  ;;  %v413_v18 = vrot.slane %v377_v10, 1 }
  0x17   :  { %v100_v21 = vrot.slane %v1164_v43, %v1154_v38  ;;  %v216_v29 = vpack.c.bf16 %v68_v14, %v68_v14  ;;  %v232_v34 = vpack.c.bf16 %v132_v24, %v132_v24  ;;  %v56_v5 = vrot.slane %v1160_v41, %v1156_v39 }
  0x18   :  { %913 = vmatpush3.bf16.msra.mxu0 %v999_v22  ;;  %v116_v22 = vrot.slane %v1166_v44, %v1154_v38  ;;  %v72_v7 = vrot.slane %v1162_v42, %v1156_v39  ;;  %v88_v8 = vrot.slane %v1164_v43, %v1156_v39  ;;  %v104_v9 = vrot.slane %v1166_v44, %v1156_v39 }
  0x19   :  { %935 = vmatpush3.bf16.msra.mxu1 %v1000_v23  ;;  %914 = vmatprep.subr.bf16.mxu0 %v1001_v25  ;;  %v404_v23 = vsel %vm384_vm1, %v403_v12, %v402_v19  ;;  %v148_v25 = vrot.slane %v1174_v48, %v1154_v38  ;;  %v351_v52 = vunpack.c.l.b16 %v216_v29  ;;  %v367_v56 = vunpack.c.l.b16 %v232_v34 }
  0x1a   :  { %936 = vmatprep.subr.bf16.mxu1 %v1002_v26  ;;  %v164_v26 = vrot.slane %v1176_v49, %v1154_v38  ;;  %v120_v11 = vrot.slane %v1172_v47, %v1156_v39  ;;  %v136_v12 = vrot.slane %v1174_v48, %v1156_v39  ;;  %v221_v19 = vpack.c.bf16 %v88_v8, %v88_v8 }
  0x1b   :  { %v236_v36 = vpack.c.bf16 %v148_v25, %v148_v25  ;;  %v435_v0 = vrot.slane %v367_v56, 4 }
  0x1c   :  { %915 = vmatpush3.bf16.msra.mxu0 %v1003_v27  ;;  %v406_v27 = vsel %vm387_vm2, %v405_v13, %v404_v23  ;;  %v240_v37 = vpack.c.bf16 %v164_v26, %v164_v26  ;;  %v152_v13 = vrot.slane %v1176_v49, %v1156_v39  ;;  %v233_v23 = vpack.c.bf16 %v136_v12, %v136_v12 }
  0x1d   :  { %937 = vmatpush3.bf16.msra.mxu1 %v1004_v28  ;;  %916 = vmatprep.subr.bf16.mxu0 %v1005_v30  ;;  %v180_v28 = vrot.slane %v1178_v50, %v1154_v38  ;;  %v220_v30 = vpack.c.bf16 %v84_v20, %v84_v20  ;;  %v371_v57 = vunpack.c.l.b16 %v236_v36  ;;  %v225_v20 = vpack.c.bf16 %v104_v9, %v104_v9 }
  0x1e   :  { %938 = vmatprep.subr.bf16.mxu1 %v1006_v31  ;;  %v408_v31 = vsel %vm390_vm3, %v407_v15, %v406_v27  ;;  %v375_v59 = vunpack.c.l.b16 %v240_v37  ;;  %v168_v15 = vrot.slane %v1178_v50, %v1156_v39  ;;  %v237_v24 = vpack.c.bf16 %v152_v13, %v152_v13 }
  0x1f   :  { %v410_v35 = vsel %vm393_vm4, %v409_v16, %v408_v31  ;;  %v244_v45 = vpack.c.bf16 %v180_v28, %v180_v28  ;;  %v355_v53 = vunpack.c.l.b16 %v220_v30  ;;  %v437_v1 = vrot.slane %v371_v57, 3 }
  0x20   :  { %917 = vmatpush3.bf16.msra.mxu0 %v1007_v32  ;;  %v224_v32 = vpack.c.bf16 %v100_v21, %v100_v21  ;;  %v412_v51 = vsel %vm396_vm5, %v411_v17, %v410_v35  ;;  %v439_v3 = vrot.slane %v375_v59, 2  ;;  %v213_v16 = vpack.c.bf16 %v56_v5, %v56_v5 }
  0x21   :  { %939 = vmatpush3.bf16.msra.mxu1 %v1008_v33  ;;  %955 = vmatprep.subr.bf16.mxu0 %v1017_v46  ;;  %v228_v33 = vpack.c.bf16 %v116_v22, %v116_v22  ;;  %v414_v55 = vsel %vm399_vm6, %v413_v18, %v412_v51  ;;  %v379_v60 = vunpack.c.l.b16 %v244_v45  ;;  %v429_v61 = vrot.slane %v355_v53, 7 }
  0x22   :  { %v359_v54 = vunpack.c.l.b16 %v224_v32  ;;  %v444_v58 = vpack.c.b16 %v414_v55, %v414_v55  ;;  %v217_v17 = vpack.c.bf16 %v72_v7, %v72_v7  ;;  %v229_v21 = vpack.c.bf16 %v120_v11, %v120_v11 }
  0x23   :  { %v363_v38 = vunpack.c.l.b16 %v228_v33  ;;  %v430_v2 = vsel %vm381_vm0, %v429_v61, %v351_v52  ;;  %v441_v4 = vrot.slane %v379_v60, 1  ;;  %v241_v25 = vpack.c.bf16 %v168_v15, %v168_v15 }
  0x24   :  { %v431_v62 = vrot.slane %v359_v54, 6  ;;  %675 = vmatprep.mubr.bf16.mxu0 %v444_v58  ;;  %v348_v27 = vunpack.c.l.b16 %v213_v16  ;;  %v352_v28 = vunpack.c.l.b16 %v217_v17  ;;  %v356_v29 = vunpack.c.l.b16 %v221_v19  ;;  %v1010_v19 = vld [vmem:[%s1307_s3 + $0x8] sm:$0xff]  }
  0x25   :  { %v433_v63 = vrot.slane %v363_v38, 5  ;;  %v360_v31 = vunpack.c.l.b16 %v225_v20  ;;  %v364_v39 = vunpack.c.l.b16 %v229_v21  ;;  %v368_v32 = vunpack.c.l.b16 %v233_v23 }
  0x26   :  { %v432_v6 = vsel %vm384_vm1, %v431_v62, %v430_v2  ;;  %v372_v33 = vunpack.c.l.b16 %v237_v24  ;;  %v376_v34 = vunpack.c.l.b16 %v241_v25  ;;  %v380_v35 = vrot.slane %v352_v28, 7 }
  0x27   :  { %v434_v10 = vsel %vm387_vm2, %v433_v63, %v432_v6  ;;  %v383_v36 = vrot.slane %v356_v29, 6  ;;  %v386_v37 = vrot.slane %v360_v31, 5  ;;  %v389_v45 = vrot.slane %v364_v39, 4  ;;  %v1013_v31 = vld [vmem:[%s1307_s3 + $0x20] sm:$0xff]   ;;  %v1014_v39 = vld [vmem:[%s1307_s3 + $0x28] sm:$0xff]  }
  0x28   :  { %v436_v14 = vsel %vm390_vm3, %v435_v0, %v434_v10  ;;  %v392_v51 = vrot.slane %v368_v32, 3  ;;  %v64_v52 = vrot.slane %v1160_v41, %v1158_v40  ;;  %v382_v53 = vsel %vm381_vm0, %v380_v35, %v348_v27  ;;  %v1015_v32 = vld [vmem:[%s1307_s3 + $0x30] sm:$0xff]  }
  0x29   :  { %v438_v18 = vsel %vm393_vm4, %v437_v1, %v436_v14  ;;  %v395_v54 = vrot.slane %v372_v33, 2  ;;  %v398_v55 = vrot.slane %v376_v34, 1  ;;  %v80_v38 = vrot.slane %v1162_v42, %v1158_v40  ;;  %v1016_v33 = vld [vmem:[%s1307_s3 + $0x38] sm:$0xff]  }
  0x2a   :  { %v440_v22 = vsel %vm396_vm5, %v439_v3, %v438_v18  ;;  %v385_v56 = vsel %vm384_vm1, %v383_v36, %v382_v53  ;;  %v96_v57 = vrot.slane %v1164_v43, %v1158_v40  ;;  %v112_v58 = vrot.slane %v1166_v44, %v1158_v40 }
  0x2b   :  { %v442_v26 = vsel %vm399_vm6, %v441_v4, %v440_v22  ;;  %v128_v59 = vrot.slane %v1172_v47, %v1158_v40  ;;  %v388_v41 = vsel %vm387_vm2, %v386_v37, %v385_v56  ;;  %v144_v60 = vrot.slane %v1174_v48, %v1158_v40 }
  0x2c   :  { %v446_v30 = vpack.c.b16 %v442_v26, %v442_v26  ;;  %v160_v61 = vrot.slane %v1176_v49, %v1158_v40  ;;  %v176_v42 = vrot.slane %v1178_v50, %v1158_v40  ;;  %v391_v62 = vsel %vm390_vm3, %v389_v45, %v388_v41  ;;  %v1009_v50 = vld [vmem:[%s1307_s3] sm:$0xff]   ;;  %v1011_v26 = vld [vmem:[%s1307_s3 + $0x10] sm:$0xff]  }
  0x2d   :  { %v215_v43 = vpack.c.bf16 %v64_v52, %v64_v52  ;;  %v219_v63 = vpack.c.bf16 %v80_v38, %v80_v38  ;;  %v223_v0 = vpack.c.bf16 %v96_v57, %v96_v57  ;;  %v394_v44 = vsel %vm393_vm4, %v392_v51, %v391_v62  ;;  %v841_v51 = vld [vmem:[%s1308_s2] ss:$0 sm:$0xff] }
  0x2e   :  { %715 = vmatprep.mubr.bf16.mxu1 %v446_v30  ;;  %v227_v1 = vpack.c.bf16 %v112_v58, %v112_v58  ;;  %v231_v47 = vpack.c.bf16 %v128_v59, %v128_v59  ;;  %v235_v2 = vpack.c.bf16 %v144_v60, %v144_v60  ;;  %v397_v3 = vsel %vm396_vm5, %v395_v54, %v394_v44  ;;  %v1012_v30 = vld [vmem:[%s1307_s3 + $0x18] sm:$0xff]  }
  0x2f   :  { %v239_v4 = vpack.c.bf16 %v160_v61, %v160_v61  ;;  %v243_v48 = vpack.c.bf16 %v176_v42, %v176_v42  ;;  %v350_v5 = vunpack.c.l.b16 %v215_v43  ;;  %v400_v49 = vsel %vm399_vm6, %v398_v55, %v397_v3 }
  0x30   :  { %v354_v6 = vunpack.c.l.b16 %v219_v63  ;;  %v358_v7 = vunpack.c.l.b16 %v223_v0  ;;  %v362_v40 = vunpack.c.l.b16 %v227_v1  ;;  %v443_v8 = vpack.c.b16 %v400_v49, %v400_v49 }
  0x31   :  { %v366_v9 = vunpack.c.l.b16 %v231_v47  ;;  %v370_v10 = vunpack.c.l.b16 %v235_v2  ;;  %v374_v11 = vunpack.c.l.b16 %v239_v4  ;;  %v378_v12 = vunpack.c.l.b16 %v243_v48 }
  0x32   :  { %v415_v13 = vrot.slane %v354_v6, 7  ;;  %v417_v14 = vrot.slane %v358_v7, 6  ;;  %v419_v15 = vrot.slane %v362_v40, 5  ;;  %676 = vmatmul.mubr.bf16.vlgmr.msra.gmra.mrb[0].mxu0 %v443_v8 }
  0x33   :  { %v421_v16 = vrot.slane %v366_v9, 4  ;;  %v423_v18 = vrot.slane %v370_v10, 3  ;;  %956 = vmatpush3.bf16.msra.mxu0 %v1009_v50  ;;  %v425_v21 = vrot.slane %v374_v11, 2  ;;  %v427_v23 = vrot.slane %v378_v12, 1  ;;  %971 = vmatprep.mubr.msk.bf16.mxu0 %vm1018_vm7, %v1017_v46 }
  0x34   :  { %v416_v17 = vsel %vm381_vm0, %v415_v13, %v350_v5  ;;  %957 = vmatprep.subr.bf16.mxu0 %v1017_v46 }
  0x35   :  { %v418_v20 = vsel %vm384_vm1, %v417_v14, %v416_v17 }
  0x36   :  { %v420_v22 = vsel %vm387_vm2, %v419_v15, %v418_v20 }
  0x37   :  { %v422_v24 = vsel %vm390_vm3, %v421_v16, %v420_v22  ;;  %958 = vmatpush3.bf16.msra.mxu0 %v1010_v19 }
  0x38   :  { %v424_v25 = vsel %vm393_vm4, %v423_v18, %v422_v24  ;;  %959 = vmatprep.subr.bf16.mxu0 %v1017_v46 }
  0x39   :  { %v426_v27 = vsel %vm396_vm5, %v425_v21, %v424_v25 }
  0x3a   :  { %v428_v28 = vsel %vm399_vm6, %v427_v23, %v426_v27 }
  0x3b   :  { %v445_v29 = vpack.c.b16 %v428_v28, %v428_v28  ;;  %960 = vmatpush3.bf16.msra.mxu0 %v1011_v26 }
  0x3c   :  { %961 = vmatprep.subr.bf16.mxu0 %v1017_v46 }
  0x3d   :  { %716 = vmatmul.mubr.bf16.vlgmr.msra.gmra.mrb[0].mxu1 %v445_v29 }
  0x3f   :  { %962 = vmatpush3.bf16.msra.mxu0 %v1012_v30 }
  0x40   :  { %963 = vmatprep.subr.bf16.mxu0 %v1017_v46 }
  0x43   :  { %964 = vmatpush3.bf16.msra.mxu0 %v1013_v31 }
  0x44   :  { %965 = vmatprep.subr.bf16.mxu0 %v1017_v46 }
  0x47   :  { %966 = vmatpush3.bf16.msra.mxu0 %v1014_v39 }
  0x48   :  { %967 = vmatprep.subr.bf16.mxu0 %v1017_v46 }
  0x4b   :  { %968 = vmatpush3.bf16.msra.mxu0 %v1015_v32 }
  0x4c   :  { %969 = vmatprep.subr.bf16.mxu0 %v1017_v46  ;;  %v874_v46 = vld [vmem:[%s1309_s4] ss:$0 sm:$0xff] }
  0x4f   :  { %970 = vmatpush3.bf16.msra.mxu0 %v1016_v33 }
 0x105   :  { %v918_v34 = vpop.f32.mrb[0].mxu0 }
 0x106   :  { %v919_v35 = vpop.f32.mrb[1].mxu0 }
 0x107   :  { %v920_v36 = vadd.f32 %v919_v35, %v918_v34  ;;  %v921_v37 = vpop.f32.mrb[2].mxu0 }
 0x108   :  { %v922_v45 = vpop.f32.mrb[3].mxu0 }
 0x109   :  { %v678_v53 = vadd.f32 %v920_v36, %v841_v51 }
 0x110   :  { %v940_v52 = vpop.f32.mrb[0].mxu1 }
 0x111   :  { %v941_v54 = vpop.f32.mrb[1].mxu1 }
 0x112   :  { %v942_v55 = vadd.f32 %v941_v54, %v940_v52  ;;  %v943_v38 = vpop.f32.mrb[2].mxu1 }
 0x113   :  { %v944_v56 = vpop.f32.mrb[3].mxu1 }
 0x114   :  { %v718_v57 = vadd.f32 %v942_v55, %v678_v53 }
 0x116   :  { %v723_v58 = vmax.f32 %v718_v57, 0.0 }
 0x118   :  { %v724_v59 = vpack.c.bf16 %v723_v58, %v723_v58 }
 0x11a   :  { %972 = vmatmul.mubr.bf16.vlgmr.msra.gmra.mrb[4].mxu0 %v724_v59 }
 0x1ed   :  { %v830_v41 = vpop.f32.mrb[4].mxu0 }
 0x1ee   :  { %v831_v60 = vadd.f32 %v874_v46, %v830_v41  ;;  %v973_v61 = vpop.f32.mrb[5].mxu0 }
 0x1ef   :  { %v833_v42 = vpop.f32.mrb[6].mxu0 }
 0x1f0   :  { %836 = vst [vmem:[%s1310_s5] sm:$0xff] %v831_v60  ;;  %v974_v62 = vpop.f32.mrb[7].mxu0 }

</bundles_post_ra>
